<compile_context>
chip_gen: v7x
topology: tpu7x:2x2x1
jax: 0.10.0
libtpu: 0.0.40
codegen_flags: <defaults>
</compile_context>

<pallas_src>
import functools
import math

import jax
import jax.numpy as jnp
from jax.experimental import pallas as pl
from jax.experimental.pallas import tpu as pltpu

# ---- config (bert-base geometry for hidden sizes; reduced depth/vocab) ----
HIDDEN = 768
NUM_HEADS = 12
HEAD_DIM = HIDDEN // NUM_HEADS          # 64
INTERMEDIATE = 3072
NUM_LAYERS = 2                          # bert-base has 12
VOCAB = 1000                            # bert-base has 30522
MAX_POS = 64
NUM_CLASSES = 3
LN_EPS = 1e-12
CLS_PAD = 128                           # classifier head padded to a lane-dense width


def _default_vmem_limit():
    """Generation-aware scoped-VMEM budget (~half of physical VMEM)."""
    try:
        cap = pltpu.get_tpu_info().vmem_capacity_bytes
    except Exception:                   # noqa: BLE001 - fall back to a safe default
        cap = 128 * 1024 * 1024
    return int(min(96 * 1024 * 1024, max(32 * 1024 * 1024, cap // 2)))


_VMEM_LIMIT = _default_vmem_limit()


def _pick_block(dim, preferred):
    b = min(preferred, dim)
    return b if dim % b == 0 else dim


def _gelu(x):
    c = math.sqrt(2.0 / math.pi)
    return 0.5 * x * (1.0 + jnp.tanh(c * (x + 0.044715 * x * x * x)))


def _layernorm_f32(y, gamma, beta):
    mu = jnp.mean(y, axis=-1, keepdims=True)
    d = y - mu
    var = jnp.mean(d * d, axis=-1, keepdims=True)
    inv = jax.lax.rsqrt(var + LN_EPS)
    return d * inv * gamma + beta


# ---------------- Pallas kernels ----------------

def _linear_kernel(x_ref, w_ref, b_ref, o_ref, acc_ref, *, activation, n_k):
    """Tiled y = act(x @ W + b). grid = (m_blocks, n_blocks, k_blocks)."""
    k = pl.program_id(2)

    @pl.when(k == 0)
    def _():
        acc_ref[...] = jnp.zeros_like(acc_ref)

    acc_ref[...] += jnp.dot(x_ref[...], w_ref[...],
                            preferred_element_type=jnp.float32)

    @pl.when(k == n_k - 1)
    def _():
        y = acc_ref[...] + b_ref[...]              # f32 epilogue
        if activation == "gelu":
            y = _gelu(y)
        o_ref[...] = y.astype(o_ref.dtype)


def linear(x, w, b, activation="none", block_m=256, block_n=768, block_k=768):
    """x: [M, K] bf16, w: [K, N] bf16, b: [N] f32 -> [M, N] bf16."""
    M, K = x.shape
    Kw, N = w.shape
    assert K == Kw
    bm = _pick_block(M, block_m)
    bn = _pick_block(N, block_n)
    bk = _pick_block(K, block_k)
    grid = (M // bm, N // bn, K // bk)
    return pl.pallas_call(
        functools.partial(_linear_kernel, activation=activation, n_k=grid[2]),
        out_shape=jax.ShapeDtypeStruct((M, N), jnp.bfloat16),
        grid=grid,
        in_specs=[
            pl.BlockSpec((bm, bk), lambda i, j, k: (i, k)),
            pl.BlockSpec((bk, bn), lambda i, j, k: (k, j)),
            pl.BlockSpec((1, bn), lambda i, j, k: (0, j)),
        ],
        out_specs=pl.BlockSpec((bm, bn), lambda i, j, k: (i, j)),
        scratch_shapes=[pltpu.VMEM((bm, bn), jnp.float32)],
        compiler_params=pltpu.CompilerParams(
            dimension_semantics=("parallel", "parallel", "arbitrary"),
            vmem_limit_bytes=_VMEM_LIMIT),
    )(x, w, b.reshape(1, N))


def _linear_ln_kernel(x_ref, w_ref, b_ref, r_ref, g_ref, bb_ref, o_ref, acc_ref, *, n_k):
    """Tiled x @ W, epilogue = +bias +residual then LayerNorm. grid = (m_blocks, k_blocks)."""
    k = pl.program_id(1)

    @pl.when(k == 0)
    def _():
        acc_ref[...] = jnp.zeros_like(acc_ref)

    acc_ref[...] += jnp.dot(x_ref[...], w_ref[...],
                            preferred_element_type=jnp.float32)

    @pl.when(k == n_k - 1)
    def _():
        y = acc_ref[...] + b_ref[...] + r_ref[...].astype(jnp.float32)
        o_ref[...] = _layernorm_f32(y, g_ref[...], bb_ref[...]).astype(o_ref.dtype)


def linear_add_ln(x, w, b, resid, gamma, beta, block_m=256, block_k=768):
    """LayerNorm(x @ W + b + resid); x: [M, K] bf16, w: [K, N] bf16, resid: [M, N] bf16."""
    M, K = x.shape
    Kw, N = w.shape
    assert K == Kw
    bm = _pick_block(M, block_m)
    bk = _pick_block(K, block_k)
    grid = (M // bm, K // bk)
    return pl.pallas_call(
        functools.partial(_linear_ln_kernel, n_k=grid[1]),
        out_shape=jax.ShapeDtypeStruct((M, N), jnp.bfloat16),
        grid=grid,
        in_specs=[
            pl.BlockSpec((bm, bk), lambda i, k: (i, k)),
            pl.BlockSpec((bk, N), lambda i, k: (k, 0)),
            pl.BlockSpec((1, N), lambda i, k: (0, 0)),
            pl.BlockSpec((bm, N), lambda i, k: (i, 0)),
            pl.BlockSpec((1, N), lambda i, k: (0, 0)),
            pl.BlockSpec((1, N), lambda i, k: (0, 0)),
        ],
        out_specs=pl.BlockSpec((bm, N), lambda i, k: (i, 0)),
        scratch_shapes=[pltpu.VMEM((bm, N), jnp.float32)],
        compiler_params=pltpu.CompilerParams(
            dimension_semantics=("parallel", "arbitrary"),
            vmem_limit_bytes=_VMEM_LIMIT),
    )(x, w, b.reshape(1, N), resid, gamma.reshape(1, N), beta.reshape(1, N))


def _emb_ln_kernel(we_ref, pe_ref, te_ref, g_ref, b_ref, o_ref):
    """Fused embedding sum (word + pos + type) + LayerNorm for one batch element."""
    y = we_ref[0] + pe_ref[0] + te_ref[0]                      # [S, H] f32
    o_ref[0] = _layernorm_f32(y, g_ref[...], b_ref[...]).astype(o_ref.dtype)


def embed_layernorm(we, pe, te, gamma, beta):
    """we: [B, S, H] f32 (gathered word emb), pe: [1, S, H], te: [1, 1, H] -> [B*S, H] bf16."""
    B, S, H = we.shape
    out = pl.pallas_call(
        _emb_ln_kernel,
        out_shape=jax.ShapeDtypeStruct((B, S, H), jnp.bfloat16),
        grid=(B,),
        in_specs=[
            pl.BlockSpec((1, S, H), lambda b: (b, 0, 0)),
            pl.BlockSpec((1, S, H), lambda b: (0, 0, 0)),
            pl.BlockSpec((1, 1, H), lambda b: (0, 0, 0)),
            pl.BlockSpec((1, H), lambda b: (0, 0)),
            pl.BlockSpec((1, H), lambda b: (0, 0)),
        ],
        out_specs=pl.BlockSpec((1, S, H), lambda b: (b, 0, 0)),
        compiler_params=pltpu.CompilerParams(
            dimension_semantics=("parallel",), vmem_limit_bytes=_VMEM_LIMIT),
    )(we, pe, te, gamma.reshape(1, H), beta.reshape(1, H))
    return out.reshape(B * S, H)


def _attn_kernel(qkv_ref, m_ref, o_ref):
    """All heads of one batch element; Q/K/V split from the fused QKV block in VMEM."""
    qkv = qkv_ref[0]                               # [S, 3*HIDDEN] bf16, packed [Q | K | V]
    m = m_ref[0]                                   # [1, S] additive mask (f32)
    scale = 1.0 / math.sqrt(HEAD_DIM)
    ctx = []
    for h in range(NUM_HEADS):
        q = qkv[:, h * HEAD_DIM:(h + 1) * HEAD_DIM]                              # [S, D]
        k = qkv[:, HIDDEN + h * HEAD_DIM:HIDDEN + (h + 1) * HEAD_DIM]            # [S, D]
        v = qkv[:, 2 * HIDDEN + h * HEAD_DIM:2 * HIDDEN + (h + 1) * HEAD_DIM]    # [S, D]
        s = jax.lax.dot_general(q, k, (((1,), (1,)), ((), ())),
                                preferred_element_type=jnp.float32) * scale + m  # [S, S]
        s = s - jnp.max(s, axis=-1, keepdims=True)
        p = jnp.exp(s)
        p = p * pl.reciprocal(jnp.sum(p, axis=-1, keepdims=True), approx=True)
        ctx.append(jnp.dot(p.astype(qkv.dtype), v, preferred_element_type=jnp.float32))
    # single lane-dense [S, HIDDEN] store, already in [B*S, HIDDEN] token layout
    o_ref[0] = jnp.concatenate(ctx, axis=-1).astype(o_ref.dtype)


def attention(qkv3, add_mask):
    """qkv3: [B, S, 3*HIDDEN] bf16; add_mask: [B, 1, S] additive (0 or -1e9) -> [B, S, HIDDEN]."""
    # TODO(synk): for production seq lengths (>=128) restructure flash-style with lane-dense
    #             KV tiles; at S=8 all heads of one batch element fit in one grid step.
    B, S, _ = qkv3.shape
    return pl.pallas_call(
        _attn_kernel,
        out_shape=jax.ShapeDtypeStruct((B, S, HIDDEN), jnp.bfloat16),
        grid=(B,),
        in_specs=[
            pl.BlockSpec((1, S, 3 * HIDDEN), lambda b: (b, 0, 0)),
            pl.BlockSpec((1, 1, S), lambda b: (b, 0, 0)),
        ],
        out_specs=pl.BlockSpec((1, S, HIDDEN), lambda b: (b, 0, 0)),
        compiler_params=pltpu.CompilerParams(
            dimension_semantics=("parallel",), vmem_limit_bytes=_VMEM_LIMIT),
    )(qkv3, add_mask)


def _pool_cls_kernel(x_ref, wp_ref, bp_ref, wc_ref, bc_ref, o_ref):
    """Fused pooler (dense + tanh on [CLS]) + classifier head (class dim padded to 128)."""
    pooled = jnp.tanh(jnp.dot(x_ref[...], wp_ref[...],
                              preferred_element_type=jnp.float32) + bp_ref[...])
    o_ref[...] = jnp.dot(pooled.astype(jnp.bfloat16), wc_ref[...],
                         preferred_element_type=jnp.float32) + bc_ref[...]


def pooler_classifier(cls_tokens, wp, bp, wc, bc):
    """cls_tokens: [B, H] bf16 -> logits [B, num_classes] f32."""
    B, H = cls_tokens.shape
    NC = wc.shape[1]
    wc_pad = jnp.pad(wc, ((0, 0), (0, CLS_PAD - NC)))
    bc_pad = jnp.pad(bc, ((0, CLS_PAD - NC),))
    out = pl.pallas_call(
        _pool_cls_kernel,
        out_shape=jax.ShapeDtypeStruct((B, CLS_PAD), jnp.float32),
        grid=(1,),
        in_specs=[
            pl.BlockSpec((B, H), lambda i: (0, 0)),
            pl.BlockSpec((H, H), lambda i: (0, 0)),
            pl.BlockSpec((1, H), lambda i: (0, 0)),
            pl.BlockSpec((H, CLS_PAD), lambda i: (0, 0)),
            pl.BlockSpec((1, CLS_PAD), lambda i: (0, 0)),
        ],
        out_specs=pl.BlockSpec((B, CLS_PAD), lambda i: (0, 0)),
        compiler_params=pltpu.CompilerParams(
            dimension_semantics=("arbitrary",), vmem_limit_bytes=_VMEM_LIMIT),
    )(cls_tokens, wp, bp.reshape(1, H), wc_pad, bc_pad.reshape(1, CLS_PAD))
    return out[:, :NC]


# ---------------- parameter init (deterministic, synthetic) ----------------

def init_params(key, num_classes):
    keys = iter(jax.random.split(key, 256))

    def dense(fan_in, fan_out):
        w = 0.02 * jax.random.normal(next(keys), (fan_in, fan_out), jnp.float32)
        return w.astype(jnp.bfloat16), jnp.zeros((fan_out,), jnp.float32)

    params = {
        "word_emb": 0.02 * jax.random.normal(next(keys), (VOCAB, HIDDEN), jnp.float32),
        "pos_emb": 0.02 * jax.random.normal(next(keys), (MAX_POS, HIDDEN), jnp.float32),
        "type_emb": 0.02 * jax.random.normal(next(keys), (2, HIDDEN), jnp.float32),
        "emb_ln_g": jnp.ones((HIDDEN,), jnp.float32),
        "emb_ln_b": jnp.zeros((HIDDEN,), jnp.float32),
        "layers": [],
    }
    for _ in range(NUM_LAYERS):
        wqkv, bqkv = dense(HIDDEN, 3 * HIDDEN)     # fused Q|K|V projection
        wo, bo = dense(HIDDEN, HIDDEN)
        w1, b1 = dense(HIDDEN, INTERMEDIATE)
        w2, b2 = dense(INTERMEDIATE, HIDDEN)
        params["layers"].append({
            "wqkv": wqkv, "bqkv": bqkv, "wo": wo, "bo": bo,
            "ln1_g": jnp.ones((HIDDEN,), jnp.float32),
            "ln1_b": jnp.zeros((HIDDEN,), jnp.float32),
            "w1": w1, "b1": b1, "w2": w2, "b2": b2,
            "ln2_g": jnp.ones((HIDDEN,), jnp.float32),
            "ln2_b": jnp.zeros((HIDDEN,), jnp.float32),
        })
    params["pool_w"], params["pool_b"] = dense(HIDDEN, HIDDEN)
    params["cls_w"], params["cls_b"] = dense(HIDDEN, num_classes)
    return params


# ---------------- forward pass (BertClassifier.forward) ----------------

def bert_classifier_forward(params, input_ids, attention_mask):
    B, S = input_ids.shape
    # HF-style extended attention mask: 0 for keep, large negative for masked key positions.
    add_mask = ((1.0 - attention_mask.astype(jnp.float32)) * -1e9).reshape(B, 1, S)

    # --- embeddings: gather is XLA glue; sum + LayerNorm fused into one Pallas kernel ---
    we = jnp.take(params["word_emb"], input_ids, axis=0)            # [B, S, H] f32
    pe = params["pos_emb"][:S][None, :, :]                          # [1, S, H]
    te = params["type_emb"][0].reshape(1, 1, HIDDEN)                # token_type_ids = 0
    h = embed_layernorm(we, pe, te, params["emb_ln_g"], params["emb_ln_b"])   # [B*S, H] bf16

    # --- encoder layers ---
    for layer in params["layers"]:
        # fused QKV projection: [B*S, 3*H] bf16; consumed directly by the attention kernel.
        qkv = linear(h, layer["wqkv"], layer["bqkv"])
        ctx = attention(qkv.reshape(B, S, 3 * HIDDEN), add_mask)    # [B, S, H] bf16
        # attention output projection fused with bias + residual + LayerNorm
        h = linear_add_ln(ctx.reshape(B * S, HIDDEN), layer["wo"], layer["bo"], h,
                          layer["ln1_g"], layer["ln1_b"])
        # FFN: GELU matmul, then output matmul fused with bias + residual + LayerNorm
        inter = linear(h, layer["w1"], layer["b1"], activation="gelu")
        h = linear_add_ln(inter, layer["w2"], layer["b2"], h,
                          layer["ln2_g"], layer["ln2_b"])

    # --- pooler (dense + tanh on [CLS]) fused with classifier head ---
    cls_tok = h.reshape(B, S, HIDDEN)[:, 0, :]                      # [B, H] bf16
    logits = pooler_classifier(cls_tok, params["pool_w"], params["pool_b"],
                               params["cls_w"], params["cls_b"])
    return logits                                                   # [B, num_classes] f32


if __name__ == "__main__":
    B, S = 2, 8
    root = jax.random.PRNGKey(0)
    k_params, k_ids = jax.random.split(root)

    params = init_params(k_params, NUM_CLASSES)
    input_ids = jax.random.randint(k_ids, (B, S), 0, VOCAB, dtype=jnp.int32)
    attention_mask = jnp.array(
        [[1, 1, 1, 1, 1, 1, 1, 1],
         [1, 1, 1, 1, 1, 0, 0, 0]], dtype=jnp.int32)

    fwd = jax.jit(bert_classifier_forward)
    logits = fwd(params, input_ids, attention_mask)
    jax.block_until_ready(logits)
    assert logits.shape == (B, NUM_CLASSES) and logits.dtype == jnp.float32
    print("KERNEL_OK")
</pallas_src>

<mosaic_0001>
module attributes {stable_mosaic.version = 11 : i64} {
  func.func @_attn_kernel(%arg0: i32, %arg1: memref<1x8x2304xbf16, #tpu.memory_space<vmem>>, %arg2: memref<1x1x8xf32, #tpu.memory_space<vmem>>, %arg3: memref<1x8x768xbf16, #tpu.memory_space<vmem>>) attributes {dimension_semantics = [#tpu.dimension_semantics<parallel>], iteration_bounds = array<i64: 2>, scalar_prefetch = 0 : i64, scratch_operands = 0 : i64, tpu.core_type = #tpu.core_type<tc>, window_params = [{transform_indices = @transform_0, window_bounds = array<i64: 1, 8, 2304>}, {transform_indices = @transform_1, window_bounds = array<i64: 1, 1, 8>}, {transform_indices = @transform_2, window_bounds = array<i64: 1, 8, 768>}]} {
    %c0 = arith.constant 0 : index
    %c0_0 = arith.constant 0 : index
    %c0_1 = arith.constant 0 : index
    %0 = vector.load %arg1[%c0, %c0_0, %c0_1] : memref<1x8x2304xbf16, #tpu.memory_space<vmem>>, vector<1x8x2304xbf16>
    %1 = vector.shape_cast %0 : vector<1x8x2304xbf16> to vector<8x2304xbf16>
    %c0_2 = arith.constant 0 : index
    %c0_3 = arith.constant 0 : index
    %c0_4 = arith.constant 0 : index
    %2 = vector.load %arg2[%c0_2, %c0_3, %c0_4] : memref<1x1x8xf32, #tpu.memory_space<vmem>>, vector<1x1x8xf32>
    %3 = vector.shape_cast %2 : vector<1x1x8xf32> to vector<1x8xf32>
    %4 = vector.extract_strided_slice %1 {offsets = [0, 0], sizes = [8, 64], strides = [1, 1]} : vector<8x2304xbf16> to vector<8x64xbf16>
    %5 = vector.extract_strided_slice %1 {offsets = [0, 768], sizes = [8, 64], strides = [1, 1]} : vector<8x2304xbf16> to vector<8x64xbf16>
    %6 = vector.extract_strided_slice %1 {offsets = [0, 1536], sizes = [8, 64], strides = [1, 1]} : vector<8x2304xbf16> to vector<8x64xbf16>
    %cst = arith.constant dense<0.000000e+00> : vector<8x8xf32>
    %7 = tpu.matmul %4, %5, %cst {dimension_numbers = #tpu.dot_dimension_numbers<[1], [1], [0], [0], [0, 0, 1, 0], [], []>} : vector<8x64xbf16>, vector<8x64xbf16>, vector<8x8xf32> -> vector<8x8xf32>
    %cst_5 = arith.constant 1.250000e-01 : f32
    %8 = vector.broadcast %cst_5 : f32 to vector<8x8xf32>
    %9 = arith.mulf %7, %8 : vector<8x8xf32>
    %10 = vector.broadcast %3 : vector<1x8xf32> to vector<8x8xf32>
    %11 = arith.addf %9, %10 : vector<8x8xf32>
    %cst_6 = arith.constant dense<0xFF800000> : vector<8xf32>
    %12 = vector.multi_reduction <maximumf>, %11, %cst_6 [1] : vector<8x8xf32> to vector<8xf32>
    %13 = vector.shape_cast %12 : vector<8xf32> to vector<8x1xf32>
    %14 = vector.broadcast %13 : vector<8x1xf32> to vector<8x8xf32>
    %15 = arith.subf %11, %14 : vector<8x8xf32>
    %16 = math.exp %15 : vector<8x8xf32>
    %cst_7 = arith.constant dense<0.000000e+00> : vector<8xf32>
    %17 = vector.multi_reduction <add>, %16, %cst_7 [1] : vector<8x8xf32> to vector<8xf32>
    %18 = vector.shape_cast %17 : vector<8xf32> to vector<8x1xf32>
    %19 = tpu.reciprocal %18 {approx = true} : vector<8x1xf32> -> vector<8x1xf32>
    %20 = vector.broadcast %19 : vector<8x1xf32> to vector<8x8xf32>
    %21 = arith.mulf %16, %20 : vector<8x8xf32>
    %22 = arith.truncf %21 : vector<8x8xf32> to vector<8x8xbf16>
    %cst_8 = arith.constant dense<0.000000e+00> : vector<8x64xf32>
    %23 = tpu.matmul %22, %6, %cst_8 {dimension_numbers = #tpu.dot_dimension_numbers<[1], [0], [0], [1], [0, 0, 1, 1], [], []>} : vector<8x8xbf16>, vector<8x64xbf16>, vector<8x64xf32> -> vector<8x64xf32>
    %24 = vector.extract_strided_slice %1 {offsets = [0, 64], sizes = [8, 64], strides = [1, 1]} : vector<8x2304xbf16> to vector<8x64xbf16>
    %25 = vector.extract_strided_slice %1 {offsets = [0, 832], sizes = [8, 64], strides = [1, 1]} : vector<8x2304xbf16> to vector<8x64xbf16>
    %26 = vector.extract_strided_slice %1 {offsets = [0, 1600], sizes = [8, 64], strides = [1, 1]} : vector<8x2304xbf16> to vector<8x64xbf16>
    %cst_9 = arith.constant dense<0.000000e+00> : vector<8x8xf32>
    %27 = tpu.matmul %24, %25, %cst_9 {dimension_numbers = #tpu.dot_dimension_numbers<[1], [1], [0], [0], [0, 0, 1, 0], [], []>} : vector<8x64xbf16>, vector<8x64xbf16>, vector<8x8xf32> -> vector<8x8xf32>
    %cst_10 = arith.constant 1.250000e-01 : f32
    %28 = vector.broadcast %cst_10 : f32 to vector<8x8xf32>
    %29 = arith.mulf %27, %28 : vector<8x8xf32>
    %30 = vector.broadcast %3 : vector<1x8xf32> to vector<8x8xf32>
    %31 = arith.addf %29, %30 : vector<8x8xf32>
    %cst_11 = arith.constant dense<0xFF800000> : vector<8xf32>
    %32 = vector.multi_reduction <maximumf>, %31, %cst_11 [1] : vector<8x8xf32> to vector<8xf32>
    %33 = vector.shape_cast %32 : vector<8xf32> to vector<8x1xf32>
    %34 = vector.broadcast %33 : vector<8x1xf32> to vector<8x8xf32>
    %35 = arith.subf %31, %34 : vector<8x8xf32>
    %36 = math.exp %35 : vector<8x8xf32>
    %cst_12 = arith.constant dense<0.000000e+00> : vector<8xf32>
    %37 = vector.multi_reduction <add>, %36, %cst_12 [1] : vector<8x8xf32> to vector<8xf32>
    %38 = vector.shape_cast %37 : vector<8xf32> to vector<8x1xf32>
    %39 = tpu.reciprocal %38 {approx = true} : vector<8x1xf32> -> vector<8x1xf32>
    %40 = vector.broadcast %39 : vector<8x1xf32> to vector<8x8xf32>
    %41 = arith.mulf %36, %40 : vector<8x8xf32>
    %42 = arith.truncf %41 : vector<8x8xf32> to vector<8x8xbf16>
    %cst_13 = arith.constant dense<0.000000e+00> : vector<8x64xf32>
    %43 = tpu.matmul %42, %26, %cst_13 {dimension_numbers = #tpu.dot_dimension_numbers<[1], [0], [0], [1], [0, 0, 1, 1], [], []>} : vector<8x8xbf16>, vector<8x64xbf16>, vector<8x64xf32> -> vector<8x64xf32>
    %44 = vector.extract_strided_slice %1 {offsets = [0, 128], sizes = [8, 64], strides = [1, 1]} : vector<8x2304xbf16> to vector<8x64xbf16>
    %45 = vector.extract_strided_slice %1 {offsets = [0, 896], sizes = [8, 64], strides = [1, 1]} : vector<8x2304xbf16> to vector<8x64xbf16>
    %46 = vector.extract_strided_slice %1 {offsets = [0, 1664], sizes = [8, 64], strides = [1, 1]} : vector<8x2304xbf16> to vector<8x64xbf16>
    %cst_14 = arith.constant dense<0.000000e+00> : vector<8x8xf32>
    %47 = tpu.matmul %44, %45, %cst_14 {dimension_numbers = #tpu.dot_dimension_numbers<[1], [1], [0], [0], [0, 0, 1, 0], [], []>} : vector<8x64xbf16>, vector<8x64xbf16>, vector<8x8xf32> -> vector<8x8xf32>
    %cst_15 = arith.constant 1.250000e-01 : f32
    %48 = vector.broadcast %cst_15 : f32 to vector<8x8xf32>
    %49 = arith.mulf %47, %48 : vector<8x8xf32>
    %50 = vector.broadcast %3 : vector<1x8xf32> to vector<8x8xf32>
    %51 = arith.addf %49, %50 : vector<8x8xf32>
    %cst_16 = arith.constant dense<0xFF800000> : vector<8xf32>
    %52 = vector.multi_reduction <maximumf>, %51, %cst_16 [1] : vector<8x8xf32> to vector<8xf32>
    %53 = vector.shape_cast %52 : vector<8xf32> to vector<8x1xf32>
    %54 = vector.broadcast %53 : vector<8x1xf32> to vector<8x8xf32>
    %55 = arith.subf %51, %54 : vector<8x8xf32>
    %56 = math.exp %55 : vector<8x8xf32>
    %cst_17 = arith.constant dense<0.000000e+00> : vector<8xf32>
    %57 = vector.multi_reduction <add>, %56, %cst_17 [1] : vector<8x8xf32> to vector<8xf32>
    %58 = vector.shape_cast %57 : vector<8xf32> to vector<8x1xf32>
    %59 = tpu.reciprocal %58 {approx = true} : vector<8x1xf32> -> vector<8x1xf32>
    %60 = vector.broadcast %59 : vector<8x1xf32> to vector<8x8xf32>
    %61 = arith.mulf %56, %60 : vector<8x8xf32>
    %62 = arith.truncf %61 : vector<8x8xf32> to vector<8x8xbf16>
    %cst_18 = arith.constant dense<0.000000e+00> : vector<8x64xf32>
    %63 = tpu.matmul %62, %46, %cst_18 {dimension_numbers = #tpu.dot_dimension_numbers<[1], [0], [0], [1], [0, 0, 1, 1], [], []>} : vector<8x8xbf16>, vector<8x64xbf16>, vector<8x64xf32> -> vector<8x64xf32>
    %64 = vector.extract_strided_slice %1 {offsets = [0, 192], sizes = [8, 64], strides = [1, 1]} : vector<8x2304xbf16> to vector<8x64xbf16>
    %65 = vector.extract_strided_slice %1 {offsets = [0, 960], sizes = [8, 64], strides = [1, 1]} : vector<8x2304xbf16> to vector<8x64xbf16>
    %66 = vector.extract_strided_slice %1 {offsets = [0, 1728], sizes = [8, 64], strides = [1, 1]} : vector<8x2304xbf16> to vector<8x64xbf16>
    %cst_19 = arith.constant dense<0.000000e+00> : vector<8x8xf32>
    %67 = tpu.matmul %64, %65, %cst_19 {dimension_numbers = #tpu.dot_dimension_numbers<[1], [1], [0], [0], [0, 0, 1, 0], [], []>} : vector<8x64xbf16>, vector<8x64xbf16>, vector<8x8xf32> -> vector<8x8xf32>
    %cst_20 = arith.constant 1.250000e-01 : f32
    %68 = vector.broadcast %cst_20 : f32 to vector<8x8xf32>
    %69 = arith.mulf %67, %68 : vector<8x8xf32>
    %70 = vector.broadcast %3 : vector<1x8xf32> to vector<8x8xf32>
    %71 = arith.addf %69, %70 : vector<8x8xf32>
    %cst_21 = arith.constant dense<0xFF800000> : vector<8xf32>
    %72 = vector.multi_reduction <maximumf>, %71, %cst_21 [1] : vector<8x8xf32> to vector<8xf32>
    %73 = vector.shape_cast %72 : vector<8xf32> to vector<8x1xf32>
    %74 = vector.broadcast %73 : vector<8x1xf32> to vector<8x8xf32>
    %75 = arith.subf %71, %74 : vector<8x8xf32>
    %76 = math.exp %75 : vector<8x8xf32>
    %cst_22 = arith.constant dense<0.000000e+00> : vector<8xf32>
    %77 = vector.multi_reduction <add>, %76, %cst_22 [1] : vector<8x8xf32> to vector<8xf32>
    %78 = vector.shape_cast %77 : vector<8xf32> to vector<8x1xf32>
    %79 = tpu.reciprocal %78 {approx = true} : vector<8x1xf32> -> vector<8x1xf32>
    %80 = vector.broadcast %79 : vector<8x1xf32> to vector<8x8xf32>
    %81 = arith.mulf %76, %80 : vector<8x8xf32>
    %82 = arith.truncf %81 : vector<8x8xf32> to vector<8x8xbf16>
    %cst_23 = arith.constant dense<0.000000e+00> : vector<8x64xf32>
    %83 = tpu.matmul %82, %66, %cst_23 {dimension_numbers = #tpu.dot_dimension_numbers<[1], [0], [0], [1], [0, 0, 1, 1], [], []>} : vector<8x8xbf16>, vector<8x64xbf16>, vector<8x64xf32> -> vector<8x64xf32>
    %84 = vector.extract_strided_slice %1 {offsets = [0, 256], sizes = [8, 64], strides = [1, 1]} : vector<8x2304xbf16> to vector<8x64xbf16>
    %85 = vector.extract_strided_slice %1 {offsets = [0, 1024], sizes = [8, 64], strides = [1, 1]} : vector<8x2304xbf16> to vector<8x64xbf16>
    %86 = vector.extract_strided_slice %1 {offsets = [0, 1792], sizes = [8, 64], strides = [1, 1]} : vector<8x2304xbf16> to vector<8x64xbf16>
    %cst_24 = arith.constant dense<0.000000e+00> : vector<8x8xf32>
    %87 = tpu.matmul %84, %85, %cst_24 {dimension_numbers = #tpu.dot_dimension_numbers<[1], [1], [0], [0], [0, 0, 1, 0], [], []>} : vector<8x64xbf16>, vector<8x64xbf16>, vector<8x8xf32> -> vector<8x8xf32>
    %cst_25 = arith.constant 1.250000e-01 : f32
    %88 = vector.broadcast %cst_25 : f32 to vector<8x8xf32>
    %89 = arith.mulf %87, %88 : vector<8x8xf32>
    %90 = vector.broadcast %3 : vector<1x8xf32> to vector<8x8xf32>
    %91 = arith.addf %89, %90 : vector<8x8xf32>
    %cst_26 = arith.constant dense<0xFF800000> : vector<8xf32>
    %92 = vector.multi_reduction <maximumf>, %91, %cst_26 [1] : vector<8x8xf32> to vector<8xf32>
    %93 = vector.shape_cast %92 : vector<8xf32> to vector<8x1xf32>
    %94 = vector.broadcast %93 : vector<8x1xf32> to vector<8x8xf32>
    %95 = arith.subf %91, %94 : vector<8x8xf32>
    %96 = math.exp %95 : vector<8x8xf32>
    %cst_27 = arith.constant dense<0.000000e+00> : vector<8xf32>
    %97 = vector.multi_reduction <add>, %96, %cst_27 [1] : vector<8x8xf32> to vector<8xf32>
    %98 = vector.shape_cast %97 : vector<8xf32> to vector<8x1xf32>
    %99 = tpu.reciprocal %98 {approx = true} : vector<8x1xf32> -> vector<8x1xf32>
    %100 = vector.broadcast %99 : vector<8x1xf32> to vector<8x8xf32>
    %101 = arith.mulf %96, %100 : vector<8x8xf32>
    %102 = arith.truncf %101 : vector<8x8xf32> to vector<8x8xbf16>
    %cst_28 = arith.constant dense<0.000000e+00> : vector<8x64xf32>
    %103 = tpu.matmul %102, %86, %cst_28 {dimension_numbers = #tpu.dot_dimension_numbers<[1], [0], [0], [1], [0, 0, 1, 1], [], []>} : vector<8x8xbf16>, vector<8x64xbf16>, vector<8x64xf32> -> vector<8x64xf32>
    %104 = vector.extract_strided_slice %1 {offsets = [0, 320], sizes = [8, 64], strides = [1, 1]} : vector<8x2304xbf16> to vector<8x64xbf16>
    %105 = vector.extract_strided_slice %1 {offsets = [0, 1088], sizes = [8, 64], strides = [1, 1]} : vector<8x2304xbf16> to vector<8x64xbf16>
    %106 = vector.extract_strided_slice %1 {offsets = [0, 1856], sizes = [8, 64], strides = [1, 1]} : vector<8x2304xbf16> to vector<8x64xbf16>
    %cst_29 = arith.constant dense<0.000000e+00> : vector<8x8xf32>
    %107 = tpu.matmul %104, %105, %cst_29 {dimension_numbers = #tpu.dot_dimension_numbers<[1], [1], [0], [0], [0, 0, 1, 0], [], []>} : vector<8x64xbf16>, vector<8x64xbf16>, vector<8x8xf32> -> vector<8x8xf32>
    %cst_30 = arith.constant 1.250000e-01 : f32
    %108 = vector.broadcast %cst_30 : f32 to vector<8x8xf32>
    %109 = arith.mulf %107, %108 : vector<8x8xf32>
    %110 = vector.broadcast %3 : vector<1x8xf32> to vector<8x8xf32>
    %111 = arith.addf %109, %110 : vector<8x8xf32>
    %cst_31 = arith.constant dense<0xFF800000> : vector<8xf32>
    %112 = vector.multi_reduction <maximumf>, %111, %cst_31 [1] : vector<8x8xf32> to vector<8xf32>
    %113 = vector.shape_cast %112 : vector<8xf32> to vector<8x1xf32>
    %114 = vector.broadcast %113 : vector<8x1xf32> to vector<8x8xf32>
    %115 = arith.subf %111, %114 : vector<8x8xf32>
    %116 = math.exp %115 : vector<8x8xf32>
    %cst_32 = arith.constant dense<0.000000e+00> : vector<8xf32>
    %117 = vector.multi_reduction <add>, %116, %cst_32 [1] : vector<8x8xf32> to vector<8xf32>
    %118 = vector.shape_cast %117 : vector<8xf32> to vector<8x1xf32>
    %119 = tpu.reciprocal %118 {approx = true} : vector<8x1xf32> -> vector<8x1xf32>
    %120 = vector.broadcast %119 : vector<8x1xf32> to vector<8x8xf32>
    %121 = arith.mulf %116, %120 : vector<8x8xf32>
    %122 = arith.truncf %121 : vector<8x8xf32> to vector<8x8xbf16>
    %cst_33 = arith.constant dense<0.000000e+00> : vector<8x64xf32>
    %123 = tpu.matmul %122, %106, %cst_33 {dimension_numbers = #tpu.dot_dimension_numbers<[1], [0], [0], [1], [0, 0, 1, 1], [], []>} : vector<8x8xbf16>, vector<8x64xbf16>, vector<8x64xf32> -> vector<8x64xf32>
    %124 = vector.extract_strided_slice %1 {offsets = [0, 384], sizes = [8, 64], strides = [1, 1]} : vector<8x2304xbf16> to vector<8x64xbf16>
    %125 = vector.extract_strided_slice %1 {offsets = [0, 1152], sizes = [8, 64], strides = [1, 1]} : vector<8x2304xbf16> to vector<8x64xbf16>
    %126 = vector.extract_strided_slice %1 {offsets = [0, 1920], sizes = [8, 64], strides = [1, 1]} : vector<8x2304xbf16> to vector<8x64xbf16>
    %cst_34 = arith.constant dense<0.000000e+00> : vector<8x8xf32>
    %127 = tpu.matmul %124, %125, %cst_34 {dimension_numbers = #tpu.dot_dimension_numbers<[1], [1], [0], [0], [0, 0, 1, 0], [], []>} : vector<8x64xbf16>, vector<8x64xbf16>, vector<8x8xf32> -> vector<8x8xf32>
    %cst_35 = arith.constant 1.250000e-01 : f32
    %128 = vector.broadcast %cst_35 : f32 to vector<8x8xf32>
    %129 = arith.mulf %127, %128 : vector<8x8xf32>
    %130 = vector.broadcast %3 : vector<1x8xf32> to vector<8x8xf32>
    %131 = arith.addf %129, %130 : vector<8x8xf32>
    %cst_36 = arith.constant dense<0xFF800000> : vector<8xf32>
    %132 = vector.multi_reduction <maximumf>, %131, %cst_36 [1] : vector<8x8xf32> to vector<8xf32>
    %133 = vector.shape_cast %132 : vector<8xf32> to vector<8x1xf32>
    %134 = vector.broadcast %133 : vector<8x1xf32> to vector<8x8xf32>
    %135 = arith.subf %131, %134 : vector<8x8xf32>
    %136 = math.exp %135 : vector<8x8xf32>
    %cst_37 = arith.constant dense<0.000000e+00> : vector<8xf32>
    %137 = vector.multi_reduction <add>, %136, %cst_37 [1] : vector<8x8xf32> to vector<8xf32>
    %138 = vector.shape_cast %137 : vector<8xf32> to vector<8x1xf32>
    %139 = tpu.reciprocal %138 {approx = true} : vector<8x1xf32> -> vector<8x1xf32>
    %140 = vector.broadcast %139 : vector<8x1xf32> to vector<8x8xf32>
    %141 = arith.mulf %136, %140 : vector<8x8xf32>
    %142 = arith.truncf %141 : vector<8x8xf32> to vector<8x8xbf16>
    %cst_38 = arith.constant dense<0.000000e+00> : vector<8x64xf32>
    %143 = tpu.matmul %142, %126, %cst_38 {dimension_numbers = #tpu.dot_dimension_numbers<[1], [0], [0], [1], [0, 0, 1, 1], [], []>} : vector<8x8xbf16>, vector<8x64xbf16>, vector<8x64xf32> -> vector<8x64xf32>
    %144 = vector.extract_strided_slice %1 {offsets = [0, 448], sizes = [8, 64], strides = [1, 1]} : vector<8x2304xbf16> to vector<8x64xbf16>
    %145 = vector.extract_strided_slice %1 {offsets = [0, 1216], sizes = [8, 64], strides = [1, 1]} : vector<8x2304xbf16> to vector<8x64xbf16>
    %146 = vector.extract_strided_slice %1 {offsets = [0, 1984], sizes = [8, 64], strides = [1, 1]} : vector<8x2304xbf16> to vector<8x64xbf16>
    %cst_39 = arith.constant dense<0.000000e+00> : vector<8x8xf32>
    %147 = tpu.matmul %144, %145, %cst_39 {dimension_numbers = #tpu.dot_dimension_numbers<[1], [1], [0], [0], [0, 0, 1, 0], [], []>} : vector<8x64xbf16>, vector<8x64xbf16>, vector<8x8xf32> -> vector<8x8xf32>
    %cst_40 = arith.constant 1.250000e-01 : f32
    %148 = vector.broadcast %cst_40 : f32 to vector<8x8xf32>
    %149 = arith.mulf %147, %148 : vector<8x8xf32>
    %150 = vector.broadcast %3 : vector<1x8xf32> to vector<8x8xf32>
    %151 = arith.addf %149, %150 : vector<8x8xf32>
    %cst_41 = arith.constant dense<0xFF800000> : vector<8xf32>
    %152 = vector.multi_reduction <maximumf>, %151, %cst_41 [1] : vector<8x8xf32> to vector<8xf32>
    %153 = vector.shape_cast %152 : vector<8xf32> to vector<8x1xf32>
    %154 = vector.broadcast %153 : vector<8x1xf32> to vector<8x8xf32>
    %155 = arith.subf %151, %154 : vector<8x8xf32>
    %156 = math.exp %155 : vector<8x8xf32>
    %cst_42 = arith.constant dense<0.000000e+00> : vector<8xf32>
    %157 = vector.multi_reduction <add>, %156, %cst_42 [1] : vector<8x8xf32> to vector<8xf32>
    %158 = vector.shape_cast %157 : vector<8xf32> to vector<8x1xf32>
    %159 = tpu.reciprocal %158 {approx = true} : vector<8x1xf32> -> vector<8x1xf32>
    %160 = vector.broadcast %159 : vector<8x1xf32> to vector<8x8xf32>
    %161 = arith.mulf %156, %160 : vector<8x8xf32>
    %162 = arith.truncf %161 : vector<8x8xf32> to vector<8x8xbf16>
    %cst_43 = arith.constant dense<0.000000e+00> : vector<8x64xf32>
    %163 = tpu.matmul %162, %146, %cst_43 {dimension_numbers = #tpu.dot_dimension_numbers<[1], [0], [0], [1], [0, 0, 1, 1], [], []>} : vector<8x8xbf16>, vector<8x64xbf16>, vector<8x64xf32> -> vector<8x64xf32>
    %164 = vector.extract_strided_slice %1 {offsets = [0, 512], sizes = [8, 64], strides = [1, 1]} : vector<8x2304xbf16> to vector<8x64xbf16>
    %165 = vector.extract_strided_slice %1 {offsets = [0, 1280], sizes = [8, 64], strides = [1, 1]} : vector<8x2304xbf16> to vector<8x64xbf16>
    %166 = vector.extract_strided_slice %1 {offsets = [0, 2048], sizes = [8, 64], strides = [1, 1]} : vector<8x2304xbf16> to vector<8x64xbf16>
    %cst_44 = arith.constant dense<0.000000e+00> : vector<8x8xf32>
    %167 = tpu.matmul %164, %165, %cst_44 {dimension_numbers = #tpu.dot_dimension_numbers<[1], [1], [0], [0], [0, 0, 1, 0], [], []>} : vector<8x64xbf16>, vector<8x64xbf16>, vector<8x8xf32> -> vector<8x8xf32>
    %cst_45 = arith.constant 1.250000e-01 : f32
    %168 = vector.broadcast %cst_45 : f32 to vector<8x8xf32>
    %169 = arith.mulf %167, %168 : vector<8x8xf32>
    %170 = vector.broadcast %3 : vector<1x8xf32> to vector<8x8xf32>
    %171 = arith.addf %169, %170 : vector<8x8xf32>
    %cst_46 = arith.constant dense<0xFF800000> : vector<8xf32>
    %172 = vector.multi_reduction <maximumf>, %171, %cst_46 [1] : vector<8x8xf32> to vector<8xf32>
    %173 = vector.shape_cast %172 : vector<8xf32> to vector<8x1xf32>
    %174 = vector.broadcast %173 : vector<8x1xf32> to vector<8x8xf32>
    %175 = arith.subf %171, %174 : vector<8x8xf32>
    %176 = math.exp %175 : vector<8x8xf32>
    %cst_47 = arith.constant dense<0.000000e+00> : vector<8xf32>
    %177 = vector.multi_reduction <add>, %176, %cst_47 [1] : vector<8x8xf32> to vector<8xf32>
    %178 = vector.shape_cast %177 : vector<8xf32> to vector<8x1xf32>
    %179 = tpu.reciprocal %178 {approx = true} : vector<8x1xf32> -> vector<8x1xf32>
    %180 = vector.broadcast %179 : vector<8x1xf32> to vector<8x8xf32>
    %181 = arith.mulf %176, %180 : vector<8x8xf32>
    %182 = arith.truncf %181 : vector<8x8xf32> to vector<8x8xbf16>
    %cst_48 = arith.constant dense<0.000000e+00> : vector<8x64xf32>
    %183 = tpu.matmul %182, %166, %cst_48 {dimension_numbers = #tpu.dot_dimension_numbers<[1], [0], [0], [1], [0, 0, 1, 1], [], []>} : vector<8x8xbf16>, vector<8x64xbf16>, vector<8x64xf32> -> vector<8x64xf32>
    %184 = vector.extract_strided_slice %1 {offsets = [0, 576], sizes = [8, 64], strides = [1, 1]} : vector<8x2304xbf16> to vector<8x64xbf16>
    %185 = vector.extract_strided_slice %1 {offsets = [0, 1344], sizes = [8, 64], strides = [1, 1]} : vector<8x2304xbf16> to vector<8x64xbf16>
    %186 = vector.extract_strided_slice %1 {offsets = [0, 2112], sizes = [8, 64], strides = [1, 1]} : vector<8x2304xbf16> to vector<8x64xbf16>
    %cst_49 = arith.constant dense<0.000000e+00> : vector<8x8xf32>
    %187 = tpu.matmul %184, %185, %cst_49 {dimension_numbers = #tpu.dot_dimension_numbers<[1], [1], [0], [0], [0, 0, 1, 0], [], []>} : vector<8x64xbf16>, vector<8x64xbf16>, vector<8x8xf32> -> vector<8x8xf32>
    %cst_50 = arith.constant 1.250000e-01 : f32
    %188 = vector.broadcast %cst_50 : f32 to vector<8x8xf32>
    %189 = arith.mulf %187, %188 : vector<8x8xf32>
    %190 = vector.broadcast %3 : vector<1x8xf32> to vector<8x8xf32>
    %191 = arith.addf %189, %190 : vector<8x8xf32>
    %cst_51 = arith.constant dense<0xFF800000> : vector<8xf32>
    %192 = vector.multi_reduction <maximumf>, %191, %cst_51 [1] : vector<8x8xf32> to vector<8xf32>
    %193 = vector.shape_cast %192 : vector<8xf32> to vector<8x1xf32>
    %194 = vector.broadcast %193 : vector<8x1xf32> to vector<8x8xf32>
    %195 = arith.subf %191, %194 : vector<8x8xf32>
    %196 = math.exp %195 : vector<8x8xf32>
    %cst_52 = arith.constant dense<0.000000e+00> : vector<8xf32>
    %197 = vector.multi_reduction <add>, %196, %cst_52 [1] : vector<8x8xf32> to vector<8xf32>
    %198 = vector.shape_cast %197 : vector<8xf32> to vector<8x1xf32>
    %199 = tpu.reciprocal %198 {approx = true} : vector<8x1xf32> -> vector<8x1xf32>
    %200 = vector.broadcast %199 : vector<8x1xf32> to vector<8x8xf32>
    %201 = arith.mulf %196, %200 : vector<8x8xf32>
    %202 = arith.truncf %201 : vector<8x8xf32> to vector<8x8xbf16>
    %cst_53 = arith.constant dense<0.000000e+00> : vector<8x64xf32>
    %203 = tpu.matmul %202, %186, %cst_53 {dimension_numbers = #tpu.dot_dimension_numbers<[1], [0], [0], [1], [0, 0, 1, 1], [], []>} : vector<8x8xbf16>, vector<8x64xbf16>, vector<8x64xf32> -> vector<8x64xf32>
    %204 = vector.extract_strided_slice %1 {offsets = [0, 640], sizes = [8, 64], strides = [1, 1]} : vector<8x2304xbf16> to vector<8x64xbf16>
    %205 = vector.extract_strided_slice %1 {offsets = [0, 1408], sizes = [8, 64], strides = [1, 1]} : vector<8x2304xbf16> to vector<8x64xbf16>
    %206 = vector.extract_strided_slice %1 {offsets = [0, 2176], sizes = [8, 64], strides = [1, 1]} : vector<8x2304xbf16> to vector<8x64xbf16>
    %cst_54 = arith.constant dense<0.000000e+00> : vector<8x8xf32>
    %207 = tpu.matmul %204, %205, %cst_54 {dimension_numbers = #tpu.dot_dimension_numbers<[1], [1], [0], [0], [0, 0, 1, 0], [], []>} : vector<8x64xbf16>, vector<8x64xbf16>, vector<8x8xf32> -> vector<8x8xf32>
    %cst_55 = arith.constant 1.250000e-01 : f32
    %208 = vector.broadcast %cst_55 : f32 to vector<8x8xf32>
    %209 = arith.mulf %207, %208 : vector<8x8xf32>
    %210 = vector.broadcast %3 : vector<1x8xf32> to vector<8x8xf32>
    %211 = arith.addf %209, %210 : vector<8x8xf32>
    %cst_56 = arith.constant dense<0xFF800000> : vector<8xf32>
    %212 = vector.multi_reduction <maximumf>, %211, %cst_56 [1] : vector<8x8xf32> to vector<8xf32>
    %213 = vector.shape_cast %212 : vector<8xf32> to vector<8x1xf32>
    %214 = vector.broadcast %213 : vector<8x1xf32> to vector<8x8xf32>
    %215 = arith.subf %211, %214 : vector<8x8xf32>
    %216 = math.exp %215 : vector<8x8xf32>
    %cst_57 = arith.constant dense<0.000000e+00> : vector<8xf32>
    %217 = vector.multi_reduction <add>, %216, %cst_57 [1] : vector<8x8xf32> to vector<8xf32>
    %218 = vector.shape_cast %217 : vector<8xf32> to vector<8x1xf32>
    %219 = tpu.reciprocal %218 {approx = true} : vector<8x1xf32> -> vector<8x1xf32>
    %220 = vector.broadcast %219 : vector<8x1xf32> to vector<8x8xf32>
    %221 = arith.mulf %216, %220 : vector<8x8xf32>
    %222 = arith.truncf %221 : vector<8x8xf32> to vector<8x8xbf16>
    %cst_58 = arith.constant dense<0.000000e+00> : vector<8x64xf32>
    %223 = tpu.matmul %222, %206, %cst_58 {dimension_numbers = #tpu.dot_dimension_numbers<[1], [0], [0], [1], [0, 0, 1, 1], [], []>} : vector<8x8xbf16>, vector<8x64xbf16>, vector<8x64xf32> -> vector<8x64xf32>
    %224 = vector.extract_strided_slice %1 {offsets = [0, 704], sizes = [8, 64], strides = [1, 1]} : vector<8x2304xbf16> to vector<8x64xbf16>
    %225 = vector.extract_strided_slice %1 {offsets = [0, 1472], sizes = [8, 64], strides = [1, 1]} : vector<8x2304xbf16> to vector<8x64xbf16>
    %226 = vector.extract_strided_slice %1 {offsets = [0, 2240], sizes = [8, 64], strides = [1, 1]} : vector<8x2304xbf16> to vector<8x64xbf16>
    %cst_59 = arith.constant dense<0.000000e+00> : vector<8x8xf32>
    %227 = tpu.matmul %224, %225, %cst_59 {dimension_numbers = #tpu.dot_dimension_numbers<[1], [1], [0], [0], [0, 0, 1, 0], [], []>} : vector<8x64xbf16>, vector<8x64xbf16>, vector<8x8xf32> -> vector<8x8xf32>
    %cst_60 = arith.constant 1.250000e-01 : f32
    %228 = vector.broadcast %cst_60 : f32 to vector<8x8xf32>
    %229 = arith.mulf %227, %228 : vector<8x8xf32>
    %230 = vector.broadcast %3 : vector<1x8xf32> to vector<8x8xf32>
    %231 = arith.addf %229, %230 : vector<8x8xf32>
    %cst_61 = arith.constant dense<0xFF800000> : vector<8xf32>
    %232 = vector.multi_reduction <maximumf>, %231, %cst_61 [1] : vector<8x8xf32> to vector<8xf32>
    %233 = vector.shape_cast %232 : vector<8xf32> to vector<8x1xf32>
    %234 = vector.broadcast %233 : vector<8x1xf32> to vector<8x8xf32>
    %235 = arith.subf %231, %234 : vector<8x8xf32>
    %236 = math.exp %235 : vector<8x8xf32>
    %cst_62 = arith.constant dense<0.000000e+00> : vector<8xf32>
    %237 = vector.multi_reduction <add>, %236, %cst_62 [1] : vector<8x8xf32> to vector<8xf32>
    %238 = vector.shape_cast %237 : vector<8xf32> to vector<8x1xf32>
    %239 = tpu.reciprocal %238 {approx = true} : vector<8x1xf32> -> vector<8x1xf32>
    %240 = vector.broadcast %239 : vector<8x1xf32> to vector<8x8xf32>
    %241 = arith.mulf %236, %240 : vector<8x8xf32>
    %242 = arith.truncf %241 : vector<8x8xf32> to vector<8x8xbf16>
    %cst_63 = arith.constant dense<0.000000e+00> : vector<8x64xf32>
    %243 = tpu.matmul %242, %226, %cst_63 {dimension_numbers = #tpu.dot_dimension_numbers<[1], [0], [0], [1], [0, 0, 1, 1], [], []>} : vector<8x8xbf16>, vector<8x64xbf16>, vector<8x64xf32> -> vector<8x64xf32>
    %244 = tpu.concatenate %23, %43, %63, %83, %103, %123, %143, %163, %183, %203, %223, %243 in 1 : vector<8x64xf32>, vector<8x64xf32>, vector<8x64xf32>, vector<8x64xf32>, vector<8x64xf32>, vector<8x64xf32>, vector<8x64xf32>, vector<8x64xf32>, vector<8x64xf32>, vector<8x64xf32>, vector<8x64xf32>, vector<8x64xf32> -> vector<8x768xf32>
    %245 = arith.truncf %244 : vector<8x768xf32> to vector<8x768xbf16>
    %c0_64 = arith.constant 0 : index
    %c0_65 = arith.constant 0 : index
    %c0_66 = arith.constant 0 : index
    %246 = vector.load %arg3[%c0_64, %c0_65, %c0_66] : memref<1x8x768xbf16, #tpu.memory_space<vmem>>, vector<1x8x768xbf16>
    %247 = vector.shape_cast %246 : vector<1x8x768xbf16> to vector<8x768xbf16>
    %248 = vector.shape_cast %245 : vector<8x768xbf16> to vector<1x8x768xbf16>
    tpu.vector_store %arg3[%c0_64, %c0_65, %c0_66], %248 {strides = array<i32>} : memref<1x8x768xbf16, #tpu.memory_space<vmem>>, vector<1x8x768xbf16>,
    return
  }
  func.func @transform_0(%arg0: i32) -> (i32, i32, i32) {
    %c0_i32 = arith.constant 0 : i32
    %c0_i32_0 = arith.constant 0 : i32
    %c0_i32_1 = arith.constant 0 : i32
    return %arg0, %c0_i32, %c0_i32_0 : i32, i32, i32
  }
  func.func @transform_1(%arg0: i32) -> (i32, i32, i32) {
    %c0_i32 = arith.constant 0 : i32
    %c0_i32_0 = arith.constant 0 : i32
    %c0_i32_1 = arith.constant 0 : i32
    return %arg0, %c0_i32, %c0_i32_0 : i32, i32, i32
  }
  func.func @transform_2(%arg0: i32) -> (i32, i32, i32) {
    %c0_i32 = arith.constant 0 : i32
    %c0_i32_0 = arith.constant 0 : i32
    %c0_i32_1 = arith.constant 0 : i32
    return %arg0, %c0_i32, %c0_i32_0 : i32, i32, i32
  }
}

module attributes {stable_mosaic.version = 11 : i64} {
  func.func @_linear_kernel(%arg0: i32, %arg1: i32, %arg2: i32, %arg3: memref<16x768xbf16, #tpu.memory_space<vmem>>, %arg4: memref<768x768xbf16, #tpu.memory_space<vmem>>, %arg5: memref<1x768xf32, #tpu.memory_space<vmem>>, %arg6: memref<16x768xbf16, #tpu.memory_space<vmem>>, %arg7: memref<16x768xf32, #tpu.memory_space<vmem>>) attributes {dimension_semantics = [#tpu.dimension_semantics<parallel>, #tpu.dimension_semantics<parallel>, #tpu.dimension_semantics<arbitrary>], iteration_bounds = array<i64: 1, 3, 1>, scalar_prefetch = 0 : i64, scratch_operands = 1 : i64, tpu.core_type = #tpu.core_type<tc>, window_params = [{transform_indices = @transform_0, window_bounds = array<i64: 16, 768>}, {transform_indices = @transform_1, window_bounds = array<i64: 768, 768>}, {transform_indices = @transform_2, window_bounds = array<i64: 1, 768>}, {transform_indices = @transform_3, window_bounds = array<i64: 16, 768>}]} {
    %c0_i32 = arith.constant 0 : i32
    %0 = arith.cmpi eq, %arg2, %c0_i32 : i32
    %1 = arith.extui %0 : i1 to i32
    %c0_i32_0 = arith.constant 0 : i32
    %2 = arith.cmpi ne, %1, %c0_i32_0 : i32
    scf.if %2 {
      %cst_10 = arith.constant 0.000000e+00 : f32
      %12 = vector.broadcast %cst_10 : f32 to vector<16x768xf32>
      %c0_11 = arith.constant 0 : index
      %c0_12 = arith.constant 0 : index
      %13 = vector.load %arg7[%c0_11, %c0_12] : memref<16x768xf32, #tpu.memory_space<vmem>>, vector<16x768xf32>
      tpu.vector_store %arg7[%c0_11, %c0_12], %12 {strides = array<i32>} : memref<16x768xf32, #tpu.memory_space<vmem>>, vector<16x768xf32>,
    } else {
    }
    %c0 = arith.constant 0 : index
    %c0_1 = arith.constant 0 : index
    %3 = vector.load %arg7[%c0, %c0_1] : memref<16x768xf32, #tpu.memory_space<vmem>>, vector<16x768xf32>
    %c0_2 = arith.constant 0 : index
    %c0_3 = arith.constant 0 : index
    %4 = vector.load %arg3[%c0_2, %c0_3] : memref<16x768xbf16, #tpu.memory_space<vmem>>, vector<16x768xbf16>
    %c0_4 = arith.constant 0 : index
    %c0_5 = arith.constant 0 : index
    %5 = vector.load %arg4[%c0_4, %c0_5] : memref<768x768xbf16, #tpu.memory_space<vmem>>, vector<768x768xbf16>
    %cst = arith.constant dense<0.000000e+00> : vector<16x768xf32>
    %6 = tpu.matmul %4, %5, %cst {dimension_numbers = #tpu.dot_dimension_numbers<[1], [0], [0], [1], [0, 0, 1, 1], [], []>} : vector<16x768xbf16>, vector<768x768xbf16>, vector<16x768xf32> -> vector<16x768xf32>
    %7 = arith.addf %3, %6 : vector<16x768xf32>
    %c0_6 = arith.constant 0 : index
    %c0_7 = arith.constant 0 : index
    %8 = vector.load %arg7[%c0_6, %c0_7] : memref<16x768xf32, #tpu.memory_space<vmem>>, vector<16x768xf32>
    tpu.vector_store %arg7[%c0_6, %c0_7], %7 {strides = array<i32>} : memref<16x768xf32, #tpu.memory_space<vmem>>, vector<16x768xf32>,
    %c0_i32_8 = arith.constant 0 : i32
    %9 = arith.cmpi eq, %arg2, %c0_i32_8 : i32
    %10 = arith.extui %9 : i1 to i32
    %c0_i32_9 = arith.constant 0 : i32
    %11 = arith.cmpi ne, %10, %c0_i32_9 : i32
    scf.if %11 {
      %c0_10 = arith.constant 0 : index
      %c0_11 = arith.constant 0 : index
      %12 = vector.load %arg7[%c0_10, %c0_11] : memref<16x768xf32, #tpu.memory_space<vmem>>, vector<16x768xf32>
      %c0_12 = arith.constant 0 : index
      %c0_13 = arith.constant 0 : index
      %13 = vector.load %arg5[%c0_12, %c0_13] : memref<1x768xf32, #tpu.memory_space<vmem>>, vector<1x768xf32>
      %14 = vector.broadcast %13 : vector<1x768xf32> to vector<16x768xf32>
      %15 = arith.addf %12, %14 : vector<16x768xf32>
      %16 = arith.truncf %15 : vector<16x768xf32> to vector<16x768xbf16>
      %c0_14 = arith.constant 0 : index
      %c0_15 = arith.constant 0 : index
      %17 = vector.load %arg6[%c0_14, %c0_15] : memref<16x768xbf16, #tpu.memory_space<vmem>>, vector<16x768xbf16>
      tpu.vector_store %arg6[%c0_14, %c0_15], %16 {strides = array<i32>} : memref<16x768xbf16, #tpu.memory_space<vmem>>, vector<16x768xbf16>,
    } else {
    }
    return
  }
  func.func @transform_0(%arg0: i32, %arg1: i32, %arg2: i32) -> (i32, i32) {
    %c0_i32 = arith.constant 0 : i32
    return %arg0, %arg2 : i32, i32
  }
  func.func @transform_1(%arg0: i32, %arg1: i32, %arg2: i32) -> (i32, i32) {
    %c0_i32 = arith.constant 0 : i32
    return %arg2, %arg1 : i32, i32
  }
  func.func @transform_2(%arg0: i32, %arg1: i32, %arg2: i32) -> (i32, i32) {
    %c0_i32 = arith.constant 0 : i32
    %c0_i32_0 = arith.constant 0 : i32
    return %c0_i32, %arg1 : i32, i32
  }
  func.func @transform_3(%arg0: i32, %arg1: i32, %arg2: i32) -> (i32, i32) {
    %c0_i32 = arith.constant 0 : i32
    return %arg0, %arg1 : i32, i32
  }
}

module attributes {stable_mosaic.version = 11 : i64} {
  func.func @_emb_ln_kernel(%arg0: i32, %arg1: memref<1x8x768xf32, #tpu.memory_space<vmem>>, %arg2: memref<1x8x768xf32, #tpu.memory_space<vmem>>, %arg3: memref<1x1x768xf32, #tpu.memory_space<vmem>>, %arg4: memref<1x768xf32, #tpu.memory_space<vmem>>, %arg5: memref<1x768xf32, #tpu.memory_space<vmem>>, %arg6: memref<1x8x768xbf16, #tpu.memory_space<vmem>>) attributes {dimension_semantics = [#tpu.dimension_semantics<parallel>], iteration_bounds = array<i64: 2>, scalar_prefetch = 0 : i64, scratch_operands = 0 : i64, tpu.core_type = #tpu.core_type<tc>, window_params = [{transform_indices = @transform_0, window_bounds = array<i64: 1, 8, 768>}, {pipeline_mode = #tpu.pipeline_mode<synchronous>, transform_indices = @transform_1, window_bounds = array<i64: 1, 8, 768>}, {pipeline_mode = #tpu.pipeline_mode<synchronous>, transform_indices = @transform_2, window_bounds = array<i64: 1, 1, 768>}, {pipeline_mode = #tpu.pipeline_mode<synchronous>, transform_indices = @transform_3, window_bounds = array<i64: 1, 768>}, {pipeline_mode = #tpu.pipeline_mode<synchronous>, transform_indices = @transform_4, window_bounds = array<i64: 1, 768>}, {transform_indices = @transform_5, window_bounds = array<i64: 1, 8, 768>}]} {
    %c0 = arith.constant 0 : index
    %c0_0 = arith.constant 0 : index
    %c0_1 = arith.constant 0 : index
    %0 = vector.load %arg1[%c0, %c0_0, %c0_1] : memref<1x8x768xf32, #tpu.memory_space<vmem>>, vector<1x8x768xf32>
    %1 = vector.shape_cast %0 : vector<1x8x768xf32> to vector<8x768xf32>
    %c0_2 = arith.constant 0 : index
    %c0_3 = arith.constant 0 : index
    %c0_4 = arith.constant 0 : index
    %2 = vector.load %arg2[%c0_2, %c0_3, %c0_4] : memref<1x8x768xf32, #tpu.memory_space<vmem>>, vector<1x8x768xf32>
    %3 = vector.shape_cast %2 : vector<1x8x768xf32> to vector<8x768xf32>
    %4 = arith.addf %1, %3 : vector<8x768xf32>
    %c0_5 = arith.constant 0 : index
    %c0_6 = arith.constant 0 : index
    %c0_7 = arith.constant 0 : index
    %5 = vector.load %arg3[%c0_5, %c0_6, %c0_7] : memref<1x1x768xf32, #tpu.memory_space<vmem>>, vector<1x1x768xf32>
    %6 = vector.shape_cast %5 : vector<1x1x768xf32> to vector<1x768xf32>
    %7 = vector.broadcast %6 : vector<1x768xf32> to vector<8x768xf32>
    %8 = arith.addf %4, %7 : vector<8x768xf32>
    %c0_8 = arith.constant 0 : index
    %c0_9 = arith.constant 0 : index
    %9 = vector.load %arg4[%c0_8, %c0_9] : memref<1x768xf32, #tpu.memory_space<vmem>>, vector<1x768xf32>
    %c0_10 = arith.constant 0 : index
    %c0_11 = arith.constant 0 : index
    %10 = vector.load %arg5[%c0_10, %c0_11] : memref<1x768xf32, #tpu.memory_space<vmem>>, vector<1x768xf32>
    %cst = arith.constant dense<0.000000e+00> : vector<8xf32>
    %11 = vector.multi_reduction <add>, %8, %cst [1] : vector<8x768xf32> to vector<8xf32>
    %12 = vector.shape_cast %11 : vector<8xf32> to vector<8x1xf32>
    %cst_12 = arith.constant 7.680000e+02 : f32
    %13 = vector.broadcast %cst_12 : f32 to vector<8x1xf32>
    %14 = arith.divf %12, %13 : vector<8x1xf32>
    %15 = vector.broadcast %14 : vector<8x1xf32> to vector<8x768xf32>
    %16 = arith.subf %8, %15 : vector<8x768xf32>
    %17 = arith.mulf %16, %16 : vector<8x768xf32>
    %cst_13 = arith.constant dense<0.000000e+00> : vector<8xf32>
    %18 = vector.multi_reduction <add>, %17, %cst_13 [1] : vector<8x768xf32> to vector<8xf32>
    %19 = vector.shape_cast %18 : vector<8xf32> to vector<8x1xf32>
    %cst_14 = arith.constant 7.680000e+02 : f32
    %20 = vector.broadcast %cst_14 : f32 to vector<8x1xf32>
    %21 = arith.divf %19, %20 : vector<8x1xf32>
    %cst_15 = arith.constant 9.99999996E-13 : f32
    %22 = vector.broadcast %cst_15 : f32 to vector<8x1xf32>
    %23 = arith.addf %21, %22 : vector<8x1xf32>
    %24 = math.rsqrt %23 : vector<8x1xf32>
    %25 = vector.broadcast %24 : vector<8x1xf32> to vector<8x768xf32>
    %26 = arith.mulf %16, %25 : vector<8x768xf32>
    %27 = vector.broadcast %9 : vector<1x768xf32> to vector<8x768xf32>
    %28 = arith.mulf %26, %27 : vector<8x768xf32>
    %29 = vector.broadcast %10 : vector<1x768xf32> to vector<8x768xf32>
    %30 = arith.addf %28, %29 : vector<8x768xf32>
    %31 = arith.truncf %30 : vector<8x768xf32> to vector<8x768xbf16>
    %c0_16 = arith.constant 0 : index
    %c0_17 = arith.constant 0 : index
    %c0_18 = arith.constant 0 : index
    %32 = vector.load %arg6[%c0_16, %c0_17, %c0_18] : memref<1x8x768xbf16, #tpu.memory_space<vmem>>, vector<1x8x768xbf16>
    %33 = vector.shape_cast %32 : vector<1x8x768xbf16> to vector<8x768xbf16>
    %34 = vector.shape_cast %31 : vector<8x768xbf16> to vector<1x8x768xbf16>
    tpu.vector_store %arg6[%c0_16, %c0_17, %c0_18], %34 {strides = array<i32>} : memref<1x8x768xbf16, #tpu.memory_space<vmem>>, vector<1x8x768xbf16>,
    return
  }
  func.func @transform_0(%arg0: i32) -> (i32, i32, i32) {
    %c0_i32 = arith.constant 0 : i32
    %c0_i32_0 = arith.constant 0 : i32
    %c0_i32_1 = arith.constant 0 : i32
    return %arg0, %c0_i32, %c0_i32_0 : i32, i32, i32
  }
  func.func @transform_1(%arg0: i32) -> (i32, i32, i32) {
    %c0_i32 = arith.constant 0 : i32
    %c0_i32_0 = arith.constant 0 : i32
    %c0_i32_1 = arith.constant 0 : i32
    %c0_i32_2 = arith.constant 0 : i32
    return %c0_i32, %c0_i32_0, %c0_i32_1 : i32, i32, i32
  }
  func.func @transform_2(%arg0: i32) -> (i32, i32, i32) {
    %c0_i32 = arith.constant 0 : i32
    %c0_i32_0 = arith.constant 0 : i32
    %c0_i32_1 = arith.constant 0 : i32
    %c0_i32_2 = arith.constant 0 : i32
    return %c0_i32, %c0_i32_0, %c0_i32_1 : i32, i32, i32
  }
  func.func @transform_3(%arg0: i32) -> (i32, i32) {
    %c0_i32 = arith.constant 0 : i32
    %c0_i32_0 = arith.constant 0 : i32
    %c0_i32_1 = arith.constant 0 : i32
    return %c0_i32, %c0_i32_0 : i32, i32
  }
  func.func @transform_4(%arg0: i32) -> (i32, i32) {
    %c0_i32 = arith.constant 0 : i32
    %c0_i32_0 = arith.constant 0 : i32
    %c0_i32_1 = arith.constant 0 : i32
    return %c0_i32, %c0_i32_0 : i32, i32
  }
  func.func @transform_5(%arg0: i32) -> (i32, i32, i32) {
    %c0_i32 = arith.constant 0 : i32
    %c0_i32_0 = arith.constant 0 : i32
    %c0_i32_1 = arith.constant 0 : i32
    return %arg0, %c0_i32, %c0_i32_0 : i32, i32, i32
  }
}

module attributes {stable_mosaic.version = 11 : i64} {
  func.func @_linear_ln_kernel(%arg0: i32, %arg1: i32, %arg2: memref<16x768xbf16, #tpu.memory_space<vmem>>, %arg3: memref<768x768xbf16, #tpu.memory_space<vmem>>, %arg4: memref<1x768xf32, #tpu.memory_space<vmem>>, %arg5: memref<16x768xbf16, #tpu.memory_space<vmem>>, %arg6: memref<1x768xf32, #tpu.memory_space<vmem>>, %arg7: memref<1x768xf32, #tpu.memory_space<vmem>>, %arg8: memref<16x768xbf16, #tpu.memory_space<vmem>>, %arg9: memref<16x768xf32, #tpu.memory_space<vmem>>) attributes {dimension_semantics = [#tpu.dimension_semantics<parallel>, #tpu.dimension_semantics<arbitrary>], iteration_bounds = array<i64: 1, 1>, scalar_prefetch = 0 : i64, scratch_operands = 1 : i64, tpu.core_type = #tpu.core_type<tc>, window_params = [{transform_indices = @transform_0, window_bounds = array<i64: 16, 768>}, {transform_indices = @transform_1, window_bounds = array<i64: 768, 768>}, {pipeline_mode = #tpu.pipeline_mode<synchronous>, transform_indices = @transform_2, window_bounds = array<i64: 1, 768>}, {transform_indices = @transform_3, window_bounds = array<i64: 16, 768>}, {pipeline_mode = #tpu.pipeline_mode<synchronous>, transform_indices = @transform_4, window_bounds = array<i64: 1, 768>}, {pipeline_mode = #tpu.pipeline_mode<synchronous>, transform_indices = @transform_5, window_bounds = array<i64: 1, 768>}, {transform_indices = @transform_6, window_bounds = array<i64: 16, 768>}]} {
    %c0_i32 = arith.constant 0 : i32
    %0 = arith.cmpi eq, %arg1, %c0_i32 : i32
    %1 = arith.extui %0 : i1 to i32
    %c0_i32_0 = arith.constant 0 : i32
    %2 = arith.cmpi ne, %1, %c0_i32_0 : i32
    scf.if %2 {
      %cst_10 = arith.constant 0.000000e+00 : f32
      %12 = vector.broadcast %cst_10 : f32 to vector<16x768xf32>
      %c0_11 = arith.constant 0 : index
      %c0_12 = arith.constant 0 : index
      %13 = vector.load %arg9[%c0_11, %c0_12] : memref<16x768xf32, #tpu.memory_space<vmem>>, vector<16x768xf32>
      tpu.vector_store %arg9[%c0_11, %c0_12], %12 {strides = array<i32>} : memref<16x768xf32, #tpu.memory_space<vmem>>, vector<16x768xf32>,
    } else {
    }
    %c0 = arith.constant 0 : index
    %c0_1 = arith.constant 0 : index
    %3 = vector.load %arg9[%c0, %c0_1] : memref<16x768xf32, #tpu.memory_space<vmem>>, vector<16x768xf32>
    %c0_2 = arith.constant 0 : index
    %c0_3 = arith.constant 0 : index
    %4 = vector.load %arg2[%c0_2, %c0_3] : memref<16x768xbf16, #tpu.memory_space<vmem>>, vector<16x768xbf16>
    %c0_4 = arith.constant 0 : index
    %c0_5 = arith.constant 0 : index
    %5 = vector.load %arg3[%c0_4, %c0_5] : memref<768x768xbf16, #tpu.memory_space<vmem>>, vector<768x768xbf16>
    %cst = arith.constant dense<0.000000e+00> : vector<16x768xf32>
    %6 = tpu.matmul %4, %5, %cst {dimension_numbers = #tpu.dot_dimension_numbers<[1], [0], [0], [1], [0, 0, 1, 1], [], []>} : vector<16x768xbf16>, vector<768x768xbf16>, vector<16x768xf32> -> vector<16x768xf32>
    %7 = arith.addf %3, %6 : vector<16x768xf32>
    %c0_6 = arith.constant 0 : index
    %c0_7 = arith.constant 0 : index
    %8 = vector.load %arg9[%c0_6, %c0_7] : memref<16x768xf32, #tpu.memory_space<vmem>>, vector<16x768xf32>
    tpu.vector_store %arg9[%c0_6, %c0_7], %7 {strides = array<i32>} : memref<16x768xf32, #tpu.memory_space<vmem>>, vector<16x768xf32>,
    %c0_i32_8 = arith.constant 0 : i32
    %9 = arith.cmpi eq, %arg1, %c0_i32_8 : i32
    %10 = arith.extui %9 : i1 to i32
    %c0_i32_9 = arith.constant 0 : i32
    %11 = arith.cmpi ne, %10, %c0_i32_9 : i32
    scf.if %11 {
      %c0_10 = arith.constant 0 : index
      %c0_11 = arith.constant 0 : index
      %12 = vector.load %arg9[%c0_10, %c0_11] : memref<16x768xf32, #tpu.memory_space<vmem>>, vector<16x768xf32>
      %c0_12 = arith.constant 0 : index
      %c0_13 = arith.constant 0 : index
      %13 = vector.load %arg4[%c0_12, %c0_13] : memref<1x768xf32, #tpu.memory_space<vmem>>, vector<1x768xf32>
      %14 = vector.broadcast %13 : vector<1x768xf32> to vector<16x768xf32>
      %15 = arith.addf %12, %14 : vector<16x768xf32>
      %c0_14 = arith.constant 0 : index
      %c0_15 = arith.constant 0 : index
      %16 = vector.load %arg5[%c0_14, %c0_15] : memref<16x768xbf16, #tpu.memory_space<vmem>>, vector<16x768xbf16>
      %17 = arith.extf %16 : vector<16x768xbf16> to vector<16x768xf32>
      %18 = arith.addf %15, %17 : vector<16x768xf32>
      %c0_16 = arith.constant 0 : index
      %c0_17 = arith.constant 0 : index
      %19 = vector.load %arg6[%c0_16, %c0_17] : memref<1x768xf32, #tpu.memory_space<vmem>>, vector<1x768xf32>
      %c0_18 = arith.constant 0 : index
      %c0_19 = arith.constant 0 : index
      %20 = vector.load %arg7[%c0_18, %c0_19] : memref<1x768xf32, #tpu.memory_space<vmem>>, vector<1x768xf32>
      %cst_20 = arith.constant dense<0.000000e+00> : vector<16xf32>
      %21 = vector.multi_reduction <add>, %18, %cst_20 [1] : vector<16x768xf32> to vector<16xf32>
      %22 = vector.shape_cast %21 : vector<16xf32> to vector<16x1xf32>
      %cst_21 = arith.constant 7.680000e+02 : f32
      %23 = vector.broadcast %cst_21 : f32 to vector<16x1xf32>
      %24 = arith.divf %22, %23 : vector<16x1xf32>
      %25 = vector.broadcast %24 : vector<16x1xf32> to vector<16x768xf32>
      %26 = arith.subf %18, %25 : vector<16x768xf32>
      %27 = arith.mulf %26, %26 : vector<16x768xf32>
      %cst_22 = arith.constant dense<0.000000e+00> : vector<16xf32>
      %28 = vector.multi_reduction <add>, %27, %cst_22 [1] : vector<16x768xf32> to vector<16xf32>
      %29 = vector.shape_cast %28 : vector<16xf32> to vector<16x1xf32>
      %cst_23 = arith.constant 7.680000e+02 : f32
      %30 = vector.broadcast %cst_23 : f32 to vector<16x1xf32>
      %31 = arith.divf %29, %30 : vector<16x1xf32>
      %cst_24 = arith.constant 9.99999996E-13 : f32
      %32 = vector.broadcast %cst_24 : f32 to vector<16x1xf32>
      %33 = arith.addf %31, %32 : vector<16x1xf32>
      %34 = math.rsqrt %33 : vector<16x1xf32>
      %35 = vector.broadcast %34 : vector<16x1xf32> to vector<16x768xf32>
      %36 = arith.mulf %26, %35 : vector<16x768xf32>
      %37 = vector.broadcast %19 : vector<1x768xf32> to vector<16x768xf32>
      %38 = arith.mulf %36, %37 : vector<16x768xf32>
      %39 = vector.broadcast %20 : vector<1x768xf32> to vector<16x768xf32>
      %40 = arith.addf %38, %39 : vector<16x768xf32>
      %41 = arith.truncf %40 : vector<16x768xf32> to vector<16x768xbf16>
      %c0_25 = arith.constant 0 : index
      %c0_26 = arith.constant 0 : index
      %42 = vector.load %arg8[%c0_25, %c0_26] : memref<16x768xbf16, #tpu.memory_space<vmem>>, vector<16x768xbf16>
      tpu.vector_store %arg8[%c0_25, %c0_26], %41 {strides = array<i32>} : memref<16x768xbf16, #tpu.memory_space<vmem>>, vector<16x768xbf16>,
    } else {
    }
    return
  }
  func.func @transform_0(%arg0: i32, %arg1: i32) -> (i32, i32) {
    %c0_i32 = arith.constant 0 : i32
    return %arg0, %arg1 : i32, i32
  }
  func.func @transform_1(%arg0: i32, %arg1: i32) -> (i32, i32) {
    %c0_i32 = arith.constant 0 : i32
    %c0_i32_0 = arith.constant 0 : i32
    return %arg1, %c0_i32 : i32, i32
  }
  func.func @transform_2(%arg0: i32, %arg1: i32) -> (i32, i32) {
    %c0_i32 = arith.constant 0 : i32
    %c0_i32_0 = arith.constant 0 : i32
    %c0_i32_1 = arith.constant 0 : i32
    return %c0_i32, %c0_i32_0 : i32, i32
  }
  func.func @transform_3(%arg0: i32, %arg1: i32) -> (i32, i32) {
    %c0_i32 = arith.constant 0 : i32
    %c0_i32_0 = arith.constant 0 : i32
    return %arg0, %c0_i32 : i32, i32
  }
  func.func @transform_4(%arg0: i32, %arg1: i32) -> (i32, i32) {
    %c0_i32 = arith.constant 0 : i32
    %c0_i32_0 = arith.constant 0 : i32
    %c0_i32_1 = arith.constant 0 : i32
    return %c0_i32, %c0_i32_0 : i32, i32
  }
  func.func @transform_5(%arg0: i32, %arg1: i32) -> (i32, i32) {
    %c0_i32 = arith.constant 0 : i32
    %c0_i32_0 = arith.constant 0 : i32
    %c0_i32_1 = arith.constant 0 : i32
    return %c0_i32, %c0_i32_0 : i32, i32
  }
  func.func @transform_6(%arg0: i32, %arg1: i32) -> (i32, i32) {
    %c0_i32 = arith.constant 0 : i32
    %c0_i32_0 = arith.constant 0 : i32
    return %arg0, %c0_i32 : i32, i32
  }
}

module attributes {stable_mosaic.version = 11 : i64} {
  func.func @_linear_kernel(%arg0: i32, %arg1: i32, %arg2: i32, %arg3: memref<16x768xbf16, #tpu.memory_space<vmem>>, %arg4: memref<768x768xbf16, #tpu.memory_space<vmem>>, %arg5: memref<1x768xf32, #tpu.memory_space<vmem>>, %arg6: memref<16x768xbf16, #tpu.memory_space<vmem>>, %arg7: memref<16x768xf32, #tpu.memory_space<vmem>>) attributes {dimension_semantics = [#tpu.dimension_semantics<parallel>, #tpu.dimension_semantics<parallel>, #tpu.dimension_semantics<arbitrary>], iteration_bounds = array<i64: 1, 4, 1>, scalar_prefetch = 0 : i64, scratch_operands = 1 : i64, tpu.core_type = #tpu.core_type<tc>, window_params = [{transform_indices = @transform_0, window_bounds = array<i64: 16, 768>}, {transform_indices = @transform_1, window_bounds = array<i64: 768, 768>}, {transform_indices = @transform_2, window_bounds = array<i64: 1, 768>}, {transform_indices = @transform_3, window_bounds = array<i64: 16, 768>}]} {
    %c0_i32 = arith.constant 0 : i32
    %0 = arith.cmpi eq, %arg2, %c0_i32 : i32
    %1 = arith.extui %0 : i1 to i32
    %c0_i32_0 = arith.constant 0 : i32
    %2 = arith.cmpi ne, %1, %c0_i32_0 : i32
    scf.if %2 {
      %cst_10 = arith.constant 0.000000e+00 : f32
      %12 = vector.broadcast %cst_10 : f32 to vector<16x768xf32>
      %c0_11 = arith.constant 0 : index
      %c0_12 = arith.constant 0 : index
      %13 = vector.load %arg7[%c0_11, %c0_12] : memref<16x768xf32, #tpu.memory_space<vmem>>, vector<16x768xf32>
      tpu.vector_store %arg7[%c0_11, %c0_12], %12 {strides = array<i32>} : memref<16x768xf32, #tpu.memory_space<vmem>>, vector<16x768xf32>,
    } else {
    }
    %c0 = arith.constant 0 : index
    %c0_1 = arith.constant 0 : index
    %3 = vector.load %arg7[%c0, %c0_1] : memref<16x768xf32, #tpu.memory_space<vmem>>, vector<16x768xf32>
    %c0_2 = arith.constant 0 : index
    %c0_3 = arith.constant 0 : index
    %4 = vector.load %arg3[%c0_2, %c0_3] : memref<16x768xbf16, #tpu.memory_space<vmem>>, vector<16x768xbf16>
    %c0_4 = arith.constant 0 : index
    %c0_5 = arith.constant 0 : index
    %5 = vector.load %arg4[%c0_4, %c0_5] : memref<768x768xbf16, #tpu.memory_space<vmem>>, vector<768x768xbf16>
    %cst = arith.constant dense<0.000000e+00> : vector<16x768xf32>
    %6 = tpu.matmul %4, %5, %cst {dimension_numbers = #tpu.dot_dimension_numbers<[1], [0], [0], [1], [0, 0, 1, 1], [], []>} : vector<16x768xbf16>, vector<768x768xbf16>, vector<16x768xf32> -> vector<16x768xf32>
    %7 = arith.addf %3, %6 : vector<16x768xf32>
    %c0_6 = arith.constant 0 : index
    %c0_7 = arith.constant 0 : index
    %8 = vector.load %arg7[%c0_6, %c0_7] : memref<16x768xf32, #tpu.memory_space<vmem>>, vector<16x768xf32>
    tpu.vector_store %arg7[%c0_6, %c0_7], %7 {strides = array<i32>} : memref<16x768xf32, #tpu.memory_space<vmem>>, vector<16x768xf32>,
    %c0_i32_8 = arith.constant 0 : i32
    %9 = arith.cmpi eq, %arg2, %c0_i32_8 : i32
    %10 = arith.extui %9 : i1 to i32
    %c0_i32_9 = arith.constant 0 : i32
    %11 = arith.cmpi ne, %10, %c0_i32_9 : i32
    scf.if %11 {
      %c0_10 = arith.constant 0 : index
      %c0_11 = arith.constant 0 : index
      %12 = vector.load %arg7[%c0_10, %c0_11] : memref<16x768xf32, #tpu.memory_space<vmem>>, vector<16x768xf32>
      %c0_12 = arith.constant 0 : index
      %c0_13 = arith.constant 0 : index
      %13 = vector.load %arg5[%c0_12, %c0_13] : memref<1x768xf32, #tpu.memory_space<vmem>>, vector<1x768xf32>
      %14 = vector.broadcast %13 : vector<1x768xf32> to vector<16x768xf32>
      %15 = arith.addf %12, %14 : vector<16x768xf32>
      %cst_14 = arith.constant 5.000000e-01 : f32
      %16 = vector.broadcast %cst_14 : f32 to vector<16x768xf32>
      %17 = arith.mulf %16, %15 : vector<16x768xf32>
      %cst_15 = arith.constant 4.471500e-02 : f32
      %18 = vector.broadcast %cst_15 : f32 to vector<16x768xf32>
      %19 = arith.mulf %18, %15 : vector<16x768xf32>
      %20 = arith.mulf %19, %15 : vector<16x768xf32>
      %21 = arith.mulf %20, %15 : vector<16x768xf32>
      %22 = arith.addf %15, %21 : vector<16x768xf32>
      %cst_16 = arith.constant 0.797884583 : f32
      %23 = vector.broadcast %cst_16 : f32 to vector<16x768xf32>
      %24 = arith.mulf %23, %22 : vector<16x768xf32>
      %25 = math.tanh %24 : vector<16x768xf32>
      %cst_17 = arith.constant 1.000000e+00 : f32
      %26 = vector.broadcast %cst_17 : f32 to vector<16x768xf32>
      %27 = arith.addf %26, %25 : vector<16x768xf32>
      %28 = arith.mulf %17, %27 : vector<16x768xf32>
      %29 = arith.truncf %28 : vector<16x768xf32> to vector<16x768xbf16>
      %c0_18 = arith.constant 0 : index
      %c0_19 = arith.constant 0 : index
      %30 = vector.load %arg6[%c0_18, %c0_19] : memref<16x768xbf16, #tpu.memory_space<vmem>>, vector<16x768xbf16>
      tpu.vector_store %arg6[%c0_18, %c0_19], %29 {strides = array<i32>} : memref<16x768xbf16, #tpu.memory_space<vmem>>, vector<16x768xbf16>,
    } else {
    }
    return
  }
  func.func @transform_0(%arg0: i32, %arg1: i32, %arg2: i32) -> (i32, i32) {
    %c0_i32 = arith.constant 0 : i32
    return %arg0, %arg2 : i32, i32
  }
  func.func @transform_1(%arg0: i32, %arg1: i32, %arg2: i32) -> (i32, i32) {
    %c0_i32 = arith.constant 0 : i32
    return %arg2, %arg1 : i32, i32
  }
  func.func @transform_2(%arg0: i32, %arg1: i32, %arg2: i32) -> (i32, i32) {
    %c0_i32 = arith.constant 0 : i32
    %c0_i32_0 = arith.constant 0 : i32
    return %c0_i32, %arg1 : i32, i32
  }
  func.func @transform_3(%arg0: i32, %arg1: i32, %arg2: i32) -> (i32, i32) {
    %c0_i32 = arith.constant 0 : i32
    return %arg0, %arg1 : i32, i32
  }
}

module attributes {stable_mosaic.version = 11 : i64} {
  func.func @_linear_ln_kernel(%arg0: i32, %arg1: i32, %arg2: memref<16x768xbf16, #tpu.memory_space<vmem>>, %arg3: memref<768x768xbf16, #tpu.memory_space<vmem>>, %arg4: memref<1x768xf32, #tpu.memory_space<vmem>>, %arg5: memref<16x768xbf16, #tpu.memory_space<vmem>>, %arg6: memref<1x768xf32, #tpu.memory_space<vmem>>, %arg7: memref<1x768xf32, #tpu.memory_space<vmem>>, %arg8: memref<16x768xbf16, #tpu.memory_space<vmem>>, %arg9: memref<16x768xf32, #tpu.memory_space<vmem>>) attributes {dimension_semantics = [#tpu.dimension_semantics<parallel>, #tpu.dimension_semantics<arbitrary>], iteration_bounds = array<i64: 1, 4>, scalar_prefetch = 0 : i64, scratch_operands = 1 : i64, tpu.core_type = #tpu.core_type<tc>, window_params = [{transform_indices = @transform_0, window_bounds = array<i64: 16, 768>}, {transform_indices = @transform_1, window_bounds = array<i64: 768, 768>}, {pipeline_mode = #tpu.pipeline_mode<synchronous>, transform_indices = @transform_2, window_bounds = array<i64: 1, 768>}, {transform_indices = @transform_3, window_bounds = array<i64: 16, 768>}, {pipeline_mode = #tpu.pipeline_mode<synchronous>, transform_indices = @transform_4, window_bounds = array<i64: 1, 768>}, {pipeline_mode = #tpu.pipeline_mode<synchronous>, transform_indices = @transform_5, window_bounds = array<i64: 1, 768>}, {transform_indices = @transform_6, window_bounds = array<i64: 16, 768>}]} {
    %c0_i32 = arith.constant 0 : i32
    %0 = arith.cmpi eq, %arg1, %c0_i32 : i32
    %1 = arith.extui %0 : i1 to i32
    %c0_i32_0 = arith.constant 0 : i32
    %2 = arith.cmpi ne, %1, %c0_i32_0 : i32
    scf.if %2 {
      %cst_9 = arith.constant 0.000000e+00 : f32
      %12 = vector.broadcast %cst_9 : f32 to vector<16x768xf32>
      %c0_10 = arith.constant 0 : index
      %c0_11 = arith.constant 0 : index
      %13 = vector.load %arg9[%c0_10, %c0_11] : memref<16x768xf32, #tpu.memory_space<vmem>>, vector<16x768xf32>
      tpu.vector_store %arg9[%c0_10, %c0_11], %12 {strides = array<i32>} : memref<16x768xf32, #tpu.memory_space<vmem>>, vector<16x768xf32>,
    } else {
    }
    %c0 = arith.constant 0 : index
    %c0_1 = arith.constant 0 : index
    %3 = vector.load %arg9[%c0, %c0_1] : memref<16x768xf32, #tpu.memory_space<vmem>>, vector<16x768xf32>
    %c0_2 = arith.constant 0 : index
    %c0_3 = arith.constant 0 : index
    %4 = vector.load %arg2[%c0_2, %c0_3] : memref<16x768xbf16, #tpu.memory_space<vmem>>, vector<16x768xbf16>
    %c0_4 = arith.constant 0 : index
    %c0_5 = arith.constant 0 : index
    %5 = vector.load %arg3[%c0_4, %c0_5] : memref<768x768xbf16, #tpu.memory_space<vmem>>, vector<768x768xbf16>
    %cst = arith.constant dense<0.000000e+00> : vector<16x768xf32>
    %6 = tpu.matmul %4, %5, %cst {dimension_numbers = #tpu.dot_dimension_numbers<[1], [0], [0], [1], [0, 0, 1, 1], [], []>} : vector<16x768xbf16>, vector<768x768xbf16>, vector<16x768xf32> -> vector<16x768xf32>
    %7 = arith.addf %3, %6 : vector<16x768xf32>
    %c0_6 = arith.constant 0 : index
    %c0_7 = arith.constant 0 : index
    %8 = vector.load %arg9[%c0_6, %c0_7] : memref<16x768xf32, #tpu.memory_space<vmem>>, vector<16x768xf32>
    tpu.vector_store %arg9[%c0_6, %c0_7], %7 {strides = array<i32>} : memref<16x768xf32, #tpu.memory_space<vmem>>, vector<16x768xf32>,
    %c3_i32 = arith.constant 3 : i32
    %9 = arith.cmpi eq, %arg1, %c3_i32 : i32
    %10 = arith.extui %9 : i1 to i32
    %c0_i32_8 = arith.constant 0 : i32
    %11 = arith.cmpi ne, %10, %c0_i32_8 : i32
    scf.if %11 {
      %c0_9 = arith.constant 0 : index
      %c0_10 = arith.constant 0 : index
      %12 = vector.load %arg9[%c0_9, %c0_10] : memref<16x768xf32, #tpu.memory_space<vmem>>, vector<16x768xf32>
      %c0_11 = arith.constant 0 : index
      %c0_12 = arith.constant 0 : index
      %13 = vector.load %arg4[%c0_11, %c0_12] : memref<1x768xf32, #tpu.memory_space<vmem>>, vector<1x768xf32>
      %14 = vector.broadcast %13 : vector<1x768xf32> to vector<16x768xf32>
      %15 = arith.addf %12, %14 : vector<16x768xf32>
      %c0_13 = arith.constant 0 : index
      %c0_14 = arith.constant 0 : index
      %16 = vector.load %arg5[%c0_13, %c0_14] : memref<16x768xbf16, #tpu.memory_space<vmem>>, vector<16x768xbf16>
      %17 = arith.extf %16 : vector<16x768xbf16> to vector<16x768xf32>
      %18 = arith.addf %15, %17 : vector<16x768xf32>
      %c0_15 = arith.constant 0 : index
      %c0_16 = arith.constant 0 : index
      %19 = vector.load %arg6[%c0_15, %c0_16] : memref<1x768xf32, #tpu.memory_space<vmem>>, vector<1x768xf32>
      %c0_17 = arith.constant 0 : index
      %c0_18 = arith.constant 0 : index
      %20 = vector.load %arg7[%c0_17, %c0_18] : memref<1x768xf32, #tpu.memory_space<vmem>>, vector<1x768xf32>
      %cst_19 = arith.constant dense<0.000000e+00> : vector<16xf32>
      %21 = vector.multi_reduction <add>, %18, %cst_19 [1] : vector<16x768xf32> to vector<16xf32>
      %22 = vector.shape_cast %21 : vector<16xf32> to vector<16x1xf32>
      %cst_20 = arith.constant 7.680000e+02 : f32
      %23 = vector.broadcast %cst_20 : f32 to vector<16x1xf32>
      %24 = arith.divf %22, %23 : vector<16x1xf32>
      %25 = vector.broadcast %24 : vector<16x1xf32> to vector<16x768xf32>
      %26 = arith.subf %18, %25 : vector<16x768xf32>
      %27 = arith.mulf %26, %26 : vector<16x768xf32>
      %cst_21 = arith.constant dense<0.000000e+00> : vector<16xf32>
      %28 = vector.multi_reduction <add>, %27, %cst_21 [1] : vector<16x768xf32> to vector<16xf32>
      %29 = vector.shape_cast %28 : vector<16xf32> to vector<16x1xf32>
      %cst_22 = arith.constant 7.680000e+02 : f32
      %30 = vector.broadcast %cst_22 : f32 to vector<16x1xf32>
      %31 = arith.divf %29, %30 : vector<16x1xf32>
      %cst_23 = arith.constant 9.99999996E-13 : f32
      %32 = vector.broadcast %cst_23 : f32 to vector<16x1xf32>
      %33 = arith.addf %31, %32 : vector<16x1xf32>
      %34 = math.rsqrt %33 : vector<16x1xf32>
      %35 = vector.broadcast %34 : vector<16x1xf32> to vector<16x768xf32>
      %36 = arith.mulf %26, %35 : vector<16x768xf32>
      %37 = vector.broadcast %19 : vector<1x768xf32> to vector<16x768xf32>
      %38 = arith.mulf %36, %37 : vector<16x768xf32>
      %39 = vector.broadcast %20 : vector<1x768xf32> to vector<16x768xf32>
      %40 = arith.addf %38, %39 : vector<16x768xf32>
      %41 = arith.truncf %40 : vector<16x768xf32> to vector<16x768xbf16>
      %c0_24 = arith.constant 0 : index
      %c0_25 = arith.constant 0 : index
      %42 = vector.load %arg8[%c0_24, %c0_25] : memref<16x768xbf16, #tpu.memory_space<vmem>>, vector<16x768xbf16>
      tpu.vector_store %arg8[%c0_24, %c0_25], %41 {strides = array<i32>} : memref<16x768xbf16, #tpu.memory_space<vmem>>, vector<16x768xbf16>,
    } else {
    }
    return
  }
  func.func @transform_0(%arg0: i32, %arg1: i32) -> (i32, i32) {
    %c0_i32 = arith.constant 0 : i32
    return %arg0, %arg1 : i32, i32
  }
  func.func @transform_1(%arg0: i32, %arg1: i32) -> (i32, i32) {
    %c0_i32 = arith.constant 0 : i32
    %c0_i32_0 = arith.constant 0 : i32
    return %arg1, %c0_i32 : i32, i32
  }
  func.func @transform_2(%arg0: i32, %arg1: i32) -> (i32, i32) {
    %c0_i32 = arith.constant 0 : i32
    %c0_i32_0 = arith.constant 0 : i32
    %c0_i32_1 = arith.constant 0 : i32
    return %c0_i32, %c0_i32_0 : i32, i32
  }
  func.func @transform_3(%arg0: i32, %arg1: i32) -> (i32, i32) {
    %c0_i32 = arith.constant 0 : i32
    %c0_i32_0 = arith.constant 0 : i32
    return %arg0, %c0_i32 : i32, i32
  }
  func.func @transform_4(%arg0: i32, %arg1: i32) -> (i32, i32) {
    %c0_i32 = arith.constant 0 : i32
    %c0_i32_0 = arith.constant 0 : i32
    %c0_i32_1 = arith.constant 0 : i32
    return %c0_i32, %c0_i32_0 : i32, i32
  }
  func.func @transform_5(%arg0: i32, %arg1: i32) -> (i32, i32) {
    %c0_i32 = arith.constant 0 : i32
    %c0_i32_0 = arith.constant 0 : i32
    %c0_i32_1 = arith.constant 0 : i32
    return %c0_i32, %c0_i32_0 : i32, i32
  }
  func.func @transform_6(%arg0: i32, %arg1: i32) -> (i32, i32) {
    %c0_i32 = arith.constant 0 : i32
    %c0_i32_0 = arith.constant 0 : i32
    return %arg0, %c0_i32 : i32, i32
  }
}

module attributes {stable_mosaic.version = 11 : i64} {
  func.func @_pool_cls_kernel(%arg0: i32, %arg1: memref<2x768xbf16, #tpu.memory_space<vmem>>, %arg2: memref<768x768xbf16, #tpu.memory_space<vmem>>, %arg3: memref<1x768xf32, #tpu.memory_space<vmem>>, %arg4: memref<768x128xbf16, #tpu.memory_space<vmem>>, %arg5: memref<1x128xf32, #tpu.memory_space<vmem>>, %arg6: memref<2x128xf32, #tpu.memory_space<vmem>>) attributes {dimension_semantics = [#tpu.dimension_semantics<arbitrary>], iteration_bounds = array<i64: 1>, scalar_prefetch = 0 : i64, scratch_operands = 0 : i64, tpu.core_type = #tpu.core_type<tc>, window_params = [{pipeline_mode = #tpu.pipeline_mode<synchronous>, transform_indices = @transform_0, window_bounds = array<i64: 2, 768>}, {pipeline_mode = #tpu.pipeline_mode<synchronous>, transform_indices = @transform_1, window_bounds = array<i64: 768, 768>}, {pipeline_mode = #tpu.pipeline_mode<synchronous>, transform_indices = @transform_2, window_bounds = array<i64: 1, 768>}, {pipeline_mode = #tpu.pipeline_mode<synchronous>, transform_indices = @transform_3, window_bounds = array<i64: 768, 128>}, {pipeline_mode = #tpu.pipeline_mode<synchronous>, transform_indices = @transform_4, window_bounds = array<i64: 1, 128>}, {pipeline_mode = #tpu.pipeline_mode<synchronous>, transform_indices = @transform_5, window_bounds = array<i64: 2, 128>}]} {
    %c0 = arith.constant 0 : index
    %c0_0 = arith.constant 0 : index
    %0 = vector.load %arg1[%c0, %c0_0] : memref<2x768xbf16, #tpu.memory_space<vmem>>, vector<2x768xbf16>
    %c0_1 = arith.constant 0 : index
    %c0_2 = arith.constant 0 : index
    %1 = vector.load %arg2[%c0_1, %c0_2] : memref<768x768xbf16, #tpu.memory_space<vmem>>, vector<768x768xbf16>
    %cst = arith.constant dense<0.000000e+00> : vector<2x768xf32>
    %2 = tpu.matmul %0, %1, %cst {dimension_numbers = #tpu.dot_dimension_numbers<[1], [0], [0], [1], [0, 0, 1, 1], [], []>} : vector<2x768xbf16>, vector<768x768xbf16>, vector<2x768xf32> -> vector<2x768xf32>
    %c0_3 = arith.constant 0 : index
    %c0_4 = arith.constant 0 : index
    %3 = vector.load %arg3[%c0_3, %c0_4] : memref<1x768xf32, #tpu.memory_space<vmem>>, vector<1x768xf32>
    %4 = vector.broadcast %3 : vector<1x768xf32> to vector<2x768xf32>
    %5 = arith.addf %2, %4 : vector<2x768xf32>
    %6 = math.tanh %5 : vector<2x768xf32>
    %7 = arith.truncf %6 : vector<2x768xf32> to vector<2x768xbf16>
    %c0_5 = arith.constant 0 : index
    %c0_6 = arith.constant 0 : index
    %8 = vector.load %arg4[%c0_5, %c0_6] : memref<768x128xbf16, #tpu.memory_space<vmem>>, vector<768x128xbf16>
    %cst_7 = arith.constant dense<0.000000e+00> : vector<2x128xf32>
    %9 = tpu.matmul %7, %8, %cst_7 {dimension_numbers = #tpu.dot_dimension_numbers<[1], [0], [0], [1], [0, 0, 1, 1], [], []>} : vector<2x768xbf16>, vector<768x128xbf16>, vector<2x128xf32> -> vector<2x128xf32>
    %c0_8 = arith.constant 0 : index
    %c0_9 = arith.constant 0 : index
    %10 = vector.load %arg5[%c0_8, %c0_9] : memref<1x128xf32, #tpu.memory_space<vmem>>, vector<1x128xf32>
    %11 = vector.broadcast %10 : vector<1x128xf32> to vector<2x128xf32>
    %12 = arith.addf %9, %11 : vector<2x128xf32>
    %c0_10 = arith.constant 0 : index
    %c0_11 = arith.constant 0 : index
    %13 = vector.load %arg6[%c0_10, %c0_11] : memref<2x128xf32, #tpu.memory_space<vmem>>, vector<2x128xf32>
    tpu.vector_store %arg6[%c0_10, %c0_11], %12 {strides = array<i32>} : memref<2x128xf32, #tpu.memory_space<vmem>>, vector<2x128xf32>,
    return
  }
  func.func @transform_0(%arg0: i32) -> (i32, i32) {
    %c0_i32 = arith.constant 0 : i32
    %c0_i32_0 = arith.constant 0 : i32
    %c0_i32_1 = arith.constant 0 : i32
    return %c0_i32, %c0_i32_0 : i32, i32
  }
  func.func @transform_1(%arg0: i32) -> (i32, i32) {
    %c0_i32 = arith.constant 0 : i32
    %c0_i32_0 = arith.constant 0 : i32
    %c0_i32_1 = arith.constant 0 : i32
    return %c0_i32, %c0_i32_0 : i32, i32
  }
  func.func @transform_2(%arg0: i32) -> (i32, i32) {
    %c0_i32 = arith.constant 0 : i32
    %c0_i32_0 = arith.constant 0 : i32
    %c0_i32_1 = arith.constant 0 : i32
    return %c0_i32, %c0_i32_0 : i32, i32
  }
  func.func @transform_3(%arg0: i32) -> (i32, i32) {
    %c0_i32 = arith.constant 0 : i32
    %c0_i32_0 = arith.constant 0 : i32
    %c0_i32_1 = arith.constant 0 : i32
    return %c0_i32, %c0_i32_0 : i32, i32
  }
  func.func @transform_4(%arg0: i32) -> (i32, i32) {
    %c0_i32 = arith.constant 0 : i32
    %c0_i32_0 = arith.constant 0 : i32
    %c0_i32_1 = arith.constant 0 : i32
    return %c0_i32, %c0_i32_0 : i32, i32
  }
  func.func @transform_5(%arg0: i32) -> (i32, i32) {
    %c0_i32 = arith.constant 0 : i32
    %c0_i32_0 = arith.constant 0 : i32
    %c0_i32_1 = arith.constant 0 : i32
    return %c0_i32, %c0_i32_0 : i32, i32
  }
}

</mosaic_0001>

<bundles_post_ra>
// kernel: bert_classifier_forward.12
= control target key start
LH: loop header
LB: loop body
LE: loop exit
PB: predicated region body
PF: predicated region fallthrough
CT: control target
= control target key end

     0   :  { %10 = vsyncpa [#allocation3], 0  ;;  %s1296_s0 = inlined_call_operand.hbm [shape: f32[2,8,768], index: 0, kind: input, shape index: {}]   ;;  %s1297_s1 = inlined_call_operand.hbm [shape: f32[1,8,768], index: 1, kind: input, shape index: {}]   ;;  %s1298_s2 = inlined_call_operand.hbm [shape: f32[1,1,768], index: 2, kind: input, shape index: {}]   ;;  %s1299_s3 = inlined_call_operand.hbm [shape: f32[1,768], index: 3, kind: input, shape index: {}]   ;;  %s1300_s4 = inlined_call_operand.hbm [shape: f32[1,768], index: 4, kind: input, shape index: {}]   ;;  %s1301_s5 = inlined_call_operand.hbm [shape: bf16[2,8,768], index: 5, kind: output, shape index: {}]  }
   0x1   :  { %12 = vsyncpa [#allocation3 + $0x1], 0 }
   0x2   :  { %13 = vsyncpa [#allocation6], 0 }
   0x3   :  { %14 = vsyncpa [#allocation9], 0 }
   0x4   :  { %15 = vsyncpa [#allocation4], 0 }
   0x5   :  { %17 = vsyncpa [#allocation4 + $0x1], 0  ;;  %s980_s18 = smov 0   ;;  %s982_s19 = smov 0  }
   0x6   :  { %s984_s20 = smov 0   ;;  %s986_s21 = smov 0  }
   0x7 LB: > { %s944_s22 = smov [#allocation5]   ;;  %s1001_s24 = sadd.s32 4294967295, %s942_s21   ;;  %s942_s21 = sphi %s986_s21, %s1324_s21   ;;  %s938_s20 = sphi %s984_s20, %s1323_s20   ;;  %s934_s19 = sphi %s982_s19, %s1322_s19   ;;  %s930_s18 = sphi %s980_s18, %s1321_s18  }
   0x8   : > { %s177_s23 = sshll.u32 %s944_s22, 4  ;;  %p611_p0 = scmp.ge.s32.totalorder %s942_s21, 1  ;;  %s1006_s23 = int_to_ptr.vmem [resolvable:$true] %s177_s23 }
   0x9   : > { %p1302_p1 = scmp.eq.s32.totalorder %s1001_s24, 0  ;;  %p164_p2 = scmp.lt.s32.totalorder %s942_s21, 3 }
   0xa   : > { %s945_s26 = smov [#allocation8]   ;;  %s946_s28 = smov [#allocation7]  }
   0xb   : > { %p1008_p3 = pnand %p611_p0, %p164_p2  ;;  %s199_s27 = sshll.u32 %s945_s26, 4  ;;  %s1015_s27 = int_to_ptr.vmem [resolvable:$true] %s199_s27 }
   0xc   : > { %s188_s29 = sshll.u32 %s946_s28, 4  ;;  %s947_s6 = smov [#allocation10]   ;;  %s1023_s29 = int_to_ptr.vmem [resolvable:$true] %s188_s29 }
   0xd   : > { %s1305_s25 = scalar_select %p1008_p3, 1, 0 }
   0xe   : > { %p657_p5 = pneg %p1008_p3  ;;  %s1025_s7 = sshll.u32 %s947_s6, 4  ;;  %s211_s7 = int_to_ptr.vmem [resolvable:$true] %s1025_s7 }
   0xf   : > { %s726_s10 = scalar_lea.hbm %s1297_s1, 768 }
  0x10   : > { %p1019_p6 = pnand %p657_p5, %p1302_p1  ;;  %p727_p7 = scmp.ne.s32.totalorder %s1297_s1, %s726_s10 }
  0x11   : > { %p733_p11 = scmp.lt.u32.totalorder %s726_s10, %s1297_s1 }
  0x12   : > { %p1035_p8 = pneg %p1019_p6 }
  0x14   : > { %p729_p9 = pnand %p1035_p8, %p727_p7 }
  0x16   : > { %p730_p10 = pneg %p729_p9 }
  0x18   : > { %p735_p12 = pnand %p733_p11, %p730_p10 }
  0x1a   : > { %738 = shalt.err (!%p735_p12)
}
  0x1b   : > { %s739_s16 = scalar_lea.vmem %s1006_s23, 768  ;;  %p747_p5 = scmp.lt.s32.totalorder %s1006_s23, %s1006_s23 }
  0x1c   : > { %p740_p13 = scmp.ne.s32.totalorder %s1006_s23, %s739_s16  ;;  %p748_p4 = scmp.lt.s32.totalorder %s739_s16, %s739_s16 }
  0x1e   : > { %p742_p0 = pnand %p740_p13, %p1035_p8  ;;  %p749_p7 = por %p748_p4, %p747_p5 }
  0x20   : > { %p743_p2 = pneg %p742_p0 }
  0x22   : > { %p750_p9 = pnand %p749_p7, %p743_p2 }
  0x24   : > { %753 = shalt.err (!%p750_p9)
}
  0x25   : > { %660 = dma.hbm_to_vmem [thread:$0]  (!%p1019_p6), %s1297_s1, 768, %s1006_s23, [#allocation6]  }
  0x26   : > { %s754_s6 = scalar_lea.hbm %s1299_s3, 96 }
  0x27   : > { %p755_p10 = scmp.ne.s32.totalorder %s1299_s3, %s754_s6  ;;  %p761_p12 = scmp.lt.u32.totalorder %s754_s6, %s1299_s3 }
  0x29   : > { %p757_p4 = pnand %p755_p10, %p1035_p8 }
  0x2b   : > { %p758_p11 = pneg %p757_p4 }
  0x2d   : > { %p763_p13 = pnand %p761_p12, %p758_p11 }
  0x2f   : > { %766 = shalt.err (!%p763_p13)
}
  0x30   : > { %s767_s23 = scalar_lea.vmem %s1015_s27, 96  ;;  %p775_p7 = scmp.lt.s32.totalorder %s1015_s27, %s1015_s27 }
  0x31   : > { %p768_p0 = scmp.ne.s32.totalorder %s1015_s27, %s767_s23  ;;  %p776_p9 = scmp.lt.s32.totalorder %s767_s23, %s767_s23 }
  0x33   : > { %p770_p2 = pnand %p768_p0, %p1035_p8  ;;  %p777_p10 = por %p776_p9, %p775_p7 }
  0x35   : > { %p771_p5 = pneg %p770_p2 }
  0x37   : > { %p778_p4 = pnand %p777_p10, %p771_p5 }
  0x39   : > { %781 = shalt.err (!%p778_p4)
}
  0x3a   : > { %666 = dma.hbm_to_vmem [thread:$0]  (!%p1019_p6), %s1299_s3, 96, %s1015_s27, [#allocation9]  }
  0x3b   : > { %s782_s17 = scalar_lea.hbm %s1298_s2, 96 }
  0x3c   : > { %p783_p11 = scmp.ne.s32.totalorder %s1298_s2, %s782_s17  ;;  %p789_p0 = scmp.lt.u32.totalorder %s782_s17, %s1298_s2 }
  0x3e   : > { %p785_p12 = pnand %p783_p11, %p1035_p8 }
  0x40   : > { %p786_p13 = pneg %p785_p12 }
  0x42   : > { %p791_p2 = pnand %p789_p0, %p786_p13 }
  0x44   : > { %794 = shalt.err (!%p791_p2)
}
  0x45   : > { %s795_s27 = scalar_lea.vmem %s1023_s29, 96  ;;  %p803_p10 = scmp.lt.s32.totalorder %s1023_s29, %s1023_s29 }
  0x46   : > { %p796_p5 = scmp.ne.s32.totalorder %s1023_s29, %s795_s27  ;;  %p804_p4 = scmp.lt.s32.totalorder %s795_s27, %s795_s27 }
  0x48   : > { %p798_p7 = pnand %p796_p5, %p1035_p8  ;;  %p805_p11 = por %p804_p4, %p803_p10 }
  0x4a   : > { %p799_p9 = pneg %p798_p7 }
  0x4c   : > { %p806_p12 = pnand %p805_p11, %p799_p9 }
  0x4e   : > { %809 = shalt.err (!%p806_p12)
}
  0x4f   : > { %663 = dma.hbm_to_vmem [thread:$0]  (!%p1019_p6), %s1298_s2, 96, %s1023_s29, [#allocation6]  }
  0x50   : > { %s810_s23 = scalar_lea.hbm %s1300_s4, 96 }
  0x51   : > { %p811_p13 = scmp.ne.s32.totalorder %s1300_s4, %s810_s23  ;;  %p817_p5 = scmp.lt.u32.totalorder %s810_s23, %s1300_s4 }
  0x53   : > { %p813_p0 = pnand %p811_p13, %p1035_p8 }
  0x55   : > { %p814_p2 = pneg %p813_p0 }
  0x57   : > { %p819_p7 = pnand %p817_p5, %p814_p2 }
  0x59   : > { %822 = shalt.err (!%p819_p7)
}
  0x5a   : > { %s823_s17 = scalar_lea.vmem %s211_s7, 96  ;;  %p831_p11 = scmp.lt.s32.totalorder %s211_s7, %s211_s7 }
  0x5b   : > { %p824_p9 = scmp.ne.s32.totalorder %s211_s7, %s823_s17  ;;  %p832_p12 = scmp.lt.s32.totalorder %s823_s17, %s823_s17 }
  0x5d   : > { %p826_p10 = pnand %p824_p9, %p1035_p8  ;;  %p833_p1 = por %p832_p12, %p831_p11 }
  0x5f   : > { %p827_p4 = pneg %p826_p10 }
  0x61   : > { %p834_p3 = pnand %p833_p1, %p827_p4 }
  0x63   : > { %837 = shalt.err (!%p834_p3)
}
  0x64   : > { %669 = dma.hbm_to_vmem [thread:$0]  (!%p1019_p6), %s1300_s4, 96, %s211_s7, [#allocation9]  }
  0x65   : > { %s610_s13 = sadd.s32 4294967294, %s942_s21   ;;  %s1123_s30 = sadd.s32 1, %s942_s21  }
  0x66   : > { %s27_s26 = ssub.s32 %s942_s21, %s1123_s30  ;;  %s30_s28 = sadd.s32 1, %s938_s20 }
  0x67   : > { %p28_p1 = scmp.eq.s32.totalorder %s27_s26, 0  ;;  %p37_p3 = scmp.ne.s32.totalorder %s938_s20, %s934_s19 }
  0x68   : > { %p38_p8 = scmp.eq.s32.totalorder %s942_s21, 0  ;;  %p43_p13 = scmp.ne.s32.totalorder %s934_s19, %s930_s18 }
  0x69   : > { %s1134_s6 = scalar_select %p28_p1, %s938_s20, %s30_s28  }
  0x6a   : > { %p39_p0 = por %p38_p8, %p37_p3  ;;  %p1308_p2 = scmp.eq.s32.totalorder %s1001_s24, 0 }
  0x6b   : > { %p151_p6 = scmp.eq.s32.totalorder %s1001_s24, 1  ;;  %p157_p7 = scmp.eq.s32.totalorder %s610_s13, 1 }
  0x6c   : > { %p1138_p5 = por %p1308_p2, %p43_p13  ;;  %p682_p9 = scmp.lt.s32.totalorder %s942_s21, 2 }
  0x6d   : > { %s221_s7 = sand.u32 1, %s938_s20   ;;  %p1145_p10 = por %p151_p6, %p37_p3 }
  0x6e   : > { %p1149_p4 = por %p157_p7, %p43_p13  ;;  %s632_s10 = smul.u32 48, %s221_s7 }
  0x6f   : > { %s1310_s8 = scalar_select %p1145_p10, 1, 0 }
  0x70   : > { %s1311_s9 = scalar_select %p1149_p4, 1, 0 }
  0x71   : > { %s633_s11 = smul.u32 768, %s942_s21  ;;  %p1154_p11 = pnand %p682_p9, %p39_p0 }
  0x72   : > { %s225_s16 = scalar_lea.vmem [#allocation2], %s632_s10  ;;  %s222_s29 = scalar_lea.sflag [#allocation3], %s221_s7 }
  0x73   : > { %s1161_s15 = scalar_lea.hbm %s1296_s0, %s633_s11  ;;  %s233_s17 = sshll.u32 %s225_s16, 4  ;;  %s1163_s17 = int_to_ptr.vmem [resolvable:$true] %s233_s17 }
  0x74   : > { %s838_s22 = scalar_lea.hbm %s1161_s15, 768  ;;  %p840_p1 = pneg %p1154_p11 }
  0x75   : > { %p839_p12 = scmp.ne.s32.totalorder %s1161_s15, %s838_s22  ;;  %s843_s28 = scalar_lea.hbm %s1296_s0, 1536 }
  0x76   : > { %p844_p13 = scmp.lt.u32.totalorder %s1161_s15, %s1296_s0  ;;  %p845_p0 = scmp.lt.u32.totalorder %s843_s28, %s838_s22 }
  0x77   : > { %p841_p3 = pnand %p840_p1, %p839_p12  ;;  %p847_p6 = scmp.lt.u32.totalorder %s838_s22, %s1161_s15 }
  0x78   : > { %p846_p2 = por %p845_p0, %p844_p13 }
  0x79   : > { %p842_p8 = pneg %p841_p3 }
  0x7a   : > { %p848_p7 = por %p847_p6, %p846_p2 }
  0x7c   : > { %p849_p9 = pnand %p848_p7, %p842_p8 }
  0x7e   : > { %852 = shalt.err (!%p849_p9)
}
  0x7f   : > { %s853_s7 = scalar_lea.vmem %s1163_s17, 768  ;;  %s948_s10 = smov [#allocation2]  }
  0x80   : > { %p854_p12 = scmp.ne.s32.totalorder %s1163_s17, %s853_s7  ;;  %s858_s14 = sshll.u32 %s948_s10, 4  ;;  %s859_s14 = int_to_ptr.vmem [resolvable:$false] %s858_s14 }
  0x81   : > { %s860_s16 = scalar_lea.vmem %s859_s14, 1536  ;;  %p861_p10 = scmp.lt.s32.totalorder %s1163_s17, %s859_s14 }
  0x82   : > { %p856_p3 = pnand %p854_p12, %p840_p1  ;;  %p862_p13 = scmp.lt.s32.totalorder %s860_s16, %s853_s7 }
  0x84   : > { %p857_p4 = pneg %p856_p3  ;;  %p863_p0 = por %p862_p13, %p861_p10 }
  0x86   : > { %p864_p2 = pnand %p863_p0, %p857_p4 }
  0x88   : > { %867 = shalt.err (!%p864_p2)
}
  0x89   : > { %673 = dma.hbm_to_vmem [thread:$0]  (!%p1154_p11), %s1161_s15, 768, %s1163_s17, %s222_s29  }
  0x8a   : > { %p1313_p8 = scmp.ne.s32.totalorder %s1305_s25, 0 }
  0x8b   : > { %s1193_s22 = sand.u32 (!%p1313_p8), 1, %s934_s19  }
  0x8c   : > { %242 = sbr.rel (%p1313_p8) target bundleno = 513 (0x201), region = 40  ;;  %s245_s26 = scalar_lea.sflag (!%p1313_p8), [#allocation3], %s1193_s22 }
  0x8d   : > { %s634_s13 = smul.u32 (!%p1313_p8), 48, %s1193_s22 }
  0x8f   : > { %s1197_s28 = scalar_lea.vmem (!%p1313_p8), [#allocation2], %s634_s13 }
  0x93   : > { %913 = dma.done.wait (%p1138_p5), %s245_s26, 768  }
  0x94   : > { %915 = vsyncadd (%p1138_p5), %s245_s26, 4294966528  ;;  %p1314_p10 = scmp.eq.s32.totalorder %s1001_s24, 0 }
  0x96   : > { %917 = dma.done.wait (%p1314_p10), [#allocation6], 864   ;;  %p1315_p4 = pmov %p1314_p10 }
  0x98   : > { %919 = vsyncadd (%p1315_p4), [#allocation6], 4294966432  ;;  %p1316_p11 = pmov %p1315_p4 }
  0x99   : > { %p1317_p1 = pmov %p1315_p4 }
  0x9a   : > { %921 = dma.done.wait (%p1316_p11), [#allocation9], 192  }
  0x9b   : > { %923 = vsyncadd (%p1317_p1), [#allocation9], 4294967104  ;;  %v311_v0 = vlaneseq  ;;  %v291_v2 = vld [vmem:[%s1197_s28] sm:$0xff]  ;;  %v292_v3 = vld [vmem:[%s1197_s28 + $0x8] sm:$0xff]  ;;  %s635_s25 = smul.u32 24, %s1193_s22  ;;  %p1318_p6 = scmp.ne.s32.totalorder %s1310_s8, 0 }
  0x9c   : > { %v293_v4 = vld [vmem:[%s1197_s28 + $0x10] sm:$0xff]  ;;  %v294_v5 = vld [vmem:[%s1197_s28 + $0x18] sm:$0xff]  ;;  %v295_v13 = vld [vmem:[%s1197_s28 + $0x20] sm:$0xff]  ;;  %s636_s27 = smul.u32 384, %s1001_s24  ;;  %s488_s24 = scalar_lea.sflag [#allocation4], %s1193_s22 }
  0x9d   : > { %v312_v1 = vshrl.u32 %v311_v0, 7  ;;  %v297_v10 = vld [vmem:[#allocation5] sm:$0xff]  ;;  %v298_v11 = vld [vmem:[#allocation5 + $0x8] sm:$0xff]  ;;  %v299_v12 = vld [vmem:[#allocation5 + $0x10] sm:$0xff]  ;;  %s290_s23 = scalar_lea.vmem [#allocation11], %s635_s25  ;;  %s949_s7 = smov [#allocation11]  }
  0x9e   : > { %v300_v14 = vld [vmem:[#allocation5 + $0x18] sm:$0xff]  ;;  %v301_v15 = vld [vmem:[#allocation5 + $0x20] sm:$0xff]  ;;  %v303_v16 = vadd.f32 %v297_v10, %v291_v2  ;;  %v304_v17 = vadd.f32 %v298_v11, %v292_v3  ;;  %v305_v18 = vadd.f32 %v299_v12, %v293_v4  ;;  %v309_v21 = vld [vmem:[#allocation7] sm:$0x3f]  ;;  %s502_s15 = sshll.u32 %s290_s23, 4  ;;  %s1252_s11 = scalar_lea.hbm %s1301_s5, %s636_s27  ;;  %s1254_s15 = int_to_ptr.vmem [resolvable:$true] %s502_s15 }
  0x9f   : > { %v1215_v6 = vsub.s32 0, %v312_v1  ;;  %v1217_v7 = vsub.s32 1, %v312_v1  ;;  %v1219_v8 = vsub.s32 2, %v312_v1  ;;  %v1221_v9 = vsub.s32 3, %v312_v1  ;;  %v296_v27 = vld [vmem:[%s1197_s28 + $0x28] sm:$0xff]  ;;  %s868_s12 = scalar_lea.vmem %s1254_s15, 384 }
  0xa0   : > { %v1224_v19 = vsub.s32 4, %v312_v1  ;;  %v306_v20 = vadd.f32 %v300_v14, %v294_v5  ;;  %v1226_v22 = vsub.s32 5, %v312_v1  ;;  %v302_v28 = vld [vmem:[#allocation5 + $0x28] sm:$0xff]  ;;  %v307_v29 = vadd.f32 %v301_v15, %v295_v13  ;;  %v347_v2 = vld [vmem:[#allocation8] sm:$0x3f]  ;;  %p869_p5 = scmp.ne.s32.totalorder %s1254_s15, %s868_s12  ;;  %s872_s10 = sshll.u32 %s949_s7, 4  ;;  %s873_s10 = int_to_ptr.vmem [resolvable:$false] %s872_s10 }
  0xa1   : > { %v314_v23 = vrot.slane %v309_v21, %v1215_v6  ;;  %v318_v24 = vrot.slane %v309_v21, %v1217_v7  ;;  %v322_v25 = vrot.slane %v309_v21, %v1219_v8  ;;  %v326_v26 = vrot.slane %v309_v21, %v1221_v9  ;;  %v348_v3 = vld [vmem:[#allocation10] sm:$0x3f]  ;;  %s874_s14 = scalar_lea.vmem %s873_s10, 768  ;;  %p875_p12 = scmp.lt.s32.totalorder %s1254_s15, %s873_s10 }
  0xa2   : > { %v330_v30 = vrot.slane %v309_v21, %v1224_v19  ;;  %v308_v34 = vadd.f32 %v302_v28, %v296_v27  ;;  %v334_v35 = vrot.slane %v309_v21, %v1226_v22  ;;  %v390_v4 = vrot.slane %v347_v2, %v1215_v6  ;;  %p870_p7 = pnand %p869_p5, %p1318_p6  ;;  %p876_p3 = scmp.lt.s32.totalorder %s874_s14, %s868_s12 }
  0xa3   : > { %v341_v31 = vadd.f32 %v314_v23, %v303_v16  ;;  %v342_v32 = vadd.f32 %v318_v24, %v304_v17  ;;  %v343_v33 = vadd.f32 %v322_v25, %v305_v18  ;;  %v344_v36 = vadd.f32 %v326_v26, %v306_v20 }
  0xa4   : > { %v345_v38 = vadd.f32 %v330_v30, %v307_v29  ;;  %v346_v40 = vadd.f32 %v334_v35, %v308_v34  ;;  %v394_v5 = vrot.slane %v347_v2, %v1217_v7  ;;  %v398_v10 = vrot.slane %v347_v2, %v1219_v8  ;;  %p871_p9 = pneg %p870_p7  ;;  %p877_p13 = por %p876_p3, %p875_p12 }
  0xa5   : > { %v349_v37 = vadd.f32 %v342_v32, %v341_v31  ;;  %v402_v11 = vrot.slane %v347_v2, %v1221_v9  ;;  %v406_v12 = vrot.slane %v347_v2, %v1224_v19  ;;  %v410_v13 = vrot.slane %v347_v2, %v1226_v22 }
  0xa6   : > { %v435_v15 = vrot.slane %v348_v3, %v1219_v8  ;;  %v439_v16 = vrot.slane %v348_v3, %v1221_v9  ;;  %v427_v17 = vrot.slane %v348_v3, %v1215_v6  ;;  %v431_v18 = vrot.slane %v348_v3, %v1217_v7  ;;  %p878_p0 = pnand %p877_p13, %p871_p9 }
  0xa7   : > { %v350_v39 = vadd.f32 %v349_v37, %v343_v33  ;;  %v443_v25 = vrot.slane %v348_v3, %v1224_v19  ;;  %v447_v26 = vrot.slane %v348_v3, %v1226_v22 }
  0xa9   : > { %v351_v41 = vadd.f32 %v350_v39, %v344_v36 }
  0xab   : > { %v352_v42 = vadd.f32 %v351_v41, %v345_v38 }
  0xad   : > { %v353_v43 = vadd.f32 %v352_v42, %v346_v40 }
  0xaf   : > { %354 = vadd.xlane.f32.xlu0 %v353_v43 }
 0x13c   : > { %v355_v44 = vpop.xlane.xlu0 %354 }
 0x13d   : > { %v357_v45 = vmul.f32 0.0013020834, %v355_v44 }
 0x13f   : > { %v358_v46 = vsub.f32 %v341_v31, %v357_v45  ;;  %v359_v47 = vsub.f32 %v342_v32, %v357_v45  ;;  %v360_v48 = vsub.f32 %v343_v33, %v357_v45  ;;  %v361_v49 = vsub.f32 %v344_v36, %v357_v45 }
 0x140   : > { %v362_v52 = vsub.f32 %v345_v38, %v357_v45  ;;  %v363_v55 = vsub.f32 %v346_v40, %v357_v45 }
 0x141   : > { %v364_v50 = vmul.f32 %v358_v46, %v358_v46  ;;  %v365_v51 = vmul.f32 %v359_v47, %v359_v47  ;;  %v366_v53 = vmul.f32 %v360_v48, %v360_v48  ;;  %v367_v56 = vmul.f32 %v361_v49, %v361_v49 }
 0x142   : > { %v368_v58 = vmul.f32 %v362_v52, %v362_v52  ;;  %v369_v60 = vmul.f32 %v363_v55, %v363_v55 }
 0x143   : > { %v370_v54 = vadd.f32 %v365_v51, %v364_v50 }
 0x145   : > { %v371_v57 = vadd.f32 %v370_v54, %v366_v53 }
 0x147   : > { %v372_v59 = vadd.f32 %v371_v57, %v367_v56 }
 0x149   : > { %v373_v61 = vadd.f32 %v372_v59, %v368_v58 }
 0x14b   : > { %v374_v62 = vadd.f32 %v373_v61, %v369_v60 }
 0x14d   : > { %375 = vadd.xlane.f32.xlu0 %v374_v62 }
 0x1da   : > { %v376_v63 = vpop.xlane.xlu0 %375 }
 0x1db   : > { %v377_v0 = vmul.f32 0.0013020834, %v376_v63 }
 0x1dd   : > { %v378_v1 = vadd.f32 1e-12, %v377_v0 }
 0x1df   : > { %724 = vrsqrt.f32 %v378_v1 }
 0x1e9   : > { %v725_v14 = vpop.eup %724 }
 0x1ea   : > { %v380_v20 = vmul.f32 %v725_v14, %v358_v46  ;;  %v381_v21 = vmul.f32 %v725_v14, %v359_v47  ;;  %v382_v23 = vmul.f32 %v725_v14, %v360_v48  ;;  %v383_v24 = vmul.f32 %v725_v14, %v361_v49 }
 0x1eb   : > { %v384_v27 = vmul.f32 %v725_v14, %v362_v52  ;;  %v385_v28 = vmul.f32 %v725_v14, %v363_v55 }
 0x1ec   : > { %v417_v29 = vmul.f32 %v390_v4, %v380_v20  ;;  %v418_v30 = vmul.f32 %v394_v5, %v381_v21  ;;  %v419_v8 = vmul.f32 %v398_v10, %v382_v23  ;;  %v420_v31 = vmul.f32 %v402_v11, %v383_v24 }
 0x1ed   : > { %v421_v9 = vmul.f32 %v406_v12, %v384_v27  ;;  %v422_v32 = vmul.f32 %v410_v13, %v385_v28 }
 0x1ee   : > { %v454_v6 = vadd.f32 %v427_v17, %v417_v29  ;;  %v455_v7 = vadd.f32 %v431_v18, %v418_v30  ;;  %v456_v33 = vadd.f32 %v435_v15, %v419_v8  ;;  %v457_v34 = vadd.f32 %v439_v16, %v420_v31 }
 0x1ef   : > { %v458_v19 = vadd.f32 %v443_v25, %v421_v9  ;;  %v459_v35 = vadd.f32 %v447_v26, %v422_v32 }
 0x1f0   : > { %v629_v22 = vpack.c.bf16 %v455_v7, %v454_v6  ;;  %v630_v36 = vpack.c.bf16 %v457_v34, %v456_v33 }
 0x1f1   : > { %v631_v37 = vpack.c.bf16 %v459_v35, %v458_v19 }
 0x1f2   : > { %484 = vst [vmem:[%s290_s23] sm:$0xff] %v629_v22  ;;  %485 = vst [vmem:[%s290_s23 + $0x8] sm:$0xff] %v630_v36 }
 0x1f3   : > { %486 = vst [vmem:[%s290_s23 + $0x10] sm:$0xff] %v631_v37 }
 0x1f4   : > { %881 = shalt.err (!%p878_p0)
}
 0x1f5   : > { %s882_s16 = scalar_lea.hbm %s1252_s11, 384  ;;  %s886_s26 = scalar_lea.hbm %s1301_s5, 768 }
 0x1f6   : > { %p883_p2 = scmp.ne.s32.totalorder %s1252_s11, %s882_s16  ;;  %p887_p4 = scmp.lt.u32.totalorder %s1252_s11, %s1301_s5 }
 0x1f7   : > { %p888_p11 = scmp.lt.u32.totalorder %s886_s26, %s882_s16  ;;  %p890_p5 = scmp.lt.u32.totalorder %s882_s16, %s1252_s11 }
 0x1f8   : > { %p884_p8 = pnand %p883_p2, %p1318_p6 }
 0x1f9   : > { %p889_p1 = por %p888_p11, %p887_p4 }
 0x1fa   : > { %p885_p10 = pneg %p884_p8 }
 0x1fb   : > { %p891_p7 = por %p890_p5, %p889_p1 }
 0x1fd   : > { %p892_p9 = pnand %p891_p7, %p885_p10 }
 0x1ff   : > { %895 = shalt.err (!%p892_p9)
}
 0x200   : > { %655 = dma.vmem_to_hbm [thread:$0]  (%p1318_p6), %s1254_s15, 384, %s1252_s11, %s488_s24  }
 0x201 PF: > { %s514_s27 = sand.u32 1, %s930_s18   ;;  %p1319_p12 = scmp.ne.s32.totalorder %s1311_s9, 0 }
 0x202   : > { %p1320_p3 = scmp.ge.s32.totalorder %s942_s21, 2  ;;  %s515_s23 = scalar_lea.sflag [#allocation4], %s514_s27 }
 0x204   : > { %p675_p13 = pnand %p1320_p3, %p1319_p12 }
 0x206   : > { %925 = dma.done.wait (!%p675_p13), %s515_s23, 384  }
 0x207   : > { %927 = vsyncadd (!%p675_p13), %s515_s23, 4294966912  ;;  %p20_p0 = scmp.ge.s32.totalorder %s1123_s30, 4   ;;  %s1321_s18 = smov %s934_s19 }
 0x208   : > { %s1322_s19 = smov %s938_s20  ;;  %s1323_s20 = smov %s1134_s6 }
 0x209   : > { %s1324_s21 = smov %s1123_s30  ;;  %22 = sbr.rel (!%p20_p0) target bundleno = 7 (0x7), region = 101 }
 0x210   :  { %520 = vsyncpa [#allocation3], 1 }
 0x211   :  { %522 = vsyncpa [#allocation3 + $0x1], 1 }
 0x212   :  { %523 = vsyncpa [#allocation6], 1 }
 0x213   :  { %524 = vsyncpa [#allocation9], 1 }
 0x214   :  { %525 = vsyncpa [#allocation4], 1 }
 0x215   :  { %527 = vsyncpa [#allocation4 + $0x1], 1 }

// kernel: bert_classifier_forward.14
= control target key start
LH: loop header
LB: loop body
LE: loop exit
PB: predicated region body
PF: predicated region fallthrough
CT: control target
= control target key end

     0   :  { %7 = vsyncpa [#allocation3], 0  ;;  %s2821_s0 = inlined_call_operand.hbm [shape: bf16[2,8,2304], index: 0, kind: input, shape index: {}]   ;;  %s2822_s1 = inlined_call_operand.hbm [shape: f32[2,1,8], index: 1, kind: input, shape index: {}]   ;;  %s2823_s2 = inlined_call_operand.hbm [shape: bf16[2,8,768], index: 2, kind: output, shape index: {}]  }
   0x1   :  { %9 = vsyncpa [#allocation3 + $0x1], 0 }
   0x2   :  { %10 = vsyncpa [#allocation6], 0 }
   0x3   :  { %12 = vsyncpa [#allocation6 + $0x1], 0 }
   0x4   :  { %13 = vsyncpa [#allocation4], 0 }
   0x5   :  { %15 = vsyncpa [#allocation4 + $0x1], 0  ;;  %s2272_s9 = smov 0   ;;  %s2274_s10 = smov 0  }
   0x6   :  { %s2276_s11 = smov 0   ;;  %s2278_s12 = smov 0  }
   0x7 LB: > { %s2293_s13 = sadd.s32 4294967295, %s2249_s12   ;;  %s1729_s14 = sadd.s32 4294967294, %s2249_s12   ;;  %s2249_s12 = sphi %s2278_s12, %s2841_s12   ;;  %s2245_s11 = sphi %s2276_s11, %s2840_s11   ;;  %s2241_s10 = sphi %s2274_s10, %s2839_s10   ;;  %s2237_s9 = sphi %s2272_s9, %s2838_s9  }
   0x8   : > { %s2297_s15 = sadd.s32 1, %s2249_s12   ;;  %s28_s16 = sadd.s32 1, %s2245_s11 }
   0x9   : > { %s25_s17 = ssub.s32 %s2249_s12, %s2297_s15  ;;  %p35_p0 = scmp.ne.s32.totalorder %s2245_s11, %s2241_s10 }
   0xa   : > { %p26_p1 = scmp.eq.s32.totalorder %s25_s17, 0  ;;  %p36_p2 = scmp.eq.s32.totalorder %s2249_s12, 0 }
   0xb   : > { %p41_p3 = scmp.ne.s32.totalorder %s2241_s10, %s2237_s9  ;;  %p42_p4 = scmp.eq.s32.totalorder %s2293_s13, 0 }
   0xc   : > { %s2309_s18 = scalar_select %p26_p1, %s2245_s11, %s28_s16  }
   0xd   : > { %p37_p5 = por %p36_p2, %p35_p0  ;;  %p2311_p6 = por %p42_p4, %p41_p3 }
   0xe   : > { %p91_p7 = scmp.eq.s32.totalorder %s2293_s13, 1  ;;  %p97_p8 = scmp.eq.s32.totalorder %s1729_s14, 1 }
   0xf   : > { %s2826_s19 = scalar_select %p2311_p6, 1, 0 }
  0x10   : > { %p2001_p10 = scmp.lt.s32.totalorder %s2249_s12, 2  ;;  %p2318_p11 = por %p91_p7, %p35_p0 }
  0x11   : > { %p2322_p12 = por %p97_p8, %p41_p3  ;;  %s2327_s22 = sand.u32 1, %s2245_s11  }
  0x12   : > { %s2827_s20 = scalar_select %p2318_p11, 1, 0 }
  0x13   : > { %s2828_s21 = scalar_select %p2322_p12, 1, 0 }
  0x14   : > { %s1980_s23 = smul.u32 1152, %s2249_s12  ;;  %p2336_p13 = pnand %p2001_p10, %p37_p5 }
  0x15   : > { %s1979_s24 = smul.u32 72, %s2327_s22  ;;  %s118_s3 = scalar_lea.sflag [#allocation3], %s2327_s22 }
  0x16   : > { %s2334_s27 = scalar_lea.hbm %s2821_s0, %s1980_s23  ;;  %p2121_p3 = pneg %p2336_p13 }
  0x17   : > { %s121_s29 = scalar_lea.vmem [#allocation2], %s1979_s24  ;;  %s2119_s4 = scalar_lea.hbm %s2334_s27, 1152 }
  0x18   : > { %s129_s30 = sshll.u32 %s121_s29, 4  ;;  %p2120_p2 = scmp.ne.s32.totalorder %s2334_s27, %s2119_s4  ;;  %s2341_s30 = int_to_ptr.vmem [resolvable:$true] %s129_s30 }
  0x19   : > { %s2124_s7 = scalar_lea.hbm %s2821_s0, 2304  ;;  %p2125_p7 = scmp.lt.u32.totalorder %s2334_s27, %s2821_s0 }
  0x1a   : > { %p2122_p4 = pnand %p2121_p3, %p2120_p2  ;;  %p2126_p8 = scmp.lt.u32.totalorder %s2124_s7, %s2119_s4 }
  0x1b   : > { %p2128_p9 = scmp.lt.u32.totalorder %s2119_s4, %s2334_s27 }
  0x1c   : > { %p2123_p5 = pneg %p2122_p4  ;;  %p2127_p10 = por %p2126_p8, %p2125_p7 }
  0x1e   : > { %p2129_p0 = por %p2128_p9, %p2127_p10 }
  0x20   : > { %p2130_p1 = pnand %p2129_p0, %p2123_p5 }
  0x22   : > { %2133 = shalt.err (!%p2130_p1)
}
  0x23   : > { %s2134_s16 = scalar_lea.vmem %s2341_s30, 1152  ;;  %s2251_s17 = smov [#allocation2]  }
  0x24   : > { %p2135_p2 = scmp.ne.s32.totalorder %s2341_s30, %s2134_s16  ;;  %s2139_s23 = sshll.u32 %s2251_s17, 4  ;;  %s2140_s23 = int_to_ptr.vmem [resolvable:$false] %s2139_s23 }
  0x25   : > { %s2141_s24 = scalar_lea.vmem %s2140_s23, 2304  ;;  %p2142_p11 = scmp.lt.s32.totalorder %s2341_s30, %s2140_s23 }
  0x26   : > { %p2137_p4 = pnand %p2135_p2, %p2121_p3  ;;  %p2143_p7 = scmp.lt.s32.totalorder %s2141_s24, %s2134_s16 }
  0x28   : > { %p2138_p12 = pneg %p2137_p4  ;;  %p2144_p8 = por %p2143_p7, %p2142_p11 }
  0x2a   : > { %p2145_p9 = pnand %p2144_p8, %p2138_p12 }
  0x2c   : > { %2148 = shalt.err (!%p2145_p9)
}
  0x2d   : > { %1993 = dma.hbm_to_vmem [thread:$0]  (!%p2336_p13), %s2334_s27, 1152, %s2341_s30, %s118_s3  }
  0x2e   : > { %p2830_p0 = scmp.lt.s32.totalorder %s2249_s12, 3  ;;  %p2831_p1 = scmp.ge.s32.totalorder %s2249_s12, 1 }
  0x2f   : > { %s1733_s26 = sshll.u32 %s2249_s12, 4  ;;  %s139_s6 = scalar_lea.vmem [#allocation5], %s2327_s22 }
  0x30   : > { %p2374_p5 = pnand %p2831_p1, %p2830_p0  ;;  %s2382_s5 = scalar_lea.hbm %s2822_s1, %s1733_s26 }
  0x31   : > { %s146_s7 = sshll.u32 %s139_s6, 4  ;;  %s137_s27 = scalar_lea.sflag [#allocation6], %s2327_s22  ;;  %s147_s7 = int_to_ptr.vmem [resolvable:$true] %s146_s7 }
  0x32   : > { %s2832_s25 = scalar_select %p2374_p5, 1, 0 }
  0x33   : > { %s2149_s30 = scalar_lea.hbm %s2382_s5, 16  ;;  %s2154_s14 = scalar_lea.hbm %s2822_s1, 32 }
  0x34   : > { %p2150_p11 = scmp.ne.s32.totalorder %s2382_s5, %s2149_s30  ;;  %p2155_p2 = scmp.lt.u32.totalorder %s2382_s5, %s2822_s1 }
  0x35   : > { %p2156_p4 = scmp.lt.u32.totalorder %s2154_s14, %s2149_s30  ;;  %p2158_p8 = scmp.lt.u32.totalorder %s2149_s30, %s2382_s5 }
  0x36   : > { %p2152_p12 = pnand %p2150_p11, %p2121_p3 }
  0x37   : > { %p2157_p7 = por %p2156_p4, %p2155_p2 }
  0x38   : > { %p2153_p10 = pneg %p2152_p12 }
  0x39   : > { %p2159_p9 = por %p2158_p8, %p2157_p7 }
  0x3b   : > { %p2160_p0 = pnand %p2159_p9, %p2153_p10 }
  0x3d   : > { %2163 = shalt.err (!%p2160_p0)
}
  0x3e   : > { %s2164_s22 = scalar_lea.vmem %s147_s7, 16  ;;  %s2252_s23 = smov [#allocation5]  }
  0x3f   : > { %p2165_p1 = scmp.ne.s32.totalorder %s147_s7, %s2164_s22  ;;  %s2169_s24 = sshll.u32 %s2252_s23, 4  ;;  %s2170_s24 = int_to_ptr.vmem [resolvable:$false] %s2169_s24 }
  0x40   : > { %s2171_s26 = scalar_lea.vmem %s2170_s24, 32  ;;  %p2172_p6 = scmp.lt.s32.totalorder %s147_s7, %s2170_s24 }
  0x41   : > { %p2167_p11 = pnand %p2165_p1, %p2121_p3  ;;  %p2173_p5 = scmp.lt.s32.totalorder %s2171_s26, %s2164_s22 }
  0x43   : > { %p2168_p12 = pneg %p2167_p11  ;;  %p2174_p2 = por %p2173_p5, %p2172_p6 }
  0x45   : > { %p2175_p4 = pnand %p2174_p2, %p2168_p12 }
  0x47   : > { %2178 = shalt.err (!%p2175_p4)
}
  0x48   : > { %1996 = dma.hbm_to_vmem [thread:$0]  (!%p2336_p13), %s2382_s5, 16, %s147_s7, %s137_s27  }
  0x49   : > { %p2833_p10 = scmp.ne.s32.totalorder %s2832_s25, 0 }
  0x4a   : > { %s2408_s29 = sand.u32 (!%p2833_p10), 1, %s2241_s10   ;;  %p2834_p6 = scmp.ne.s32.totalorder (!%p2833_p10), %s2826_s19, 0 }
  0x4b   : > { %155 = sbr.rel (%p2833_p10) target bundleno = 1661 (0x67d), region = 28  ;;  %s158_s6 = scalar_lea.sflag (!%p2833_p10), [#allocation3], %s2408_s29 }
  0x4c   : > { %s1981_s4 = smul.u32 (!%p2833_p10), 72, %s2408_s29 }
  0x4e   : > { %s2412_s30 = scalar_lea.vmem (!%p2833_p10), [#allocation2], %s1981_s4 }
  0x52   : > { %2224 = dma.done.wait (%p2834_p6), %s158_s6, 1152  }
  0x53   : > { %2226 = vsyncadd (%p2834_p6), %s158_s6, 4294966144  ;;  %s167_s28 = scalar_lea.sflag [#allocation6], %s2408_s29  ;;  %s169_s25 = scalar_lea.vmem [#allocation5], %s2408_s29 }
  0x54   : > { %2228 = dma.done.wait (%p2834_p6), %s167_s28, 16  }
  0x55   : > { %2230 = vsyncadd (%p2834_p6), %s167_s28, 4294967280  ;;  %v2253_v0 = vmov 0.0   ;;  %vm2254_vm0 = vmmov 0   ;;  %vm205_vm1 = vcmask 523264   ;;  %v198_v1 = vld [vmem:[%s2412_s30 + $0x18] sm:$0xff]  ;;  %v195_v3 = vld [vmem:[%s2412_s30] sm:$0xff] }
  0x56   : > { %1835 = vmatprep.subr.bf16.mxu0 %v2253_v0  ;;  %1837 = vmatprep.mubr.msk.bf16.mxu0 %vm2254_vm0, %v2253_v0  ;;  %v210_v2 = vsel %vm205_vm1, %v198_v1, 0  ;;  %v2437_v5 = vld [vmem:[%s169_s25] ss:$0 sm:$0xff]  ;;  %vm260_vm2 = vcmask 64512   ;;  %v1739_v12 = vcombine.low %v198_v1, %v198_v1  ;;  %s2255_s19 = smov 64   ;;  %v1738_v13 = vcombine.low %v195_v3, %v195_v3  ;;  %v2446_v17 = vld [vmem:[%s2412_s30 + $0x8] sm:$0xff] }
  0x57   : > { %1841 = vmatprep.subr.bf16.mxu1 %v2253_v0  ;;  %1843 = vmatprep.mubr.msk.bf16.mxu1 %vm2254_vm0, %v2253_v0  ;;  %v1743_v14 = vcombine.high %v195_v3, %v195_v3  ;;  %v199_v15 = vld [vmem:[%s2412_s30 + $0x20] sm:$0xff]  ;;  %v1752_v18 = vcombine.low %v2446_v17, %v2446_v17  ;;  %v2458_v20 = vcombine.high %v2446_v17, %v2446_v17  ;;  %v2461_v21 = vld [vmem:[%s2412_s30 + $0x28] sm:$0xff]  ;;  %v2476_v29 = vld [vmem:[%s2412_s30 + $0x30] sm:$0xff]  ;;  %vm276_vm3 = vcmask 1043456   ;;  %s1982_s5 = smul.u32 24, %s2408_s29  ;;  %p2835_p3 = scmp.ne.s32.totalorder %s2827_s20, 0 }
  0x58   : > { %1836 = vmatpush3.bf16.xpose.msra.mxu0 %v210_v2  ;;  %328 = vrot.lane.b32.xlu1 %v1739_v12, %s2255_s19  ;;  %v1753_v16 = vcombine.low %v199_v15, %v199_v15  ;;  %v2452_v19 = vcombine.high %v199_v15, %v199_v15  ;;  %v1767_v22 = vcombine.low %v2461_v21, %v2461_v21  ;;  %v278_v30 = vsel %vm276_vm3, %v2476_v29, 0  ;;  %v197_v32 = vld [vmem:[%s2412_s30 + $0x10] sm:$0xff]  ;;  %s1983_s27 = smul.u32 384, %s2293_s13  ;;  %s1625_s13 = scalar_lea.sflag [#allocation4], %s2408_s29 }
  0x59   : > { %1853 = vmatprep.subr.bf16.mxu0 %v2253_v0  ;;  %v2470_v23 = vcombine.high %v2461_v21, %v2461_v21  ;;  %1842 = vmatpush3.bf16.msra.mxu1 %v278_v30  ;;  %v1744_v31 = vcombine.high %v198_v1, %v198_v1  ;;  %v1766_v33 = vcombine.low %v197_v32, %v197_v32  ;;  %v669_v46 = vsel %vm205_vm1, %v199_v15, 0  ;;  %s193_s7 = scalar_lea.vmem [#allocation7], %s1982_s5  ;;  %s2256_s22 = smov [#allocation7]  }
  0x5a   : > { %1847 = vmatprep.subr.bf16.mxu1 %v2253_v0  ;;  %v2484_v34 = vcombine.high %v197_v32, %v197_v32  ;;  %v900_v50 = vsel %vm205_vm1, %v2452_v19, 0  ;;  %v1120_v54 = vsel %vm205_vm1, %v2461_v21, 0  ;;  %s1639_s3 = sshll.u32 %s193_s7, 4  ;;  %s2777_s16 = scalar_lea.hbm %s2823_s2, %s1983_s27  ;;  %s2779_s3 = int_to_ptr.vmem [resolvable:$true] %s1639_s3 }
  0x5b   : > { %v449_v42 = vsel %vm205_vm1, %v1744_v31, 0  ;;  %v1351_v58 = vsel %vm205_vm1, %v2470_v23, 0  ;;  %s2179_s17 = scalar_lea.vmem %s2779_s3, 384  ;;  %s2183_s23 = sshll.u32 %s2256_s22, 4  ;;  %s2184_s23 = int_to_ptr.vmem [resolvable:$false] %s2183_s23 }
  0x5c   : > { %323 = vrot.lane.b32.xlu1 %v1738_v13, %s2255_s19  ;;  %p2180_p13 = scmp.ne.s32.totalorder %s2779_s3, %s2179_s17  ;;  %s2185_s24 = scalar_lea.vmem %s2184_s23, 768 }
  0x5d   : > { %p2186_p8 = scmp.lt.s32.totalorder %s2779_s3, %s2184_s23  ;;  %p2187_p9 = scmp.lt.s32.totalorder %s2185_s24, %s2179_s17 }
  0x5e   : > { %p2181_p5 = pnand %p2180_p13, %p2835_p3 }
  0x5f   : > { %1838 = vmatmul.mubr.msk.bf16.vlgmr.msra.gmra.mrb[0].mxu0 %vm205_vm1, %v195_v3  ;;  %p2188_p0 = por %p2187_p9, %p2186_p8 }
  0x60   : > { %1855 = vmatprep.mubr.msk.bf16.mxu0 %vm2254_vm0, %v2253_v0  ;;  %553 = vrot.lane.b32.xlu1 %v1743_v14, %s2255_s19  ;;  %p2182_p7 = pneg %p2181_p5 }
  0x62   : > { %p2189_p1 = pnand %p2188_p0, %p2182_p7 }
  0x64   : > { %779 = vrot.lane.b32.xlu1 %v1753_v16, %s2255_s19 }
  0x68   : > { %774 = vrot.lane.b32.xlu1 %v1752_v18, %s2255_s19 }
  0x6c   : > { %1006 = vrot.lane.b32.xlu1 %v2452_v19, %s2255_s19 }
  0x70   : > { %1004 = vrot.lane.b32.xlu1 %v2458_v20, %s2255_s19 }
  0x74   : > { %1230 = vrot.lane.b32.xlu1 %v1767_v22, %s2255_s19 }
  0x78   : > { %1457 = vrot.lane.b32.xlu1 %v2470_v23, %s2255_s19 }
  0xca   : > { %v329_v37 = vpop.permute.xlu1 %328 }
  0xcb   : > { %v334_v39 = vsel %vm205_vm1, %v329_v37, 0 }
  0xce   : > { %v324_v41 = vpop.permute.xlu1 %323 }
  0xd2   : > { %v554_v45 = vpop.permute.xlu1 %553 }
  0xd6   : > { %v780_v47 = vpop.permute.xlu1 %779 }
  0xd7   : > { %v785_v48 = vsel %vm205_vm1, %v780_v47, 0 }
  0xda   : > { %v775_v49 = vpop.permute.xlu1 %774 }
  0xde   : > { %v1007_v51 = vpop.permute.xlu1 %1006 }
  0xdf   : > { %v1012_v52 = vsel %vm205_vm1, %v1007_v51, 0 }
  0xe2   : > { %v1005_v53 = vpop.permute.xlu1 %1004 }
  0xe6   : > { %v1231_v55 = vpop.permute.xlu1 %1230 }
  0xe7   : > { %v1236_v56 = vsel %vm205_vm1, %v1231_v55, 0 }
  0xea   : > { %v1458_v59 = vpop.permute.xlu1 %1457 }
  0xeb   : > { %v1463_v60 = vsel %vm205_vm1, %v1458_v59, 0 }
 0x132   : > { %v246_v4 = vpop.f32.mrb[0].mxu0 }
 0x133   : > { %v252_v6 = vmul.f32 0.125, %v246_v4  ;;  %v1839_v7 = vpop.f32.mrb[1].mxu0 }
 0x134   : > { %v249_v8 = vpop.f32.mrb[2].mxu0 }
 0x135   : > { %v1840_v9 = vpop.f32.mrb[3].mxu0  ;;  %v259_v10 = vadd.f32 %v2437_v5, %v252_v6 }
 0x137   : > { %v261_v11 = vsel %vm260_vm2, %v259_v10, -inf }
 0x138   : > { %262 = vmax.xlane.f32.xlu0 %v261_v11 }
 0x1c5   : > { %v263_v24 = vpop.xlane.xlu0 %262 }
 0x1c6   : > { %v264_v25 = vsub.f32 %v259_v10, %v263_v24 }
 0x1c8   : > { %v265_v26 = vmul.f32 1.442695, %v264_v25 }
 0x1ca   : > { %2071 = vpow2.f32 %v265_v26 }
 0x1d4   : > { %v2072_v27 = vpop.eup %2071 }
 0x1d5   : > { %v267_v28 = vsel %vm260_vm2, %v2072_v27, 0.0 }
 0x1d6   : > { %268 = vadd.xlane.f32.xlu0 %v267_v28 }
 0x1ec   : > { %555 = vrot.lane.b32.xlu0 %v1744_v31, %s2255_s19 }
 0x1f0   : > { %1225 = vrot.lane.b32.xlu0 %v1766_v33, %s2255_s19 }
 0x1f4   : > { %1455 = vrot.lane.b32.xlu0 %v2484_v34, %s2255_s19 }
 0x263   : > { %v269_v35 = vpop.xlane.xlu0 %268 }
 0x264   : > { %2073 = vrcp.f32 %v269_v35 }
 0x267   : > { %v556_v43 = vpop.permute.xlu0 %555 }
 0x268   : > { %v561_v44 = vsel %vm205_vm1, %v556_v43, 0 }
 0x26b   : > { %v1226_v57 = vpop.permute.xlu0 %1225 }
 0x26e   : > { %v2074_v36 = vpop.eup %2073 }
 0x26f   : > { %v271_v38 = vmul.f32 %v2074_v36, %v2072_v27  ;;  %v1456_v61 = vpop.permute.xlu0 %1455 }
 0x271   : > { %v272_v40 = vpack.c.bf16 %v271_v38, %v271_v38 }
 0x273   : > { %1844 = vmatmul.mubr.msk.bf16.vlgmr.msra.gmra.mrb[0].mxu1 %vm260_vm2, %v272_v40 }
 0x274   : > { %1848 = vmatpush3.bf16.xpose.msra.mxu1 %v334_v39  ;;  %1849 = vmatprep.mubr.msk.bf16.mxu1 %vm2254_vm0, %v2253_v0 }
 0x275   : > { %1859 = vmatprep.subr.bf16.mxu1 %v2253_v0 }
 0x27b   : > { %1850 = vmatmul.mubr.msk.bf16.vlgmr.msra.gmra.mrb[4].mxu1 %vm205_vm1, %v324_v41 }
 0x27c   : > { %1860 = vmatpush3.bf16.xpose.msra.mxu1 %v449_v42  ;;  %1861 = vmatprep.mubr.msk.bf16.mxu1 %vm2254_vm0, %v2253_v0 }
 0x27d   : > { %1871 = vmatprep.subr.bf16.mxu1 %v2253_v0 }
 0x283   : > { %1862 = vmatmul.mubr.msk.bf16.vlgmr.msra.gmra.mrb[8].mxu1 %vm205_vm1, %v1743_v14 }
 0x284   : > { %1872 = vmatpush3.bf16.xpose.msra.mxu1 %v561_v44  ;;  %1873 = vmatprep.mubr.msk.bf16.mxu1 %vm2254_vm0, %v2253_v0 }
 0x285   : > { %1883 = vmatprep.subr.bf16.mxu1 %v2253_v0 }
 0x28b   : > { %1874 = vmatmul.mubr.msk.bf16.vlgmr.msra.gmra.mrb[12].mxu1 %vm205_vm1, %v554_v45 }
 0x28c   : > { %1884 = vmatpush3.bf16.xpose.msra.mxu1 %v669_v46  ;;  %1885 = vmatprep.mubr.msk.bf16.mxu1 %vm2254_vm0, %v2253_v0 }
 0x28d   : > { %1895 = vmatprep.subr.bf16.mxu1 %v2253_v0 }
 0x293   : > { %1886 = vmatmul.mubr.msk.bf16.vlgmr.msra.gmra.mrb[16].mxu1 %vm205_vm1, %v2446_v17 }
 0x294   : > { %1896 = vmatpush3.bf16.xpose.msra.mxu1 %v785_v48  ;;  %1897 = vmatprep.mubr.msk.bf16.mxu1 %vm2254_vm0, %v2253_v0 }
 0x295   : > { %1907 = vmatprep.subr.bf16.mxu1 %v2253_v0 }
 0x29b   : > { %1898 = vmatmul.mubr.msk.bf16.vlgmr.msra.gmra.mrb[20].mxu1 %vm205_vm1, %v775_v49 }
 0x29c   : > { %1908 = vmatpush3.bf16.xpose.msra.mxu1 %v900_v50  ;;  %1909 = vmatprep.mubr.msk.bf16.mxu1 %vm2254_vm0, %v2253_v0 }
 0x29d   : > { %1919 = vmatprep.subr.bf16.mxu1 %v2253_v0 }
 0x2a3   : > { %1910 = vmatmul.mubr.msk.bf16.vlgmr.msra.gmra.mrb[24].mxu1 %vm205_vm1, %v2458_v20 }
 0x2a4   : > { %1920 = vmatpush3.bf16.xpose.msra.mxu1 %v1012_v52  ;;  %1921 = vmatprep.mubr.msk.bf16.mxu1 %vm2254_vm0, %v2253_v0 }
 0x2a5   : > { %1931 = vmatprep.subr.bf16.mxu1 %v2253_v0 }
 0x2ab   : > { %1922 = vmatmul.mubr.msk.bf16.vlgmr.msra.gmra.mrb[28].mxu1 %vm205_vm1, %v1005_v53 }
 0x2ac   : > { %1932 = vmatpush3.bf16.xpose.msra.mxu1 %v1120_v54  ;;  %1933 = vmatprep.mubr.msk.bf16.mxu1 %vm2254_vm0, %v2253_v0 }
 0x2ad   : > { %1943 = vmatprep.subr.bf16.mxu1 %v2253_v0 }
 0x2b3   : > { %1934 = vmatmul.mubr.msk.bf16.vlgmr.msra.gmra.mrb[32].mxu1 %vm205_vm1, %v197_v32 }
 0x2b4   : > { %1944 = vmatpush3.bf16.xpose.msra.mxu1 %v1236_v56  ;;  %1945 = vmatprep.mubr.msk.bf16.mxu1 %vm2254_vm0, %v2253_v0 }
 0x2b5   : > { %1955 = vmatprep.subr.bf16.mxu1 %v2253_v0 }
 0x2bb   : > { %1946 = vmatmul.mubr.msk.bf16.vlgmr.msra.gmra.mrb[36].mxu1 %vm205_vm1, %v1226_v57 }
 0x2bc   : > { %1956 = vmatpush3.bf16.xpose.msra.mxu1 %v1351_v58  ;;  %1957 = vmatprep.mubr.msk.bf16.mxu1 %vm2254_vm0, %v2253_v0 }
 0x2bd   : > { %1967 = vmatprep.subr.bf16.mxu1 %v2253_v0 }
 0x2c3   : > { %1958 = vmatmul.mubr.msk.bf16.vlgmr.msra.gmra.mrb[40].mxu1 %vm205_vm1, %v2484_v34 }
 0x2c4   : > { %1968 = vmatpush3.bf16.xpose.msra.mxu1 %v1463_v60  ;;  %1969 = vmatprep.mubr.msk.bf16.mxu1 %vm2254_vm0, %v2253_v0 }
 0x2cb   : > { %1970 = vmatmul.mubr.msk.bf16.vlgmr.msra.gmra.mrb[44].mxu1 %vm205_vm1, %v1456_v61 }
 0x346   : > { %v2549_v62 = vpop.f32.mrb[0].mxu1 }
 0x347   : > { %v1845_v63 = vpop.f32.mrb[1].mxu1 }
 0x348   : > { %v317_v1 = vpop.f32.mrb[2].mxu1 }
 0x349   : > { %v1846_v2 = vpop.f32.mrb[3].mxu1 }
 0x34e   : > { %v370_v3 = vpop.f32.mrb[4].mxu1 }
 0x34f   : > { %v376_v4 = vmul.f32 0.125, %v370_v3  ;;  %v1851_v6 = vpop.f32.mrb[5].mxu1 }
 0x350   : > { %v373_v7 = vpop.f32.mrb[6].mxu1 }
 0x351   : > { %v1852_v8 = vpop.f32.mrb[7].mxu1  ;;  %v2552_v9 = vadd.f32 %v2437_v5, %v376_v4 }
 0x353   : > { %v378_v10 = vsel %vm260_vm2, %v2552_v9, -inf }
 0x354   : > { %379 = vmax.xlane.f32.xlu1 %v378_v10 }
 0x356   : > { %v485_v11 = vpop.f32.mrb[8].mxu1 }
 0x357   : > { %v491_v12 = vmul.f32 0.125, %v485_v11  ;;  %v1863_v13 = vpop.f32.mrb[9].mxu1 }
 0x358   : > { %v488_v14 = vpop.f32.mrb[10].mxu1 }
 0x359   : > { %v1864_v15 = vpop.f32.mrb[11].mxu1  ;;  %v2557_v16 = vadd.f32 %v2437_v5, %v491_v12 }
 0x35b   : > { %v493_v17 = vsel %vm260_vm2, %v2557_v16, -inf }
 0x35c   : > { %494 = vmax.xlane.f32.xlu0 %v493_v17 }
 0x35e   : > { %v597_v18 = vpop.f32.mrb[12].mxu1 }
 0x35f   : > { %v603_v19 = vmul.f32 0.125, %v597_v18  ;;  %v1875_v20 = vpop.f32.mrb[13].mxu1 }
 0x360   : > { %v600_v21 = vpop.f32.mrb[14].mxu1 }
 0x361   : > { %v2562_v22 = vadd.f32 %v2437_v5, %v603_v19  ;;  %v1876_v23 = vpop.f32.mrb[15].mxu1 }
 0x363   : > { %v605_v24 = vsel %vm260_vm2, %v2562_v22, -inf }
 0x364   : > { %606 = vmax.xlane.f32.xlu0 %v605_v24 }
 0x366   : > { %v705_v25 = vpop.f32.mrb[16].mxu1 }
 0x367   : > { %v711_v26 = vmul.f32 0.125, %v705_v25  ;;  %v1887_v27 = vpop.f32.mrb[17].mxu1 }
 0x368   : > { %v708_v28 = vpop.f32.mrb[18].mxu1 }
 0x369   : > { %v2567_v30 = vadd.f32 %v2437_v5, %v711_v26  ;;  %v1888_v31 = vpop.f32.mrb[19].mxu1 }
 0x36b   : > { %v713_v32 = vsel %vm260_vm2, %v2567_v30, -inf }
 0x36c   : > { %714 = vmax.xlane.f32.xlu1 %v713_v32 }
 0x36e   : > { %v821_v33 = vpop.f32.mrb[20].mxu1 }
 0x36f   : > { %v827_v34 = vmul.f32 0.125, %v821_v33  ;;  %v1899_v35 = vpop.f32.mrb[21].mxu1 }
 0x370   : > { %v824_v36 = vpop.f32.mrb[22].mxu1 }
 0x371   : > { %v2572_v37 = vadd.f32 %v2437_v5, %v827_v34  ;;  %v1900_v38 = vpop.f32.mrb[23].mxu1 }
 0x373   : > { %v829_v39 = vsel %vm260_vm2, %v2572_v37, -inf }
 0x374   : > { %830 = vmax.xlane.f32.xlu0 %v829_v39  ;;  %v2623_v39 = vcombine.high %v2476_v29, %v2476_v29 }
 0x376   : > { %v936_v40 = vpop.f32.mrb[24].mxu1 }
 0x377   : > { %v942_v41 = vmul.f32 0.125, %v936_v40  ;;  %v1911_v42 = vpop.f32.mrb[25].mxu1 }
 0x378   : > { %v939_v43 = vpop.f32.mrb[26].mxu1 }
 0x379   : > { %v2577_v44 = vadd.f32 %v2437_v5, %v942_v41  ;;  %v1912_v45 = vpop.f32.mrb[27].mxu1 }
 0x37b   : > { %v944_v46 = vsel %vm260_vm2, %v2577_v44, -inf }
 0x37c   : > { %945 = vmax.xlane.f32.xlu1 %v944_v46 }
 0x37e   : > { %v1048_v47 = vpop.f32.mrb[28].mxu1 }
 0x37f   : > { %v1054_v48 = vmul.f32 0.125, %v1048_v47  ;;  %v1923_v49 = vpop.f32.mrb[29].mxu1 }
 0x380   : > { %v1051_v50 = vpop.f32.mrb[30].mxu1 }
 0x381   : > { %v2582_v51 = vadd.f32 %v2437_v5, %v1054_v48  ;;  %v1924_v52 = vpop.f32.mrb[31].mxu1 }
 0x383   : > { %v1056_v53 = vsel %vm260_vm2, %v2582_v51, -inf }
 0x384   : > { %1057 = vmax.xlane.f32.xlu0 %v1056_v53 }
 0x386   : > { %v1156_v54 = vpop.f32.mrb[32].mxu1 }
 0x387   : > { %v1162_v55 = vmul.f32 0.125, %v1156_v54  ;;  %v1935_v56 = vpop.f32.mrb[33].mxu1 }
 0x388   : > { %v1159_v57 = vpop.f32.mrb[34].mxu1 }
 0x389   : > { %v2587_v58 = vadd.f32 %v2437_v5, %v1162_v55  ;;  %v1936_v59 = vpop.f32.mrb[35].mxu1  ;;  %v2651_v57 = vld [vmem:[%s2412_s30 + $0x38] sm:$0xff] }
 0x38a   : > { %v1755_v59 = vcombine.low %v2651_v57, %v2651_v57 }
 0x38b   : > { %v1164_v60 = vsel %vm260_vm2, %v2587_v58, -inf }
 0x38c   : > { %1165 = vmax.xlane.f32.xlu1 %v1164_v60  ;;  %v2658_v60 = vcombine.high %v2651_v57, %v2651_v57 }
 0x38e   : > { %v1272_v61 = vpop.f32.mrb[36].mxu1 }
 0x38f   : > { %v1278_v63 = vmul.f32 0.125, %v1272_v61  ;;  %v1947_v1 = vpop.f32.mrb[37].mxu1 }
 0x390   : > { %v1275_v2 = vpop.f32.mrb[38].mxu1 }
 0x391   : > { %v2592_v3 = vadd.f32 %v2437_v5, %v1278_v63  ;;  %v1948_v4 = vpop.f32.mrb[39].mxu1 }
 0x393   : > { %v1280_v6 = vsel %vm260_vm2, %v2592_v3, -inf }
 0x394   : > { %1281 = vmax.xlane.f32.xlu0 %v1280_v6 }
 0x396   : > { %v1387_v7 = vpop.f32.mrb[40].mxu1 }
 0x397   : > { %v1393_v8 = vmul.f32 0.125, %v1387_v7  ;;  %v1959_v10 = vpop.f32.mrb[41].mxu1 }
 0x398   : > { %v1390_v11 = vpop.f32.mrb[42].mxu1 }
 0x399   : > { %v2597_v12 = vadd.f32 %v2437_v5, %v1393_v8  ;;  %v1960_v13 = vpop.f32.mrb[43].mxu1 }
 0x39b   : > { %v1395_v14 = vsel %vm260_vm2, %v2597_v12, -inf }
 0x39c   : > { %1396 = vmax.xlane.f32.xlu1 %v1395_v14 }
 0x39e   : > { %v1499_v15 = vpop.f32.mrb[44].mxu1 }
 0x39f   : > { %v1505_v17 = vmul.f32 0.125, %v1499_v15  ;;  %v1971_v18 = vpop.f32.mrb[45].mxu1 }
 0x3a0   : > { %v1502_v19 = vpop.f32.mrb[46].mxu1 }
 0x3a1   : > { %v2602_v20 = vadd.f32 %v2437_v5, %v1505_v17  ;;  %v1972_v21 = vpop.f32.mrb[47].mxu1 }
 0x3a3   : > { %v1507_v23 = vsel %vm260_vm2, %v2602_v20, -inf }
 0x3a4   : > { %1508 = vmax.xlane.f32.xlu0 %v1507_v23  ;;  %v2683_v23 = vld [vmem:[%s2412_s30 + $0x40] sm:$0xff] }
 0x3e1   : > { %v380_v24 = vpop.xlane.xlu1 %379 }
 0x3e2   : > { %v381_v25 = vsub.f32 %v2552_v9, %v380_v24  ;;  %v1769_v24 = vcombine.low %v2683_v23, %v2683_v23 }
 0x3e4   : > { %v382_v26 = vmul.f32 1.442695, %v381_v25 }
 0x3e6   : > { %2075 = vpow2.f32 %v382_v26  ;;  %v2690_v26 = vcombine.high %v2683_v23, %v2683_v23 }
 0x3e9   : > { %v495_v27 = vpop.xlane.xlu0 %494 }
 0x3ea   : > { %v496_v28 = vsub.f32 %v2557_v16, %v495_v27 }
 0x3ec   : > { %v497_v31 = vmul.f32 1.442695, %v496_v28 }
 0x3ee   : > { %2077 = vpow2.f32 %v497_v31 }
 0x3f0   : > { %v2608_v32 = vpop.eup %2075 }
 0x3f1   : > { %v607_v33 = vpop.xlane.xlu0 %606  ;;  %v384_v5 = vsel %vm260_vm2, %v2608_v32, 0.0 }
 0x3f2   : > { %v608_v34 = vsub.f32 %v2562_v22, %v607_v33  ;;  %385 = vadd.xlane.f32.xlu1 %v384_v5  ;;  %v1741_v22 = vcombine.low %v2476_v29, %v2476_v29 }
 0x3f4   : > { %v609_v35 = vmul.f32 1.442695, %v608_v34 }
 0x3f6   : > { %2079 = vpow2.f32 %v609_v35  ;;  %v511_v35 = vsel %vm276_vm3, %v2623_v39, 0 }
 0x3f8   : > { %v2613_v36 = vpop.eup %2077 }
 0x3f9   : > { %v499_v9 = vsel %vm260_vm2, %v2613_v36, 0.0  ;;  %v715_v40 = vpop.xlane.xlu1 %714 }
 0x3fa   : > { %500 = vadd.xlane.f32.xlu0 %v499_v9  ;;  %v716_v41 = vsub.f32 %v2567_v30, %v715_v40 }
 0x3fc   : > { %v717_v43 = vmul.f32 1.442695, %v716_v41 }
 0x3fe   : > { %2081 = vpow2.f32 %v717_v43 }
 0x400   : > { %v2617_v16 = vpop.eup %2079 }
 0x401   : > { %v611_v38 = vsel %vm260_vm2, %v2617_v16, 0.0  ;;  %v831_v42 = vpop.xlane.xlu0 %830 }
 0x402   : > { %612 = vadd.xlane.f32.xlu1 %v611_v38  ;;  %v832_v45 = vsub.f32 %v2572_v37, %v831_v42 }
 0x404   : > { %v833_v49 = vmul.f32 1.442695, %v832_v45 }
 0x406   : > { %2083 = vpow2.f32 %v833_v49 }
 0x408   : > { %v2634_v53 = vpop.eup %2081 }
 0x409   : > { %v946_v46 = vpop.xlane.xlu1 %945  ;;  %v719_v30 = vsel %vm260_vm2, %v2634_v53, 0.0 }
 0x40a   : > { %v947_v48 = vsub.f32 %v2577_v44, %v946_v46 }
 0x40c   : > { %v948_v50 = vmul.f32 1.442695, %v947_v48 }
 0x40e   : > { %2085 = vpow2.f32 %v948_v50 }
 0x410   : > { %617 = vrot.lane.b32.xlu0 %v2623_v39, %s2255_s19  ;;  %v2638_v37 = vpop.eup %2083 }
 0x411   : > { %v1058_v47 = vpop.xlane.xlu0 %1057  ;;  %v835_v44 = vsel %vm260_vm2, %v2638_v37, 0.0 }
 0x412   : > { %v1059_v29 = vsub.f32 %v2582_v51, %v1058_v47 }
 0x413   : > { %393 = vrot.lane.b32.xlu1 %v1741_v22, %s2255_s19 }
 0x414   : > { %v1060_v52 = vmul.f32 1.442695, %v1059_v29 }
 0x416   : > { %2087 = vpow2.f32 %v1060_v52 }
 0x418   : > { %v2640_v54 = vpop.eup %2085 }
 0x419   : > { %v950_v55 = vsel %vm260_vm2, %v2640_v54, 0.0  ;;  %v1166_v63 = vpop.xlane.xlu1 %1165 }
 0x41a   : > { %v1167_v2 = vsub.f32 %v2587_v58, %v1166_v63 }
 0x41c   : > { %v1168_v6 = vmul.f32 1.442695, %v1167_v2 }
 0x41e   : > { %2089 = vpow2.f32 %v1168_v6 }
 0x420   : > { %v2644_v51 = vpop.eup %2087 }
 0x421   : > { %v1062_v56 = vsel %vm260_vm2, %v2644_v51, 0.0  ;;  %v1282_v61 = vpop.xlane.xlu0 %1281 }
 0x422   : > { %v1283_v7 = vsub.f32 %v2592_v3, %v1282_v61 }
 0x424   : > { %v1284_v11 = vmul.f32 1.442695, %v1283_v7 }
 0x428   : > { %v2666_v15 = vpop.eup %2089 }
 0x429   : > { %v1397_v10 = vpop.xlane.xlu1 %1396  ;;  %v1170_v58 = vsel %vm260_vm2, %v2666_v15, 0.0 }
 0x42a   : > { %v1398_v13 = vsub.f32 %v2597_v12, %v1397_v10 }
 0x42c   : > { %v1399_v14 = vmul.f32 1.442695, %v1398_v13 }
 0x42f   : > { %720 = vadd.xlane.f32.xlu0 %v719_v30 }
 0x431   : > { %v1509_v1 = vpop.xlane.xlu0 %1508 }
 0x432   : > { %v1510_v4 = vsub.f32 %v2602_v20, %v1509_v1 }
 0x433   : > { %836 = vadd.xlane.f32.xlu0 %v835_v44 }
 0x434   : > { %v1511_v8 = vmul.f32 1.442695, %v1510_v4 }
 0x436   : > { %2091 = vpow2.f32 %v1511_v8 }
 0x437   : > { %951 = vadd.xlane.f32.xlu0 %v950_v55  ;;  %1063 = vadd.xlane.f32.xlu1 %v1062_v56  ;;  %2093 = vpow2.f32 %v1284_v11 }
 0x438   : > { %2095 = vpow2.f32 %v1399_v14 }
 0x440   : > { %v2668_v17 = vpop.eup %2091 }
 0x441   : > { %v1513_v3 = vsel %vm260_vm2, %v2668_v17, 0.0  ;;  %v2674_v18 = vpop.eup %2093 }
 0x442   : > { %v1286_v12 = vsel %vm260_vm2, %v2674_v18, 0.0  ;;  %v2678_v19 = vpop.eup %2095 }
 0x443   : > { %v1401_v20 = vsel %vm260_vm2, %v2678_v19, 0.0 }
 0x448   : > { %844 = vrot.lane.b32.xlu1 %v1755_v59, %s2255_s19 }
 0x44d   : > { %1068 = vrot.lane.b32.xlu0 %v2658_v60, %s2255_s19 }
 0x46c   : > { %1171 = vadd.xlane.f32.xlu0 %v1170_v58  ;;  %1514 = vadd.xlane.f32.xlu1 %v1513_v3 }
 0x470   : > { %1287 = vadd.xlane.f32.xlu0 %v1286_v12 }
 0x474   : > { %1402 = vadd.xlane.f32.xlu0 %v1401_v20 }
 0x47f   : > { %v386_v21 = vpop.xlane.xlu1 %385 }
 0x480   : > { %2097 = vrcp.f32 %v386_v21 }
 0x487   : > { %v501_v25 = vpop.xlane.xlu0 %500 }
 0x488   : > { %2099 = vrcp.f32 %v501_v25 }
 0x48a   : > { %1295 = vrot.lane.b32.xlu0 %v1769_v24, %s2255_s19  ;;  %v2098_v27 = vpop.eup %2097 }
 0x48b   : > { %v388_v31 = vmul.f32 %v2098_v27, %v2608_v32  ;;  %v618_v38 = vpop.permute.xlu0 %617 }
 0x48c   : > { %v623_v41 = vsel %vm276_vm3, %v618_v38, 0 }
 0x48d   : > { %v389_v34 = vpack.c.bf16 %v388_v31, %v388_v31 }
 0x48e   : > { %1519 = vrot.lane.b32.xlu0 %v2690_v26, %s2255_s19 }
 0x48f   : > { %v613_v28 = vpop.xlane.xlu1 %612 }
 0x490   : > { %2101 = vrcp.f32 %v613_v28 }
 0x492   : > { %v2100_v9 = vpop.eup %2099 }
 0x493   : > { %v394_v33 = vpop.permute.xlu1 %393  ;;  %v503_v32 = vmul.f32 %v2100_v9, %v2613_v36  ;;  %v729_v36 = vsel %vm276_vm3, %v2651_v57, 0 }
 0x494   : > { %v399_v5 = vsel %vm276_vm3, %v394_v33, 0 }
 0x495   : > { %1854 = vmatpush3.bf16.msra.mxu0 %v399_v5  ;;  %v504_v22 = vpack.c.bf16 %v503_v32, %v503_v32 }
 0x496   : > { %1865 = vmatprep.subr.bf16.mxu0 %v2253_v0 }
 0x498   : > { %1856 = vmatmul.mubr.msk.bf16.vlgmr.msra.gmra.mrb[4].mxu0 %vm260_vm2, %v389_v34 }
 0x499   : > { %1866 = vmatpush3.bf16.msra.mxu0 %v511_v35  ;;  %1867 = vmatprep.mubr.msk.bf16.mxu0 %vm2254_vm0, %v2253_v0 }
 0x49a   : > { %1877 = vmatprep.subr.bf16.mxu0 %v2253_v0  ;;  %v2102_v40 = vpop.eup %2101 }
 0x49b   : > { %v615_v39 = vmul.f32 %v2102_v40, %v2617_v16 }
 0x49d   : > { %v616_v42 = vpack.c.bf16 %v615_v39, %v615_v39 }
 0x4a0   : > { %1868 = vmatmul.mubr.msk.bf16.vlgmr.msra.gmra.mrb[8].mxu0 %vm260_vm2, %v504_v22 }
 0x4a1   : > { %1878 = vmatpush3.bf16.msra.mxu0 %v623_v41  ;;  %1879 = vmatprep.mubr.msk.bf16.mxu0 %vm2254_vm0, %v2253_v0 }
 0x4a2   : > { %1889 = vmatprep.subr.bf16.mxu0 %v2253_v0 }
 0x4a8   : > { %1880 = vmatmul.mubr.msk.bf16.vlgmr.msra.gmra.mrb[12].mxu0 %vm260_vm2, %v616_v42 }
 0x4a9   : > { %1890 = vmatpush3.bf16.msra.mxu0 %v729_v36  ;;  %1891 = vmatprep.mubr.msk.bf16.mxu0 %vm2254_vm0, %v2253_v0 }
 0x4aa   : > { %1901 = vmatprep.subr.bf16.mxu0 %v2253_v0 }
 0x4bc   : > { %v721_v43 = vpop.xlane.xlu0 %720 }
 0x4bd   : > { %2103 = vrcp.f32 %v721_v43 }
 0x4c0   : > { %v837_v45 = vpop.xlane.xlu0 %836 }
 0x4c1   : > { %2105 = vrcp.f32 %v837_v45 }
 0x4c4   : > { %v1064_v46 = vpop.xlane.xlu1 %1063  ;;  %v952_v16 = vpop.xlane.xlu0 %951 }
 0x4c5   : > { %2107 = vrcp.f32 %v952_v16 }
 0x4c6   : > { %2109 = vrcp.f32 %v1064_v46 }
 0x4c7   : > { %v2104_v47 = vpop.eup %2103 }
 0x4c8   : > { %v723_v48 = vmul.f32 %v2104_v47, %v2634_v53  ;;  %v845_v49 = vpop.permute.xlu1 %844  ;;  %v962_v53 = vsel %vm276_vm3, %v2658_v60, 0  ;;  %v1069_v57 = vpop.permute.xlu0 %1068 }
 0x4c9   : > { %v850_v50 = vsel %vm276_vm3, %v845_v49, 0  ;;  %v1074_v61 = vsel %vm276_vm3, %v1069_v57, 0 }
 0x4ca   : > { %v724_v29 = vpack.c.bf16 %v723_v48, %v723_v48 }
 0x4cb   : > { %v2106_v52 = vpop.eup %2105 }
 0x4cc   : > { %1892 = vmatmul.mubr.msk.bf16.vlgmr.msra.gmra.mrb[16].mxu0 %vm260_vm2, %v724_v29  ;;  %v839_v30 = vmul.f32 %v2106_v52, %v2638_v37 }
 0x4cd   : > { %1902 = vmatpush3.bf16.msra.mxu0 %v850_v50  ;;  %1903 = vmatprep.mubr.msk.bf16.mxu0 %vm2254_vm0, %v2253_v0 }
 0x4ce   : > { %1913 = vmatprep.subr.bf16.mxu0 %v2253_v0  ;;  %v840_v44 = vpack.c.bf16 %v839_v30, %v839_v30 }
 0x4cf   : > { %v2108_v55 = vpop.eup %2107 }
 0x4d0   : > { %v954_v56 = vmul.f32 %v2108_v55, %v2640_v54  ;;  %v2110_v59 = vpop.eup %2109  ;;  %v1180_v54 = vsel %vm276_vm3, %v2683_v23, 0 }
 0x4d1   : > { %v1066_v60 = vmul.f32 %v2110_v59, %v2644_v51 }
 0x4d2   : > { %v955_v37 = vpack.c.bf16 %v954_v56, %v954_v56 }
 0x4d3   : > { %v1067_v63 = vpack.c.bf16 %v1066_v60, %v1066_v60 }
 0x4d4   : > { %1904 = vmatmul.mubr.msk.bf16.vlgmr.msra.gmra.mrb[20].mxu0 %vm260_vm2, %v840_v44 }
 0x4d5   : > { %1914 = vmatpush3.bf16.msra.mxu0 %v962_v53  ;;  %1915 = vmatprep.mubr.msk.bf16.mxu0 %vm2254_vm0, %v2253_v0 }
 0x4d6   : > { %1925 = vmatprep.subr.bf16.mxu0 %v2253_v0 }
 0x4dc   : > { %1916 = vmatmul.mubr.msk.bf16.vlgmr.msra.gmra.mrb[24].mxu0 %vm260_vm2, %v955_v37 }
 0x4dd   : > { %1926 = vmatpush3.bf16.msra.mxu0 %v1074_v61  ;;  %1927 = vmatprep.mubr.msk.bf16.mxu0 %vm2254_vm0, %v2253_v0 }
 0x4de   : > { %1937 = vmatprep.subr.bf16.mxu0 %v2253_v0 }
 0x4e4   : > { %1928 = vmatmul.mubr.msk.bf16.vlgmr.msra.gmra.mrb[28].mxu0 %vm260_vm2, %v1067_v63 }
 0x4e5   : > { %1938 = vmatpush3.bf16.msra.mxu0 %v1180_v54  ;;  %1939 = vmatprep.mubr.msk.bf16.mxu0 %vm2254_vm0, %v2253_v0 }
 0x4e6   : > { %1949 = vmatprep.subr.bf16.mxu0 %v2253_v0 }
 0x4f9   : > { %v1172_v1 = vpop.xlane.xlu0 %1171  ;;  %v1515_v13 = vpop.xlane.xlu1 %1514 }
 0x4fa   : > { %2111 = vrcp.f32 %v1172_v1 }
 0x4fd   : > { %v1288_v2 = vpop.xlane.xlu0 %1287 }
 0x4fe   : > { %2113 = vrcp.f32 %v1288_v2 }
 0x501   : > { %v1403_v4 = vpop.xlane.xlu0 %1402 }
 0x502   : > { %2115 = vrcp.f32 %v1403_v4 }
 0x503   : > { %2117 = vrcp.f32 %v1515_v13 }
 0x504   : > { %v2112_v51 = vpop.eup %2111 }
 0x505   : > { %v1296_v6 = vpop.permute.xlu0 %1295  ;;  %v1174_v7 = vmul.f32 %v2112_v51, %v2666_v15  ;;  %v1413_v15 = vsel %vm276_vm3, %v2690_v26, 0 }
 0x506   : > { %v1301_v8 = vsel %vm276_vm3, %v1296_v6, 0 }
 0x507   : > { %v1175_v10 = vpack.c.bf16 %v1174_v7, %v1174_v7 }
 0x508   : > { %v2114_v11 = vpop.eup %2113 }
 0x509   : > { %1940 = vmatmul.mubr.msk.bf16.vlgmr.msra.gmra.mrb[32].mxu0 %vm260_vm2, %v1175_v10  ;;  %v1290_v14 = vmul.f32 %v2114_v11, %v2674_v18  ;;  %v1520_v20 = vpop.permute.xlu0 %1519 }
 0x50a   : > { %1950 = vmatpush3.bf16.msra.mxu0 %v1301_v8  ;;  %1951 = vmatprep.mubr.msk.bf16.mxu0 %vm2254_vm0, %v2253_v0  ;;  %v1525_v18 = vsel %vm276_vm3, %v1520_v20, 0 }
 0x50b   : > { %1961 = vmatprep.subr.bf16.mxu0 %v2253_v0  ;;  %v1291_v58 = vpack.c.bf16 %v1290_v14, %v1290_v14 }
 0x50c   : > { %v2116_v3 = vpop.eup %2115 }
 0x50d   : > { %v1405_v12 = vmul.f32 %v2116_v3, %v2678_v19  ;;  %v2118_v23 = vpop.eup %2117 }
 0x50e   : > { %v1517_v24 = vmul.f32 %v2118_v23, %v2668_v17 }
 0x50f   : > { %v1406_v21 = vpack.c.bf16 %v1405_v12, %v1405_v12 }
 0x510   : > { %v1518_v25 = vpack.c.bf16 %v1517_v24, %v1517_v24 }
 0x511   : > { %1952 = vmatmul.mubr.msk.bf16.vlgmr.msra.gmra.mrb[36].mxu0 %vm260_vm2, %v1291_v58 }
 0x512   : > { %1962 = vmatpush3.bf16.msra.mxu0 %v1413_v15  ;;  %1963 = vmatprep.mubr.msk.bf16.mxu0 %vm2254_vm0, %v2253_v0 }
 0x513   : > { %1973 = vmatprep.subr.bf16.mxu0 %v2253_v0 }
 0x519   : > { %1964 = vmatmul.mubr.msk.bf16.vlgmr.msra.gmra.mrb[40].mxu0 %vm260_vm2, %v1406_v21 }
 0x51a   : > { %1974 = vmatpush3.bf16.msra.mxu0 %v1525_v18  ;;  %1975 = vmatprep.mubr.msk.bf16.mxu0 %vm2254_vm0, %v2253_v0 }
 0x521   : > { %1976 = vmatmul.mubr.msk.bf16.vlgmr.msra.gmra.mrb[44].mxu0 %vm260_vm2, %v1518_v25 }
 0x56b   : > { %v435_v26 = vpop.f32.mrb[4].mxu0 }
 0x56c   : > { %v1857_v19 = vpop.f32.mrb[5].mxu0 }
 0x56d   : > { %v438_v27 = vpop.f32.mrb[6].mxu0 }
 0x56e   : > { %v1858_v28 = vpop.f32.mrb[7].mxu0 }
 0x573   : > { %v547_v31 = vpop.f32.mrb[8].mxu0 }
 0x574   : > { %v1869_v33 = vpop.f32.mrb[9].mxu0 }
 0x575   : > { %v550_v5 = vpop.f32.mrb[10].mxu0 }
 0x576   : > { %v1870_v34 = vpop.f32.mrb[11].mxu0 }
 0x57b   : > { %v659_v35 = vpop.f32.mrb[12].mxu0 }
 0x57c   : > { %v2038_v9 = vpack.i.bf16 %v659_v35, %v435_v26  ;;  %v1881_v32 = vpop.f32.mrb[13].mxu0 }
 0x57d   : > { %v662_v38 = vpop.f32.mrb[14].mxu0 }
 0x57e   : > { %2039 = vrot.lane.b32.xlu0 %v2038_v9, %s2255_s19  ;;  %v1882_v0 = vpop.f32.mrb[15].mxu0 }
 0x59f   : > { %v765_v22 = vpop.f32.mrb[16].mxu0 }
 0x5a0   : > { %v1893_v17 = vpop.f32.mrb[17].mxu0 }
 0x5a1   : > { %v768_v40 = vpop.f32.mrb[18].mxu0 }
 0x5a2   : > { %v1894_v41 = vpop.f32.mrb[19].mxu0 }
 0x5a7   : > { %v886_v39 = vpop.f32.mrb[20].mxu0 }
 0x5a8   : > { %v1905_v42 = vpop.f32.mrb[21].mxu0 }
 0x5a9   : > { %v889_v36 = vpop.f32.mrb[22].mxu0 }
 0x5aa   : > { %v1906_v43 = vpop.f32.mrb[23].mxu0 }
 0x5af   : > { %v998_v45 = vpop.f32.mrb[24].mxu0 }
 0x5b0   : > { %v1917_v46 = vpop.f32.mrb[25].mxu0 }
 0x5b1   : > { %v1001_v16 = vpop.f32.mrb[26].mxu0 }
 0x5b2   : > { %v1918_v47 = vpop.f32.mrb[27].mxu0 }
 0x5b7   : > { %v1110_v48 = vpop.f32.mrb[28].mxu0 }
 0x5b8   : > { %v2043_v49 = vpack.i.bf16 %v1110_v48, %v886_v39  ;;  %v1929_v29 = vpop.f32.mrb[29].mxu0 }
 0x5b9   : > { %v1113_v50 = vpop.f32.mrb[30].mxu0 }
 0x5ba   : > { %2044 = vrot.lane.b32.xlu0 %v2043_v49, %s2255_s19  ;;  %v1930_v52 = vpop.f32.mrb[31].mxu0 }
 0x5dc   : > { %v1216_v30 = vpop.f32.mrb[32].mxu0 }
 0x5dd   : > { %v1941_v44 = vpop.f32.mrb[33].mxu0 }
 0x5de   : > { %v1219_v53 = vpop.f32.mrb[34].mxu0 }
 0x5df   : > { %v1942_v55 = vpop.f32.mrb[35].mxu0 }
 0x5e4   : > { %v1337_v56 = vpop.f32.mrb[36].mxu0 }
 0x5e5   : > { %v1953_v57 = vpop.f32.mrb[37].mxu0 }
 0x5e6   : > { %v1340_v37 = vpop.f32.mrb[38].mxu0 }
 0x5e7   : > { %v1954_v59 = vpop.f32.mrb[39].mxu0 }
 0x5ec   : > { %v1449_v61 = vpop.f32.mrb[40].mxu0 }
 0x5ed   : > { %v1965_v60 = vpop.f32.mrb[41].mxu0 }
 0x5ee   : > { %v1452_v63 = vpop.f32.mrb[42].mxu0 }
 0x5ef   : > { %v1966_v54 = vpop.f32.mrb[43].mxu0 }
 0x5f0   : > { %v2040_v1 = vpop.permute.xlu0 %2039 }
 0x5f1   : > { %v2042_v2 = vunpack.i.h.bf16 %v2040_v1  ;;  %v2041_v4 = vunpack.i.l.bf16 %v2040_v1 }
 0x5f3   : > { %v1592_v51 = vsel %vm205_vm1, %v547_v31, %v2042_v2  ;;  %v1591_v6 = vsel %vm205_vm1, %v2549_v62, %v2041_v4 }
 0x5f4   : > { %v1784_v7 = vpack.c.bf16 %v1592_v51, %v1591_v6  ;;  %v1561_v8 = vpop.f32.mrb[44].mxu0 }
 0x5f5   : > { %v2048_v10 = vpack.i.bf16 %v1561_v8, %v1337_v56  ;;  %v1977_v11 = vpop.f32.mrb[45].mxu0 }
 0x5f6   : > { %1621 = vst [vmem:[%s193_s7] sm:$0xff] %v1784_v7  ;;  %v1564_v13 = vpop.f32.mrb[46].mxu0 }
 0x5f7   : > { %2049 = vrot.lane.b32.xlu1 %v2048_v10, %s2255_s19  ;;  %v1978_v14 = vpop.f32.mrb[47].mxu0 }
 0x62c   : > { %v2045_v58 = vpop.permute.xlu0 %2044 }
 0x62d   : > { %v2047_v15 = vunpack.i.h.bf16 %v2045_v58  ;;  %v2046_v3 = vunpack.i.l.bf16 %v2045_v58 }
 0x62f   : > { %v1594_v12 = vsel %vm205_vm1, %v998_v45, %v2047_v15  ;;  %v1593_v20 = vsel %vm205_vm1, %v765_v22, %v2046_v3 }
 0x630   : > { %v1785_v62 = vpack.c.bf16 %v1594_v12, %v1593_v20 }
 0x632   : > { %1622 = vst [vmem:[%s193_s7 + $0x8] sm:$0xff] %v1785_v62 }
 0x669   : > { %v2050_v18 = vpop.permute.xlu1 %2049 }
 0x66a   : > { %v2052_v21 = vunpack.i.h.bf16 %v2050_v18  ;;  %v2051_v23 = vunpack.i.l.bf16 %v2050_v18 }
 0x66c   : > { %v1596_v24 = vsel %vm205_vm1, %v1449_v61, %v2052_v21  ;;  %v1595_v25 = vsel %vm205_vm1, %v1216_v30, %v2051_v23 }
 0x66d   : > { %v1786_v26 = vpack.c.bf16 %v1596_v24, %v1595_v25 }
 0x66f   : > { %1623 = vst [vmem:[%s193_s7 + $0x10] sm:$0xff] %v1786_v26 }
 0x670   : > { %2192 = shalt.err (!%p2189_p1)
}
 0x671   : > { %s2193_s26 = scalar_lea.hbm %s2777_s16, 384  ;;  %s2197_s6 = scalar_lea.hbm %s2823_s2, 768 }
 0x672   : > { %p2194_p11 = scmp.ne.s32.totalorder %s2777_s16, %s2193_s26  ;;  %p2198_p4 = scmp.lt.u32.totalorder %s2777_s16, %s2823_s2 }
 0x673   : > { %p2199_p10 = scmp.lt.u32.totalorder %s2197_s6, %s2193_s26  ;;  %p2201_p13 = scmp.lt.u32.totalorder %s2193_s26, %s2777_s16 }
 0x674   : > { %p2195_p12 = pnand %p2194_p11, %p2835_p3 }
 0x675   : > { %p2200_p6 = por %p2199_p10, %p2198_p4 }
 0x676   : > { %p2196_p2 = pneg %p2195_p12 }
 0x677   : > { %p2202_p5 = por %p2201_p13, %p2200_p6 }
 0x679   : > { %p2203_p7 = pnand %p2202_p5, %p2196_p2 }
 0x67b   : > { %2206 = shalt.err (!%p2203_p7)
}
 0x67c   : > { %1988 = dma.vmem_to_hbm [thread:$0]  (%p2835_p3), %s2779_s3, 384, %s2777_s16, %s1625_s13  }
 0x67d PF: > { %s1651_s25 = sand.u32 1, %s2237_s9   ;;  %p2836_p8 = scmp.ne.s32.totalorder %s2828_s21, 0 }
 0x67e   : > { %p2837_p9 = scmp.ge.s32.totalorder %s2249_s12, 2  ;;  %s1652_s19 = scalar_lea.sflag [#allocation4], %s1651_s25 }
 0x680   : > { %p1998_p0 = pnand %p2837_p9, %p2836_p8 }
 0x682   : > { %2232 = dma.done.wait (!%p1998_p0), %s1652_s19, 384  }
 0x683   : > { %2234 = vsyncadd (!%p1998_p0), %s1652_s19, 4294966912  ;;  %p18_p1 = scmp.ge.s32.totalorder %s2297_s15, 4   ;;  %s2838_s9 = smov %s2241_s10 }
 0x684   : > { %s2839_s10 = smov %s2245_s11  ;;  %s2840_s11 = smov %s2309_s18 }
 0x685   : > { %s2841_s12 = smov %s2297_s15  ;;  %20 = sbr.rel (!%p18_p1) target bundleno = 7 (0x7), region = 86 }
 0x68c   :  { %1657 = vsyncpa [#allocation3], 1 }
 0x68d   :  { %1659 = vsyncpa [#allocation3 + $0x1], 1 }
 0x68e   :  { %1660 = vsyncpa [#allocation6], 1 }
 0x68f   :  { %1662 = vsyncpa [#allocation6 + $0x1], 1 }
 0x690   :  { %1663 = vsyncpa [#allocation4], 1 }
 0x691   :  { %1665 = vsyncpa [#allocation4 + $0x1], 1 }

// kernel: bert_classifier_forward.13
= control target key start
LH: loop header
LB: loop body
LE: loop exit
PB: predicated region body
PF: predicated region fallthrough
CT: control target
= control target key end

     0   :  { %s4398_s0 = inlined_call_operand.hbm [shape: bf16[16,768], index: 0, kind: input, shape index: {}]   ;;  %s4399_s1 = inlined_call_operand.hbm [shape: bf16[768,2304], index: 1, kind: input, shape index: {}]   ;;  %s4400_s2 = inlined_call_operand.hbm [shape: f32[1,2304], index: 2, kind: input, shape index: {}]   ;;  %s4401_s3 = inlined_call_operand.hbm [shape: bf16[16,2304], index: 3, kind: output, shape index: {}]  }
   0x1   :  { %4412 = sst [smem:[#allocation14_spill]] %s4399_s1 }
   0x2   :  { %8 = vsyncpa [#allocation4], 0 }
   0x3   :  { %9 = vsyncpa [#allocation7], 0 }
   0x4   :  { %11 = vsyncpa [#allocation7 + $0x1], 0 }
   0x5   :  { %12 = vsyncpa [#allocation5], 0 }
   0x6   :  { %14 = vsyncpa [#allocation5 + $0x1], 0  ;;  %s3816_s12 = smov 0   ;;  %s3818_s13 = smov 0  }
   0x7   :  { %s3820_s14 = smov 0   ;;  %s3822_s15 = smov 0  }
   0x8   :  { %s3824_s16 = smov 0   ;;  %s3826_s17 = smov 0  }
   0x9 LB: > { %s35_s18 = sadd.s32 1, %s3780_s16  ;;  %s76_s19 = sadd.s32 1, %s3772_s14  ;;  %s3784_s17 = sphi %s3826_s17, %s20_s17   ;;  %s3780_s16 = sphi %s3824_s16, %s4437_s16   ;;  %s3776_s15 = sphi %s3822_s15, %s4436_s15   ;;  %s3772_s14 = sphi %s3820_s14, %s4435_s14   ;;  %s3768_s13 = sphi %s3818_s13, %s4434_s13   ;;  %s3764_s12 = sphi %s3816_s12, %s4433_s12  }
   0xa   : > { %p37_p0 = scmp.ge.s32.totalorder %s35_s18, 3  ;;  %p83_p1 = scmp.ne.s32.totalorder %s3772_s14, %s3768_s13 }
   0xb   : > { %p84_p2 = scmp.eq.s32.totalorder %s3784_s17, 0  ;;  %p3109_p5 = scmp.lt.s32.totalorder %s3784_s17, 3 }
   0xc   : > { %s4439_s18 = smov (%p37_p0, %s35_s18), 0  ;;  %s186_s21 = sand.u32 1, %s3784_s17  }
   0xd   : > { %4413 = sst [smem:[#allocation13_spill]] %s4439_s18  ;;  %p85_p3 = por %p84_p2, %p83_p1 }
   0xe   : > { %s72_s20 = ssub.s32 %s3780_s16, %s4439_s18  ;;  %s188_s22 = sand.u32 1, %s3772_s14  }
   0xf   : > { %p74_p4 = scmp.eq.s32.totalorder %s72_s20, 0  ;;  %s3078_s24 = smul.u32 2304, %s188_s22 }
  0x10   : > { %s3045_s25 = smul.u32 384, %s3780_s16  ;;  %p3867_p6 = pnand %p3109_p5, %p85_p3 }
  0x11   : > { %s3862_s23 = scalar_select %p74_p4, %s3772_s14, %s76_s19  }
  0x12   : > { %s4414_s26 = scalar_select %p3867_p6, 1, 0 }
  0x13   : > { %s4415_s1 = sld [smem:[#allocation14_spill]]  ;;  %s190_s30 = scalar_lea.vmem [#allocation6], %s3078_s24 }
  0x14   : > { %s200_s4 = sshll.u32 %s190_s30, 4  ;;  %s3878_s5 = scalar_lea.sflag [#allocation7], %s186_s21  ;;  %s3876_s4 = int_to_ptr.vmem [resolvable:$true] %s200_s4 }
  0x15   : > { %p4406_p8 = pneg %p3867_p6 }
  0x19   : > { %s3874_s29 = scalar_lea.hbm %s4415_s1, %s3045_s25  ;;  %s3615_s9 = scalar_lea.hbm %s4415_s1, 110592 }
  0x1a   : > { %s3610_s6 = scalar_lea.hbm %s3874_s29, 36864  ;;  %p3616_p11 = scmp.lt.u32.totalorder %s3874_s29, %s4415_s1 }
  0x1b   : > { %p3611_p7 = scmp.ne.s32.totalorder %s3874_s29, %s3610_s6  ;;  %p3617_p12 = scmp.lt.u32.totalorder %s3615_s9, %s3610_s6 }
  0x1c   : > { %p3619_p0 = scmp.lt.u32.totalorder %s3610_s6, %s3874_s29 }
  0x1d   : > { %p3613_p9 = pnand %p4406_p8, %p3611_p7  ;;  %p3618_p13 = por %p3617_p12, %p3616_p11 }
  0x1f   : > { %p3614_p10 = pneg %p3613_p9  ;;  %p3620_p2 = por %p3619_p0, %p3618_p13 }
  0x21   : > { %p3621_p3 = pnand %p3620_p2, %p3614_p10 }
  0x23   : > { %3624 = shalt.err (!%p3621_p3)
}
  0x24   : > { %s3625_s19 = scalar_lea.vmem %s3876_s4, 36864  ;;  %s3786_s20 = smov [#allocation6]  }
  0x25   : > { %p3626_p4 = scmp.ne.s32.totalorder %s3876_s4, %s3625_s19  ;;  %s3630_s21 = sshll.u32 %s3786_s20, 4  ;;  %s3631_s21 = int_to_ptr.vmem [resolvable:$false] %s3630_s21 }
  0x26   : > { %s3632_s24 = scalar_lea.vmem %s3631_s21, 73728  ;;  %p3633_p9 = scmp.lt.s32.totalorder %s3876_s4, %s3631_s21 }
  0x27   : > { %p3628_p5 = pnand %p3626_p4, %p4406_p8  ;;  %p3634_p11 = scmp.lt.s32.totalorder %s3632_s24, %s3625_s19 }
  0x29   : > { %p3629_p7 = pneg %p3628_p5  ;;  %p3635_p12 = por %p3634_p11, %p3633_p9 }
  0x2b   : > { %p3636_p13 = pnand %p3635_p12, %p3629_p7 }
  0x2d   : > { %3639 = shalt.err (!%p3636_p13)
}
  0x2e   : > { %s3787_s25 = smov 1152   ;;  %s4402_s27 = smov 384  }
  0x2f   : > { %s4403_s28 = smov 24   ;;  %s3909_s30 = sadd.s32 4294967295, %s3784_s17  }
  0x30   : > { %3100 = dma.hbm_to_vmem [thread:$0]  (!%p3867_p6), %s3874_s29, 36864, %s3876_s4, %s3878_s5, %s3787_s25, %s4402_s27, %s4403_s28  }
  0x31   : > { %s2734_s6 = sadd.s32 4294967294, %s3784_s17   ;;  %p89_p10 = scmp.ne.s32.totalorder %s3768_s13, %s3764_s12 }
  0x32   : > { %p4405_p0 = scmp.eq.s32.totalorder %s3909_s30, 0  ;;  %p141_p2 = scmp.eq.s32.totalorder %s3909_s30, 2 }
  0x33   : > { %p147_p3 = scmp.eq.s32.totalorder %s2734_s6, 2  ;;  %p2735_p5 = scmp.ge.s32.totalorder %s3784_s17, 1 }
  0x34   : > { %p3918_p4 = por %p4405_p0, %p89_p10  ;;  %p3926_p7 = por %p141_p2, %p83_p1 }
  0x35   : > { %p3930_p9 = por %p147_p3, %p89_p10  ;;  %p154_p11 = scmp.lt.s32.totalorder %s3784_s17, 4 }
  0x36   : > { %s4416_s7 = scalar_select %p3918_p4, 1, 0 }
  0x37   : > { %s4417_s29 = scalar_select %p3926_p7, 1, 0 }
  0x38   : > { %s4418_s4 = scalar_select %p3930_p9, 1, 0 }
  0x39   : > { %s3079_s8 = smul.u32 6, %s188_s22  ;;  %p3937_p12 = pnand %p2735_p5, %p154_p11 }
  0x3a   : > { %s3790_s10 = smov [#allocation3]   ;;  %s3046_s19 = smul.u32 96, %s3780_s16 }
  0x3b   : > { %s4419_s9 = scalar_select %p3937_p12, 1, 0 }
  0x3c   : > { %s172_s11 = sshll.u32 %s3790_s10, 4  ;;  %p3093_p13 = pneg %p3937_p12  ;;  %s173_s11 = int_to_ptr.vmem [resolvable:$true] %s172_s11 }
  0x3d   : > { %s214_s20 = scalar_lea.vmem [#allocation8], %s3079_s8  ;;  %s3953_s6 = scalar_lea.hbm %s4400_s2, %s3046_s19 }
  0x3e   : > { %s222_s21 = sshll.u32 %s214_s20, 4  ;;  %p3946_p1 = pnand %p3093_p13, %p4405_p0  ;;  %s3955_s21 = int_to_ptr.vmem [resolvable:$true] %s222_s21 }
  0x3f   : > { %s3640_s28 = scalar_lea.hbm %s4398_s0, 768 }
  0x40   : > { %p3641_p10 = scmp.ne.s32.totalorder %s4398_s0, %s3640_s28  ;;  %p3642_p2 = pneg %p3946_p1 }
  0x41   : > { %p3647_p11 = scmp.lt.u32.totalorder %s3640_s28, %s4398_s0 }
  0x42   : > { %p3643_p3 = pnand %p3642_p2, %p3641_p10 }
  0x44   : > { %p3644_p5 = pneg %p3643_p3 }
  0x46   : > { %p3649_p13 = pnand %p3647_p11, %p3644_p5 }
  0x48   : > { %3652 = shalt.err (!%p3649_p13)
}
  0x49   : > { %s3653_s19 = scalar_lea.vmem %s173_s11, 768  ;;  %p3661_p7 = scmp.lt.s32.totalorder %s173_s11, %s173_s11 }
  0x4a   : > { %p3654_p0 = scmp.ne.s32.totalorder %s173_s11, %s3653_s19  ;;  %p3662_p4 = scmp.lt.s32.totalorder %s3653_s19, %s3653_s19 }
  0x4c   : > { %p3656_p8 = pnand %p3654_p0, %p3642_p2  ;;  %p3663_p12 = por %p3662_p4, %p3661_p7 }
  0x4e   : > { %p3657_p9 = pneg %p3656_p8 }
  0x50   : > { %p3664_p6 = pnand %p3663_p12, %p3657_p9 }
  0x52   : > { %3667 = shalt.err (!%p3664_p6)
}
  0x53   : > { %s4421_s27 = smov 24   ;;  %s4422_s25 = smov 384  }
  0x54   : > { %3096 = dma.hbm_to_vmem [thread:$0]  (!%p3946_p1), %s4398_s0, 768, %s173_s11, [#allocation4], %s4422_s25, %s4422_s25, %s4421_s27  }
  0x55   : > { %s3668_s1 = scalar_lea.hbm %s3953_s6, 96  ;;  %p4423_p0 = scmp.ne.s32.totalorder %s4414_s26, 0 }
  0x56   : > { %p3669_p8 = scmp.ne.s32.totalorder %s3953_s6, %s3668_s1  ;;  %s3673_s24 = scalar_lea.hbm %s4400_s2, 288 }
  0x57   : > { %p4424_p4 = pneg %p4423_p0  ;;  %p3674_p9 = scmp.lt.u32.totalorder %s3953_s6, %s4400_s2 }
  0x58   : > { %p3675_p12 = scmp.lt.u32.totalorder %s3673_s24, %s3668_s1  ;;  %p3677_p2 = scmp.lt.u32.totalorder %s3668_s1, %s3953_s6 }
  0x59   : > { %p3671_p7 = pnand %p3669_p8, %p4424_p4 }
  0x5a   : > { %p3676_p10 = por %p3675_p12, %p3674_p9 }
  0x5b   : > { %p3672_p6 = pneg %p3671_p7 }
  0x5c   : > { %p3678_p3 = por %p3677_p2, %p3676_p10 }
  0x5e   : > { %p3679_p5 = pnand %p3678_p3, %p3672_p6 }
  0x60   : > { %3682 = shalt.err (!%p3679_p5)
}
  0x61   : > { %s3683_s11 = scalar_lea.vmem %s3955_s21, 96  ;;  %p4425_p11 = pmov %p4424_p4 }
  0x62   : > { %p3684_p1 = scmp.ne.s32.totalorder %s3955_s21, %s3683_s11  ;;  %s3791_s19 = smov [#allocation8]  }
  0x63   : > { %s3688_s27 = sshll.u32 %s3791_s19, 4  ;;  %s3689_s27 = int_to_ptr.vmem [resolvable:$false] %s3688_s27 }
  0x64   : > { %p3686_p13 = pnand %p3684_p1, %p4425_p11  ;;  %s3690_s25 = scalar_lea.vmem %s3689_s27, 192 }
  0x65   : > { %p3691_p4 = scmp.lt.s32.totalorder %s3955_s21, %s3689_s27  ;;  %p3692_p7 = scmp.lt.s32.totalorder %s3690_s25, %s3683_s11 }
  0x66   : > { %p3687_p8 = pneg %p3686_p13 }
  0x67   : > { %p3693_p9 = por %p3692_p7, %p3691_p4 }
  0x69   : > { %p3694_p12 = pnand %p3693_p9, %p3687_p8 }
  0x6b   : > { %3697 = shalt.err (!%p3694_p12)
}
  0x6c   : > { %3103 = dma.hbm_to_vmem [thread:$0]  (!%p4423_p0), %s3953_s6, 96, %s3955_s21, %s3878_s5  }
  0x6d   : > { %p4426_p6 = scmp.ne.s32.totalorder %s4419_s9, 0 }
  0x6e   : > { %p4427_p10 = scmp.eq.s32.totalorder (!%p4426_p6), %s3909_s30, 0 }
  0x6f   : > { %231 = sbr.rel (%p4426_p6) target bundleno = 681 (0x2a9), region = 32 }
  0x76   : > { %3751 = dma.done.wait (%p4427_p10), [#allocation4], 768   ;;  %p4428_p2 = pmov %p4427_p10 }
  0x77   : > { %s237_s22 = sand.u32 1, %s3909_s30   ;;  %s4008_s10 = sand.u32 1, %s3768_s13  }
  0x78   : > { %3753 = vsyncadd (%p4428_p2), [#allocation4], 4294966528  ;;  %s3080_s26 = smul.u32 2304, %s4008_s10  ;;  %s238_s1 = scalar_lea.sflag [#allocation7], %s237_s22 }
  0x79   : > { %p4429_p0 = scmp.ne.s32.totalorder %s4416_s7, 0 }
  0x7a   : > { %s4011_s18 = scalar_lea.vmem [#allocation6], %s3080_s26 }
  0x7b   : > { %3755 = dma.done.wait (%p4429_p0), %s238_s1, 36960  }
  0x7c   : > { %3757 = vsyncadd (%p4429_p0), %s238_s1, 4294930336  ;;  %v3167_v0 = vld [vmem:[%s4011_s18 + $0x4] ss:$24 sps:$4 sm:$0xff]   ;;  %v3171_v2 = vld [vmem:[%s4011_s18] ss:$24 sps:$4 sm:$0xff]   ;;  %s3081_s5 = smul.u32 6, %s4008_s10 }
  0x7d   : > { %v3169_v1 = vld [vmem:[%s4011_s18 + $0x304] ss:$24 sps:$4 sm:$0xff]   ;;  %2077 = vmatprep.subr.bf16.mxu1 %v3167_v0  ;;  %v3172_v3 = vld [vmem:[%s4011_s18 + $0x300] ss:$24 sps:$4 sm:$0xff]   ;;  %v3173_v4 = vld [vmem:[%s4011_s18 + $0x34] ss:$24 sps:$4 sm:$0xff]  }
  0x7e   : > { %2120 = vmatprep.subr.bf16.mxu0 %v3169_v1  ;;  %2078 = vmatpush1.bf16.msra.mxu1 %v3171_v2  ;;  %v3175_v5 = vld [vmem:[%s4011_s18 + $0x334] ss:$24 sps:$4 sm:$0xff]   ;;  %v3177_v6 = vld [vmem:[%s4011_s18 + $0x30] ss:$24 sps:$4 sm:$0xff]   ;;  %v3179_v8 = vld [vmem:[%s4011_s18 + $0x64] ss:$24 sps:$4 sm:$0xff]  }
  0x7f   : > { %2121 = vmatpush1.bf16.msra.mxu0 %v3172_v3  ;;  %2079 = vmatprep.subr.bf16.mxu1 %v3173_v4  ;;  %v3178_v7 = vld [vmem:[%s4011_s18 + $0x330] ss:$24 sps:$4 sm:$0xff]   ;;  %v3181_v9 = vld [vmem:[%s4011_s18 + $0x364] ss:$24 sps:$4 sm:$0xff]   ;;  %v3183_v10 = vld [vmem:[%s4011_s18 + $0x60] ss:$24 sps:$4 sm:$0xff]  }
  0x80   : > { %2122 = vmatprep.subr.bf16.mxu0 %v3175_v5  ;;  %v3184_v11 = vld [vmem:[%s4011_s18 + $0x360] ss:$24 sps:$4 sm:$0xff]   ;;  %v3185_v12 = vld [vmem:[%s4011_s18 + $0x94] ss:$24 sps:$4 sm:$0xff]   ;;  %v3189_v14 = vld [vmem:[%s4011_s18 + $0x90] ss:$24 sps:$4 sm:$0xff]  }
  0x81   : > { %v3187_v13 = vld [vmem:[%s4011_s18 + $0x394] ss:$24 sps:$4 sm:$0xff]   ;;  %v3190_v15 = vld [vmem:[%s4011_s18 + $0x390] ss:$24 sps:$4 sm:$0xff]   ;;  %v3191_v16 = vld [vmem:[%s4011_s18 + $0xc4] ss:$24 sps:$4 sm:$0xff]  }
  0x82   : > { %2080 = vmatpush1.bf16.msra.mxu1 %v3177_v6  ;;  %v3193_v17 = vld [vmem:[%s4011_s18 + $0x3c4] ss:$24 sps:$4 sm:$0xff]   ;;  %v3195_v18 = vld [vmem:[%s4011_s18 + $0xc0] ss:$24 sps:$4 sm:$0xff]   ;;  %v3197_v20 = vld [vmem:[%s4011_s18 + $0xf4] ss:$24 sps:$4 sm:$0xff]  }
  0x83   : > { %2123 = vmatpush1.bf16.msra.mxu0 %v3178_v7  ;;  %2081 = vmatprep.subr.bf16.mxu1 %v3179_v8  ;;  %v3196_v19 = vld [vmem:[%s4011_s18 + $0x3c0] ss:$24 sps:$4 sm:$0xff]   ;;  %v3199_v21 = vld [vmem:[%s4011_s18 + $0x3f4] ss:$24 sps:$4 sm:$0xff]   ;;  %v3201_v22 = vld [vmem:[%s4011_s18 + $0xf0] ss:$24 sps:$4 sm:$0xff]  }
  0x84   : > { %2124 = vmatprep.subr.bf16.mxu0 %v3181_v9  ;;  %v3202_v23 = vld [vmem:[%s4011_s18 + $0x3f0] ss:$24 sps:$4 sm:$0xff]   ;;  %v3203_v24 = vld [vmem:[%s4011_s18 + $0x124] ss:$24 sps:$4 sm:$0xff]   ;;  %v3207_v26 = vld [vmem:[%s4011_s18 + $0x120] ss:$24 sps:$4 sm:$0xff]  }
  0x85   : > { %v3205_v25 = vld [vmem:[%s4011_s18 + $0x424] ss:$24 sps:$4 sm:$0xff]   ;;  %v3208_v27 = vld [vmem:[%s4011_s18 + $0x420] ss:$24 sps:$4 sm:$0xff]   ;;  %v3209_v28 = vld [vmem:[%s4011_s18 + $0x154] ss:$24 sps:$4 sm:$0xff]  }
  0x86   : > { %2082 = vmatpush1.bf16.msra.mxu1 %v3183_v10  ;;  %v3211_v29 = vld [vmem:[%s4011_s18 + $0x454] ss:$24 sps:$4 sm:$0xff]   ;;  %v3213_v30 = vld [vmem:[%s4011_s18 + $0x150] ss:$24 sps:$4 sm:$0xff]   ;;  %v3215_v32 = vld [vmem:[%s4011_s18 + $0x184] ss:$24 sps:$4 sm:$0xff]  }
  0x87   : > { %2125 = vmatpush1.bf16.msra.mxu0 %v3184_v11  ;;  %2083 = vmatprep.subr.bf16.mxu1 %v3185_v12  ;;  %v3214_v31 = vld [vmem:[%s4011_s18 + $0x450] ss:$24 sps:$4 sm:$0xff]   ;;  %v3217_v33 = vld [vmem:[%s4011_s18 + $0x484] ss:$24 sps:$4 sm:$0xff]   ;;  %v3219_v34 = vld [vmem:[%s4011_s18 + $0x180] ss:$24 sps:$4 sm:$0xff]  }
  0x88   : > { %2126 = vmatprep.subr.bf16.mxu0 %v3187_v13  ;;  %v3220_v35 = vld [vmem:[%s4011_s18 + $0x480] ss:$24 sps:$4 sm:$0xff]   ;;  %v3221_v36 = vld [vmem:[%s4011_s18 + $0x1b4] ss:$24 sps:$4 sm:$0xff]   ;;  %v3225_v38 = vld [vmem:[%s4011_s18 + $0x1b0] ss:$24 sps:$4 sm:$0xff]  }
  0x89   : > { %v3223_v37 = vld [vmem:[%s4011_s18 + $0x4b4] ss:$24 sps:$4 sm:$0xff]   ;;  %v3226_v39 = vld [vmem:[%s4011_s18 + $0x4b0] ss:$24 sps:$4 sm:$0xff]   ;;  %v3227_v40 = vld [vmem:[%s4011_s18 + $0x1e4] ss:$24 sps:$4 sm:$0xff]  }
  0x8a   : > { %2084 = vmatpush1.bf16.msra.mxu1 %v3189_v14  ;;  %v3229_v41 = vld [vmem:[%s4011_s18 + $0x4e4] ss:$24 sps:$4 sm:$0xff]   ;;  %v3231_v42 = vld [vmem:[%s4011_s18 + $0x1e0] ss:$24 sps:$4 sm:$0xff]   ;;  %v3233_v44 = vld [vmem:[%s4011_s18 + $0x214] ss:$24 sps:$4 sm:$0xff]  }
  0x8b   : > { %2127 = vmatpush1.bf16.msra.mxu0 %v3190_v15  ;;  %2085 = vmatprep.subr.bf16.mxu1 %v3191_v16  ;;  %v3232_v43 = vld [vmem:[%s4011_s18 + $0x4e0] ss:$24 sps:$4 sm:$0xff]   ;;  %v3235_v45 = vld [vmem:[%s4011_s18 + $0x514] ss:$24 sps:$4 sm:$0xff]   ;;  %v3237_v46 = vld [vmem:[%s4011_s18 + $0x210] ss:$24 sps:$4 sm:$0xff]  }
  0x8c   : > { %2128 = vmatprep.subr.bf16.mxu0 %v3193_v17  ;;  %v3238_v47 = vld [vmem:[%s4011_s18 + $0x510] ss:$24 sps:$4 sm:$0xff]   ;;  %v4065_v48 = vld [vmem:[#allocation3 + $0x4] ss:$24 sps:$4 sm:$0xff]   ;;  %v3239_v50 = vld [vmem:[%s4011_s18 + $0x244] ss:$24 sps:$4 sm:$0xff]  }
  0x8d   : > { %v4067_v49 = vld [vmem:[#allocation3 + $0xc] ss:$24 sps:$4 sm:$0xff]   ;;  %2109 = vmatprep.mubr.bf16.mxu1 %v4065_v48  ;;  %v3243_v52 = vld [vmem:[%s4011_s18 + $0x240] ss:$24 sps:$4 sm:$0xff]   ;;  %v3249_v56 = vld [vmem:[%s4011_s18 + $0x270] ss:$24 sps:$4 sm:$0xff]  }
  0x8e   : > { %2086 = vmatpush1.bf16.msra.mxu1 %v3195_v18  ;;  %v3241_v51 = vld [vmem:[%s4011_s18 + $0x544] ss:$24 sps:$4 sm:$0xff]   ;;  %2152 = vmatprep.mubr.bf16.mxu0 %v4067_v49  ;;  %v3244_v53 = vld [vmem:[%s4011_s18 + $0x540] ss:$24 sps:$4 sm:$0xff]   ;;  %v3245_v54 = vld [vmem:[%s4011_s18 + $0x274] ss:$24 sps:$4 sm:$0xff]  }
  0x8f   : > { %2129 = vmatpush1.bf16.msra.mxu0 %v3196_v19  ;;  %2087 = vmatprep.subr.bf16.mxu1 %v3197_v20  ;;  %v3247_v55 = vld [vmem:[%s4011_s18 + $0x574] ss:$24 sps:$4 sm:$0xff]   ;;  %v3250_v57 = vld [vmem:[%s4011_s18 + $0x570] ss:$24 sps:$4 sm:$0xff]   ;;  %v3251_v58 = vld [vmem:[%s4011_s18 + $0x2a4] ss:$24 sps:$4 sm:$0xff]  }
  0x90   : > { %2130 = vmatprep.subr.bf16.mxu0 %v3199_v21  ;;  %v3253_v59 = vld [vmem:[%s4011_s18 + $0x5a4] ss:$24 sps:$4 sm:$0xff]   ;;  %v3255_v60 = vld [vmem:[%s4011_s18 + $0x2a0] ss:$24 sps:$4 sm:$0xff]   ;;  %v3257_v62 = vld [vmem:[%s4011_s18 + $0x2d4] ss:$24 sps:$4 sm:$0xff]  }
  0x91   : > { %v3256_v61 = vld [vmem:[%s4011_s18 + $0x5a0] ss:$24 sps:$4 sm:$0xff]   ;;  %v3259_v63 = vld [vmem:[%s4011_s18 + $0x5d4] ss:$24 sps:$4 sm:$0xff]   ;;  %v3261_v0 = vld [vmem:[%s4011_s18 + $0x2d0] ss:$24 sps:$4 sm:$0xff]  }
  0x92   : > { %2088 = vmatpush1.bf16.msra.mxu1 %v3201_v22  ;;  %v3262_v1 = vld [vmem:[%s4011_s18 + $0x5d0] ss:$24 sps:$4 sm:$0xff]   ;;  %v3269_v2 = vld [vmem:[%s4011_s18 + $0x604] ss:$24 sps:$4 sm:$0xff]   ;;  %v3267_v4 = vld [vmem:[%s4011_s18 + $0x600] ss:$24 sps:$4 sm:$0xff]  }
  0x93   : > { %2131 = vmatpush1.bf16.msra.mxu0 %v3202_v23  ;;  %2089 = vmatprep.subr.bf16.mxu1 %v3203_v24  ;;  %v3272_v3 = vld [vmem:[%s4011_s18 + $0xc] ss:$24 sps:$4 sm:$0xff]   ;;  %v3270_v5 = vld [vmem:[%s4011_s18 + $0x8] ss:$24 sps:$4 sm:$0xff]   ;;  %v4093_v7 = vld [vmem:[#allocation3 + $0x8] ss:$24 sps:$4 sm:$0xff]  }
  0x94   : > { %2132 = vmatprep.subr.bf16.mxu0 %v3205_v25  ;;  %v4091_v6 = vld [vmem:[#allocation3] ss:$24 sps:$4 sm:$0xff]   ;;  %v3277_v8 = vld [vmem:[%s4011_s18 + $0x634] ss:$24 sps:$4 sm:$0xff]   ;;  %v3283_v12 = vld [vmem:[%s4011_s18 + $0x664] ss:$24 sps:$4 sm:$0xff]  }
  0x95   : > { %v3280_v9 = vld [vmem:[%s4011_s18 + $0x3c] ss:$24 sps:$4 sm:$0xff]   ;;  %v3275_v10 = vld [vmem:[%s4011_s18 + $0x630] ss:$24 sps:$4 sm:$0xff]   ;;  %v3286_v13 = vld [vmem:[%s4011_s18 + $0x6c] ss:$24 sps:$4 sm:$0xff]  }
  0x96   : > { %2090 = vmatpush1.bf16.msra.mxu1 %v3207_v26  ;;  %v3278_v11 = vld [vmem:[%s4011_s18 + $0x38] ss:$24 sps:$4 sm:$0xff]   ;;  %v3284_v15 = vld [vmem:[%s4011_s18 + $0x68] ss:$24 sps:$4 sm:$0xff]   ;;  %v3289_v16 = vld [vmem:[%s4011_s18 + $0x694] ss:$24 sps:$4 sm:$0xff]  }
  0x97   : > { %2133 = vmatpush1.bf16.msra.mxu0 %v3208_v27  ;;  %2091 = vmatprep.subr.bf16.mxu1 %v3209_v28  ;;  %v3281_v14 = vld [vmem:[%s4011_s18 + $0x660] ss:$24 sps:$4 sm:$0xff]   ;;  %v3292_v17 = vld [vmem:[%s4011_s18 + $0x9c] ss:$24 sps:$4 sm:$0xff]   ;;  %v3287_v18 = vld [vmem:[%s4011_s18 + $0x690] ss:$24 sps:$4 sm:$0xff]  }
  0x98   : > { %2134 = vmatprep.subr.bf16.mxu0 %v3211_v29  ;;  %v3290_v19 = vld [vmem:[%s4011_s18 + $0x98] ss:$24 sps:$4 sm:$0xff]   ;;  %v3295_v20 = vld [vmem:[%s4011_s18 + $0x6c4] ss:$24 sps:$4 sm:$0xff]   ;;  %v3296_v23 = vld [vmem:[%s4011_s18 + $0xc8] ss:$24 sps:$4 sm:$0xff]  }
  0x99   : > { %v3298_v21 = vld [vmem:[%s4011_s18 + $0xcc] ss:$24 sps:$4 sm:$0xff]   ;;  %v3293_v22 = vld [vmem:[%s4011_s18 + $0x6c0] ss:$24 sps:$4 sm:$0xff]   ;;  %v3304_v25 = vld [vmem:[%s4011_s18 + $0xfc] ss:$24 sps:$4 sm:$0xff]  }
  0x9a   : > { %2092 = vmatpush1.bf16.msra.mxu1 %v3213_v30  ;;  %v3301_v24 = vld [vmem:[%s4011_s18 + $0x6f4] ss:$24 sps:$4 sm:$0xff]   ;;  %v3299_v26 = vld [vmem:[%s4011_s18 + $0x6f0] ss:$24 sps:$4 sm:$0xff]   ;;  %v3307_v28 = vld [vmem:[%s4011_s18 + $0x724] ss:$24 sps:$4 sm:$0xff]  }
  0x9b   : > { %2135 = vmatpush1.bf16.msra.mxu0 %v3214_v31  ;;  %2093 = vmatprep.subr.bf16.mxu1 %v3215_v32  ;;  %v3302_v27 = vld [vmem:[%s4011_s18 + $0xf8] ss:$24 sps:$4 sm:$0xff]   ;;  %v3310_v29 = vld [vmem:[%s4011_s18 + $0x12c] ss:$24 sps:$4 sm:$0xff]   ;;  %v3308_v31 = vld [vmem:[%s4011_s18 + $0x128] ss:$24 sps:$4 sm:$0xff]  }
  0x9c   : > { %2136 = vmatprep.subr.bf16.mxu0 %v3217_v33  ;;  %v3305_v30 = vld [vmem:[%s4011_s18 + $0x720] ss:$24 sps:$4 sm:$0xff]   ;;  %v3313_v32 = vld [vmem:[%s4011_s18 + $0x754] ss:$24 sps:$4 sm:$0xff]   ;;  %s250_s30 = scalar_lea.vmem [#allocation8], %s3081_s5  ;;  %s3082_s7 = smul.u32 48, %s4008_s10 }
  0x9d   : > { %v3316_v33 = vld [vmem:[%s4011_s18 + $0x15c] ss:$24 sps:$4 sm:$0xff]   ;;  %s3053_s6 = smul.u32 384, %s3776_s15  ;;  %s2590_s15 = scalar_lea.sflag [#allocation5], %s4008_s10 }
  0x9e   : > { %2094 = vmatpush1.bf16.msra.mxu1 %v3219_v34  ;;  %v4124_v34 = vld [vmem:[#allocation3 + $0x14] ss:$24 sps:$4 sm:$0xff]   ;;  %s4335_s9 = scalar_lea.vmem [#allocation9], %s3082_s7  ;;  %p4430_p5 = scmp.ne.s32.totalorder %s4417_s29, 0 }
  0x9f   : > { %2137 = vmatpush1.bf16.msra.mxu0 %v3220_v35  ;;  %2095 = vmatprep.subr.bf16.mxu1 %v3221_v36  ;;  %v3311_v35 = vld [vmem:[%s4011_s18 + $0x750] ss:$24 sps:$4 sm:$0xff]   ;;  %s2606_s21 = sshll.u32 %s4335_s9, 4  ;;  %s4348_s8 = scalar_lea.hbm %s4401_s3, %s3053_s6  ;;  %s4343_s21 = int_to_ptr.vmem [resolvable:$true] %s2606_s21 }
  0xa0   : > { %2138 = vmatprep.subr.bf16.mxu0 %v3223_v37  ;;  %v3314_v36 = vld [vmem:[%s4011_s18 + $0x158] ss:$24 sps:$4 sm:$0xff]   ;;  %v3319_v37 = vld [vmem:[%s4011_s18 + $0x784] ss:$24 sps:$4 sm:$0xff]   ;;  %s3698_s20 = scalar_lea.vmem %s4343_s21, 768  ;;  %s3792_s11 = smov [#allocation9]  }
  0xa1   : > { %p3699_p3 = scmp.ne.s32.totalorder %s4343_s21, %s3698_s20  ;;  %s3702_s19 = sshll.u32 %s3792_s11, 4  ;;  %s3703_s19 = int_to_ptr.vmem [resolvable:$false] %s3702_s19 }
  0xa2   : > { %2096 = vmatpush1.bf16.msra.mxu1 %v3225_v38  ;;  %v3322_v38 = vld [vmem:[%s4011_s18 + $0x18c] ss:$24 sps:$4 sm:$0xff]   ;;  %s3704_s27 = scalar_lea.vmem %s3703_s19, 1536  ;;  %p3705_p13 = scmp.lt.s32.totalorder %s4343_s21, %s3703_s19 }
  0xa3   : > { %2139 = vmatpush1.bf16.msra.mxu0 %v3226_v39  ;;  %2097 = vmatprep.subr.bf16.mxu1 %v3227_v40  ;;  %v3317_v39 = vld [vmem:[%s4011_s18 + $0x780] ss:$24 sps:$4 sm:$0xff]   ;;  %p3700_p1 = pnand %p3699_p3, %p4430_p5  ;;  %p3706_p8 = scmp.lt.s32.totalorder %s3704_s27, %s3698_s20 }
  0xa4   : > { %2140 = vmatprep.subr.bf16.mxu0 %v3229_v41  ;;  %v3320_v40 = vld [vmem:[%s4011_s18 + $0x188] ss:$24 sps:$4 sm:$0xff]   ;;  %v3325_v41 = vld [vmem:[%s4011_s18 + $0x7b4] ss:$24 sps:$4 sm:$0xff]  }
  0xa5   : > { %p3701_p11 = pneg %p3700_p1  ;;  %p3707_p4 = por %p3706_p8, %p3705_p13 }
  0xa6   : > { %2098 = vmatpush1.bf16.msra.mxu1 %v3231_v42  ;;  %v3328_v42 = vld [vmem:[%s4011_s18 + $0x1bc] ss:$24 sps:$4 sm:$0xff]  }
  0xa7   : > { %2141 = vmatpush1.bf16.msra.mxu0 %v3232_v43  ;;  %2099 = vmatprep.subr.bf16.mxu1 %v3233_v44  ;;  %v3323_v43 = vld [vmem:[%s4011_s18 + $0x7b0] ss:$24 sps:$4 sm:$0xff]   ;;  %p3708_p7 = pnand %p3707_p4, %p3701_p11 }
  0xa8   : > { %2142 = vmatprep.subr.bf16.mxu0 %v3235_v45  ;;  %v3326_v44 = vld [vmem:[%s4011_s18 + $0x1b8] ss:$24 sps:$4 sm:$0xff]   ;;  %v3331_v45 = vld [vmem:[%s4011_s18 + $0x7e4] ss:$24 sps:$4 sm:$0xff]  }
  0xaa   : > { %2100 = vmatpush1.bf16.msra.mxu1 %v3237_v46  ;;  %v3334_v46 = vld [vmem:[%s4011_s18 + $0x1ec] ss:$24 sps:$4 sm:$0xff]  }
  0xab   : > { %2143 = vmatpush1.bf16.msra.mxu0 %v3238_v47  ;;  %2101 = vmatprep.subr.bf16.mxu1 %v3239_v50  ;;  %v3329_v47 = vld [vmem:[%s4011_s18 + $0x7e0] ss:$24 sps:$4 sm:$0xff]  }
  0xac   : > { %2144 = vmatprep.subr.bf16.mxu0 %v3241_v51  ;;  %v3332_v50 = vld [vmem:[%s4011_s18 + $0x1e8] ss:$24 sps:$4 sm:$0xff]   ;;  %v3337_v51 = vld [vmem:[%s4011_s18 + $0x814] ss:$24 sps:$4 sm:$0xff]  }
  0xae   : > { %2102 = vmatpush1.bf16.msra.mxu1 %v3243_v52  ;;  %v3340_v52 = vld [vmem:[%s4011_s18 + $0x21c] ss:$24 sps:$4 sm:$0xff]  }
  0xaf   : > { %2145 = vmatpush1.bf16.msra.mxu0 %v3244_v53  ;;  %2103 = vmatprep.subr.bf16.mxu1 %v3245_v54  ;;  %v3335_v53 = vld [vmem:[%s4011_s18 + $0x810] ss:$24 sps:$4 sm:$0xff]  }
  0xb0   : > { %2146 = vmatprep.subr.bf16.mxu0 %v3247_v55  ;;  %v3338_v54 = vld [vmem:[%s4011_s18 + $0x218] ss:$24 sps:$4 sm:$0xff]   ;;  %v3343_v55 = vld [vmem:[%s4011_s18 + $0x844] ss:$24 sps:$4 sm:$0xff]  }
  0xb2   : > { %2104 = vmatpush1.bf16.msra.mxu1 %v3249_v56  ;;  %v3346_v56 = vld [vmem:[%s4011_s18 + $0x24c] ss:$24 sps:$4 sm:$0xff]  }
  0xb3   : > { %2147 = vmatpush1.bf16.msra.mxu0 %v3250_v57  ;;  %2105 = vmatprep.subr.bf16.mxu1 %v3251_v58  ;;  %v3341_v57 = vld [vmem:[%s4011_s18 + $0x840] ss:$24 sps:$4 sm:$0xff]  }
  0xb4   : > { %2148 = vmatprep.subr.bf16.mxu0 %v3253_v59  ;;  %v3344_v58 = vld [vmem:[%s4011_s18 + $0x248] ss:$24 sps:$4 sm:$0xff]   ;;  %v3349_v59 = vld [vmem:[%s4011_s18 + $0x874] ss:$24 sps:$4 sm:$0xff]  }
  0xb6   : > { %2106 = vmatpush1.bf16.msra.mxu1 %v3255_v60  ;;  %v3352_v60 = vld [vmem:[%s4011_s18 + $0x27c] ss:$24 sps:$4 sm:$0xff]  }
  0xb7   : > { %2149 = vmatpush1.bf16.msra.mxu0 %v3256_v61  ;;  %2107 = vmatprep.subr.bf16.mxu1 %v3257_v62  ;;  %v3347_v61 = vld [vmem:[%s4011_s18 + $0x870] ss:$24 sps:$4 sm:$0xff]  }
  0xb8   : > { %2150 = vmatprep.subr.bf16.mxu0 %v3259_v63  ;;  %v3350_v62 = vld [vmem:[%s4011_s18 + $0x278] ss:$24 sps:$4 sm:$0xff]   ;;  %v3355_v63 = vld [vmem:[%s4011_s18 + $0x8a4] ss:$24 sps:$4 sm:$0xff]  }
  0xba   : > { %2108 = vmatpush1.bf16.msra.mxu1 %v3261_v0  ;;  %v3358_v0 = vld [vmem:[%s4011_s18 + $0x2ac] ss:$24 sps:$4 sm:$0xff]  }
  0xbb   : > { %2151 = vmatpush1.bf16.msra.mxu0 %v3262_v1  ;;  %2206 = vmatprep.subr.bf16.mxu1 %v3272_v3  ;;  %v3353_v1 = vld [vmem:[%s4011_s18 + $0x8a0] ss:$24 sps:$4 sm:$0xff]   ;;  %v3361_v3 = vld [vmem:[%s4011_s18 + $0x8d4] ss:$24 sps:$4 sm:$0xff]  }
  0xbc   : > { %2163 = vmatprep.subr.bf16.mxu0 %v3269_v2  ;;  %v3356_v2 = vld [vmem:[%s4011_s18 + $0x2a8] ss:$24 sps:$4 sm:$0xff]  }
  0xbd   : > { %2110 = vmatmul.mubr.bf16.vlgmr.msra.gmra.mrb[0].mxu1 %v4091_v6 }
  0xbe   : > { %2153 = vmatmul.mubr.bf16.vlgmr.msra.gmra.mrb[0].mxu0 %v4093_v7  ;;  %2207 = vmatpush1.bf16.msra.mxu1 %v3270_v5  ;;  %v3359_v5 = vld [vmem:[%s4011_s18 + $0x8d0] ss:$24 sps:$4 sm:$0xff]  }
  0xbf   : > { %2164 = vmatpush1.bf16.msra.mxu0 %v3267_v4  ;;  %2208 = vmatprep.subr.bf16.mxu1 %v3280_v9  ;;  %v3364_v4 = vld [vmem:[%s4011_s18 + $0x2dc] ss:$24 sps:$4 sm:$0xff]   ;;  %v3370_v9 = vld [vmem:[%s4011_s18 + $0x30c] ss:$24 sps:$4 sm:$0xff]  }
  0xc0   : > { %2165 = vmatprep.subr.bf16.mxu0 %v3277_v8  ;;  %2238 = vmatprep.mubr.bf16.mxu1 %v4065_v48  ;;  %v3362_v8 = vld [vmem:[%s4011_s18 + $0x2d8] ss:$24 sps:$4 sm:$0xff]  }
  0xc1   : > { %2195 = vmatprep.mubr.bf16.mxu0 %v4124_v34 }
  0xc2   : > { %2209 = vmatpush1.bf16.msra.mxu1 %v3278_v11  ;;  %v4163_v11 = vld [vmem:[#allocation3 + $0x10] ss:$24 sps:$4 sm:$0xff]  }
  0xc3   : > { %2166 = vmatpush1.bf16.msra.mxu0 %v3275_v10  ;;  %2210 = vmatprep.subr.bf16.mxu1 %v3286_v13  ;;  %v3373_v10 = vld [vmem:[%s4011_s18 + $0x14] ss:$24 sps:$4 sm:$0xff]   ;;  %v3371_v13 = vld [vmem:[%s4011_s18 + $0x10] ss:$24 sps:$4 sm:$0xff]  }
  0xc4   : > { %2167 = vmatprep.subr.bf16.mxu0 %v3283_v12  ;;  %v3368_v12 = vld [vmem:[%s4011_s18 + $0x308] ss:$24 sps:$4 sm:$0xff]  }
  0xc6   : > { %2211 = vmatpush1.bf16.msra.mxu1 %v3284_v15  ;;  %v3379_v15 = vld [vmem:[%s4011_s18 + $0x44] ss:$24 sps:$4 sm:$0xff]  }
  0xc7   : > { %2168 = vmatpush1.bf16.msra.mxu0 %v3281_v14  ;;  %2212 = vmatprep.subr.bf16.mxu1 %v3292_v17  ;;  %v3376_v14 = vld [vmem:[%s4011_s18 + $0x33c] ss:$24 sps:$4 sm:$0xff]   ;;  %v3377_v17 = vld [vmem:[%s4011_s18 + $0x40] ss:$24 sps:$4 sm:$0xff]  }
  0xc8   : > { %2169 = vmatprep.subr.bf16.mxu0 %v3289_v16  ;;  %v3374_v16 = vld [vmem:[%s4011_s18 + $0x338] ss:$24 sps:$4 sm:$0xff]  }
  0xca   : > { %2213 = vmatpush1.bf16.msra.mxu1 %v3290_v19  ;;  %v3385_v19 = vld [vmem:[%s4011_s18 + $0x74] ss:$24 sps:$4 sm:$0xff]  }
  0xcb   : > { %2170 = vmatpush1.bf16.msra.mxu0 %v3287_v18  ;;  %2214 = vmatprep.subr.bf16.mxu1 %v3298_v21  ;;  %v3382_v18 = vld [vmem:[%s4011_s18 + $0x36c] ss:$24 sps:$4 sm:$0xff]   ;;  %v3383_v21 = vld [vmem:[%s4011_s18 + $0x70] ss:$24 sps:$4 sm:$0xff]  }
  0xcc   : > { %2171 = vmatprep.subr.bf16.mxu0 %v3295_v20  ;;  %v3380_v20 = vld [vmem:[%s4011_s18 + $0x368] ss:$24 sps:$4 sm:$0xff]  }
  0xce   : > { %2215 = vmatpush1.bf16.msra.mxu1 %v3296_v23  ;;  %v3391_v23 = vld [vmem:[%s4011_s18 + $0xa4] ss:$24 sps:$4 sm:$0xff]  }
  0xcf   : > { %2172 = vmatpush1.bf16.msra.mxu0 %v3293_v22  ;;  %2216 = vmatprep.subr.bf16.mxu1 %v3304_v25  ;;  %v3388_v22 = vld [vmem:[%s4011_s18 + $0x39c] ss:$24 sps:$4 sm:$0xff]   ;;  %v3389_v25 = vld [vmem:[%s4011_s18 + $0xa0] ss:$24 sps:$4 sm:$0xff]  }
  0xd0   : > { %2173 = vmatprep.subr.bf16.mxu0 %v3301_v24  ;;  %v3386_v24 = vld [vmem:[%s4011_s18 + $0x398] ss:$24 sps:$4 sm:$0xff]  }
  0xd2   : > { %2217 = vmatpush1.bf16.msra.mxu1 %v3302_v27  ;;  %v3395_v27 = vld [vmem:[%s4011_s18 + $0xd0] ss:$24 sps:$4 sm:$0xff]  }
  0xd3   : > { %2174 = vmatpush1.bf16.msra.mxu0 %v3299_v26  ;;  %2218 = vmatprep.subr.bf16.mxu1 %v3310_v29  ;;  %v3392_v26 = vld [vmem:[%s4011_s18 + $0x3c8] ss:$24 sps:$4 sm:$0xff]   ;;  %v3403_v29 = vld [vmem:[%s4011_s18 + $0x104] ss:$24 sps:$4 sm:$0xff]  }
  0xd4   : > { %2175 = vmatprep.subr.bf16.mxu0 %v3307_v28  ;;  %v3400_v28 = vld [vmem:[%s4011_s18 + $0x3fc] ss:$24 sps:$4 sm:$0xff]  }
  0xd6   : > { %2219 = vmatpush1.bf16.msra.mxu1 %v3308_v31  ;;  %v3401_v31 = vld [vmem:[%s4011_s18 + $0x100] ss:$24 sps:$4 sm:$0xff]  }
  0xd7   : > { %2176 = vmatpush1.bf16.msra.mxu0 %v3305_v30  ;;  %2220 = vmatprep.subr.bf16.mxu1 %v3316_v33  ;;  %v3398_v30 = vld [vmem:[%s4011_s18 + $0x3f8] ss:$24 sps:$4 sm:$0xff]   ;;  %v3409_v33 = vld [vmem:[%s4011_s18 + $0x134] ss:$24 sps:$4 sm:$0xff]  }
  0xd8   : > { %2177 = vmatprep.subr.bf16.mxu0 %v3313_v32  ;;  %v3406_v32 = vld [vmem:[%s4011_s18 + $0x42c] ss:$24 sps:$4 sm:$0xff]  }
  0xda   : > { %2221 = vmatpush1.bf16.msra.mxu1 %v3314_v36  ;;  %v3407_v36 = vld [vmem:[%s4011_s18 + $0x130] ss:$24 sps:$4 sm:$0xff]  }
  0xdb   : > { %2178 = vmatpush1.bf16.msra.mxu0 %v3311_v35  ;;  %2222 = vmatprep.subr.bf16.mxu1 %v3322_v38  ;;  %v3404_v35 = vld [vmem:[%s4011_s18 + $0x428] ss:$24 sps:$4 sm:$0xff]   ;;  %v3415_v38 = vld [vmem:[%s4011_s18 + $0x164] ss:$24 sps:$4 sm:$0xff]  }
  0xdc   : > { %2179 = vmatprep.subr.bf16.mxu0 %v3319_v37  ;;  %v3412_v37 = vld [vmem:[%s4011_s18 + $0x45c] ss:$24 sps:$4 sm:$0xff]  }
  0xde   : > { %2223 = vmatpush1.bf16.msra.mxu1 %v3320_v40  ;;  %v3413_v40 = vld [vmem:[%s4011_s18 + $0x160] ss:$24 sps:$4 sm:$0xff]  }
  0xdf   : > { %2180 = vmatpush1.bf16.msra.mxu0 %v3317_v39  ;;  %2224 = vmatprep.subr.bf16.mxu1 %v3328_v42  ;;  %v3410_v39 = vld [vmem:[%s4011_s18 + $0x458] ss:$24 sps:$4 sm:$0xff]   ;;  %v3421_v42 = vld [vmem:[%s4011_s18 + $0x194] ss:$24 sps:$4 sm:$0xff]  }
  0xe0   : > { %2181 = vmatprep.subr.bf16.mxu0 %v3325_v41  ;;  %v3418_v41 = vld [vmem:[%s4011_s18 + $0x48c] ss:$24 sps:$4 sm:$0xff]  }
  0xe2   : > { %2225 = vmatpush1.bf16.msra.mxu1 %v3326_v44  ;;  %v3419_v44 = vld [vmem:[%s4011_s18 + $0x190] ss:$24 sps:$4 sm:$0xff]  }
  0xe3   : > { %2182 = vmatpush1.bf16.msra.mxu0 %v3323_v43  ;;  %2226 = vmatprep.subr.bf16.mxu1 %v3334_v46  ;;  %v3416_v43 = vld [vmem:[%s4011_s18 + $0x488] ss:$24 sps:$4 sm:$0xff]   ;;  %v3427_v46 = vld [vmem:[%s4011_s18 + $0x1c4] ss:$24 sps:$4 sm:$0xff]  }
  0xe4   : > { %2183 = vmatprep.subr.bf16.mxu0 %v3331_v45  ;;  %v3424_v45 = vld [vmem:[%s4011_s18 + $0x4bc] ss:$24 sps:$4 sm:$0xff]  }
  0xe6   : > { %2227 = vmatpush1.bf16.msra.mxu1 %v3332_v50  ;;  %v3425_v50 = vld [vmem:[%s4011_s18 + $0x1c0] ss:$24 sps:$4 sm:$0xff]  }
  0xe7   : > { %2184 = vmatpush1.bf16.msra.mxu0 %v3329_v47  ;;  %2228 = vmatprep.subr.bf16.mxu1 %v3340_v52  ;;  %v3422_v47 = vld [vmem:[%s4011_s18 + $0x4b8] ss:$24 sps:$4 sm:$0xff]   ;;  %v3433_v52 = vld [vmem:[%s4011_s18 + $0x1f4] ss:$24 sps:$4 sm:$0xff]  }
  0xe8   : > { %2185 = vmatprep.subr.bf16.mxu0 %v3337_v51  ;;  %v3430_v51 = vld [vmem:[%s4011_s18 + $0x4ec] ss:$24 sps:$4 sm:$0xff]  }
  0xea   : > { %2229 = vmatpush1.bf16.msra.mxu1 %v3338_v54  ;;  %v3431_v54 = vld [vmem:[%s4011_s18 + $0x1f0] ss:$24 sps:$4 sm:$0xff]  }
  0xeb   : > { %2186 = vmatpush1.bf16.msra.mxu0 %v3335_v53  ;;  %2230 = vmatprep.subr.bf16.mxu1 %v3346_v56  ;;  %v3428_v53 = vld [vmem:[%s4011_s18 + $0x4e8] ss:$24 sps:$4 sm:$0xff]   ;;  %v3439_v56 = vld [vmem:[%s4011_s18 + $0x224] ss:$24 sps:$4 sm:$0xff]  }
  0xec   : > { %2187 = vmatprep.subr.bf16.mxu0 %v3343_v55  ;;  %v3436_v55 = vld [vmem:[%s4011_s18 + $0x51c] ss:$24 sps:$4 sm:$0xff]  }
  0xee   : > { %2231 = vmatpush1.bf16.msra.mxu1 %v3344_v58  ;;  %v3437_v58 = vld [vmem:[%s4011_s18 + $0x220] ss:$24 sps:$4 sm:$0xff]  }
  0xef   : > { %2188 = vmatpush1.bf16.msra.mxu0 %v3341_v57  ;;  %2232 = vmatprep.subr.bf16.mxu1 %v3352_v60  ;;  %v3434_v57 = vld [vmem:[%s4011_s18 + $0x518] ss:$24 sps:$4 sm:$0xff]   ;;  %v3445_v60 = vld [vmem:[%s4011_s18 + $0x254] ss:$24 sps:$4 sm:$0xff]  }
  0xf0   : > { %2189 = vmatprep.subr.bf16.mxu0 %v3349_v59  ;;  %v3442_v59 = vld [vmem:[%s4011_s18 + $0x54c] ss:$24 sps:$4 sm:$0xff]  }
  0xf2   : > { %2233 = vmatpush1.bf16.msra.mxu1 %v3350_v62  ;;  %v3443_v62 = vld [vmem:[%s4011_s18 + $0x250] ss:$24 sps:$4 sm:$0xff]  }
  0xf3   : > { %2190 = vmatpush1.bf16.msra.mxu0 %v3347_v61  ;;  %2234 = vmatprep.subr.bf16.mxu1 %v3358_v0  ;;  %v3440_v61 = vld [vmem:[%s4011_s18 + $0x548] ss:$24 sps:$4 sm:$0xff]   ;;  %v3451_v0 = vld [vmem:[%s4011_s18 + $0x284] ss:$24 sps:$4 sm:$0xff]  }
  0xf4   : > { %2191 = vmatprep.subr.bf16.mxu0 %v3355_v63  ;;  %v3448_v63 = vld [vmem:[%s4011_s18 + $0x57c] ss:$24 sps:$4 sm:$0xff]  }
  0xf6   : > { %2235 = vmatpush1.bf16.msra.mxu1 %v3356_v2  ;;  %v3449_v2 = vld [vmem:[%s4011_s18 + $0x280] ss:$24 sps:$4 sm:$0xff]  }
  0xf7   : > { %2192 = vmatpush1.bf16.msra.mxu0 %v3353_v1  ;;  %2236 = vmatprep.subr.bf16.mxu1 %v3364_v4  ;;  %v3446_v1 = vld [vmem:[%s4011_s18 + $0x578] ss:$24 sps:$4 sm:$0xff]   ;;  %v3457_v4 = vld [vmem:[%s4011_s18 + $0x2b4] ss:$24 sps:$4 sm:$0xff]  }
  0xf8   : > { %2193 = vmatprep.subr.bf16.mxu0 %v3361_v3  ;;  %v3454_v3 = vld [vmem:[%s4011_s18 + $0x5ac] ss:$24 sps:$4 sm:$0xff]  }
  0xfa   : > { %2237 = vmatpush1.bf16.msra.mxu1 %v3362_v8  ;;  %v3455_v8 = vld [vmem:[%s4011_s18 + $0x2b0] ss:$24 sps:$4 sm:$0xff]  }
  0xfb   : > { %2194 = vmatpush1.bf16.msra.mxu0 %v3359_v5  ;;  %2249 = vmatprep.subr.bf16.mxu1 %v3370_v9  ;;  %v3452_v5 = vld [vmem:[%s4011_s18 + $0x5a8] ss:$24 sps:$4 sm:$0xff]   ;;  %v3460_v9 = vld [vmem:[%s4011_s18 + $0x5dc] ss:$24 sps:$4 sm:$0xff]  }
  0xfc   : > { %2335 = vmatprep.subr.bf16.mxu0 %v3373_v10  ;;  %v3463_v10 = vld [vmem:[%s4011_s18 + $0x2e4] ss:$24 sps:$4 sm:$0xff]  }
  0xfd   : > { %2239 = vmatmul.mubr.bf16.vlgmr.msra.gmra.mrb[4].mxu1 %v4091_v6 }
  0xfe   : > { %2196 = vmatmul.mubr.bf16.vlgmr.msra.gmra.mrb[0].mxu0 %v4163_v11  ;;  %2250 = vmatpush1.bf16.msra.mxu1 %v3368_v12  ;;  %v3458_v12 = vld [vmem:[%s4011_s18 + $0x5d8] ss:$24 sps:$4 sm:$0xff]  }
  0xff   : > { %2336 = vmatpush1.bf16.msra.mxu0 %v3371_v13  ;;  %2251 = vmatprep.subr.bf16.mxu1 %v3376_v14  ;;  %v3461_v13 = vld [vmem:[%s4011_s18 + $0x2e0] ss:$24 sps:$4 sm:$0xff]   ;;  %v3466_v14 = vld [vmem:[%s4011_s18 + $0x60c] ss:$24 sps:$4 sm:$0xff]  }
 0x100   : > { %2337 = vmatprep.subr.bf16.mxu0 %v3379_v15  ;;  %2281 = vmatprep.mubr.bf16.mxu1 %v4067_v49  ;;  %v3397_v49 = vld [vmem:[%s4011_s18 + $0xd4] ss:$24 sps:$4 sm:$0xff]  }
 0x101   : > { %2367 = vmatprep.mubr.bf16.mxu0 %v4065_v48  ;;  %v3394_v48 = vld [vmem:[%s4011_s18 + $0x3cc] ss:$24 sps:$4 sm:$0xff]  }
 0x102   : > { %2252 = vmatpush1.bf16.msra.mxu1 %v3374_v16  ;;  %v3469_v15 = vld [vmem:[%s4011_s18 + $0x314] ss:$24 sps:$4 sm:$0xff]   ;;  %v3464_v16 = vld [vmem:[%s4011_s18 + $0x608] ss:$24 sps:$4 sm:$0xff]  }
 0x103   : > { %2338 = vmatpush1.bf16.msra.mxu0 %v3377_v17  ;;  %2253 = vmatprep.subr.bf16.mxu1 %v3382_v18  ;;  %v3467_v17 = vld [vmem:[%s4011_s18 + $0x310] ss:$24 sps:$4 sm:$0xff]   ;;  %v3472_v18 = vld [vmem:[%s4011_s18 + $0x63c] ss:$24 sps:$4 sm:$0xff]  }
 0x104   : > { %2339 = vmatprep.subr.bf16.mxu0 %v3385_v19  ;;  %v3475_v19 = vld [vmem:[%s4011_s18 + $0x344] ss:$24 sps:$4 sm:$0xff]  }
 0x106   : > { %2254 = vmatpush1.bf16.msra.mxu1 %v3380_v20  ;;  %v3470_v20 = vld [vmem:[%s4011_s18 + $0x638] ss:$24 sps:$4 sm:$0xff]  }
 0x107   : > { %2340 = vmatpush1.bf16.msra.mxu0 %v3383_v21  ;;  %2255 = vmatprep.subr.bf16.mxu1 %v3388_v22  ;;  %v3473_v21 = vld [vmem:[%s4011_s18 + $0x340] ss:$24 sps:$4 sm:$0xff]   ;;  %v3478_v22 = vld [vmem:[%s4011_s18 + $0x66c] ss:$24 sps:$4 sm:$0xff]  }
 0x108   : > { %2341 = vmatprep.subr.bf16.mxu0 %v3391_v23  ;;  %v3481_v23 = vld [vmem:[%s4011_s18 + $0x374] ss:$24 sps:$4 sm:$0xff]  }
 0x10a   : > { %2256 = vmatpush1.bf16.msra.mxu1 %v3386_v24  ;;  %v3608_v24 = vld [vmem:[#allocation3 + $0xc] ss:$24 sps:$4 sm:$0xff]  }
 0x10b   : > { %2342 = vmatpush1.bf16.msra.mxu0 %v3389_v25  ;;  %2257 = vmatprep.subr.bf16.mxu1 %v3394_v48  ;;  %v3484_v25 = vld [vmem:[%s4011_s18 + $0x69c] ss:$24 sps:$4 sm:$0xff]  }
 0x10c   : > { %2343 = vmatprep.subr.bf16.mxu0 %v3397_v49  ;;  %v3487_v48 = vld [vmem:[%s4011_s18 + $0x3a4] ss:$24 sps:$4 sm:$0xff]   ;;  %v3482_v49 = vld [vmem:[%s4011_s18 + $0x698] ss:$24 sps:$4 sm:$0xff]  }
 0x10e   : > { %2258 = vmatpush1.bf16.msra.mxu1 %v3392_v26  ;;  %v3485_v26 = vld [vmem:[%s4011_s18 + $0x3a0] ss:$24 sps:$4 sm:$0xff]  }
 0x10f   : > { %2344 = vmatpush1.bf16.msra.mxu0 %v3395_v27  ;;  %2259 = vmatprep.subr.bf16.mxu1 %v3400_v28  ;;  %v3490_v27 = vld [vmem:[%s4011_s18 + $0x6cc] ss:$24 sps:$4 sm:$0xff]  }
 0x110   : > { %2345 = vmatprep.subr.bf16.mxu0 %v3403_v29  ;;  %v3493_v28 = vld [vmem:[%s4011_s18 + $0x3d4] ss:$24 sps:$4 sm:$0xff]   ;;  %v3488_v29 = vld [vmem:[%s4011_s18 + $0x6c8] ss:$24 sps:$4 sm:$0xff]  }
 0x112   : > { %2260 = vmatpush1.bf16.msra.mxu1 %v3398_v30  ;;  %v3491_v30 = vld [vmem:[%s4011_s18 + $0x3d0] ss:$24 sps:$4 sm:$0xff]  }
 0x113   : > { %2346 = vmatpush1.bf16.msra.mxu0 %v3401_v31  ;;  %2261 = vmatprep.subr.bf16.mxu1 %v3406_v32  ;;  %v3496_v31 = vld [vmem:[%s4011_s18 + $0x6fc] ss:$24 sps:$4 sm:$0xff]  }
 0x114   : > { %2347 = vmatprep.subr.bf16.mxu0 %v3409_v33  ;;  %v3499_v32 = vld [vmem:[%s4011_s18 + $0x404] ss:$24 sps:$4 sm:$0xff]   ;;  %v3494_v33 = vld [vmem:[%s4011_s18 + $0x6f8] ss:$24 sps:$4 sm:$0xff]  }
 0x116   : > { %2262 = vmatpush1.bf16.msra.mxu1 %v3404_v35  ;;  %v3497_v35 = vld [vmem:[%s4011_s18 + $0x400] ss:$24 sps:$4 sm:$0xff]  }
 0x117   : > { %2348 = vmatpush1.bf16.msra.mxu0 %v3407_v36  ;;  %2263 = vmatprep.subr.bf16.mxu1 %v3412_v37  ;;  %v3502_v36 = vld [vmem:[%s4011_s18 + $0x72c] ss:$24 sps:$4 sm:$0xff]  }
 0x118   : > { %2349 = vmatprep.subr.bf16.mxu0 %v3415_v38  ;;  %v3505_v37 = vld [vmem:[%s4011_s18 + $0x434] ss:$24 sps:$4 sm:$0xff]   ;;  %v3500_v38 = vld [vmem:[%s4011_s18 + $0x728] ss:$24 sps:$4 sm:$0xff]  }
 0x11a   : > { %2264 = vmatpush1.bf16.msra.mxu1 %v3410_v39  ;;  %v3503_v39 = vld [vmem:[%s4011_s18 + $0x430] ss:$24 sps:$4 sm:$0xff]  }
 0x11b   : > { %2350 = vmatpush1.bf16.msra.mxu0 %v3413_v40  ;;  %2265 = vmatprep.subr.bf16.mxu1 %v3418_v41  ;;  %v3508_v40 = vld [vmem:[%s4011_s18 + $0x75c] ss:$24 sps:$4 sm:$0xff]  }
 0x11c   : > { %2351 = vmatprep.subr.bf16.mxu0 %v3421_v42  ;;  %v3511_v41 = vld [vmem:[%s4011_s18 + $0x464] ss:$24 sps:$4 sm:$0xff]   ;;  %v3506_v42 = vld [vmem:[%s4011_s18 + $0x758] ss:$24 sps:$4 sm:$0xff]  }
 0x11e   : > { %2266 = vmatpush1.bf16.msra.mxu1 %v3416_v43  ;;  %v3509_v43 = vld [vmem:[%s4011_s18 + $0x460] ss:$24 sps:$4 sm:$0xff]  }
 0x11f   : > { %2352 = vmatpush1.bf16.msra.mxu0 %v3419_v44  ;;  %2267 = vmatprep.subr.bf16.mxu1 %v3424_v45  ;;  %v3514_v44 = vld [vmem:[%s4011_s18 + $0x78c] ss:$24 sps:$4 sm:$0xff]  }
 0x120   : > { %2353 = vmatprep.subr.bf16.mxu0 %v3427_v46  ;;  %v3517_v45 = vld [vmem:[%s4011_s18 + $0x494] ss:$24 sps:$4 sm:$0xff]   ;;  %v3512_v46 = vld [vmem:[%s4011_s18 + $0x788] ss:$24 sps:$4 sm:$0xff]  }
 0x122   : > { %2268 = vmatpush1.bf16.msra.mxu1 %v3422_v47  ;;  %v3515_v47 = vld [vmem:[%s4011_s18 + $0x490] ss:$24 sps:$4 sm:$0xff]  }
 0x123   : > { %2354 = vmatpush1.bf16.msra.mxu0 %v3425_v50  ;;  %2269 = vmatprep.subr.bf16.mxu1 %v3430_v51  ;;  %v3520_v50 = vld [vmem:[%s4011_s18 + $0x7bc] ss:$24 sps:$4 sm:$0xff]  }
 0x124   : > { %2355 = vmatprep.subr.bf16.mxu0 %v3433_v52  ;;  %v3523_v51 = vld [vmem:[%s4011_s18 + $0x4c4] ss:$24 sps:$4 sm:$0xff]   ;;  %v3518_v52 = vld [vmem:[%s4011_s18 + $0x7b8] ss:$24 sps:$4 sm:$0xff]  }
 0x126   : > { %2270 = vmatpush1.bf16.msra.mxu1 %v3428_v53  ;;  %v3521_v53 = vld [vmem:[%s4011_s18 + $0x4c0] ss:$24 sps:$4 sm:$0xff]  }
 0x127   : > { %2356 = vmatpush1.bf16.msra.mxu0 %v3431_v54  ;;  %2271 = vmatprep.subr.bf16.mxu1 %v3436_v55  ;;  %v3526_v54 = vld [vmem:[%s4011_s18 + $0x7ec] ss:$24 sps:$4 sm:$0xff]  }
 0x128   : > { %2357 = vmatprep.subr.bf16.mxu0 %v3439_v56  ;;  %v3529_v55 = vld [vmem:[%s4011_s18 + $0x4f4] ss:$24 sps:$4 sm:$0xff]   ;;  %v3524_v56 = vld [vmem:[%s4011_s18 + $0x7e8] ss:$24 sps:$4 sm:$0xff]  }
 0x12a   : > { %2272 = vmatpush1.bf16.msra.mxu1 %v3434_v57  ;;  %v3527_v57 = vld [vmem:[%s4011_s18 + $0x4f0] ss:$24 sps:$4 sm:$0xff]  }
 0x12b   : > { %2358 = vmatpush1.bf16.msra.mxu0 %v3437_v58  ;;  %2273 = vmatprep.subr.bf16.mxu1 %v3442_v59  ;;  %v3532_v58 = vld [vmem:[%s4011_s18 + $0x81c] ss:$24 sps:$4 sm:$0xff]  }
 0x12c   : > { %2359 = vmatprep.subr.bf16.mxu0 %v3445_v60  ;;  %v3535_v59 = vld [vmem:[%s4011_s18 + $0x524] ss:$24 sps:$4 sm:$0xff]   ;;  %v3530_v60 = vld [vmem:[%s4011_s18 + $0x818] ss:$24 sps:$4 sm:$0xff]  }
 0x12e   : > { %2274 = vmatpush1.bf16.msra.mxu1 %v3440_v61  ;;  %v3533_v61 = vld [vmem:[%s4011_s18 + $0x520] ss:$24 sps:$4 sm:$0xff]  }
 0x12f   : > { %2360 = vmatpush1.bf16.msra.mxu0 %v3443_v62  ;;  %2275 = vmatprep.subr.bf16.mxu1 %v3448_v63  ;;  %v3538_v62 = vld [vmem:[%s4011_s18 + $0x84c] ss:$24 sps:$4 sm:$0xff]  }
 0x130   : > { %2361 = vmatprep.subr.bf16.mxu0 %v3451_v0  ;;  %v3541_v63 = vld [vmem:[%s4011_s18 + $0x554] ss:$24 sps:$4 sm:$0xff]   ;;  %v3536_v0 = vld [vmem:[%s4011_s18 + $0x848] ss:$24 sps:$4 sm:$0xff]  }
 0x132   : > { %2276 = vmatpush1.bf16.msra.mxu1 %v3446_v1  ;;  %v3539_v1 = vld [vmem:[%s4011_s18 + $0x550] ss:$24 sps:$4 sm:$0xff]  }
 0x133   : > { %2362 = vmatpush1.bf16.msra.mxu0 %v3449_v2  ;;  %2277 = vmatprep.subr.bf16.mxu1 %v3454_v3  ;;  %v3544_v2 = vld [vmem:[%s4011_s18 + $0x87c] ss:$24 sps:$4 sm:$0xff]  }
 0x134   : > { %2363 = vmatprep.subr.bf16.mxu0 %v3457_v4  ;;  %v3547_v3 = vld [vmem:[%s4011_s18 + $0x584] ss:$24 sps:$4 sm:$0xff]   ;;  %v3542_v4 = vld [vmem:[%s4011_s18 + $0x878] ss:$24 sps:$4 sm:$0xff]  }
 0x136   : > { %2278 = vmatpush1.bf16.msra.mxu1 %v3452_v5  ;;  %v3545_v5 = vld [vmem:[%s4011_s18 + $0x580] ss:$24 sps:$4 sm:$0xff]  }
 0x137   : > { %2364 = vmatpush1.bf16.msra.mxu0 %v3455_v8  ;;  %2279 = vmatprep.subr.bf16.mxu1 %v3460_v9  ;;  %v3550_v8 = vld [vmem:[%s4011_s18 + $0x8ac] ss:$24 sps:$4 sm:$0xff]  }
 0x138   : > { %2365 = vmatprep.subr.bf16.mxu0 %v3463_v10  ;;  %v3553_v9 = vld [vmem:[%s4011_s18 + $0x5b4] ss:$24 sps:$4 sm:$0xff]   ;;  %v3548_v10 = vld [vmem:[%s4011_s18 + $0x8a8] ss:$24 sps:$4 sm:$0xff]  }
 0x13a   : > { %2280 = vmatpush1.bf16.msra.mxu1 %v3458_v12  ;;  %v3551_v12 = vld [vmem:[%s4011_s18 + $0x5b0] ss:$24 sps:$4 sm:$0xff]  }
 0x13b   : > { %2366 = vmatpush1.bf16.msra.mxu0 %v3461_v13  ;;  %2292 = vmatprep.subr.bf16.mxu1 %v3466_v14  ;;  %v3556_v13 = vld [vmem:[%s4011_s18 + $0x8dc] ss:$24 sps:$4 sm:$0xff]  }
 0x13c   : > { %2378 = vmatprep.subr.bf16.mxu0 %v3469_v15  ;;  %v3559_v14 = vld [vmem:[%s4011_s18 + $0x5e4] ss:$24 sps:$4 sm:$0xff]   ;;  %v3554_v15 = vld [vmem:[%s4011_s18 + $0x8d8] ss:$24 sps:$4 sm:$0xff]  }
 0x13d   : > { %2282 = vmatmul.mubr.bf16.vlgmr.msra.gmra.mrb[4].mxu1 %v4093_v7  ;;  %v3479_v7 = vld [vmem:[%s4011_s18 + $0x370] ss:$24 sps:$4 sm:$0xff]  }
 0x13e   : > { %2368 = vmatmul.mubr.bf16.vlgmr.msra.gmra.mrb[4].mxu0 %v4091_v6  ;;  %2293 = vmatpush1.bf16.msra.mxu1 %v3464_v16  ;;  %v3476_v6 = vld [vmem:[%s4011_s18 + $0x668] ss:$24 sps:$4 sm:$0xff]  }
 0x13f   : > { %2379 = vmatpush1.bf16.msra.mxu0 %v3467_v17  ;;  %2294 = vmatprep.subr.bf16.mxu1 %v3472_v18  ;;  %v3557_v16 = vld [vmem:[%s4011_s18 + $0x5e0] ss:$24 sps:$4 sm:$0xff]   ;;  %v3562_v17 = vld [vmem:[%s4011_s18 + $0x614] ss:$24 sps:$4 sm:$0xff]   ;;  %v3560_v18 = vld [vmem:[%s4011_s18 + $0x610] ss:$24 sps:$4 sm:$0xff]  }
 0x140   : > { %2380 = vmatprep.subr.bf16.mxu0 %v3475_v19  ;;  %2324 = vmatprep.mubr.bf16.mxu1 %v4124_v34  ;;  %v3565_v19 = vld [vmem:[%s4011_s18 + $0x644] ss:$24 sps:$4 sm:$0xff]  }
 0x141   : > { %2410 = vmatprep.mubr.bf16.mxu0 %v3608_v24  ;;  %v3571_v24 = vld [vmem:[%s4011_s18 + $0x6a4] ss:$24 sps:$4 sm:$0xff]  }
 0x142   : > { %2295 = vmatpush1.bf16.msra.mxu1 %v3470_v20  ;;  %v3609_v20 = vld [vmem:[#allocation3 + $0x8] ss:$24 sps:$4 sm:$0xff]  }
 0x143   : > { %2381 = vmatpush1.bf16.msra.mxu0 %v3473_v21  ;;  %2296 = vmatprep.subr.bf16.mxu1 %v3478_v22  ;;  %v3563_v21 = vld [vmem:[%s4011_s18 + $0x640] ss:$24 sps:$4 sm:$0xff]   ;;  %v3568_v22 = vld [vmem:[%s4011_s18 + $0x674] ss:$24 sps:$4 sm:$0xff]  }
 0x144   : > { %2382 = vmatprep.subr.bf16.mxu0 %v3481_v23  ;;  %v3566_v23 = vld [vmem:[%s4011_s18 + $0x670] ss:$24 sps:$4 sm:$0xff]  }
 0x146   : > { %2297 = vmatpush1.bf16.msra.mxu1 %v3476_v6  ;;  %v3569_v6 = vld [vmem:[%s4011_s18 + $0x6a0] ss:$24 sps:$4 sm:$0xff]  }
 0x147   : > { %2383 = vmatpush1.bf16.msra.mxu0 %v3479_v7  ;;  %2298 = vmatprep.subr.bf16.mxu1 %v3484_v25  ;;  %v3574_v7 = vld [vmem:[%s4011_s18 + $0x6d4] ss:$24 sps:$4 sm:$0xff]   ;;  %v3572_v25 = vld [vmem:[%s4011_s18 + $0x6d0] ss:$24 sps:$4 sm:$0xff]  }
 0x148   : > { %2384 = vmatprep.subr.bf16.mxu0 %v3487_v48  ;;  %v3577_v48 = vld [vmem:[%s4011_s18 + $0x704] ss:$24 sps:$4 sm:$0xff]  }
 0x14a   : > { %2299 = vmatpush1.bf16.msra.mxu1 %v3482_v49  ;;  %v3580_v49 = vld [vmem:[%s4011_s18 + $0x734] ss:$24 sps:$4 sm:$0xff]  }
 0x14b   : > { %2385 = vmatpush1.bf16.msra.mxu0 %v3485_v26  ;;  %2300 = vmatprep.subr.bf16.mxu1 %v3490_v27 }
 0x14c   : > { %2386 = vmatprep.subr.bf16.mxu0 %v3493_v28  ;;  %v3578_v28 = vld [vmem:[%s4011_s18 + $0x730] ss:$24 sps:$4 sm:$0xff]  }
 0x14e   : > { %2301 = vmatpush1.bf16.msra.mxu1 %v3488_v29 }
 0x14f   : > { %2387 = vmatpush1.bf16.msra.mxu0 %v3491_v30  ;;  %2302 = vmatprep.subr.bf16.mxu1 %v3496_v31  ;;  %v3583_v30 = vld [vmem:[%s4011_s18 + $0x764] ss:$24 sps:$4 sm:$0xff]  }
 0x150   : > { %2388 = vmatprep.subr.bf16.mxu0 %v3499_v32  ;;  %v3581_v32 = vld [vmem:[%s4011_s18 + $0x760] ss:$24 sps:$4 sm:$0xff]  }
 0x152   : > { %2303 = vmatpush1.bf16.msra.mxu1 %v3494_v33  ;;  %v3586_v33 = vld [vmem:[%s4011_s18 + $0x794] ss:$24 sps:$4 sm:$0xff]  }
 0x153   : > { %2389 = vmatpush1.bf16.msra.mxu0 %v3497_v35  ;;  %2304 = vmatprep.subr.bf16.mxu1 %v3502_v36  ;;  %v3584_v35 = vld [vmem:[%s4011_s18 + $0x790] ss:$24 sps:$4 sm:$0xff]   ;;  %v3589_v36 = vld [vmem:[%s4011_s18 + $0x7c4] ss:$24 sps:$4 sm:$0xff]  }
 0x154   : > { %2390 = vmatprep.subr.bf16.mxu0 %v3505_v37  ;;  %v3587_v37 = vld [vmem:[%s4011_s18 + $0x7c0] ss:$24 sps:$4 sm:$0xff]  }
 0x156   : > { %2305 = vmatpush1.bf16.msra.mxu1 %v3500_v38  ;;  %v3592_v38 = vld [vmem:[%s4011_s18 + $0x7f4] ss:$24 sps:$4 sm:$0xff]  }
 0x157   : > { %2391 = vmatpush1.bf16.msra.mxu0 %v3503_v39  ;;  %2306 = vmatprep.subr.bf16.mxu1 %v3508_v40  ;;  %v3590_v39 = vld [vmem:[%s4011_s18 + $0x7f0] ss:$24 sps:$4 sm:$0xff]   ;;  %v3595_v40 = vld [vmem:[%s4011_s18 + $0x824] ss:$24 sps:$4 sm:$0xff]  }
 0x158   : > { %2392 = vmatprep.subr.bf16.mxu0 %v3511_v41  ;;  %v3593_v41 = vld [vmem:[%s4011_s18 + $0x820] ss:$24 sps:$4 sm:$0xff]  }
 0x15a   : > { %2307 = vmatpush1.bf16.msra.mxu1 %v3506_v42  ;;  %v3598_v42 = vld [vmem:[%s4011_s18 + $0x854] ss:$24 sps:$4 sm:$0xff]  }
 0x15b   : > { %2393 = vmatpush1.bf16.msra.mxu0 %v3509_v43  ;;  %2308 = vmatprep.subr.bf16.mxu1 %v3514_v44  ;;  %v3596_v43 = vld [vmem:[%s4011_s18 + $0x850] ss:$24 sps:$4 sm:$0xff]   ;;  %v3601_v44 = vld [vmem:[%s4011_s18 + $0x884] ss:$24 sps:$4 sm:$0xff]  }
 0x15c   : > { %2394 = vmatprep.subr.bf16.mxu0 %v3517_v45  ;;  %v3599_v45 = vld [vmem:[%s4011_s18 + $0x880] ss:$24 sps:$4 sm:$0xff]  }
 0x15e   : > { %2309 = vmatpush1.bf16.msra.mxu1 %v3512_v46  ;;  %v3604_v46 = vld [vmem:[%s4011_s18 + $0x8b4] ss:$24 sps:$4 sm:$0xff]  }
 0x15f   : > { %2395 = vmatpush1.bf16.msra.mxu0 %v3515_v47  ;;  %2310 = vmatprep.subr.bf16.mxu1 %v3520_v50  ;;  %v3602_v47 = vld [vmem:[%s4011_s18 + $0x8b0] ss:$24 sps:$4 sm:$0xff]   ;;  %v3607_v50 = vld [vmem:[%s4011_s18 + $0x8e4] ss:$24 sps:$4 sm:$0xff]  }
 0x160   : > { %2396 = vmatprep.subr.bf16.mxu0 %v3523_v51  ;;  %v3605_v51 = vld [vmem:[%s4011_s18 + $0x8e0] ss:$24 sps:$4 sm:$0xff]  }
 0x162   : > { %2311 = vmatpush1.bf16.msra.mxu1 %v3518_v52  ;;  %v2505_v52 = vlaneseq }
 0x163   : > { %2397 = vmatpush1.bf16.msra.mxu0 %v3521_v53  ;;  %2312 = vmatprep.subr.bf16.mxu1 %v3526_v54 }
 0x164   : > { %2398 = vmatprep.subr.bf16.mxu0 %v3529_v55  ;;  %v2506_v53 = vshrl.u32 %v2505_v52, 7  ;;  %v2503_v55 = vld [vmem:[%s250_s30] sm:$0x3f] }
 0x166   : > { %2313 = vmatpush1.bf16.msra.mxu1 %v3524_v56  ;;  %v2507_v54 = vsub.s32 0, %v2506_v53  ;;  %v2511_v56 = vsub.s32 1, %v2506_v53 }
 0x167   : > { %2399 = vmatpush1.bf16.msra.mxu0 %v3527_v57  ;;  %2314 = vmatprep.subr.bf16.mxu1 %v3532_v58 }
 0x168   : > { %2400 = vmatprep.subr.bf16.mxu0 %v3535_v59  ;;  %v2508_v57 = vrot.slane %v2503_v55, %v2507_v54  ;;  %v2512_v59 = vrot.slane %v2503_v55, %v2511_v56 }
 0x16a   : > { %2315 = vmatpush1.bf16.msra.mxu1 %v3530_v60 }
 0x16b   : > { %2401 = vmatpush1.bf16.msra.mxu0 %v3533_v61  ;;  %2316 = vmatprep.subr.bf16.mxu1 %v3538_v62 }
 0x16c   : > { %2402 = vmatprep.subr.bf16.mxu0 %v3541_v63 }
 0x16e   : > { %2317 = vmatpush1.bf16.msra.mxu1 %v3536_v0 }
 0x16f   : > { %2403 = vmatpush1.bf16.msra.mxu0 %v3539_v1  ;;  %2318 = vmatprep.subr.bf16.mxu1 %v3544_v2 }
 0x170   : > { %2404 = vmatprep.subr.bf16.mxu0 %v3547_v3 }
 0x172   : > { %2319 = vmatpush1.bf16.msra.mxu1 %v3542_v4 }
 0x173   : > { %2405 = vmatpush1.bf16.msra.mxu0 %v3545_v5  ;;  %2320 = vmatprep.subr.bf16.mxu1 %v3550_v8 }
 0x174   : > { %2406 = vmatprep.subr.bf16.mxu0 %v3553_v9 }
 0x176   : > { %2321 = vmatpush1.bf16.msra.mxu1 %v3548_v10  ;;  %v2515_v10 = vsub.s32 2, %v2506_v53 }
 0x177   : > { %2407 = vmatpush1.bf16.msra.mxu0 %v3551_v12  ;;  %2322 = vmatprep.subr.bf16.mxu1 %v3556_v13  ;;  %v2519_v12 = vsub.s32 3, %v2506_v53 }
 0x178   : > { %2408 = vmatprep.subr.bf16.mxu0 %v3559_v14  ;;  %v2516_v13 = vrot.slane %v2503_v55, %v2515_v10 }
 0x179   : > { %v2520_v14 = vrot.slane %v2503_v55, %v2519_v12 }
 0x17a   : > { %2323 = vmatpush1.bf16.msra.mxu1 %v3554_v15 }
 0x17b   : > { %2409 = vmatpush1.bf16.msra.mxu0 %v3557_v16 }
 0x17c   : > { %2421 = vmatprep.subr.bf16.mxu0 %v3562_v17 }
 0x17d   : > { %2325 = vmatmul.mubr.bf16.vlgmr.msra.gmra.mrb[4].mxu1 %v4163_v11 }
 0x17e   : > { %2411 = vmatmul.mubr.bf16.vlgmr.msra.gmra.mrb[4].mxu0 %v3609_v20 }
 0x17f   : > { %2422 = vmatpush1.bf16.msra.mxu0 %v3560_v18  ;;  %2453 = vmatprep.mubr.bf16.mxu0 %v4124_v34  ;;  %v3575_v34 = vld [vmem:[%s4011_s18 + $0x700] ss:$24 sps:$4 sm:$0xff]  }
 0x180   : > { %2423 = vmatprep.subr.bf16.mxu0 %v3565_v19 }
 0x183   : > { %2424 = vmatpush1.bf16.msra.mxu0 %v3563_v21 }
 0x184   : > { %2425 = vmatprep.subr.bf16.mxu0 %v3568_v22 }
 0x187   : > { %2426 = vmatpush1.bf16.msra.mxu0 %v3566_v23 }
 0x188   : > { %2427 = vmatprep.subr.bf16.mxu0 %v3571_v24 }
 0x18b   : > { %2428 = vmatpush1.bf16.msra.mxu0 %v3569_v6  ;;  %v2523_v6 = vsub.s32 4, %v2506_v53 }
 0x18c   : > { %2429 = vmatprep.subr.bf16.mxu0 %v3574_v7  ;;  %v2527_v7 = vsub.s32 5, %v2506_v53 }
 0x18f   : > { %2430 = vmatpush1.bf16.msra.mxu0 %v3572_v25  ;;  %v2524_v25 = vrot.slane %v2503_v55, %v2523_v6 }
 0x190   : > { %2431 = vmatprep.subr.bf16.mxu0 %v3577_v48  ;;  %v2111_v26 = vpop.f32.mrb[0].mxu1  ;;  %v2528_v48 = vrot.slane %v2503_v55, %v2527_v7 }
 0x191   : > { %v2113_v27 = vpop.f32.mrb[1].mxu1 }
 0x192   : > { %v2115_v29 = vpop.f32.mrb[2].mxu1 }
 0x193   : > { %2432 = vmatpush1.bf16.msra.mxu0 %v3575_v34  ;;  %v2117_v31 = vpop.f32.mrb[3].mxu1 }
 0x194   : > { %2433 = vmatprep.subr.bf16.mxu0 %v3580_v49 }
 0x197   : > { %2434 = vmatpush1.bf16.msra.mxu0 %v3578_v28 }
 0x198   : > { %2435 = vmatprep.subr.bf16.mxu0 %v3583_v30 }
 0x19b   : > { %2436 = vmatpush1.bf16.msra.mxu0 %v3581_v32 }
 0x19c   : > { %2437 = vmatprep.subr.bf16.mxu0 %v3586_v33 }
 0x19f   : > { %2438 = vmatpush1.bf16.msra.mxu0 %v3584_v35 }
 0x1a0   : > { %2439 = vmatprep.subr.bf16.mxu0 %v3589_v36 }
 0x1a3   : > { %2440 = vmatpush1.bf16.msra.mxu0 %v3587_v37 }
 0x1a4   : > { %2441 = vmatprep.subr.bf16.mxu0 %v3592_v38 }
 0x1a7   : > { %2442 = vmatpush1.bf16.msra.mxu0 %v3590_v39 }
 0x1a8   : > { %2443 = vmatprep.subr.bf16.mxu0 %v3595_v40 }
 0x1ab   : > { %2444 = vmatpush1.bf16.msra.mxu0 %v3593_v41 }
 0x1ac   : > { %2445 = vmatprep.subr.bf16.mxu0 %v3598_v42 }
 0x1af   : > { %2446 = vmatpush1.bf16.msra.mxu0 %v3596_v43 }
 0x1b0   : > { %2447 = vmatprep.subr.bf16.mxu0 %v3601_v44 }
 0x1b3   : > { %2448 = vmatpush1.bf16.msra.mxu0 %v3599_v45 }
 0x1b4   : > { %2449 = vmatprep.subr.bf16.mxu0 %v3604_v46 }
 0x1b7   : > { %2450 = vmatpush1.bf16.msra.mxu0 %v3602_v47 }
 0x1b8   : > { %2451 = vmatprep.subr.bf16.mxu0 %v3607_v50 }
 0x1bb   : > { %2452 = vmatpush1.bf16.msra.mxu0 %v3605_v51 }
 0x1be   : > { %2454 = vmatmul.mubr.bf16.vlgmr.msra.gmra.mrb[4].mxu0 %v4163_v11 }
 0x1d1   : > { %v2197_v58 = vpop.f32.mrb[0].mxu0 }
 0x1d2   : > { %v3054_v60 = vadd.f32 %v2197_v58, %v2111_v26  ;;  %v2199_v61 = vpop.f32.mrb[1].mxu0 }
 0x1d3   : > { %v3055_v62 = vadd.f32 %v2199_v61, %v2113_v27  ;;  %v2201_v63 = vpop.f32.mrb[2].mxu0 }
 0x1d4   : > { %v2535_v0 = vadd.f32 %v3054_v60, %v2508_v57  ;;  %v3056_v1 = vadd.f32 %v2201_v63, %v2115_v29  ;;  %v2203_v2 = vpop.f32.mrb[3].mxu0 }
 0x1d5   : > { %v2536_v3 = vadd.f32 %v3055_v62, %v2512_v59  ;;  %v3057_v11 = vadd.f32 %v2203_v2, %v2117_v31 }
 0x1d6   : > { %v2541_v4 = vadd.f32 %v3056_v1, %v2508_v57 }
 0x1d7   : > { %v3047_v5 = vpack.c.bf16 %v2536_v3, %v2535_v0  ;;  %v2542_v8 = vadd.f32 %v3057_v11, %v2512_v59 }
 0x1d9   : > { %2583 = vst [vmem:[%s4335_s9] sm:$0xff] %v3047_v5  ;;  %v3050_v9 = vpack.c.bf16 %v2542_v8, %v2541_v4 }
 0x1db   : > { %2586 = vst [vmem:[%s4335_s9 + $0x18] sm:$0xff] %v3050_v9 }
 0x250   : > { %v2326_v15 = vpop.f32.mrb[4].mxu1 }
 0x251   : > { %v2537_v16 = vadd.f32 %v2516_v13, %v2326_v15  ;;  %v2328_v17 = vpop.f32.mrb[5].mxu1 }
 0x252   : > { %v2538_v18 = vadd.f32 %v2520_v14, %v2328_v17  ;;  %v2330_v19 = vpop.f32.mrb[6].mxu1 }
 0x253   : > { %v2543_v20 = vadd.f32 %v2516_v13, %v2330_v19  ;;  %v2332_v21 = vpop.f32.mrb[7].mxu1 }
 0x254   : > { %v3048_v22 = vpack.c.bf16 %v2538_v18, %v2537_v16  ;;  %v2544_v23 = vadd.f32 %v2520_v14, %v2332_v21 }
 0x256   : > { %2584 = vst [vmem:[%s4335_s9 + $0x8] sm:$0xff] %v3048_v22  ;;  %v3051_v24 = vpack.c.bf16 %v2544_v23, %v2543_v20 }
 0x258   : > { %2587 = vst [vmem:[%s4335_s9 + $0x20] sm:$0xff] %v3051_v24 }
 0x291   : > { %v2455_v34 = vpop.f32.mrb[4].mxu0 }
 0x292   : > { %v2539_v49 = vadd.f32 %v2524_v25, %v2455_v34  ;;  %v2457_v26 = vpop.f32.mrb[5].mxu0 }
 0x293   : > { %v2540_v27 = vadd.f32 %v2528_v48, %v2457_v26  ;;  %v2459_v28 = vpop.f32.mrb[6].mxu0 }
 0x294   : > { %v2545_v29 = vadd.f32 %v2524_v25, %v2459_v28  ;;  %v2461_v30 = vpop.f32.mrb[7].mxu0 }
 0x295   : > { %v3049_v31 = vpack.c.bf16 %v2540_v27, %v2539_v49  ;;  %v2546_v32 = vadd.f32 %v2528_v48, %v2461_v30 }
 0x297   : > { %2585 = vst [vmem:[%s4335_s9 + $0x10] sm:$0xff] %v3049_v31  ;;  %v3052_v33 = vpack.c.bf16 %v2546_v32, %v2545_v29 }
 0x299   : > { %2588 = vst [vmem:[%s4335_s9 + $0x28] sm:$0xff] %v3052_v33 }
 0x29a   : > { %3711 = shalt.err (!%p3708_p7)
}
 0x29b   : > { %s3712_s25 = scalar_lea.hbm %s4348_s8, 768  ;;  %s3716_s1 = scalar_lea.hbm %s4401_s3, 2304 }
 0x29c   : > { %p3713_p9 = scmp.ne.s32.totalorder %s4348_s8, %s3712_s25  ;;  %p3717_p10 = scmp.lt.u32.totalorder %s4348_s8, %s4401_s3 }
 0x29d   : > { %p3718_p2 = scmp.lt.u32.totalorder %s3716_s1, %s3712_s25  ;;  %p3720_p3 = scmp.lt.u32.totalorder %s3712_s25, %s4348_s8 }
 0x29e   : > { %p3714_p12 = pnand %p3713_p9, %p4430_p5 }
 0x29f   : > { %p3719_p0 = por %p3718_p2, %p3717_p10 }
 0x2a0   : > { %p3715_p6 = pneg %p3714_p12 }
 0x2a1   : > { %p3721_p1 = por %p3720_p3, %p3719_p0 }
 0x2a3   : > { %p3722_p11 = pnand %p3721_p1, %p3715_p6 }
 0x2a5   : > { %3725 = shalt.err (!%p3722_p11)
}
 0x2a6   : > { %s3793_s30 = smov 384   ;;  %s3794_s7 = smov 1152  }
 0x2a7   : > { %s3795_s9 = smov 24  }
 0x2a8   : > { %3091 = dma.vmem_to_hbm [thread:$0]  (%p4430_p5), %s4343_s21, 768, %s4348_s8, %s2590_s15, %s3793_s30, %s3794_s7, %s3795_s9  }
 0x2a9 PF: > { %p3111_p13 = scmp.ge.s32.totalorder %s3784_s17, 2  ;;  %s2621_s6 = sand.u32 1, %s3764_s12  }
 0x2aa   : > { %p4431_p8 = scmp.ne.s32.totalorder %s4418_s4, 0  ;;  %s2622_s28 = scalar_lea.sflag [#allocation5], %s2621_s6 }
 0x2ac   : > { %p3105_p4 = pnand %p3111_p13, %p4431_p8 }
 0x2ae   : > { %3759 = dma.done.wait (!%p3105_p4), %s2622_s28, 768  }
 0x2af   : > { %3761 = vsyncadd (!%p3105_p4), %s2622_s28, 4294966528  ;;  %s20_s17 = sadd.s32 1, %s3784_s17   ;;  %s4432_s29 = sld [smem:[#allocation13_spill]] }
 0x2b0   : > { %p17_p7 = scmp.ge.s32.totalorder %s20_s17, 5   ;;  %s4433_s12 = smov %s3768_s13 }
 0x2b1   : > { %s4434_s13 = smov %s3772_s14  ;;  %s4435_s14 = smov %s3862_s23 }
 0x2b2   : > { %s4436_s15 = smov %s3780_s16  ;;  %19 = sbr.rel (!%p17_p7) target bundleno = 9 (0x9), region = 102 }
 0x2b5   : > { %s4437_s16 = smov %s4432_s29 }
 0x2b9   :  { %2627 = vsyncpa [#allocation4], 1 }
 0x2ba   :  { %2629 = vsyncpa [#allocation4 + $0x1], 1 }
 0x2bb   :  { %2630 = vsyncpa [#allocation7], 1 }
 0x2bc   :  { %2632 = vsyncpa [#allocation7 + $0x1], 1 }
 0x2bd   :  { %2633 = vsyncpa [#allocation5], 1 }
 0x2be   :  { %2635 = vsyncpa [#allocation5 + $0x1], 1 }

// kernel: bert_classifier_forward.15
= control target key start
LH: loop header
LB: loop body
LE: loop exit
PB: predicated region body
PF: predicated region fallthrough
CT: control target
= control target key end

     0   :  { %11 = vsyncpa [#allocation4], 0  ;;  %s3785_s0 = inlined_call_operand.hbm [shape: bf16[16,768], index: 0, kind: input, shape index: {}]   ;;  %s3786_s1 = inlined_call_operand.hbm [shape: bf16[768,768], index: 1, kind: input, shape index: {}]   ;;  %s3787_s2 = inlined_call_operand.hbm [shape: f32[1,768], index: 2, kind: input, shape index: {}]   ;;  %s3788_s3 = inlined_call_operand.hbm [shape: bf16[16,768], index: 3, kind: input, shape index: {}]   ;;  %s3789_s4 = inlined_call_operand.hbm [shape: f32[1,768], index: 4, kind: input, shape index: {}]   ;;  %s3790_s5 = inlined_call_operand.hbm [shape: f32[1,768], index: 5, kind: input, shape index: {}]   ;;  %s3791_s6 = inlined_call_operand.hbm [shape: bf16[16,768], index: 6, kind: output, shape index: {}]  }
   0x1   :  { %12 = vsyncpa [#allocation7], 0 }
   0x2   :  { %13 = vsyncpa [#allocation10], 0 }
   0x3   :  { %14 = vsyncpa [#allocation13], 0 }
   0x4   :  { %15 = vsyncpa [#allocation5], 0  ;;  %s3565_s21 = smov [#allocation6]   ;;  %s3566_s23 = smov [#allocation9]  }
   0x5   :  { %s33_s22 = sshll.u32 %s3565_s21, 4  ;;  %s55_s24 = sshll.u32 %s3566_s23, 4  ;;  %s34_s22 = int_to_ptr.vmem [resolvable:$true] %s33_s22  ;;  %s3609_s24 = int_to_ptr.vmem [resolvable:$true] %s55_s24 }
   0x6   :  { %s3401_s27 = scalar_lea.hbm %s3786_s1, 36864 }
   0x7   :  { %p3402_p0 = scmp.ne.s32.totalorder %s3786_s1, %s3401_s27  ;;  %p3405_p1 = scmp.lt.u32.totalorder %s3401_s27, %s3786_s1 }
   0x9   :  { %p3407_p2 = pnand %p3405_p1, %p3402_p0 }
   0xb   :  { %3410 = shalt.err (!%p3407_p2)
}
   0xc   :  { %s3411_s8 = scalar_lea.vmem %s34_s22, 36864  ;;  %p3416_p4 = scmp.lt.s32.totalorder %s34_s22, %s34_s22 }
   0xd   :  { %p3412_p3 = scmp.ne.s32.totalorder %s34_s22, %s3411_s8  ;;  %p3417_p5 = scmp.lt.s32.totalorder %s3411_s8, %s3411_s8 }
   0xf   :  { %p3418_p6 = por %p3417_p5, %p3416_p4 }
  0x11   :  { %p3419_p7 = pnand %p3418_p6, %p3412_p3 }
  0x13   :  { %3422 = shalt.err (!%p3419_p7)
}
  0x14   :  { %s3567_s9 = smov 384   ;;  %s3568_s10 = smov 24  }
  0x15   :  { %39 = dma.hbm_to_vmem [thread:$0]  %s3786_s1, 36864, %s34_s22, [#allocation7], %s3567_s9, %s3567_s9, %s3568_s10  }
  0x16   :  { %s3423_s15 = scalar_lea.hbm %s3788_s3, 768 }
  0x17   :  { %p3424_p8 = scmp.ne.s32.totalorder %s3788_s3, %s3423_s15  ;;  %p3427_p9 = scmp.lt.u32.totalorder %s3423_s15, %s3788_s3 }
  0x19   :  { %p3429_p10 = pnand %p3427_p9, %p3424_p8 }
  0x1b   :  { %3432 = shalt.err (!%p3429_p10)
}
  0x1c   :  { %s3433_s20 = scalar_lea.vmem %s3609_s24, 768  ;;  %p3438_p12 = scmp.lt.s32.totalorder %s3609_s24, %s3609_s24 }
  0x1d   :  { %p3434_p11 = scmp.ne.s32.totalorder %s3609_s24, %s3433_s20  ;;  %p3439_p13 = scmp.lt.s32.totalorder %s3433_s20, %s3433_s20 }
  0x1f   :  { %p3440_p0 = por %p3439_p13, %p3438_p12 }
  0x21   :  { %p3441_p1 = pnand %p3440_p0, %p3434_p11 }
  0x23   :  { %3444 = shalt.err (!%p3441_p1)
}
  0x24   :  { %61 = dma.hbm_to_vmem [thread:$0]  %s3788_s3, 768, %s3609_s24, [#allocation10], %s3567_s9, %s3567_s9, %s3568_s10  }
  0x25   :  { %s3569_s22 = smov [#allocation3]   ;;  %s3570_s25 = smov [#allocation8]  }
  0x26   :  { %s21_s23 = sshll.u32 %s3569_s22, 4  ;;  %s46_s26 = sshll.u32 %s3570_s25, 4  ;;  %s22_s23 = int_to_ptr.vmem [resolvable:$true] %s21_s23  ;;  %s47_s26 = int_to_ptr.vmem [resolvable:$true] %s46_s26 }
  0x27   :  { %s3445_s29 = scalar_lea.hbm %s3785_s0, 768 }
  0x28   :  { %p3446_p2 = scmp.ne.s32.totalorder %s3785_s0, %s3445_s29  ;;  %p3449_p3 = scmp.lt.u32.totalorder %s3445_s29, %s3785_s0 }
  0x2a   :  { %p3451_p4 = pnand %p3449_p3, %p3446_p2 }
  0x2c   :  { %3454 = shalt.err (!%p3451_p4)
}
  0x2d   :  { %s3455_s3 = scalar_lea.vmem %s22_s23, 768  ;;  %p3460_p6 = scmp.lt.s32.totalorder %s22_s23, %s22_s23 }
  0x2e   :  { %p3456_p5 = scmp.ne.s32.totalorder %s22_s23, %s3455_s3  ;;  %p3461_p7 = scmp.lt.s32.totalorder %s3455_s3, %s3455_s3 }
  0x30   :  { %p3462_p8 = por %p3461_p7, %p3460_p6 }
  0x32   :  { %p3463_p9 = pnand %p3462_p8, %p3456_p5 }
  0x34   :  { %3466 = shalt.err (!%p3463_p9)
}
  0x35   :  { %27 = dma.hbm_to_vmem [thread:$0]  %s3785_s0, 768, %s22_s23, [#allocation4], %s3567_s9, %s3567_s9, %s3568_s10  }
  0x36   :  { %s3467_s15 = scalar_lea.hbm %s3787_s2, 96 }
  0x37   :  { %p3468_p10 = scmp.ne.s32.totalorder %s3787_s2, %s3467_s15  ;;  %p3471_p11 = scmp.lt.u32.totalorder %s3467_s15, %s3787_s2 }
  0x39   :  { %p3473_p12 = pnand %p3471_p11, %p3468_p10 }
  0x3b   :  { %3476 = shalt.err (!%p3473_p12)
}
  0x3c   :  { %s3477_s20 = scalar_lea.vmem %s47_s26, 96  ;;  %p3482_p0 = scmp.lt.s32.totalorder %s47_s26, %s47_s26 }
  0x3d   :  { %p3478_p13 = scmp.ne.s32.totalorder %s47_s26, %s3477_s20  ;;  %p3483_p1 = scmp.lt.s32.totalorder %s3477_s20, %s3477_s20 }
  0x3f   :  { %p3484_p2 = por %p3483_p1, %p3482_p0 }
  0x41   :  { %p3485_p3 = pnand %p3484_p2, %p3478_p13 }
  0x43   :  { %3488 = shalt.err (!%p3485_p3)
}
  0x44   :  { %49 = dma.hbm_to_vmem [thread:$0]  %s3787_s2, 96, %s47_s26, [#allocation7]  }
  0x45   :  { %s3571_s21 = smov [#allocation11]   ;;  %s3572_s23 = smov [#allocation12]  }
  0x46   :  { %s68_s22 = sshll.u32 %s3571_s21, 4  ;;  %s78_s25 = sshll.u32 %s3572_s23, 4  ;;  %s69_s22 = int_to_ptr.vmem [resolvable:$true] %s68_s22  ;;  %s79_s25 = int_to_ptr.vmem [resolvable:$true] %s78_s25 }
  0x47   :  { %s3489_s29 = scalar_lea.hbm %s3789_s4, 96 }
  0x48   :  { %p3490_p4 = scmp.ne.s32.totalorder %s3789_s4, %s3489_s29  ;;  %p3493_p5 = scmp.lt.u32.totalorder %s3489_s29, %s3789_s4 }
  0x4a   :  { %p3495_p6 = pnand %p3493_p5, %p3490_p4 }
  0x4c   :  { %3498 = shalt.err (!%p3495_p6)
}
  0x4d   :  { %s3499_s2 = scalar_lea.vmem %s69_s22, 96  ;;  %p3504_p8 = scmp.lt.s32.totalorder %s69_s22, %s69_s22 }
  0x4e   :  { %p3500_p7 = scmp.ne.s32.totalorder %s69_s22, %s3499_s2  ;;  %p3505_p9 = scmp.lt.s32.totalorder %s3499_s2, %s3499_s2 }
  0x50   :  { %p3506_p10 = por %p3505_p9, %p3504_p8 }
  0x52   :  { %p3507_p11 = pnand %p3506_p10, %p3500_p7 }
  0x54   :  { %3510 = shalt.err (!%p3507_p11)
}
  0x55   :  { %71 = dma.hbm_to_vmem [thread:$0]  %s3789_s4, 96, %s69_s22, [#allocation10]  }
  0x56   :  { %s3511_s13 = scalar_lea.hbm %s3790_s5, 96 }
  0x57   :  { %p3512_p12 = scmp.ne.s32.totalorder %s3790_s5, %s3511_s13  ;;  %p3515_p13 = scmp.lt.u32.totalorder %s3511_s13, %s3790_s5 }
  0x59   :  { %p3517_p0 = pnand %p3515_p13, %p3512_p12 }
  0x5b   :  { %3520 = shalt.err (!%p3517_p0)
}
  0x5c   :  { %s3521_s18 = scalar_lea.vmem %s79_s25, 96  ;;  %p3526_p2 = scmp.lt.s32.totalorder %s79_s25, %s79_s25 }
  0x5d   :  { %p3522_p1 = scmp.ne.s32.totalorder %s79_s25, %s3521_s18  ;;  %p3527_p3 = scmp.lt.s32.totalorder %s3521_s18, %s3521_s18 }
  0x5f   :  { %p3528_p4 = por %p3527_p3, %p3526_p2 }
  0x61   :  { %p3529_p5 = pnand %p3528_p4, %p3522_p1 }
  0x63   :  { %3532 = shalt.err (!%p3529_p5)
}
  0x64   :  { %81 = dma.hbm_to_vmem [thread:$0]  %s3790_s5, 96, %s79_s25, [#allocation13]  }
  0x65   :  { %3555 = dma.done.wait [#allocation4], 768  }
  0x66   :  { %3556 = vsyncadd [#allocation4], 4294966528 }
  0x67   :  { %3557 = dma.done.wait [#allocation7], 36960  }
  0x68   :  { %3558 = vsyncadd [#allocation7], 4294930336 }
  0x69   :  { %3559 = dma.done.wait [#allocation10], 864  }
  0x6a   :  { %3560 = vsyncadd [#allocation10], 4294966432 }
  0x6b   :  { %3561 = dma.done.wait [#allocation13], 96  }
  0x6c   :  { %3562 = vsyncadd [#allocation13], 4294967200  ;;  %v2954_v0 = vld [vmem:[#allocation6 + $0x4] ss:$24 sps:$4 sm:$0xff]   ;;  %v2958_v2 = vld [vmem:[#allocation6] ss:$24 sps:$4 sm:$0xff]  }
  0x6d   :  { %v2956_v1 = vld [vmem:[#allocation6 + $0x304] ss:$24 sps:$4 sm:$0xff]   ;;  %1892 = vmatprep.subr.bf16.mxu1 %v2954_v0  ;;  %v2959_v3 = vld [vmem:[#allocation6 + $0x300] ss:$24 sps:$4 sm:$0xff]   ;;  %v2960_v4 = vld [vmem:[#allocation6 + $0x34] ss:$24 sps:$4 sm:$0xff]  }
  0x6e   :  { %1935 = vmatprep.subr.bf16.mxu0 %v2956_v1  ;;  %1893 = vmatpush1.bf16.msra.mxu1 %v2958_v2  ;;  %v2962_v5 = vld [vmem:[#allocation6 + $0x334] ss:$24 sps:$4 sm:$0xff]   ;;  %v2964_v6 = vld [vmem:[#allocation6 + $0x30] ss:$24 sps:$4 sm:$0xff]   ;;  %v2966_v8 = vld [vmem:[#allocation6 + $0x64] ss:$24 sps:$4 sm:$0xff]  }
  0x6f   :  { %1936 = vmatpush1.bf16.msra.mxu0 %v2959_v3  ;;  %1894 = vmatprep.subr.bf16.mxu1 %v2960_v4  ;;  %v2965_v7 = vld [vmem:[#allocation6 + $0x330] ss:$24 sps:$4 sm:$0xff]   ;;  %v2968_v9 = vld [vmem:[#allocation6 + $0x364] ss:$24 sps:$4 sm:$0xff]   ;;  %v2970_v10 = vld [vmem:[#allocation6 + $0x60] ss:$24 sps:$4 sm:$0xff]  }
  0x70   :  { %1937 = vmatprep.subr.bf16.mxu0 %v2962_v5  ;;  %v2971_v11 = vld [vmem:[#allocation6 + $0x360] ss:$24 sps:$4 sm:$0xff]   ;;  %v2972_v12 = vld [vmem:[#allocation6 + $0x94] ss:$24 sps:$4 sm:$0xff]   ;;  %v2976_v14 = vld [vmem:[#allocation6 + $0x90] ss:$24 sps:$4 sm:$0xff]  }
  0x71   :  { %v2974_v13 = vld [vmem:[#allocation6 + $0x394] ss:$24 sps:$4 sm:$0xff]   ;;  %v2977_v15 = vld [vmem:[#allocation6 + $0x390] ss:$24 sps:$4 sm:$0xff]   ;;  %v2978_v16 = vld [vmem:[#allocation6 + $0xc4] ss:$24 sps:$4 sm:$0xff]  }
  0x72   :  { %1895 = vmatpush1.bf16.msra.mxu1 %v2964_v6  ;;  %v2980_v17 = vld [vmem:[#allocation6 + $0x3c4] ss:$24 sps:$4 sm:$0xff]   ;;  %v2982_v18 = vld [vmem:[#allocation6 + $0xc0] ss:$24 sps:$4 sm:$0xff]   ;;  %v2984_v20 = vld [vmem:[#allocation6 + $0xf4] ss:$24 sps:$4 sm:$0xff]  }
  0x73   :  { %1938 = vmatpush1.bf16.msra.mxu0 %v2965_v7  ;;  %1896 = vmatprep.subr.bf16.mxu1 %v2966_v8  ;;  %v2983_v19 = vld [vmem:[#allocation6 + $0x3c0] ss:$24 sps:$4 sm:$0xff]   ;;  %v2986_v21 = vld [vmem:[#allocation6 + $0x3f4] ss:$24 sps:$4 sm:$0xff]   ;;  %v2988_v22 = vld [vmem:[#allocation6 + $0xf0] ss:$24 sps:$4 sm:$0xff]  }
  0x74   :  { %1939 = vmatprep.subr.bf16.mxu0 %v2968_v9  ;;  %v2989_v23 = vld [vmem:[#allocation6 + $0x3f0] ss:$24 sps:$4 sm:$0xff]   ;;  %v2990_v24 = vld [vmem:[#allocation6 + $0x124] ss:$24 sps:$4 sm:$0xff]   ;;  %v2994_v26 = vld [vmem:[#allocation6 + $0x120] ss:$24 sps:$4 sm:$0xff]  }
  0x75   :  { %v2992_v25 = vld [vmem:[#allocation6 + $0x424] ss:$24 sps:$4 sm:$0xff]   ;;  %v2995_v27 = vld [vmem:[#allocation6 + $0x420] ss:$24 sps:$4 sm:$0xff]   ;;  %v2996_v28 = vld [vmem:[#allocation6 + $0x154] ss:$24 sps:$4 sm:$0xff]  }
  0x76   :  { %1897 = vmatpush1.bf16.msra.mxu1 %v2970_v10  ;;  %v2998_v29 = vld [vmem:[#allocation6 + $0x454] ss:$24 sps:$4 sm:$0xff]   ;;  %v3000_v30 = vld [vmem:[#allocation6 + $0x150] ss:$24 sps:$4 sm:$0xff]   ;;  %v3002_v32 = vld [vmem:[#allocation6 + $0x184] ss:$24 sps:$4 sm:$0xff]  }
  0x77   :  { %1940 = vmatpush1.bf16.msra.mxu0 %v2971_v11  ;;  %1898 = vmatprep.subr.bf16.mxu1 %v2972_v12  ;;  %v3001_v31 = vld [vmem:[#allocation6 + $0x450] ss:$24 sps:$4 sm:$0xff]   ;;  %v3004_v33 = vld [vmem:[#allocation6 + $0x484] ss:$24 sps:$4 sm:$0xff]   ;;  %v3006_v34 = vld [vmem:[#allocation6 + $0x180] ss:$24 sps:$4 sm:$0xff]  }
  0x78   :  { %1941 = vmatprep.subr.bf16.mxu0 %v2974_v13  ;;  %v3007_v35 = vld [vmem:[#allocation6 + $0x480] ss:$24 sps:$4 sm:$0xff]   ;;  %v3008_v36 = vld [vmem:[#allocation6 + $0x1b4] ss:$24 sps:$4 sm:$0xff]   ;;  %v3012_v38 = vld [vmem:[#allocation6 + $0x1b0] ss:$24 sps:$4 sm:$0xff]  }
  0x79   :  { %v3010_v37 = vld [vmem:[#allocation6 + $0x4b4] ss:$24 sps:$4 sm:$0xff]   ;;  %v3013_v39 = vld [vmem:[#allocation6 + $0x4b0] ss:$24 sps:$4 sm:$0xff]   ;;  %v3014_v40 = vld [vmem:[#allocation6 + $0x1e4] ss:$24 sps:$4 sm:$0xff]  }
  0x7a   :  { %1899 = vmatpush1.bf16.msra.mxu1 %v2976_v14  ;;  %v3016_v41 = vld [vmem:[#allocation6 + $0x4e4] ss:$24 sps:$4 sm:$0xff]   ;;  %v3018_v42 = vld [vmem:[#allocation6 + $0x1e0] ss:$24 sps:$4 sm:$0xff]   ;;  %v3020_v44 = vld [vmem:[#allocation6 + $0x214] ss:$24 sps:$4 sm:$0xff]  }
  0x7b   :  { %1942 = vmatpush1.bf16.msra.mxu0 %v2977_v15  ;;  %1900 = vmatprep.subr.bf16.mxu1 %v2978_v16  ;;  %v3019_v43 = vld [vmem:[#allocation6 + $0x4e0] ss:$24 sps:$4 sm:$0xff]   ;;  %v3022_v45 = vld [vmem:[#allocation6 + $0x514] ss:$24 sps:$4 sm:$0xff]   ;;  %v3024_v46 = vld [vmem:[#allocation6 + $0x210] ss:$24 sps:$4 sm:$0xff]  }
  0x7c   :  { %1943 = vmatprep.subr.bf16.mxu0 %v2980_v17  ;;  %v3025_v47 = vld [vmem:[#allocation6 + $0x510] ss:$24 sps:$4 sm:$0xff]   ;;  %v3697_v48 = vld [vmem:[#allocation3 + $0x4] ss:$24 sps:$4 sm:$0xff]   ;;  %v3026_v50 = vld [vmem:[#allocation6 + $0x244] ss:$24 sps:$4 sm:$0xff]  }
  0x7d   :  { %v3699_v49 = vld [vmem:[#allocation3 + $0xc] ss:$24 sps:$4 sm:$0xff]   ;;  %1924 = vmatprep.mubr.bf16.mxu1 %v3697_v48  ;;  %v3030_v52 = vld [vmem:[#allocation6 + $0x240] ss:$24 sps:$4 sm:$0xff]   ;;  %v3036_v56 = vld [vmem:[#allocation6 + $0x270] ss:$24 sps:$4 sm:$0xff]  }
  0x7e   :  { %1901 = vmatpush1.bf16.msra.mxu1 %v2982_v18  ;;  %v3028_v51 = vld [vmem:[#allocation6 + $0x544] ss:$24 sps:$4 sm:$0xff]   ;;  %1967 = vmatprep.mubr.bf16.mxu0 %v3699_v49  ;;  %v3031_v53 = vld [vmem:[#allocation6 + $0x540] ss:$24 sps:$4 sm:$0xff]   ;;  %v3032_v54 = vld [vmem:[#allocation6 + $0x274] ss:$24 sps:$4 sm:$0xff]  }
  0x7f   :  { %1944 = vmatpush1.bf16.msra.mxu0 %v2983_v19  ;;  %1902 = vmatprep.subr.bf16.mxu1 %v2984_v20  ;;  %v3034_v55 = vld [vmem:[#allocation6 + $0x574] ss:$24 sps:$4 sm:$0xff]   ;;  %v3037_v57 = vld [vmem:[#allocation6 + $0x570] ss:$24 sps:$4 sm:$0xff]   ;;  %v3038_v58 = vld [vmem:[#allocation6 + $0x2a4] ss:$24 sps:$4 sm:$0xff]  }
  0x80   :  { %1945 = vmatprep.subr.bf16.mxu0 %v2986_v21  ;;  %v3040_v59 = vld [vmem:[#allocation6 + $0x5a4] ss:$24 sps:$4 sm:$0xff]   ;;  %v3042_v60 = vld [vmem:[#allocation6 + $0x2a0] ss:$24 sps:$4 sm:$0xff]   ;;  %v3044_v62 = vld [vmem:[#allocation6 + $0x2d4] ss:$24 sps:$4 sm:$0xff]  }
  0x81   :  { %v3043_v61 = vld [vmem:[#allocation6 + $0x5a0] ss:$24 sps:$4 sm:$0xff]   ;;  %v3046_v63 = vld [vmem:[#allocation6 + $0x5d4] ss:$24 sps:$4 sm:$0xff]   ;;  %v3048_v0 = vld [vmem:[#allocation6 + $0x2d0] ss:$24 sps:$4 sm:$0xff]  }
  0x82   :  { %1903 = vmatpush1.bf16.msra.mxu1 %v2988_v22  ;;  %v3049_v1 = vld [vmem:[#allocation6 + $0x5d0] ss:$24 sps:$4 sm:$0xff]   ;;  %v3056_v2 = vld [vmem:[#allocation6 + $0x604] ss:$24 sps:$4 sm:$0xff]   ;;  %v3054_v4 = vld [vmem:[#allocation6 + $0x600] ss:$24 sps:$4 sm:$0xff]  }
  0x83   :  { %1946 = vmatpush1.bf16.msra.mxu0 %v2989_v23  ;;  %1904 = vmatprep.subr.bf16.mxu1 %v2990_v24  ;;  %v3059_v3 = vld [vmem:[#allocation6 + $0xc] ss:$24 sps:$4 sm:$0xff]   ;;  %v3057_v5 = vld [vmem:[#allocation6 + $0x8] ss:$24 sps:$4 sm:$0xff]   ;;  %v3705_v7 = vld [vmem:[#allocation3 + $0x8] ss:$24 sps:$4 sm:$0xff]  }
  0x84   :  { %1947 = vmatprep.subr.bf16.mxu0 %v2992_v25  ;;  %v3703_v6 = vld [vmem:[#allocation3] ss:$24 sps:$4 sm:$0xff]   ;;  %v3064_v8 = vld [vmem:[#allocation6 + $0x634] ss:$24 sps:$4 sm:$0xff]   ;;  %v3070_v12 = vld [vmem:[#allocation6 + $0x664] ss:$24 sps:$4 sm:$0xff]  }
  0x85   :  { %v3067_v9 = vld [vmem:[#allocation6 + $0x3c] ss:$24 sps:$4 sm:$0xff]   ;;  %v3062_v10 = vld [vmem:[#allocation6 + $0x630] ss:$24 sps:$4 sm:$0xff]   ;;  %v3073_v13 = vld [vmem:[#allocation6 + $0x6c] ss:$24 sps:$4 sm:$0xff]  }
  0x86   :  { %1905 = vmatpush1.bf16.msra.mxu1 %v2994_v26  ;;  %v3065_v11 = vld [vmem:[#allocation6 + $0x38] ss:$24 sps:$4 sm:$0xff]   ;;  %v3071_v15 = vld [vmem:[#allocation6 + $0x68] ss:$24 sps:$4 sm:$0xff]   ;;  %v3076_v16 = vld [vmem:[#allocation6 + $0x694] ss:$24 sps:$4 sm:$0xff]  }
  0x87   :  { %1948 = vmatpush1.bf16.msra.mxu0 %v2995_v27  ;;  %1906 = vmatprep.subr.bf16.mxu1 %v2996_v28  ;;  %v3068_v14 = vld [vmem:[#allocation6 + $0x660] ss:$24 sps:$4 sm:$0xff]   ;;  %v3079_v17 = vld [vmem:[#allocation6 + $0x9c] ss:$24 sps:$4 sm:$0xff]   ;;  %v3074_v18 = vld [vmem:[#allocation6 + $0x690] ss:$24 sps:$4 sm:$0xff]  }
  0x88   :  { %1949 = vmatprep.subr.bf16.mxu0 %v2998_v29  ;;  %v3077_v19 = vld [vmem:[#allocation6 + $0x98] ss:$24 sps:$4 sm:$0xff]   ;;  %v3082_v20 = vld [vmem:[#allocation6 + $0x6c4] ss:$24 sps:$4 sm:$0xff]   ;;  %v3083_v23 = vld [vmem:[#allocation6 + $0xc8] ss:$24 sps:$4 sm:$0xff]  }
  0x89   :  { %v3085_v21 = vld [vmem:[#allocation6 + $0xcc] ss:$24 sps:$4 sm:$0xff]   ;;  %v3080_v22 = vld [vmem:[#allocation6 + $0x6c0] ss:$24 sps:$4 sm:$0xff]   ;;  %v3091_v25 = vld [vmem:[#allocation6 + $0xfc] ss:$24 sps:$4 sm:$0xff]  }
  0x8a   :  { %1907 = vmatpush1.bf16.msra.mxu1 %v3000_v30  ;;  %v3088_v24 = vld [vmem:[#allocation6 + $0x6f4] ss:$24 sps:$4 sm:$0xff]   ;;  %v3086_v26 = vld [vmem:[#allocation6 + $0x6f0] ss:$24 sps:$4 sm:$0xff]   ;;  %v3094_v28 = vld [vmem:[#allocation6 + $0x724] ss:$24 sps:$4 sm:$0xff]  }
  0x8b   :  { %1950 = vmatpush1.bf16.msra.mxu0 %v3001_v31  ;;  %1908 = vmatprep.subr.bf16.mxu1 %v3002_v32  ;;  %v3089_v27 = vld [vmem:[#allocation6 + $0xf8] ss:$24 sps:$4 sm:$0xff]   ;;  %v3097_v29 = vld [vmem:[#allocation6 + $0x12c] ss:$24 sps:$4 sm:$0xff]   ;;  %v3095_v31 = vld [vmem:[#allocation6 + $0x128] ss:$24 sps:$4 sm:$0xff]  }
  0x8c   :  { %1951 = vmatprep.subr.bf16.mxu0 %v3004_v33  ;;  %v3092_v30 = vld [vmem:[#allocation6 + $0x720] ss:$24 sps:$4 sm:$0xff]   ;;  %v3100_v32 = vld [vmem:[#allocation6 + $0x754] ss:$24 sps:$4 sm:$0xff]   ;;  %s3573_s5 = smov [#allocation14]  }
  0x8d   :  { %v3103_v33 = vld [vmem:[#allocation6 + $0x15c] ss:$24 sps:$4 sm:$0xff]   ;;  %s2600_s20 = sshll.u32 %s3573_s5, 4  ;;  %s2601_s20 = int_to_ptr.vmem [resolvable:$true] %s2600_s20 }
  0x8e   :  { %1909 = vmatpush1.bf16.msra.mxu1 %v3006_v34  ;;  %v3710_v34 = vld [vmem:[#allocation3 + $0x14] ss:$24 sps:$4 sm:$0xff]   ;;  %s3533_s0 = scalar_lea.vmem %s2601_s20, 768  ;;  %p3538_p7 = scmp.lt.s32.totalorder %s2601_s20, %s2601_s20 }
  0x8f   :  { %1952 = vmatpush1.bf16.msra.mxu0 %v3007_v35  ;;  %1910 = vmatprep.subr.bf16.mxu1 %v3008_v36  ;;  %v3098_v35 = vld [vmem:[#allocation6 + $0x750] ss:$24 sps:$4 sm:$0xff]   ;;  %p3534_p6 = scmp.ne.s32.totalorder %s2601_s20, %s3533_s0  ;;  %p3539_p8 = scmp.lt.s32.totalorder %s3533_s0, %s3533_s0 }
  0x90   :  { %1953 = vmatprep.subr.bf16.mxu0 %v3010_v37  ;;  %v3101_v36 = vld [vmem:[#allocation6 + $0x158] ss:$24 sps:$4 sm:$0xff]   ;;  %v3106_v37 = vld [vmem:[#allocation6 + $0x784] ss:$24 sps:$4 sm:$0xff]  }
  0x91   :  { %p3540_p9 = por %p3539_p8, %p3538_p7 }
  0x92   :  { %1911 = vmatpush1.bf16.msra.mxu1 %v3012_v38  ;;  %v3109_v38 = vld [vmem:[#allocation6 + $0x18c] ss:$24 sps:$4 sm:$0xff]  }
  0x93   :  { %1954 = vmatpush1.bf16.msra.mxu0 %v3013_v39  ;;  %1912 = vmatprep.subr.bf16.mxu1 %v3014_v40  ;;  %v3104_v39 = vld [vmem:[#allocation6 + $0x780] ss:$24 sps:$4 sm:$0xff]   ;;  %p3541_p10 = pnand %p3540_p9, %p3534_p6 }
  0x94   :  { %1955 = vmatprep.subr.bf16.mxu0 %v3016_v41  ;;  %v3107_v40 = vld [vmem:[#allocation6 + $0x188] ss:$24 sps:$4 sm:$0xff]   ;;  %v3112_v41 = vld [vmem:[#allocation6 + $0x7b4] ss:$24 sps:$4 sm:$0xff]  }
  0x96   :  { %1913 = vmatpush1.bf16.msra.mxu1 %v3018_v42  ;;  %v3115_v42 = vld [vmem:[#allocation6 + $0x1bc] ss:$24 sps:$4 sm:$0xff]  }
  0x97   :  { %1956 = vmatpush1.bf16.msra.mxu0 %v3019_v43  ;;  %1914 = vmatprep.subr.bf16.mxu1 %v3020_v44  ;;  %v3110_v43 = vld [vmem:[#allocation6 + $0x7b0] ss:$24 sps:$4 sm:$0xff]  }
  0x98   :  { %1957 = vmatprep.subr.bf16.mxu0 %v3022_v45  ;;  %v3113_v44 = vld [vmem:[#allocation6 + $0x1b8] ss:$24 sps:$4 sm:$0xff]   ;;  %v3118_v45 = vld [vmem:[#allocation6 + $0x7e4] ss:$24 sps:$4 sm:$0xff]  }
  0x9a   :  { %1915 = vmatpush1.bf16.msra.mxu1 %v3024_v46  ;;  %v3121_v46 = vld [vmem:[#allocation6 + $0x1ec] ss:$24 sps:$4 sm:$0xff]  }
  0x9b   :  { %1958 = vmatpush1.bf16.msra.mxu0 %v3025_v47  ;;  %1916 = vmatprep.subr.bf16.mxu1 %v3026_v50  ;;  %v3116_v47 = vld [vmem:[#allocation6 + $0x7e0] ss:$24 sps:$4 sm:$0xff]  }
  0x9c   :  { %1959 = vmatprep.subr.bf16.mxu0 %v3028_v51  ;;  %v3119_v50 = vld [vmem:[#allocation6 + $0x1e8] ss:$24 sps:$4 sm:$0xff]   ;;  %v3124_v51 = vld [vmem:[#allocation6 + $0x814] ss:$24 sps:$4 sm:$0xff]  }
  0x9e   :  { %1917 = vmatpush1.bf16.msra.mxu1 %v3030_v52  ;;  %v3127_v52 = vld [vmem:[#allocation6 + $0x21c] ss:$24 sps:$4 sm:$0xff]  }
  0x9f   :  { %1960 = vmatpush1.bf16.msra.mxu0 %v3031_v53  ;;  %1918 = vmatprep.subr.bf16.mxu1 %v3032_v54  ;;  %v3122_v53 = vld [vmem:[#allocation6 + $0x810] ss:$24 sps:$4 sm:$0xff]  }
  0xa0   :  { %1961 = vmatprep.subr.bf16.mxu0 %v3034_v55  ;;  %v3125_v54 = vld [vmem:[#allocation6 + $0x218] ss:$24 sps:$4 sm:$0xff]   ;;  %v3130_v55 = vld [vmem:[#allocation6 + $0x844] ss:$24 sps:$4 sm:$0xff]  }
  0xa2   :  { %1919 = vmatpush1.bf16.msra.mxu1 %v3036_v56  ;;  %v3133_v56 = vld [vmem:[#allocation6 + $0x24c] ss:$24 sps:$4 sm:$0xff]  }
  0xa3   :  { %1962 = vmatpush1.bf16.msra.mxu0 %v3037_v57  ;;  %1920 = vmatprep.subr.bf16.mxu1 %v3038_v58  ;;  %v3128_v57 = vld [vmem:[#allocation6 + $0x840] ss:$24 sps:$4 sm:$0xff]  }
  0xa4   :  { %1963 = vmatprep.subr.bf16.mxu0 %v3040_v59  ;;  %v3131_v58 = vld [vmem:[#allocation6 + $0x248] ss:$24 sps:$4 sm:$0xff]   ;;  %v3136_v59 = vld [vmem:[#allocation6 + $0x874] ss:$24 sps:$4 sm:$0xff]  }
  0xa6   :  { %1921 = vmatpush1.bf16.msra.mxu1 %v3042_v60  ;;  %v3139_v60 = vld [vmem:[#allocation6 + $0x27c] ss:$24 sps:$4 sm:$0xff]  }
  0xa7   :  { %1964 = vmatpush1.bf16.msra.mxu0 %v3043_v61  ;;  %1922 = vmatprep.subr.bf16.mxu1 %v3044_v62  ;;  %v3134_v61 = vld [vmem:[#allocation6 + $0x870] ss:$24 sps:$4 sm:$0xff]  }
  0xa8   :  { %1965 = vmatprep.subr.bf16.mxu0 %v3046_v63  ;;  %v3137_v62 = vld [vmem:[#allocation6 + $0x278] ss:$24 sps:$4 sm:$0xff]   ;;  %v3142_v63 = vld [vmem:[#allocation6 + $0x8a4] ss:$24 sps:$4 sm:$0xff]  }
  0xaa   :  { %1923 = vmatpush1.bf16.msra.mxu1 %v3048_v0  ;;  %v3145_v0 = vld [vmem:[#allocation6 + $0x2ac] ss:$24 sps:$4 sm:$0xff]  }
  0xab   :  { %1966 = vmatpush1.bf16.msra.mxu0 %v3049_v1  ;;  %2021 = vmatprep.subr.bf16.mxu1 %v3059_v3  ;;  %v3140_v1 = vld [vmem:[#allocation6 + $0x8a0] ss:$24 sps:$4 sm:$0xff]   ;;  %v3148_v3 = vld [vmem:[#allocation6 + $0x8d4] ss:$24 sps:$4 sm:$0xff]  }
  0xac   :  { %1978 = vmatprep.subr.bf16.mxu0 %v3056_v2  ;;  %v3143_v2 = vld [vmem:[#allocation6 + $0x2a8] ss:$24 sps:$4 sm:$0xff]  }
  0xad   :  { %1925 = vmatmul.mubr.bf16.vlgmr.msra.gmra.mrb[0].mxu1 %v3703_v6 }
  0xae   :  { %1968 = vmatmul.mubr.bf16.vlgmr.msra.gmra.mrb[0].mxu0 %v3705_v7  ;;  %2022 = vmatpush1.bf16.msra.mxu1 %v3057_v5  ;;  %v3146_v5 = vld [vmem:[#allocation6 + $0x8d0] ss:$24 sps:$4 sm:$0xff]  }
  0xaf   :  { %1979 = vmatpush1.bf16.msra.mxu0 %v3054_v4  ;;  %2023 = vmatprep.subr.bf16.mxu1 %v3067_v9  ;;  %v3151_v4 = vld [vmem:[#allocation6 + $0x2dc] ss:$24 sps:$4 sm:$0xff]   ;;  %v3157_v9 = vld [vmem:[#allocation6 + $0x30c] ss:$24 sps:$4 sm:$0xff]  }
  0xb0   :  { %1980 = vmatprep.subr.bf16.mxu0 %v3064_v8  ;;  %2053 = vmatprep.mubr.bf16.mxu1 %v3697_v48  ;;  %v3149_v8 = vld [vmem:[#allocation6 + $0x2d8] ss:$24 sps:$4 sm:$0xff]  }
  0xb1   :  { %2010 = vmatprep.mubr.bf16.mxu0 %v3710_v34 }
  0xb2   :  { %2024 = vmatpush1.bf16.msra.mxu1 %v3065_v11  ;;  %v3713_v11 = vld [vmem:[#allocation3 + $0x10] ss:$24 sps:$4 sm:$0xff]  }
  0xb3   :  { %1981 = vmatpush1.bf16.msra.mxu0 %v3062_v10  ;;  %2025 = vmatprep.subr.bf16.mxu1 %v3073_v13  ;;  %v3160_v10 = vld [vmem:[#allocation6 + $0x14] ss:$24 sps:$4 sm:$0xff]   ;;  %v3158_v13 = vld [vmem:[#allocation6 + $0x10] ss:$24 sps:$4 sm:$0xff]  }
  0xb4   :  { %1982 = vmatprep.subr.bf16.mxu0 %v3070_v12  ;;  %v3155_v12 = vld [vmem:[#allocation6 + $0x308] ss:$24 sps:$4 sm:$0xff]  }
  0xb6   :  { %2026 = vmatpush1.bf16.msra.mxu1 %v3071_v15  ;;  %v3166_v15 = vld [vmem:[#allocation6 + $0x44] ss:$24 sps:$4 sm:$0xff]  }
  0xb7   :  { %1983 = vmatpush1.bf16.msra.mxu0 %v3068_v14  ;;  %2027 = vmatprep.subr.bf16.mxu1 %v3079_v17  ;;  %v3163_v14 = vld [vmem:[#allocation6 + $0x33c] ss:$24 sps:$4 sm:$0xff]   ;;  %v3164_v17 = vld [vmem:[#allocation6 + $0x40] ss:$24 sps:$4 sm:$0xff]  }
  0xb8   :  { %1984 = vmatprep.subr.bf16.mxu0 %v3076_v16  ;;  %v3161_v16 = vld [vmem:[#allocation6 + $0x338] ss:$24 sps:$4 sm:$0xff]  }
  0xba   :  { %2028 = vmatpush1.bf16.msra.mxu1 %v3077_v19  ;;  %v3172_v19 = vld [vmem:[#allocation6 + $0x74] ss:$24 sps:$4 sm:$0xff]  }
  0xbb   :  { %1985 = vmatpush1.bf16.msra.mxu0 %v3074_v18  ;;  %2029 = vmatprep.subr.bf16.mxu1 %v3085_v21  ;;  %v3169_v18 = vld [vmem:[#allocation6 + $0x36c] ss:$24 sps:$4 sm:$0xff]   ;;  %v3170_v21 = vld [vmem:[#allocation6 + $0x70] ss:$24 sps:$4 sm:$0xff]  }
  0xbc   :  { %1986 = vmatprep.subr.bf16.mxu0 %v3082_v20  ;;  %v3167_v20 = vld [vmem:[#allocation6 + $0x368] ss:$24 sps:$4 sm:$0xff]  }
  0xbe   :  { %2030 = vmatpush1.bf16.msra.mxu1 %v3083_v23  ;;  %v3178_v23 = vld [vmem:[#allocation6 + $0xa4] ss:$24 sps:$4 sm:$0xff]  }
  0xbf   :  { %1987 = vmatpush1.bf16.msra.mxu0 %v3080_v22  ;;  %2031 = vmatprep.subr.bf16.mxu1 %v3091_v25  ;;  %v3175_v22 = vld [vmem:[#allocation6 + $0x39c] ss:$24 sps:$4 sm:$0xff]   ;;  %v3176_v25 = vld [vmem:[#allocation6 + $0xa0] ss:$24 sps:$4 sm:$0xff]  }
  0xc0   :  { %1988 = vmatprep.subr.bf16.mxu0 %v3088_v24  ;;  %v3173_v24 = vld [vmem:[#allocation6 + $0x398] ss:$24 sps:$4 sm:$0xff]  }
  0xc2   :  { %2032 = vmatpush1.bf16.msra.mxu1 %v3089_v27  ;;  %v3184_v27 = vld [vmem:[#allocation6 + $0xd4] ss:$24 sps:$4 sm:$0xff]  }
  0xc3   :  { %1989 = vmatpush1.bf16.msra.mxu0 %v3086_v26  ;;  %2033 = vmatprep.subr.bf16.mxu1 %v3097_v29  ;;  %v3181_v26 = vld [vmem:[#allocation6 + $0x3cc] ss:$24 sps:$4 sm:$0xff]  }
  0xc4   :  { %1990 = vmatprep.subr.bf16.mxu0 %v3094_v28  ;;  %v3179_v28 = vld [vmem:[#allocation6 + $0x3c8] ss:$24 sps:$4 sm:$0xff]   ;;  %v3190_v29 = vld [vmem:[#allocation6 + $0x104] ss:$24 sps:$4 sm:$0xff]  }
  0xc6   :  { %2034 = vmatpush1.bf16.msra.mxu1 %v3095_v31  ;;  %v3188_v31 = vld [vmem:[#allocation6 + $0x100] ss:$24 sps:$4 sm:$0xff]  }
  0xc7   :  { %1991 = vmatpush1.bf16.msra.mxu0 %v3092_v30  ;;  %2035 = vmatprep.subr.bf16.mxu1 %v3103_v33  ;;  %v3185_v30 = vld [vmem:[#allocation6 + $0x3f8] ss:$24 sps:$4 sm:$0xff]   ;;  %v3196_v33 = vld [vmem:[#allocation6 + $0x134] ss:$24 sps:$4 sm:$0xff]  }
  0xc8   :  { %1992 = vmatprep.subr.bf16.mxu0 %v3100_v32  ;;  %v3193_v32 = vld [vmem:[#allocation6 + $0x42c] ss:$24 sps:$4 sm:$0xff]  }
  0xca   :  { %2036 = vmatpush1.bf16.msra.mxu1 %v3101_v36  ;;  %v3194_v36 = vld [vmem:[#allocation6 + $0x130] ss:$24 sps:$4 sm:$0xff]  }
  0xcb   :  { %1993 = vmatpush1.bf16.msra.mxu0 %v3098_v35  ;;  %2037 = vmatprep.subr.bf16.mxu1 %v3109_v38  ;;  %v3191_v35 = vld [vmem:[#allocation6 + $0x428] ss:$24 sps:$4 sm:$0xff]   ;;  %v3202_v38 = vld [vmem:[#allocation6 + $0x164] ss:$24 sps:$4 sm:$0xff]  }
  0xcc   :  { %1994 = vmatprep.subr.bf16.mxu0 %v3106_v37  ;;  %v3199_v37 = vld [vmem:[#allocation6 + $0x45c] ss:$24 sps:$4 sm:$0xff]  }
  0xce   :  { %2038 = vmatpush1.bf16.msra.mxu1 %v3107_v40  ;;  %v3200_v40 = vld [vmem:[#allocation6 + $0x160] ss:$24 sps:$4 sm:$0xff]  }
  0xcf   :  { %1995 = vmatpush1.bf16.msra.mxu0 %v3104_v39  ;;  %2039 = vmatprep.subr.bf16.mxu1 %v3115_v42  ;;  %v3197_v39 = vld [vmem:[#allocation6 + $0x458] ss:$24 sps:$4 sm:$0xff]   ;;  %v3208_v42 = vld [vmem:[#allocation6 + $0x194] ss:$24 sps:$4 sm:$0xff]  }
  0xd0   :  { %1996 = vmatprep.subr.bf16.mxu0 %v3112_v41  ;;  %v3205_v41 = vld [vmem:[#allocation6 + $0x48c] ss:$24 sps:$4 sm:$0xff]  }
  0xd2   :  { %2040 = vmatpush1.bf16.msra.mxu1 %v3113_v44  ;;  %v3206_v44 = vld [vmem:[#allocation6 + $0x190] ss:$24 sps:$4 sm:$0xff]  }
  0xd3   :  { %1997 = vmatpush1.bf16.msra.mxu0 %v3110_v43  ;;  %2041 = vmatprep.subr.bf16.mxu1 %v3121_v46  ;;  %v3203_v43 = vld [vmem:[#allocation6 + $0x488] ss:$24 sps:$4 sm:$0xff]   ;;  %v3214_v46 = vld [vmem:[#allocation6 + $0x1c4] ss:$24 sps:$4 sm:$0xff]  }
  0xd4   :  { %1998 = vmatprep.subr.bf16.mxu0 %v3118_v45  ;;  %v3211_v45 = vld [vmem:[#allocation6 + $0x4bc] ss:$24 sps:$4 sm:$0xff]  }
  0xd6   :  { %2042 = vmatpush1.bf16.msra.mxu1 %v3119_v50  ;;  %v3212_v50 = vld [vmem:[#allocation6 + $0x1c0] ss:$24 sps:$4 sm:$0xff]  }
  0xd7   :  { %1999 = vmatpush1.bf16.msra.mxu0 %v3116_v47  ;;  %2043 = vmatprep.subr.bf16.mxu1 %v3127_v52  ;;  %v3209_v47 = vld [vmem:[#allocation6 + $0x4b8] ss:$24 sps:$4 sm:$0xff]   ;;  %v3220_v52 = vld [vmem:[#allocation6 + $0x1f4] ss:$24 sps:$4 sm:$0xff]  }
  0xd8   :  { %2000 = vmatprep.subr.bf16.mxu0 %v3124_v51  ;;  %v3217_v51 = vld [vmem:[#allocation6 + $0x4ec] ss:$24 sps:$4 sm:$0xff]  }
  0xda   :  { %2044 = vmatpush1.bf16.msra.mxu1 %v3125_v54  ;;  %v3218_v54 = vld [vmem:[#allocation6 + $0x1f0] ss:$24 sps:$4 sm:$0xff]  }
  0xdb   :  { %2001 = vmatpush1.bf16.msra.mxu0 %v3122_v53  ;;  %2045 = vmatprep.subr.bf16.mxu1 %v3133_v56  ;;  %v3215_v53 = vld [vmem:[#allocation6 + $0x4e8] ss:$24 sps:$4 sm:$0xff]   ;;  %v3226_v56 = vld [vmem:[#allocation6 + $0x224] ss:$24 sps:$4 sm:$0xff]  }
  0xdc   :  { %2002 = vmatprep.subr.bf16.mxu0 %v3130_v55  ;;  %v3223_v55 = vld [vmem:[#allocation6 + $0x51c] ss:$24 sps:$4 sm:$0xff]  }
  0xde   :  { %2046 = vmatpush1.bf16.msra.mxu1 %v3131_v58  ;;  %v3224_v58 = vld [vmem:[#allocation6 + $0x220] ss:$24 sps:$4 sm:$0xff]  }
  0xdf   :  { %2003 = vmatpush1.bf16.msra.mxu0 %v3128_v57  ;;  %2047 = vmatprep.subr.bf16.mxu1 %v3139_v60  ;;  %v3221_v57 = vld [vmem:[#allocation6 + $0x518] ss:$24 sps:$4 sm:$0xff]   ;;  %v3232_v60 = vld [vmem:[#allocation6 + $0x254] ss:$24 sps:$4 sm:$0xff]  }
  0xe0   :  { %2004 = vmatprep.subr.bf16.mxu0 %v3136_v59  ;;  %v3229_v59 = vld [vmem:[#allocation6 + $0x54c] ss:$24 sps:$4 sm:$0xff]  }
  0xe2   :  { %2048 = vmatpush1.bf16.msra.mxu1 %v3137_v62  ;;  %v3230_v62 = vld [vmem:[#allocation6 + $0x250] ss:$24 sps:$4 sm:$0xff]  }
  0xe3   :  { %2005 = vmatpush1.bf16.msra.mxu0 %v3134_v61  ;;  %2049 = vmatprep.subr.bf16.mxu1 %v3145_v0  ;;  %v3227_v61 = vld [vmem:[#allocation6 + $0x548] ss:$24 sps:$4 sm:$0xff]   ;;  %v3238_v0 = vld [vmem:[#allocation6 + $0x284] ss:$24 sps:$4 sm:$0xff]  }
  0xe4   :  { %2006 = vmatprep.subr.bf16.mxu0 %v3142_v63  ;;  %v3235_v63 = vld [vmem:[#allocation6 + $0x57c] ss:$24 sps:$4 sm:$0xff]  }
  0xe6   :  { %2050 = vmatpush1.bf16.msra.mxu1 %v3143_v2  ;;  %v3236_v2 = vld [vmem:[#allocation6 + $0x280] ss:$24 sps:$4 sm:$0xff]  }
  0xe7   :  { %2007 = vmatpush1.bf16.msra.mxu0 %v3140_v1  ;;  %2051 = vmatprep.subr.bf16.mxu1 %v3151_v4  ;;  %v3233_v1 = vld [vmem:[#allocation6 + $0x578] ss:$24 sps:$4 sm:$0xff]   ;;  %v3244_v4 = vld [vmem:[#allocation6 + $0x2b4] ss:$24 sps:$4 sm:$0xff]  }
  0xe8   :  { %2008 = vmatprep.subr.bf16.mxu0 %v3148_v3  ;;  %v3241_v3 = vld [vmem:[#allocation6 + $0x5ac] ss:$24 sps:$4 sm:$0xff]  }
  0xea   :  { %2052 = vmatpush1.bf16.msra.mxu1 %v3149_v8  ;;  %v3242_v8 = vld [vmem:[#allocation6 + $0x2b0] ss:$24 sps:$4 sm:$0xff]  }
  0xeb   :  { %2009 = vmatpush1.bf16.msra.mxu0 %v3146_v5  ;;  %2064 = vmatprep.subr.bf16.mxu1 %v3157_v9  ;;  %v3239_v5 = vld [vmem:[#allocation6 + $0x5a8] ss:$24 sps:$4 sm:$0xff]   ;;  %v3247_v9 = vld [vmem:[#allocation6 + $0x5dc] ss:$24 sps:$4 sm:$0xff]  }
  0xec   :  { %2150 = vmatprep.subr.bf16.mxu0 %v3160_v10  ;;  %v3250_v10 = vld [vmem:[#allocation6 + $0x2e4] ss:$24 sps:$4 sm:$0xff]  }
  0xed   :  { %2054 = vmatmul.mubr.bf16.vlgmr.msra.gmra.mrb[4].mxu1 %v3703_v6 }
  0xee   :  { %2011 = vmatmul.mubr.bf16.vlgmr.msra.gmra.mrb[0].mxu0 %v3713_v11  ;;  %2065 = vmatpush1.bf16.msra.mxu1 %v3155_v12  ;;  %v3245_v12 = vld [vmem:[#allocation6 + $0x5d8] ss:$24 sps:$4 sm:$0xff]  }
  0xef   :  { %2151 = vmatpush1.bf16.msra.mxu0 %v3158_v13  ;;  %2066 = vmatprep.subr.bf16.mxu1 %v3163_v14  ;;  %v3248_v13 = vld [vmem:[#allocation6 + $0x2e0] ss:$24 sps:$4 sm:$0xff]   ;;  %v3253_v14 = vld [vmem:[#allocation6 + $0x60c] ss:$24 sps:$4 sm:$0xff]  }
  0xf0   :  { %2152 = vmatprep.subr.bf16.mxu0 %v3166_v15  ;;  %2096 = vmatprep.mubr.bf16.mxu1 %v3699_v49  ;;  %v3182_v49 = vld [vmem:[#allocation6 + $0xd0] ss:$24 sps:$4 sm:$0xff]   ;;  %v3256_v15 = vld [vmem:[#allocation6 + $0x314] ss:$24 sps:$4 sm:$0xff]  }
  0xf1   :  { %2182 = vmatprep.mubr.bf16.mxu0 %v3697_v48  ;;  %v3187_v48 = vld [vmem:[#allocation6 + $0x3fc] ss:$24 sps:$4 sm:$0xff]  }
  0xf2   :  { %2067 = vmatpush1.bf16.msra.mxu1 %v3161_v16  ;;  %v3251_v16 = vld [vmem:[#allocation6 + $0x608] ss:$24 sps:$4 sm:$0xff]  }
  0xf3   :  { %2153 = vmatpush1.bf16.msra.mxu0 %v3164_v17  ;;  %2068 = vmatprep.subr.bf16.mxu1 %v3169_v18  ;;  %v3254_v17 = vld [vmem:[#allocation6 + $0x310] ss:$24 sps:$4 sm:$0xff]   ;;  %v3259_v18 = vld [vmem:[#allocation6 + $0x63c] ss:$24 sps:$4 sm:$0xff]  }
  0xf4   :  { %2154 = vmatprep.subr.bf16.mxu0 %v3172_v19  ;;  %v3262_v19 = vld [vmem:[#allocation6 + $0x344] ss:$24 sps:$4 sm:$0xff]  }
  0xf6   :  { %2069 = vmatpush1.bf16.msra.mxu1 %v3167_v20  ;;  %v3257_v20 = vld [vmem:[#allocation6 + $0x638] ss:$24 sps:$4 sm:$0xff]  }
  0xf7   :  { %2155 = vmatpush1.bf16.msra.mxu0 %v3170_v21  ;;  %2070 = vmatprep.subr.bf16.mxu1 %v3175_v22  ;;  %v3260_v21 = vld [vmem:[#allocation6 + $0x340] ss:$24 sps:$4 sm:$0xff]   ;;  %v3265_v22 = vld [vmem:[#allocation6 + $0x66c] ss:$24 sps:$4 sm:$0xff]  }
  0xf8   :  { %2156 = vmatprep.subr.bf16.mxu0 %v3178_v23  ;;  %v3268_v23 = vld [vmem:[#allocation6 + $0x374] ss:$24 sps:$4 sm:$0xff]  }
  0xfa   :  { %2071 = vmatpush1.bf16.msra.mxu1 %v3173_v24  ;;  %v3399_v24 = vld [vmem:[#allocation3 + $0xc] ss:$24 sps:$4 sm:$0xff]  }
  0xfb   :  { %2157 = vmatpush1.bf16.msra.mxu0 %v3176_v25  ;;  %2072 = vmatprep.subr.bf16.mxu1 %v3181_v26  ;;  %v3263_v25 = vld [vmem:[#allocation6 + $0x668] ss:$24 sps:$4 sm:$0xff]  }
  0xfc   :  { %2158 = vmatprep.subr.bf16.mxu0 %v3184_v27  ;;  %v3266_v26 = vld [vmem:[#allocation6 + $0x370] ss:$24 sps:$4 sm:$0xff]  }
  0xfd   :  { %v3269_v27 = vld [vmem:[#allocation6 + $0x698] ss:$24 sps:$4 sm:$0xff]  }
  0xfe   :  { %2073 = vmatpush1.bf16.msra.mxu1 %v3179_v28  ;;  %v3272_v28 = vld [vmem:[#allocation6 + $0x3a0] ss:$24 sps:$4 sm:$0xff]  }
  0xff   :  { %2159 = vmatpush1.bf16.msra.mxu0 %v3182_v49  ;;  %2074 = vmatprep.subr.bf16.mxu1 %v3187_v48  ;;  %v3277_v49 = vld [vmem:[#allocation6 + $0x6cc] ss:$24 sps:$4 sm:$0xff]  }
 0x100   :  { %2160 = vmatprep.subr.bf16.mxu0 %v3190_v29  ;;  %v3280_v48 = vld [vmem:[#allocation6 + $0x3d4] ss:$24 sps:$4 sm:$0xff]   ;;  %v3275_v29 = vld [vmem:[#allocation6 + $0x6c8] ss:$24 sps:$4 sm:$0xff]  }
 0x102   :  { %2075 = vmatpush1.bf16.msra.mxu1 %v3185_v30  ;;  %v3278_v30 = vld [vmem:[#allocation6 + $0x3d0] ss:$24 sps:$4 sm:$0xff]  }
 0x103   :  { %2161 = vmatpush1.bf16.msra.mxu0 %v3188_v31  ;;  %2076 = vmatprep.subr.bf16.mxu1 %v3193_v32  ;;  %v3283_v31 = vld [vmem:[#allocation6 + $0x6fc] ss:$24 sps:$4 sm:$0xff]  }
 0x104   :  { %2162 = vmatprep.subr.bf16.mxu0 %v3196_v33  ;;  %v3286_v32 = vld [vmem:[#allocation6 + $0x404] ss:$24 sps:$4 sm:$0xff]   ;;  %v3281_v33 = vld [vmem:[#allocation6 + $0x6f8] ss:$24 sps:$4 sm:$0xff]  }
 0x106   :  { %2077 = vmatpush1.bf16.msra.mxu1 %v3191_v35  ;;  %v3284_v35 = vld [vmem:[#allocation6 + $0x400] ss:$24 sps:$4 sm:$0xff]  }
 0x107   :  { %2163 = vmatpush1.bf16.msra.mxu0 %v3194_v36  ;;  %2078 = vmatprep.subr.bf16.mxu1 %v3199_v37  ;;  %v3289_v36 = vld [vmem:[#allocation6 + $0x72c] ss:$24 sps:$4 sm:$0xff]  }
 0x108   :  { %2164 = vmatprep.subr.bf16.mxu0 %v3202_v38  ;;  %v3292_v37 = vld [vmem:[#allocation6 + $0x434] ss:$24 sps:$4 sm:$0xff]   ;;  %v3287_v38 = vld [vmem:[#allocation6 + $0x728] ss:$24 sps:$4 sm:$0xff]  }
 0x10a   :  { %2079 = vmatpush1.bf16.msra.mxu1 %v3197_v39  ;;  %v3290_v39 = vld [vmem:[#allocation6 + $0x430] ss:$24 sps:$4 sm:$0xff]  }
 0x10b   :  { %2165 = vmatpush1.bf16.msra.mxu0 %v3200_v40  ;;  %2080 = vmatprep.subr.bf16.mxu1 %v3205_v41  ;;  %v3295_v40 = vld [vmem:[#allocation6 + $0x75c] ss:$24 sps:$4 sm:$0xff]  }
 0x10c   :  { %2166 = vmatprep.subr.bf16.mxu0 %v3208_v42  ;;  %v3298_v41 = vld [vmem:[#allocation6 + $0x464] ss:$24 sps:$4 sm:$0xff]   ;;  %v3293_v42 = vld [vmem:[#allocation6 + $0x758] ss:$24 sps:$4 sm:$0xff]  }
 0x10e   :  { %2081 = vmatpush1.bf16.msra.mxu1 %v3203_v43  ;;  %v3296_v43 = vld [vmem:[#allocation6 + $0x460] ss:$24 sps:$4 sm:$0xff]  }
 0x10f   :  { %2167 = vmatpush1.bf16.msra.mxu0 %v3206_v44  ;;  %2082 = vmatprep.subr.bf16.mxu1 %v3211_v45  ;;  %v3301_v44 = vld [vmem:[#allocation6 + $0x78c] ss:$24 sps:$4 sm:$0xff]  }
 0x110   :  { %2168 = vmatprep.subr.bf16.mxu0 %v3214_v46  ;;  %v3304_v45 = vld [vmem:[#allocation6 + $0x494] ss:$24 sps:$4 sm:$0xff]   ;;  %v3299_v46 = vld [vmem:[#allocation6 + $0x788] ss:$24 sps:$4 sm:$0xff]  }
 0x112   :  { %2083 = vmatpush1.bf16.msra.mxu1 %v3209_v47  ;;  %v3302_v47 = vld [vmem:[#allocation6 + $0x490] ss:$24 sps:$4 sm:$0xff]  }
 0x113   :  { %2169 = vmatpush1.bf16.msra.mxu0 %v3212_v50  ;;  %2084 = vmatprep.subr.bf16.mxu1 %v3217_v51  ;;  %v3307_v50 = vld [vmem:[#allocation6 + $0x7bc] ss:$24 sps:$4 sm:$0xff]  }
 0x114   :  { %2170 = vmatprep.subr.bf16.mxu0 %v3220_v52  ;;  %v3310_v51 = vld [vmem:[#allocation6 + $0x4c4] ss:$24 sps:$4 sm:$0xff]   ;;  %v3305_v52 = vld [vmem:[#allocation6 + $0x7b8] ss:$24 sps:$4 sm:$0xff]  }
 0x116   :  { %2085 = vmatpush1.bf16.msra.mxu1 %v3215_v53  ;;  %v3308_v53 = vld [vmem:[#allocation6 + $0x4c0] ss:$24 sps:$4 sm:$0xff]  }
 0x117   :  { %2171 = vmatpush1.bf16.msra.mxu0 %v3218_v54  ;;  %2086 = vmatprep.subr.bf16.mxu1 %v3223_v55  ;;  %v3313_v54 = vld [vmem:[#allocation6 + $0x7ec] ss:$24 sps:$4 sm:$0xff]  }
 0x118   :  { %2172 = vmatprep.subr.bf16.mxu0 %v3226_v56  ;;  %v3316_v55 = vld [vmem:[#allocation6 + $0x4f4] ss:$24 sps:$4 sm:$0xff]   ;;  %v3311_v56 = vld [vmem:[#allocation6 + $0x7e8] ss:$24 sps:$4 sm:$0xff]  }
 0x11a   :  { %2087 = vmatpush1.bf16.msra.mxu1 %v3221_v57  ;;  %v3314_v57 = vld [vmem:[#allocation6 + $0x4f0] ss:$24 sps:$4 sm:$0xff]  }
 0x11b   :  { %2173 = vmatpush1.bf16.msra.mxu0 %v3224_v58  ;;  %2088 = vmatprep.subr.bf16.mxu1 %v3229_v59  ;;  %v3319_v58 = vld [vmem:[#allocation6 + $0x81c] ss:$24 sps:$4 sm:$0xff]  }
 0x11c   :  { %2174 = vmatprep.subr.bf16.mxu0 %v3232_v60  ;;  %v3322_v59 = vld [vmem:[#allocation6 + $0x524] ss:$24 sps:$4 sm:$0xff]   ;;  %v3317_v60 = vld [vmem:[#allocation6 + $0x818] ss:$24 sps:$4 sm:$0xff]  }
 0x11e   :  { %2089 = vmatpush1.bf16.msra.mxu1 %v3227_v61  ;;  %v3320_v61 = vld [vmem:[#allocation6 + $0x520] ss:$24 sps:$4 sm:$0xff]  }
 0x11f   :  { %2175 = vmatpush1.bf16.msra.mxu0 %v3230_v62  ;;  %2090 = vmatprep.subr.bf16.mxu1 %v3235_v63  ;;  %v3325_v62 = vld [vmem:[#allocation6 + $0x84c] ss:$24 sps:$4 sm:$0xff]  }
 0x120   :  { %2176 = vmatprep.subr.bf16.mxu0 %v3238_v0  ;;  %v3328_v63 = vld [vmem:[#allocation6 + $0x554] ss:$24 sps:$4 sm:$0xff]   ;;  %v3323_v0 = vld [vmem:[#allocation6 + $0x848] ss:$24 sps:$4 sm:$0xff]  }
 0x122   :  { %2091 = vmatpush1.bf16.msra.mxu1 %v3233_v1  ;;  %v3326_v1 = vld [vmem:[#allocation6 + $0x550] ss:$24 sps:$4 sm:$0xff]  }
 0x123   :  { %2177 = vmatpush1.bf16.msra.mxu0 %v3236_v2  ;;  %2092 = vmatprep.subr.bf16.mxu1 %v3241_v3  ;;  %v3331_v2 = vld [vmem:[#allocation6 + $0x87c] ss:$24 sps:$4 sm:$0xff]  }
 0x124   :  { %2178 = vmatprep.subr.bf16.mxu0 %v3244_v4  ;;  %v3334_v3 = vld [vmem:[#allocation6 + $0x584] ss:$24 sps:$4 sm:$0xff]   ;;  %v3329_v4 = vld [vmem:[#allocation6 + $0x878] ss:$24 sps:$4 sm:$0xff]  }
 0x126   :  { %2093 = vmatpush1.bf16.msra.mxu1 %v3239_v5  ;;  %v3332_v5 = vld [vmem:[#allocation6 + $0x580] ss:$24 sps:$4 sm:$0xff]  }
 0x127   :  { %2179 = vmatpush1.bf16.msra.mxu0 %v3242_v8  ;;  %2094 = vmatprep.subr.bf16.mxu1 %v3247_v9  ;;  %v3337_v8 = vld [vmem:[#allocation6 + $0x8ac] ss:$24 sps:$4 sm:$0xff]  }
 0x128   :  { %2180 = vmatprep.subr.bf16.mxu0 %v3250_v10  ;;  %v3340_v9 = vld [vmem:[#allocation6 + $0x5b4] ss:$24 sps:$4 sm:$0xff]   ;;  %v3335_v10 = vld [vmem:[#allocation6 + $0x8a8] ss:$24 sps:$4 sm:$0xff]  }
 0x12a   :  { %2095 = vmatpush1.bf16.msra.mxu1 %v3245_v12  ;;  %v3338_v12 = vld [vmem:[#allocation6 + $0x5b0] ss:$24 sps:$4 sm:$0xff]  }
 0x12b   :  { %2181 = vmatpush1.bf16.msra.mxu0 %v3248_v13  ;;  %2107 = vmatprep.subr.bf16.mxu1 %v3253_v14  ;;  %v3343_v13 = vld [vmem:[#allocation6 + $0x8dc] ss:$24 sps:$4 sm:$0xff]  }
 0x12c   :  { %2193 = vmatprep.subr.bf16.mxu0 %v3256_v15  ;;  %v3346_v14 = vld [vmem:[#allocation6 + $0x5e4] ss:$24 sps:$4 sm:$0xff]   ;;  %v3341_v15 = vld [vmem:[#allocation6 + $0x8d8] ss:$24 sps:$4 sm:$0xff]  }
 0x12d   :  { %2097 = vmatmul.mubr.bf16.vlgmr.msra.gmra.mrb[4].mxu1 %v3705_v7  ;;  %v3271_v7 = vld [vmem:[#allocation6 + $0x69c] ss:$24 sps:$4 sm:$0xff]  }
 0x12e   :  { %2183 = vmatmul.mubr.bf16.vlgmr.msra.gmra.mrb[4].mxu0 %v3703_v6  ;;  %2108 = vmatpush1.bf16.msra.mxu1 %v3251_v16  ;;  %v3274_v6 = vld [vmem:[#allocation6 + $0x3a4] ss:$24 sps:$4 sm:$0xff]   ;;  %v3344_v16 = vld [vmem:[#allocation6 + $0x5e0] ss:$24 sps:$4 sm:$0xff]  }
 0x12f   :  { %2194 = vmatpush1.bf16.msra.mxu0 %v3254_v17  ;;  %2109 = vmatprep.subr.bf16.mxu1 %v3259_v18  ;;  %v3349_v17 = vld [vmem:[#allocation6 + $0x614] ss:$24 sps:$4 sm:$0xff]   ;;  %v3347_v18 = vld [vmem:[#allocation6 + $0x610] ss:$24 sps:$4 sm:$0xff]  }
 0x130   :  { %2195 = vmatprep.subr.bf16.mxu0 %v3262_v19  ;;  %2139 = vmatprep.mubr.bf16.mxu1 %v3710_v34  ;;  %v3352_v19 = vld [vmem:[#allocation6 + $0x644] ss:$24 sps:$4 sm:$0xff]  }
 0x131   :  { %2225 = vmatprep.mubr.bf16.mxu0 %v3399_v24  ;;  %v3358_v24 = vld [vmem:[#allocation6 + $0x6a4] ss:$24 sps:$4 sm:$0xff]  }
 0x132   :  { %2110 = vmatpush1.bf16.msra.mxu1 %v3257_v20  ;;  %v3400_v20 = vld [vmem:[#allocation3 + $0x8] ss:$24 sps:$4 sm:$0xff]  }
 0x133   :  { %2196 = vmatpush1.bf16.msra.mxu0 %v3260_v21  ;;  %2111 = vmatprep.subr.bf16.mxu1 %v3265_v22  ;;  %v3350_v21 = vld [vmem:[#allocation6 + $0x640] ss:$24 sps:$4 sm:$0xff]   ;;  %v3355_v22 = vld [vmem:[#allocation6 + $0x674] ss:$24 sps:$4 sm:$0xff]  }
 0x134   :  { %2197 = vmatprep.subr.bf16.mxu0 %v3268_v23  ;;  %v3353_v23 = vld [vmem:[#allocation6 + $0x670] ss:$24 sps:$4 sm:$0xff]  }
 0x136   :  { %2112 = vmatpush1.bf16.msra.mxu1 %v3263_v25  ;;  %v3356_v25 = vld [vmem:[#allocation6 + $0x6a0] ss:$24 sps:$4 sm:$0xff]  }
 0x137   :  { %2198 = vmatpush1.bf16.msra.mxu0 %v3266_v26  ;;  %2113 = vmatprep.subr.bf16.mxu1 %v3271_v7  ;;  %v3361_v26 = vld [vmem:[#allocation6 + $0x6d4] ss:$24 sps:$4 sm:$0xff]   ;;  %v3359_v7 = vld [vmem:[#allocation6 + $0x6d0] ss:$24 sps:$4 sm:$0xff]  }
 0x138   :  { %2199 = vmatprep.subr.bf16.mxu0 %v3274_v6  ;;  %v3364_v6 = vld [vmem:[#allocation6 + $0x704] ss:$24 sps:$4 sm:$0xff]  }
 0x13a   :  { %2114 = vmatpush1.bf16.msra.mxu1 %v3269_v27  ;;  %v3362_v27 = vld [vmem:[#allocation6 + $0x700] ss:$24 sps:$4 sm:$0xff]  }
 0x13b   :  { %2200 = vmatpush1.bf16.msra.mxu0 %v3272_v28  ;;  %2115 = vmatprep.subr.bf16.mxu1 %v3277_v49  ;;  %v3367_v28 = vld [vmem:[#allocation6 + $0x734] ss:$24 sps:$4 sm:$0xff]  }
 0x13c   :  { %2201 = vmatprep.subr.bf16.mxu0 %v3280_v48  ;;  %v3365_v48 = vld [vmem:[#allocation6 + $0x730] ss:$24 sps:$4 sm:$0xff]  }
 0x13e   :  { %2116 = vmatpush1.bf16.msra.mxu1 %v3275_v29 }
 0x13f   :  { %2202 = vmatpush1.bf16.msra.mxu0 %v3278_v30  ;;  %2117 = vmatprep.subr.bf16.mxu1 %v3283_v31  ;;  %v3370_v30 = vld [vmem:[#allocation6 + $0x764] ss:$24 sps:$4 sm:$0xff]  }
 0x140   :  { %2203 = vmatprep.subr.bf16.mxu0 %v3286_v32  ;;  %v3368_v32 = vld [vmem:[#allocation6 + $0x760] ss:$24 sps:$4 sm:$0xff]  }
 0x142   :  { %2118 = vmatpush1.bf16.msra.mxu1 %v3281_v33  ;;  %v3373_v33 = vld [vmem:[#allocation6 + $0x794] ss:$24 sps:$4 sm:$0xff]  }
 0x143   :  { %2204 = vmatpush1.bf16.msra.mxu0 %v3284_v35  ;;  %2119 = vmatprep.subr.bf16.mxu1 %v3289_v36  ;;  %v3371_v35 = vld [vmem:[#allocation6 + $0x790] ss:$24 sps:$4 sm:$0xff]   ;;  %v3376_v36 = vld [vmem:[#allocation6 + $0x7c4] ss:$24 sps:$4 sm:$0xff]  }
 0x144   :  { %2205 = vmatprep.subr.bf16.mxu0 %v3292_v37  ;;  %v3374_v37 = vld [vmem:[#allocation6 + $0x7c0] ss:$24 sps:$4 sm:$0xff]  }
 0x146   :  { %2120 = vmatpush1.bf16.msra.mxu1 %v3287_v38  ;;  %v3379_v38 = vld [vmem:[#allocation6 + $0x7f4] ss:$24 sps:$4 sm:$0xff]  }
 0x147   :  { %2206 = vmatpush1.bf16.msra.mxu0 %v3290_v39  ;;  %2121 = vmatprep.subr.bf16.mxu1 %v3295_v40  ;;  %v3377_v39 = vld [vmem:[#allocation6 + $0x7f0] ss:$24 sps:$4 sm:$0xff]   ;;  %v3382_v40 = vld [vmem:[#allocation6 + $0x824] ss:$24 sps:$4 sm:$0xff]  }
 0x148   :  { %2207 = vmatprep.subr.bf16.mxu0 %v3298_v41  ;;  %v3380_v41 = vld [vmem:[#allocation6 + $0x820] ss:$24 sps:$4 sm:$0xff]  }
 0x14a   :  { %2122 = vmatpush1.bf16.msra.mxu1 %v3293_v42  ;;  %v3385_v42 = vld [vmem:[#allocation6 + $0x854] ss:$24 sps:$4 sm:$0xff]  }
 0x14b   :  { %2208 = vmatpush1.bf16.msra.mxu0 %v3296_v43  ;;  %2123 = vmatprep.subr.bf16.mxu1 %v3301_v44  ;;  %v3383_v43 = vld [vmem:[#allocation6 + $0x850] ss:$24 sps:$4 sm:$0xff]   ;;  %v3388_v44 = vld [vmem:[#allocation6 + $0x884] ss:$24 sps:$4 sm:$0xff]  }
 0x14c   :  { %2209 = vmatprep.subr.bf16.mxu0 %v3304_v45  ;;  %v3386_v45 = vld [vmem:[#allocation6 + $0x880] ss:$24 sps:$4 sm:$0xff]  }
 0x14e   :  { %2124 = vmatpush1.bf16.msra.mxu1 %v3299_v46  ;;  %v3391_v46 = vld [vmem:[#allocation6 + $0x8b4] ss:$24 sps:$4 sm:$0xff]  }
 0x14f   :  { %2210 = vmatpush1.bf16.msra.mxu0 %v3302_v47  ;;  %2125 = vmatprep.subr.bf16.mxu1 %v3307_v50  ;;  %v3389_v47 = vld [vmem:[#allocation6 + $0x8b0] ss:$24 sps:$4 sm:$0xff]   ;;  %v3394_v50 = vld [vmem:[#allocation6 + $0x8e4] ss:$24 sps:$4 sm:$0xff]  }
 0x150   :  { %2211 = vmatprep.subr.bf16.mxu0 %v3310_v51  ;;  %v3392_v51 = vld [vmem:[#allocation6 + $0x8e0] ss:$24 sps:$4 sm:$0xff]  }
 0x152   :  { %2126 = vmatpush1.bf16.msra.mxu1 %v3305_v52 }
 0x153   :  { %2212 = vmatpush1.bf16.msra.mxu0 %v3308_v53  ;;  %2127 = vmatprep.subr.bf16.mxu1 %v3313_v54 }
 0x154   :  { %2213 = vmatprep.subr.bf16.mxu0 %v3316_v55 }
 0x156   :  { %2128 = vmatpush1.bf16.msra.mxu1 %v3311_v56 }
 0x157   :  { %2214 = vmatpush1.bf16.msra.mxu0 %v3314_v57  ;;  %2129 = vmatprep.subr.bf16.mxu1 %v3319_v58 }
 0x158   :  { %2215 = vmatprep.subr.bf16.mxu0 %v3322_v59 }
 0x15a   :  { %2130 = vmatpush1.bf16.msra.mxu1 %v3317_v60 }
 0x15b   :  { %2216 = vmatpush1.bf16.msra.mxu0 %v3320_v61  ;;  %2131 = vmatprep.subr.bf16.mxu1 %v3325_v62 }
 0x15c   :  { %2217 = vmatprep.subr.bf16.mxu0 %v3328_v63 }
 0x15e   :  { %2132 = vmatpush1.bf16.msra.mxu1 %v3323_v0  ;;  %v2320_v0 = vlaneseq }
 0x15f   :  { %2218 = vmatpush1.bf16.msra.mxu0 %v3326_v1  ;;  %2133 = vmatprep.subr.bf16.mxu1 %v3331_v2 }
 0x160   :  { %2219 = vmatprep.subr.bf16.mxu0 %v3334_v3  ;;  %v2321_v1 = vshrl.u32 %v2320_v0, 7 }
 0x162   :  { %2134 = vmatpush1.bf16.msra.mxu1 %v3329_v4  ;;  %v3725_v2 = vsub.s32 0, %v2321_v1  ;;  %v3727_v3 = vsub.s32 1, %v2321_v1  ;;  %v2318_v4 = vld [vmem:[#allocation8] sm:$0x3f] }
 0x163   :  { %2220 = vmatpush1.bf16.msra.mxu0 %v3332_v5  ;;  %2135 = vmatprep.subr.bf16.mxu1 %v3337_v8 }
 0x164   :  { %2221 = vmatprep.subr.bf16.mxu0 %v3340_v9  ;;  %v2323_v5 = vrot.slane %v2318_v4, %v3725_v2  ;;  %v2327_v8 = vrot.slane %v2318_v4, %v3727_v3  ;;  %v2362_v9 = vld [vmem:[#allocation9] sm:$0xff] }
 0x166   :  { %2136 = vmatpush1.bf16.msra.mxu1 %v3335_v10  ;;  %v3733_v10 = vsub.s32 3, %v2321_v1 }
 0x167   :  { %2222 = vmatpush1.bf16.msra.mxu0 %v3338_v12  ;;  %2137 = vmatprep.subr.bf16.mxu1 %v3343_v13  ;;  %v2365_v12 = vld [vmem:[#allocation9 + $0x18] sm:$0xff] }
 0x168   :  { %2223 = vmatprep.subr.bf16.mxu0 %v3346_v14  ;;  %v2363_v14 = vld [vmem:[#allocation9 + $0x8] sm:$0xff] }
 0x16a   :  { %2138 = vmatpush1.bf16.msra.mxu1 %v3341_v15 }
 0x16b   :  { %2224 = vmatpush1.bf16.msra.mxu0 %v3344_v16  ;;  %v2368_v16 = vunpack.c.l.bf16 %v2362_v9 }
 0x16c   :  { %2236 = vmatprep.subr.bf16.mxu0 %v3349_v17 }
 0x16d   :  { %2140 = vmatmul.mubr.bf16.vlgmr.msra.gmra.mrb[4].mxu1 %v3713_v11 }
 0x16e   :  { %2226 = vmatmul.mubr.bf16.vlgmr.msra.gmra.mrb[4].mxu0 %v3400_v20  ;;  %v2374_v20 = vunpack.c.l.bf16 %v2365_v12 }
 0x16f   :  { %2237 = vmatpush1.bf16.msra.mxu0 %v3347_v18  ;;  %2268 = vmatprep.mubr.bf16.mxu0 %v3710_v34  ;;  %v2369_v18 = vunpack.c.h.bf16 %v2362_v9 }
 0x170   :  { %2238 = vmatprep.subr.bf16.mxu0 %v3352_v19  ;;  %v2366_v19 = vld [vmem:[#allocation9 + $0x20] sm:$0xff] }
 0x173   :  { %2239 = vmatpush1.bf16.msra.mxu0 %v3350_v21  ;;  %v2375_v21 = vunpack.c.h.bf16 %v2365_v12 }
 0x174   :  { %2240 = vmatprep.subr.bf16.mxu0 %v3355_v22  ;;  %v2335_v22 = vrot.slane %v2318_v4, %v3733_v10 }
 0x177   :  { %2241 = vmatpush1.bf16.msra.mxu0 %v3353_v23 }
 0x178   :  { %2242 = vmatprep.subr.bf16.mxu0 %v3358_v24 }
 0x17b   :  { %2243 = vmatpush1.bf16.msra.mxu0 %v3356_v25 }
 0x17c   :  { %2244 = vmatprep.subr.bf16.mxu0 %v3361_v26  ;;  %v2370_v26 = vunpack.c.l.bf16 %v2363_v14 }
 0x17f   :  { %2245 = vmatpush1.bf16.msra.mxu0 %v3359_v7  ;;  %v2376_v7 = vunpack.c.l.bf16 %v2366_v19 }
 0x180   :  { %2246 = vmatprep.subr.bf16.mxu0 %v3364_v6  ;;  %v1926_v49 = vpop.f32.mrb[0].mxu1 }
 0x181   :  { %v1928_v34 = vpop.f32.mrb[1].mxu1 }
 0x182   :  { %v1930_v29 = vpop.f32.mrb[2].mxu1 }
 0x183   :  { %2247 = vmatpush1.bf16.msra.mxu0 %v3362_v27  ;;  %v1932_v31 = vpop.f32.mrb[3].mxu1 }
 0x184   :  { %2248 = vmatprep.subr.bf16.mxu0 %v3367_v28 }
 0x187   :  { %2249 = vmatpush1.bf16.msra.mxu0 %v3365_v48  ;;  %v3739_v48 = vsub.s32 5, %v2321_v1 }
 0x188   :  { %2250 = vmatprep.subr.bf16.mxu0 %v3370_v30 }
 0x18b   :  { %2251 = vmatpush1.bf16.msra.mxu0 %v3368_v32 }
 0x18c   :  { %2252 = vmatprep.subr.bf16.mxu0 %v3373_v33  ;;  %v2377_v33 = vunpack.c.h.bf16 %v2366_v19 }
 0x18f   :  { %2253 = vmatpush1.bf16.msra.mxu0 %v3371_v35  ;;  %v2364_v35 = vld [vmem:[#allocation9 + $0x10] sm:$0xff] }
 0x190   :  { %2254 = vmatprep.subr.bf16.mxu0 %v3376_v36 }
 0x193   :  { %2255 = vmatpush1.bf16.msra.mxu0 %v3374_v37 }
 0x194   :  { %2256 = vmatprep.subr.bf16.mxu0 %v3379_v38 }
 0x197   :  { %2257 = vmatpush1.bf16.msra.mxu0 %v3377_v39 }
 0x198   :  { %2258 = vmatprep.subr.bf16.mxu0 %v3382_v40  ;;  %v2343_v40 = vrot.slane %v2318_v4, %v3739_v48 }
 0x19b   :  { %2259 = vmatpush1.bf16.msra.mxu0 %v3380_v41  ;;  %v2367_v41 = vld [vmem:[#allocation9 + $0x28] sm:$0xff] }
 0x19c   :  { %2260 = vmatprep.subr.bf16.mxu0 %v3385_v42 }
 0x19f   :  { %2261 = vmatpush1.bf16.msra.mxu0 %v3383_v43 }
 0x1a0   :  { %2262 = vmatprep.subr.bf16.mxu0 %v3388_v44 }
 0x1a3   :  { %2263 = vmatpush1.bf16.msra.mxu0 %v3386_v45  ;;  %v2372_v45 = vunpack.c.l.bf16 %v2364_v35 }
 0x1a4   :  { %2264 = vmatprep.subr.bf16.mxu0 %v3391_v46 }
 0x1a7   :  { %2265 = vmatpush1.bf16.msra.mxu0 %v3389_v47  ;;  %v2373_v47 = vunpack.c.h.bf16 %v2364_v35 }
 0x1a8   :  { %2266 = vmatprep.subr.bf16.mxu0 %v3394_v50 }
 0x1ab   :  { %2267 = vmatpush1.bf16.msra.mxu0 %v3392_v51 }
 0x1ae   :  { %2269 = vmatmul.mubr.bf16.vlgmr.msra.gmra.mrb[4].mxu0 %v3713_v11  ;;  %v3729_v11 = vsub.s32 2, %v2321_v1 }
 0x1b0   :  { %v2331_v13 = vrot.slane %v2318_v4, %v3729_v11 }
 0x1c1   :  { %v2012_v52 = vpop.f32.mrb[0].mxu0 }
 0x1c2   :  { %v2921_v53 = vadd.f32 %v2012_v52, %v1926_v49  ;;  %v2014_v54 = vpop.f32.mrb[1].mxu0  ;;  %v3737_v49 = vsub.s32 4, %v2321_v1 }
 0x1c3   :  { %v2922_v55 = vadd.f32 %v2014_v54, %v1928_v34  ;;  %v2016_v56 = vpop.f32.mrb[2].mxu0  ;;  %v2371_v34 = vunpack.c.h.bf16 %v2363_v14  ;;  %v2378_v54 = vunpack.c.l.bf16 %v2367_v41 }
 0x1c4   :  { %v2923_v57 = vadd.f32 %v2016_v56, %v1930_v29  ;;  %v2018_v58 = vpop.f32.mrb[3].mxu0  ;;  %v2350_v15 = vadd.f32 %v2921_v53, %v2323_v5  ;;  %v2339_v39 = vrot.slane %v2318_v4, %v3737_v49 }
 0x1c5   :  { %v2924_v59 = vadd.f32 %v2018_v58, %v1932_v31  ;;  %v2351_v17 = vadd.f32 %v2922_v55, %v2327_v8 }
 0x1c6   :  { %v2356_v23 = vadd.f32 %v2923_v57, %v2323_v5  ;;  %v2380_v6 = vadd.f32 %v2368_v16, %v2350_v15 }
 0x1c7   :  { %v2357_v24 = vadd.f32 %v2924_v59, %v2327_v8  ;;  %v2381_v27 = vadd.f32 %v2369_v18, %v2351_v17 }
 0x1c8   :  { %v2386_v29 = vadd.f32 %v2374_v20, %v2356_v23 }
 0x1c9   :  { %v2387_v30 = vadd.f32 %v2375_v21, %v2357_v24  ;;  %v2394_v36 = vadd.f32 %v2381_v27, %v2380_v6 }
 0x1cb   :  { %v2401_v44 = vadd.f32 %v2387_v30, %v2386_v29 }
 0x240   :  { %v2141_v60 = vpop.f32.mrb[4].mxu1 }
 0x241   :  { %v2143_v61 = vpop.f32.mrb[5].mxu1  ;;  %v2352_v25 = vadd.f32 %v2331_v13, %v2141_v60  ;;  %v2379_v60 = vunpack.c.h.bf16 %v2367_v41 }
 0x242   :  { %v2145_v62 = vpop.f32.mrb[6].mxu1  ;;  %v2353_v32 = vadd.f32 %v2335_v22, %v2143_v61 }
 0x243   :  { %v2147_v63 = vpop.f32.mrb[7].mxu1  ;;  %v2358_v28 = vadd.f32 %v2331_v13, %v2145_v62  ;;  %v2382_v31 = vadd.f32 %v2370_v26, %v2352_v25 }
 0x244   :  { %v2359_v38 = vadd.f32 %v2335_v22, %v2147_v63  ;;  %v2383_v43 = vadd.f32 %v2371_v34, %v2353_v32 }
 0x245   :  { %v2388_v37 = vadd.f32 %v2376_v7, %v2358_v28  ;;  %v2395_v42 = vadd.f32 %v2394_v36, %v2382_v31 }
 0x246   :  { %v2389_v51 = vadd.f32 %v2377_v33, %v2359_v38 }
 0x247   :  { %v2402_v50 = vadd.f32 %v2401_v44, %v2388_v37  ;;  %v2396_v61 = vadd.f32 %v2395_v42, %v2383_v43 }
 0x249   :  { %v2403_v0 = vadd.f32 %v2402_v50, %v2389_v51 }
 0x281   :  { %v2270_v46 = vpop.f32.mrb[4].mxu0 }
 0x282   :  { %v2354_v52 = vadd.f32 %v2339_v39, %v2270_v46  ;;  %v2272_v53 = vpop.f32.mrb[5].mxu0 }
 0x283   :  { %v2355_v55 = vadd.f32 %v2343_v40, %v2272_v53  ;;  %v2274_v56 = vpop.f32.mrb[6].mxu0 }
 0x284   :  { %v2384_v57 = vadd.f32 %v2372_v45, %v2354_v52  ;;  %v2360_v58 = vadd.f32 %v2339_v39, %v2274_v56  ;;  %v2276_v59 = vpop.f32.mrb[7].mxu0 }
 0x285   :  { %v2361_v62 = vadd.f32 %v2343_v40, %v2276_v59  ;;  %v2385_v63 = vadd.f32 %v2373_v47, %v2355_v55 }
 0x286   :  { %v2390_v1 = vadd.f32 %v2378_v54, %v2360_v58  ;;  %v2397_v4 = vadd.f32 %v2396_v61, %v2384_v57  ;;  %v2393_v58 = vld [vmem:[#allocation12] sm:$0x3f] }
 0x287   :  { %v2391_v5 = vadd.f32 %v2379_v60, %v2361_v62  ;;  %v2514_v60 = vrot.slane %v2393_v58, %v3725_v2  ;;  %v2518_v62 = vrot.slane %v2393_v58, %v3727_v3 }
 0x288   :  { %v2398_v8 = vadd.f32 %v2397_v4, %v2385_v63  ;;  %v2404_v9 = vadd.f32 %v2403_v0, %v2390_v1 }
 0x28a   :  { %2399 = vadd.xlane.f32.xlu0 %v2398_v8  ;;  %v2405_v12 = vadd.f32 %v2404_v9, %v2391_v5 }
 0x28e   :  { %2406 = vadd.xlane.f32.xlu0 %v2405_v12 }
 0x317   :  { %v2400_v13 = vpop.xlane.xlu0 %2399 }
 0x318   :  { %v2409_v14 = vmul.f32 0.0013020834, %v2400_v13 }
 0x31a   :  { %v2411_v15 = vsub.f32 %v2380_v6, %v2409_v14  ;;  %v2412_v16 = vsub.f32 %v2381_v27, %v2409_v14  ;;  %v2413_v17 = vsub.f32 %v2382_v31, %v2409_v14  ;;  %v2414_v19 = vsub.f32 %v2383_v43, %v2409_v14 }
 0x31b   :  { %v2407_v18 = vpop.xlane.xlu0 %2406  ;;  %v2415_v23 = vsub.f32 %v2384_v57, %v2409_v14  ;;  %v2416_v34 = vsub.f32 %v2385_v63, %v2409_v14  ;;  %v2392_v57 = vld [vmem:[#allocation11] sm:$0x3f]  ;;  %v2522_v14 = vrot.slane %v2393_v58, %v3729_v11 }
 0x31c   :  { %v2410_v20 = vmul.f32 0.0013020834, %v2407_v18  ;;  %v2423_v21 = vmul.f32 %v2411_v15, %v2411_v15  ;;  %v2424_v22 = vmul.f32 %v2412_v16, %v2412_v16  ;;  %v2425_v24 = vmul.f32 %v2413_v17, %v2413_v17 }
 0x31d   :  { %v2426_v32 = vmul.f32 %v2414_v19, %v2414_v19  ;;  %v2427_v35 = vmul.f32 %v2415_v23, %v2415_v23  ;;  %v2428_v39 = vmul.f32 %v2416_v34, %v2416_v34  ;;  %v2471_v59 = vrot.slane %v2392_v57, %v3725_v2 }
 0x31e   :  { %v2435_v25 = vadd.f32 %v2424_v22, %v2423_v21  ;;  %v3743_v26 = vsub.f32 %v2386_v29, %v2410_v20  ;;  %v3745_v7 = vsub.f32 %v2387_v30, %v2410_v20  ;;  %v3747_v28 = vsub.f32 %v2388_v37, %v2410_v20 }
 0x31f   :  { %v2420_v6 = vsub.f32 %v2389_v51, %v2410_v20  ;;  %v2421_v38 = vsub.f32 %v2390_v1, %v2410_v20  ;;  %v2422_v40 = vsub.f32 %v2391_v5, %v2410_v20  ;;  %v2475_v61 = vrot.slane %v2392_v57, %v3727_v3 }
 0x320   :  { %v2436_v33 = vadd.f32 %v2435_v25, %v2425_v24  ;;  %v2429_v27 = vmul.f32 %v3743_v26, %v3743_v26  ;;  %v2430_v31 = vmul.f32 %v3745_v7, %v3745_v7  ;;  %v2431_v29 = vmul.f32 %v3747_v28, %v3747_v28 }
 0x321   :  { %v2432_v41 = vmul.f32 %v2420_v6, %v2420_v6  ;;  %v2433_v44 = vmul.f32 %v2421_v38, %v2421_v38  ;;  %v2434_v46 = vmul.f32 %v2422_v40, %v2422_v40  ;;  %v2479_v0 = vrot.slane %v2392_v57, %v3729_v11 }
 0x322   :  { %v2437_v36 = vadd.f32 %v2436_v33, %v2426_v32  ;;  %v2442_v30 = vadd.f32 %v2430_v31, %v2429_v27  ;;  %v2483_v1 = vrot.slane %v2392_v57, %v3733_v10  ;;  %v2487_v4 = vrot.slane %v2392_v57, %v3737_v49 }
 0x323   :  { %v2491_v5 = vrot.slane %v2392_v57, %v3739_v48  ;;  %v2526_v2 = vrot.slane %v2393_v58, %v3733_v10  ;;  %v2530_v3 = vrot.slane %v2393_v58, %v3737_v49  ;;  %v2534_v21 = vrot.slane %v2393_v58, %v3739_v48 }
 0x324   :  { %v2438_v37 = vadd.f32 %v2437_v36, %v2427_v35  ;;  %v2443_v42 = vadd.f32 %v2442_v30, %v2431_v29 }
 0x326   :  { %v2439_v43 = vadd.f32 %v2438_v37, %v2428_v39  ;;  %v2444_v45 = vadd.f32 %v2443_v42, %v2432_v41 }
 0x328   :  { %2440 = vadd.xlane.f32.xlu1 %v2439_v43  ;;  %v2445_v47 = vadd.f32 %v2444_v45, %v2433_v44 }
 0x32a   :  { %v2446_v50 = vadd.f32 %v2445_v47, %v2434_v46 }
 0x32c   :  { %2447 = vadd.xlane.f32.xlu1 %v2446_v50 }
 0x3b5   :  { %v2441_v51 = vpop.xlane.xlu1 %2440 }
 0x3b6   :  { %v2449_v52 = vmul.f32 0.0013020834, %v2441_v51 }
 0x3b8   :  { %v2451_v53 = vadd.f32 1e-12, %v2449_v52 }
 0x3b9   :  { %v2448_v54 = vpop.xlane.xlu1 %2447 }
 0x3ba   :  { %3395 = vrsqrt.f32 %v2451_v53  ;;  %v2450_v55 = vmul.f32 0.0013020834, %v2448_v54 }
 0x3bc   :  { %v2452_v56 = vadd.f32 1e-12, %v2450_v55 }
 0x3be   :  { %3397 = vrsqrt.f32 %v2452_v56 }
 0x3c4   :  { %v3396_v63 = vpop.eup %3395 }
 0x3c5   :  { %v2455_v8 = vmul.f32 %v3396_v63, %v2411_v15  ;;  %v2456_v9 = vmul.f32 %v3396_v63, %v2412_v16  ;;  %v2457_v12 = vmul.f32 %v3396_v63, %v2413_v17  ;;  %v2458_v13 = vmul.f32 %v3396_v63, %v2414_v19 }
 0x3c6   :  { %v2459_v18 = vmul.f32 %v3396_v63, %v2415_v23  ;;  %v2460_v20 = vmul.f32 %v3396_v63, %v2416_v34 }
 0x3c7   :  { %v2498_v22 = vmul.f32 %v2471_v59, %v2455_v8  ;;  %v2499_v24 = vmul.f32 %v2475_v61, %v2456_v9  ;;  %v2500_v32 = vmul.f32 %v2479_v0, %v2457_v12  ;;  %v2501_v33 = vmul.f32 %v2483_v1, %v2458_v13 }
 0x3c8   :  { %v3398_v25 = vpop.eup %3397  ;;  %v2502_v27 = vmul.f32 %v2487_v4, %v2459_v18  ;;  %v2503_v15 = vmul.f32 %v2491_v5, %v2460_v20 }
 0x3c9   :  { %v2461_v16 = vmul.f32 %v3398_v25, %v3743_v26  ;;  %v2462_v17 = vmul.f32 %v3398_v25, %v3745_v7  ;;  %v2463_v11 = vmul.f32 %v3398_v25, %v3747_v28  ;;  %v2464_v10 = vmul.f32 %v3398_v25, %v2420_v6 }
 0x3ca   :  { %v2465_v19 = vmul.f32 %v3398_v25, %v2421_v38  ;;  %v2466_v23 = vmul.f32 %v3398_v25, %v2422_v40  ;;  %v2541_v34 = vadd.f32 %v2514_v60, %v2498_v22  ;;  %v2542_v49 = vadd.f32 %v2518_v62, %v2499_v24 }
 0x3cb   :  { %v2504_v31 = vmul.f32 %v2471_v59, %v2461_v16  ;;  %v2505_v48 = vmul.f32 %v2475_v61, %v2462_v17  ;;  %v2506_v35 = vmul.f32 %v2479_v0, %v2463_v11  ;;  %v2507_v36 = vmul.f32 %v2483_v1, %v2464_v10 }
 0x3cc   :  { %v2508_v29 = vmul.f32 %v2487_v4, %v2465_v19  ;;  %v2509_v30 = vmul.f32 %v2491_v5, %v2466_v23  ;;  %v2543_v39 = vadd.f32 %v2522_v14, %v2500_v32  ;;  %v2544_v37 = vadd.f32 %v2526_v2, %v2501_v33 }
 0x3cd   :  { %v2545_v41 = vadd.f32 %v2530_v3, %v2502_v27  ;;  %v2546_v42 = vadd.f32 %v2534_v21, %v2503_v15  ;;  %v2547_v26 = vadd.f32 %v2514_v60, %v2504_v31  ;;  %v2548_v43 = vadd.f32 %v2518_v62, %v2505_v48 }
 0x3ce   :  { %v2549_v7 = vadd.f32 %v2522_v14, %v2506_v35  ;;  %v2550_v28 = vadd.f32 %v2526_v2, %v2507_v36  ;;  %v2551_v6 = vadd.f32 %v2530_v3, %v2508_v29  ;;  %v2552_v38 = vadd.f32 %v2534_v21, %v2509_v30 }
 0x3cf   :  { %v2915_v40 = vpack.c.bf16 %v2542_v49, %v2541_v34  ;;  %v2916_v44 = vpack.c.bf16 %v2544_v37, %v2543_v39  ;;  %v2917_v45 = vpack.c.bf16 %v2546_v42, %v2545_v41  ;;  %v2918_v46 = vpack.c.bf16 %v2548_v43, %v2547_v26 }
 0x3d0   :  { %v2919_v47 = vpack.c.bf16 %v2550_v28, %v2549_v7  ;;  %v2920_v50 = vpack.c.bf16 %v2552_v38, %v2551_v6 }
 0x3d1   :  { %2589 = vst [vmem:[#allocation14] sm:$0xff] %v2915_v40  ;;  %2590 = vst [vmem:[#allocation14 + $0x8] sm:$0xff] %v2916_v44 }
 0x3d2   :  { %2591 = vst [vmem:[#allocation14 + $0x10] sm:$0xff] %v2917_v45  ;;  %2592 = vst [vmem:[#allocation14 + $0x18] sm:$0xff] %v2918_v46 }
 0x3d3   :  { %2593 = vst [vmem:[#allocation14 + $0x20] sm:$0xff] %v2919_v47  ;;  %2594 = vst [vmem:[#allocation14 + $0x28] sm:$0xff] %v2920_v50 }
 0x3d4   :  { %3544 = shalt.err (!%p3541_p10)
}
 0x3d5   :  { %s3545_s22 = scalar_lea.hbm %s3791_s6, 768 }
 0x3d6   :  { %p3546_p11 = scmp.ne.s32.totalorder %s3791_s6, %s3545_s22  ;;  %p3549_p12 = scmp.lt.u32.totalorder %s3545_s22, %s3791_s6 }
 0x3d8   :  { %p3551_p13 = pnand %p3549_p12, %p3546_p11 }
 0x3da   :  { %3554 = shalt.err (!%p3551_p13)
}
 0x3db   :  { %2606 = dma.vmem_to_hbm [thread:$0]  %s2601_s20, 768, %s3791_s6, [#allocation5], %s3567_s9, %s3567_s9, %s3568_s10  }
 0x3dc   :  { %3563 = dma.done.wait [#allocation5], 768  }
 0x3dd   :  { %3564 = vsyncadd [#allocation5], 4294966528 }
 0x3de   :  { %2610 = vsyncpa [#allocation4], 1 }
 0x3df   :  { %2611 = vsyncpa [#allocation7], 1 }
 0x3e0   :  { %2612 = vsyncpa [#allocation10], 1 }
 0x3e1   :  { %2613 = vsyncpa [#allocation13], 1 }
 0x3e2   :  { %2614 = vsyncpa [#allocation5], 1 }

// kernel: bert_classifier_forward.16
= control target key start
LH: loop header
LB: loop body
LE: loop exit
PB: predicated region body
PF: predicated region fallthrough
CT: control target
= control target key end

     0   :  { %s4546_s0 = inlined_call_operand.hbm [shape: bf16[16,768], index: 0, kind: input, shape index: {}]   ;;  %s4547_s1 = inlined_call_operand.hbm [shape: bf16[768,3072], index: 1, kind: input, shape index: {}]   ;;  %s4548_s2 = inlined_call_operand.hbm [shape: f32[1,3072], index: 2, kind: input, shape index: {}]   ;;  %s4549_s3 = inlined_call_operand.hbm [shape: bf16[16,3072], index: 3, kind: output, shape index: {}]  }
   0x1   :  { %4560 = sst [smem:[#allocation14_spill]] %s4547_s1 }
   0x2   :  { %8 = vsyncpa [#allocation4], 0 }
   0x3   :  { %9 = vsyncpa [#allocation7], 0 }
   0x4   :  { %11 = vsyncpa [#allocation7 + $0x1], 0 }
   0x5   :  { %12 = vsyncpa [#allocation5], 0 }
   0x6   :  { %14 = vsyncpa [#allocation5 + $0x1], 0  ;;  %s3948_s12 = smov 0   ;;  %s3950_s13 = smov 0  }
   0x7   :  { %s3952_s14 = smov 0   ;;  %s3954_s15 = smov 0  }
   0x8   :  { %s3956_s16 = smov 0   ;;  %s3958_s17 = smov 0  }
   0x9 LB: > { %s35_s18 = sadd.s32 1, %s3912_s16  ;;  %s76_s19 = sadd.s32 1, %s3904_s14  ;;  %s3916_s17 = sphi %s3958_s17, %s20_s17   ;;  %s3912_s16 = sphi %s3956_s16, %s4585_s16   ;;  %s3908_s15 = sphi %s3954_s15, %s4584_s15   ;;  %s3904_s14 = sphi %s3952_s14, %s4583_s14   ;;  %s3900_s13 = sphi %s3950_s13, %s4582_s13   ;;  %s3896_s12 = sphi %s3948_s12, %s4581_s12  }
   0xa   : > { %p37_p0 = scmp.ge.s32.totalorder %s35_s18, 4  ;;  %p83_p1 = scmp.ne.s32.totalorder %s3904_s14, %s3900_s13 }
   0xb   : > { %p84_p2 = scmp.eq.s32.totalorder %s3916_s17, 0  ;;  %p3217_p5 = scmp.lt.s32.totalorder %s3916_s17, 4 }
   0xc   : > { %s4587_s18 = smov (%p37_p0, %s35_s18), 0  ;;  %s186_s21 = sand.u32 1, %s3916_s17  }
   0xd   : > { %4561 = sst [smem:[#allocation13_spill]] %s4587_s18  ;;  %p85_p3 = por %p84_p2, %p83_p1 }
   0xe   : > { %s72_s20 = ssub.s32 %s3912_s16, %s4587_s18  ;;  %s188_s22 = sand.u32 1, %s3904_s14  }
   0xf   : > { %p74_p4 = scmp.eq.s32.totalorder %s72_s20, 0  ;;  %s3186_s24 = smul.u32 2304, %s188_s22 }
  0x10   : > { %s3153_s25 = smul.u32 384, %s3912_s16  ;;  %p3999_p6 = pnand %p3217_p5, %p85_p3 }
  0x11   : > { %s3994_s23 = scalar_select %p74_p4, %s3904_s14, %s76_s19  }
  0x12   : > { %s4562_s26 = scalar_select %p3999_p6, 1, 0 }
  0x13   : > { %s4563_s1 = sld [smem:[#allocation14_spill]]  ;;  %s190_s30 = scalar_lea.vmem [#allocation6], %s3186_s24 }
  0x14   : > { %s200_s4 = sshll.u32 %s190_s30, 4  ;;  %s4010_s5 = scalar_lea.sflag [#allocation7], %s186_s21  ;;  %s4008_s4 = int_to_ptr.vmem [resolvable:$true] %s200_s4 }
  0x15   : > { %p4554_p8 = pneg %p3999_p6 }
  0x19   : > { %s4006_s29 = scalar_lea.hbm %s4563_s1, %s3153_s25  ;;  %s3747_s9 = scalar_lea.hbm %s4563_s1, 147456 }
  0x1a   : > { %s3742_s6 = scalar_lea.hbm %s4006_s29, 36864  ;;  %p3748_p11 = scmp.lt.u32.totalorder %s4006_s29, %s4563_s1 }
  0x1b   : > { %p3743_p7 = scmp.ne.s32.totalorder %s4006_s29, %s3742_s6  ;;  %p3749_p12 = scmp.lt.u32.totalorder %s3747_s9, %s3742_s6 }
  0x1c   : > { %p3751_p0 = scmp.lt.u32.totalorder %s3742_s6, %s4006_s29 }
  0x1d   : > { %p3745_p9 = pnand %p4554_p8, %p3743_p7  ;;  %p3750_p13 = por %p3749_p12, %p3748_p11 }
  0x1f   : > { %p3746_p10 = pneg %p3745_p9  ;;  %p3752_p2 = por %p3751_p0, %p3750_p13 }
  0x21   : > { %p3753_p3 = pnand %p3752_p2, %p3746_p10 }
  0x23   : > { %3756 = shalt.err (!%p3753_p3)
}
  0x24   : > { %s3757_s19 = scalar_lea.vmem %s4008_s4, 36864  ;;  %s3918_s20 = smov [#allocation6]  }
  0x25   : > { %p3758_p4 = scmp.ne.s32.totalorder %s4008_s4, %s3757_s19  ;;  %s3762_s21 = sshll.u32 %s3918_s20, 4  ;;  %s3763_s21 = int_to_ptr.vmem [resolvable:$false] %s3762_s21 }
  0x26   : > { %s3764_s24 = scalar_lea.vmem %s3763_s21, 73728  ;;  %p3765_p9 = scmp.lt.s32.totalorder %s4008_s4, %s3763_s21 }
  0x27   : > { %p3760_p5 = pnand %p3758_p4, %p4554_p8  ;;  %p3766_p11 = scmp.lt.s32.totalorder %s3764_s24, %s3757_s19 }
  0x29   : > { %p3761_p7 = pneg %p3760_p5  ;;  %p3767_p12 = por %p3766_p11, %p3765_p9 }
  0x2b   : > { %p3768_p13 = pnand %p3767_p12, %p3761_p7 }
  0x2d   : > { %3771 = shalt.err (!%p3768_p13)
}
  0x2e   : > { %s3919_s25 = smov 1536   ;;  %s4550_s27 = smov 384  }
  0x2f   : > { %s4551_s28 = smov 24   ;;  %s4041_s30 = sadd.s32 4294967295, %s3916_s17  }
  0x30   : > { %3208 = dma.hbm_to_vmem [thread:$0]  (!%p3999_p6), %s4006_s29, 36864, %s4008_s4, %s4010_s5, %s3919_s25, %s4550_s27, %s4551_s28  }
  0x31   : > { %s2842_s6 = sadd.s32 4294967294, %s3916_s17   ;;  %p89_p10 = scmp.ne.s32.totalorder %s3900_s13, %s3896_s12 }
  0x32   : > { %p4553_p0 = scmp.eq.s32.totalorder %s4041_s30, 0  ;;  %p141_p2 = scmp.eq.s32.totalorder %s4041_s30, 3 }
  0x33   : > { %p147_p3 = scmp.eq.s32.totalorder %s2842_s6, 3  ;;  %p2843_p5 = scmp.ge.s32.totalorder %s3916_s17, 1 }
  0x34   : > { %p4050_p4 = por %p4553_p0, %p89_p10  ;;  %p4058_p7 = por %p141_p2, %p83_p1 }
  0x35   : > { %p4062_p9 = por %p147_p3, %p89_p10  ;;  %p154_p11 = scmp.lt.s32.totalorder %s3916_s17, 5 }
  0x36   : > { %s4564_s7 = scalar_select %p4050_p4, 1, 0 }
  0x37   : > { %s4565_s29 = scalar_select %p4058_p7, 1, 0 }
  0x38   : > { %s4566_s4 = scalar_select %p4062_p9, 1, 0 }
  0x39   : > { %s3187_s8 = smul.u32 6, %s188_s22  ;;  %p4069_p12 = pnand %p2843_p5, %p154_p11 }
  0x3a   : > { %s3922_s10 = smov [#allocation3]   ;;  %s3154_s19 = smul.u32 96, %s3912_s16 }
  0x3b   : > { %s4567_s9 = scalar_select %p4069_p12, 1, 0 }
  0x3c   : > { %s172_s11 = sshll.u32 %s3922_s10, 4  ;;  %p3201_p13 = pneg %p4069_p12  ;;  %s173_s11 = int_to_ptr.vmem [resolvable:$true] %s172_s11 }
  0x3d   : > { %s214_s20 = scalar_lea.vmem [#allocation8], %s3187_s8  ;;  %s4085_s6 = scalar_lea.hbm %s4548_s2, %s3154_s19 }
  0x3e   : > { %s222_s21 = sshll.u32 %s214_s20, 4  ;;  %p4078_p1 = pnand %p3201_p13, %p4553_p0  ;;  %s4087_s21 = int_to_ptr.vmem [resolvable:$true] %s222_s21 }
  0x3f   : > { %s3772_s28 = scalar_lea.hbm %s4546_s0, 768 }
  0x40   : > { %p3773_p10 = scmp.ne.s32.totalorder %s4546_s0, %s3772_s28  ;;  %p3774_p2 = pneg %p4078_p1 }
  0x41   : > { %p3779_p11 = scmp.lt.u32.totalorder %s3772_s28, %s4546_s0 }
  0x42   : > { %p3775_p3 = pnand %p3774_p2, %p3773_p10 }
  0x44   : > { %p3776_p5 = pneg %p3775_p3 }
  0x46   : > { %p3781_p13 = pnand %p3779_p11, %p3776_p5 }
  0x48   : > { %3784 = shalt.err (!%p3781_p13)
}
  0x49   : > { %s3785_s19 = scalar_lea.vmem %s173_s11, 768  ;;  %p3793_p7 = scmp.lt.s32.totalorder %s173_s11, %s173_s11 }
  0x4a   : > { %p3786_p0 = scmp.ne.s32.totalorder %s173_s11, %s3785_s19  ;;  %p3794_p4 = scmp.lt.s32.totalorder %s3785_s19, %s3785_s19 }
  0x4c   : > { %p3788_p8 = pnand %p3786_p0, %p3774_p2  ;;  %p3795_p12 = por %p3794_p4, %p3793_p7 }
  0x4e   : > { %p3789_p9 = pneg %p3788_p8 }
  0x50   : > { %p3796_p6 = pnand %p3795_p12, %p3789_p9 }
  0x52   : > { %3799 = shalt.err (!%p3796_p6)
}
  0x53   : > { %s4569_s27 = smov 24   ;;  %s4570_s25 = smov 384  }
  0x54   : > { %3204 = dma.hbm_to_vmem [thread:$0]  (!%p4078_p1), %s4546_s0, 768, %s173_s11, [#allocation4], %s4570_s25, %s4570_s25, %s4569_s27  }
  0x55   : > { %s3800_s1 = scalar_lea.hbm %s4085_s6, 96  ;;  %p4571_p0 = scmp.ne.s32.totalorder %s4562_s26, 0 }
  0x56   : > { %p3801_p8 = scmp.ne.s32.totalorder %s4085_s6, %s3800_s1  ;;  %s3805_s24 = scalar_lea.hbm %s4548_s2, 384 }
  0x57   : > { %p4572_p4 = pneg %p4571_p0  ;;  %p3806_p9 = scmp.lt.u32.totalorder %s4085_s6, %s4548_s2 }
  0x58   : > { %p3807_p12 = scmp.lt.u32.totalorder %s3805_s24, %s3800_s1  ;;  %p3809_p2 = scmp.lt.u32.totalorder %s3800_s1, %s4085_s6 }
  0x59   : > { %p3803_p7 = pnand %p3801_p8, %p4572_p4 }
  0x5a   : > { %p3808_p10 = por %p3807_p12, %p3806_p9 }
  0x5b   : > { %p3804_p6 = pneg %p3803_p7 }
  0x5c   : > { %p3810_p3 = por %p3809_p2, %p3808_p10 }
  0x5e   : > { %p3811_p5 = pnand %p3810_p3, %p3804_p6 }
  0x60   : > { %3814 = shalt.err (!%p3811_p5)
}
  0x61   : > { %s3815_s11 = scalar_lea.vmem %s4087_s21, 96  ;;  %p4573_p11 = pmov %p4572_p4 }
  0x62   : > { %p3816_p1 = scmp.ne.s32.totalorder %s4087_s21, %s3815_s11  ;;  %s3923_s19 = smov [#allocation8]  }
  0x63   : > { %s3820_s27 = sshll.u32 %s3923_s19, 4  ;;  %s3821_s27 = int_to_ptr.vmem [resolvable:$false] %s3820_s27 }
  0x64   : > { %p3818_p13 = pnand %p3816_p1, %p4573_p11  ;;  %s3822_s25 = scalar_lea.vmem %s3821_s27, 192 }
  0x65   : > { %p3823_p4 = scmp.lt.s32.totalorder %s4087_s21, %s3821_s27  ;;  %p3824_p7 = scmp.lt.s32.totalorder %s3822_s25, %s3815_s11 }
  0x66   : > { %p3819_p8 = pneg %p3818_p13 }
  0x67   : > { %p3825_p9 = por %p3824_p7, %p3823_p4 }
  0x69   : > { %p3826_p12 = pnand %p3825_p9, %p3819_p8 }
  0x6b   : > { %3829 = shalt.err (!%p3826_p12)
}
  0x6c   : > { %3211 = dma.hbm_to_vmem [thread:$0]  (!%p4571_p0), %s4085_s6, 96, %s4087_s21, %s4010_s5  }
  0x6d   : > { %p4574_p6 = scmp.ne.s32.totalorder %s4567_s9, 0 }
  0x6e   : > { %p4575_p10 = scmp.eq.s32.totalorder (!%p4574_p6), %s4041_s30, 0 }
  0x6f   : > { %231 = sbr.rel (%p4574_p6) target bundleno = 706 (0x2c2), region = 32 }
  0x76   : > { %3883 = dma.done.wait (%p4575_p10), [#allocation4], 768   ;;  %p4576_p2 = pmov %p4575_p10 }
  0x77   : > { %s237_s22 = sand.u32 1, %s4041_s30   ;;  %s4140_s10 = sand.u32 1, %s3900_s13  }
  0x78   : > { %3885 = vsyncadd (%p4576_p2), [#allocation4], 4294966528  ;;  %s3188_s26 = smul.u32 2304, %s4140_s10  ;;  %s238_s1 = scalar_lea.sflag [#allocation7], %s237_s22 }
  0x79   : > { %p4577_p0 = scmp.ne.s32.totalorder %s4564_s7, 0 }
  0x7a   : > { %s4143_s18 = scalar_lea.vmem [#allocation6], %s3188_s26 }
  0x7b   : > { %3887 = dma.done.wait (%p4577_p0), %s238_s1, 36960  }
  0x7c   : > { %3889 = vsyncadd (%p4577_p0), %s238_s1, 4294930336  ;;  %v3275_v0 = vld [vmem:[%s4143_s18 + $0x4] ss:$24 sps:$4 sm:$0xff]   ;;  %v3279_v2 = vld [vmem:[%s4143_s18] ss:$24 sps:$4 sm:$0xff]   ;;  %s3189_s5 = smul.u32 6, %s4140_s10 }
  0x7d   : > { %v3277_v1 = vld [vmem:[%s4143_s18 + $0x304] ss:$24 sps:$4 sm:$0xff]   ;;  %2077 = vmatprep.subr.bf16.mxu1 %v3275_v0  ;;  %v3280_v3 = vld [vmem:[%s4143_s18 + $0x300] ss:$24 sps:$4 sm:$0xff]   ;;  %v3281_v4 = vld [vmem:[%s4143_s18 + $0x34] ss:$24 sps:$4 sm:$0xff]  }
  0x7e   : > { %2120 = vmatprep.subr.bf16.mxu0 %v3277_v1  ;;  %2078 = vmatpush1.bf16.msra.mxu1 %v3279_v2  ;;  %v3283_v5 = vld [vmem:[%s4143_s18 + $0x334] ss:$24 sps:$4 sm:$0xff]   ;;  %v3285_v6 = vld [vmem:[%s4143_s18 + $0x30] ss:$24 sps:$4 sm:$0xff]   ;;  %v3287_v8 = vld [vmem:[%s4143_s18 + $0x64] ss:$24 sps:$4 sm:$0xff]  }
  0x7f   : > { %2121 = vmatpush1.bf16.msra.mxu0 %v3280_v3  ;;  %2079 = vmatprep.subr.bf16.mxu1 %v3281_v4  ;;  %v3286_v7 = vld [vmem:[%s4143_s18 + $0x330] ss:$24 sps:$4 sm:$0xff]   ;;  %v3289_v9 = vld [vmem:[%s4143_s18 + $0x364] ss:$24 sps:$4 sm:$0xff]   ;;  %v3291_v10 = vld [vmem:[%s4143_s18 + $0x60] ss:$24 sps:$4 sm:$0xff]  }
  0x80   : > { %2122 = vmatprep.subr.bf16.mxu0 %v3283_v5  ;;  %v3292_v11 = vld [vmem:[%s4143_s18 + $0x360] ss:$24 sps:$4 sm:$0xff]   ;;  %v3293_v12 = vld [vmem:[%s4143_s18 + $0x94] ss:$24 sps:$4 sm:$0xff]   ;;  %v3297_v14 = vld [vmem:[%s4143_s18 + $0x90] ss:$24 sps:$4 sm:$0xff]  }
  0x81   : > { %v3295_v13 = vld [vmem:[%s4143_s18 + $0x394] ss:$24 sps:$4 sm:$0xff]   ;;  %v3298_v15 = vld [vmem:[%s4143_s18 + $0x390] ss:$24 sps:$4 sm:$0xff]   ;;  %v3299_v16 = vld [vmem:[%s4143_s18 + $0xc4] ss:$24 sps:$4 sm:$0xff]  }
  0x82   : > { %2080 = vmatpush1.bf16.msra.mxu1 %v3285_v6  ;;  %v3301_v17 = vld [vmem:[%s4143_s18 + $0x3c4] ss:$24 sps:$4 sm:$0xff]   ;;  %v3303_v18 = vld [vmem:[%s4143_s18 + $0xc0] ss:$24 sps:$4 sm:$0xff]   ;;  %v3305_v20 = vld [vmem:[%s4143_s18 + $0xf4] ss:$24 sps:$4 sm:$0xff]  }
  0x83   : > { %2123 = vmatpush1.bf16.msra.mxu0 %v3286_v7  ;;  %2081 = vmatprep.subr.bf16.mxu1 %v3287_v8  ;;  %v3304_v19 = vld [vmem:[%s4143_s18 + $0x3c0] ss:$24 sps:$4 sm:$0xff]   ;;  %v3307_v21 = vld [vmem:[%s4143_s18 + $0x3f4] ss:$24 sps:$4 sm:$0xff]   ;;  %v3309_v22 = vld [vmem:[%s4143_s18 + $0xf0] ss:$24 sps:$4 sm:$0xff]  }
  0x84   : > { %2124 = vmatprep.subr.bf16.mxu0 %v3289_v9  ;;  %v3310_v23 = vld [vmem:[%s4143_s18 + $0x3f0] ss:$24 sps:$4 sm:$0xff]   ;;  %v3311_v24 = vld [vmem:[%s4143_s18 + $0x124] ss:$24 sps:$4 sm:$0xff]   ;;  %v3315_v26 = vld [vmem:[%s4143_s18 + $0x120] ss:$24 sps:$4 sm:$0xff]  }
  0x85   : > { %v3313_v25 = vld [vmem:[%s4143_s18 + $0x424] ss:$24 sps:$4 sm:$0xff]   ;;  %v3316_v27 = vld [vmem:[%s4143_s18 + $0x420] ss:$24 sps:$4 sm:$0xff]   ;;  %v3317_v28 = vld [vmem:[%s4143_s18 + $0x154] ss:$24 sps:$4 sm:$0xff]  }
  0x86   : > { %2082 = vmatpush1.bf16.msra.mxu1 %v3291_v10  ;;  %v3319_v29 = vld [vmem:[%s4143_s18 + $0x454] ss:$24 sps:$4 sm:$0xff]   ;;  %v3321_v30 = vld [vmem:[%s4143_s18 + $0x150] ss:$24 sps:$4 sm:$0xff]   ;;  %v3323_v32 = vld [vmem:[%s4143_s18 + $0x184] ss:$24 sps:$4 sm:$0xff]  }
  0x87   : > { %2125 = vmatpush1.bf16.msra.mxu0 %v3292_v11  ;;  %2083 = vmatprep.subr.bf16.mxu1 %v3293_v12  ;;  %v3322_v31 = vld [vmem:[%s4143_s18 + $0x450] ss:$24 sps:$4 sm:$0xff]   ;;  %v3325_v33 = vld [vmem:[%s4143_s18 + $0x484] ss:$24 sps:$4 sm:$0xff]   ;;  %v3327_v34 = vld [vmem:[%s4143_s18 + $0x180] ss:$24 sps:$4 sm:$0xff]  }
  0x88   : > { %2126 = vmatprep.subr.bf16.mxu0 %v3295_v13  ;;  %v3328_v35 = vld [vmem:[%s4143_s18 + $0x480] ss:$24 sps:$4 sm:$0xff]   ;;  %v3329_v36 = vld [vmem:[%s4143_s18 + $0x1b4] ss:$24 sps:$4 sm:$0xff]   ;;  %v3333_v38 = vld [vmem:[%s4143_s18 + $0x1b0] ss:$24 sps:$4 sm:$0xff]  }
  0x89   : > { %v3331_v37 = vld [vmem:[%s4143_s18 + $0x4b4] ss:$24 sps:$4 sm:$0xff]   ;;  %v3334_v39 = vld [vmem:[%s4143_s18 + $0x4b0] ss:$24 sps:$4 sm:$0xff]   ;;  %v3335_v40 = vld [vmem:[%s4143_s18 + $0x1e4] ss:$24 sps:$4 sm:$0xff]  }
  0x8a   : > { %2084 = vmatpush1.bf16.msra.mxu1 %v3297_v14  ;;  %v3337_v41 = vld [vmem:[%s4143_s18 + $0x4e4] ss:$24 sps:$4 sm:$0xff]   ;;  %v3339_v42 = vld [vmem:[%s4143_s18 + $0x1e0] ss:$24 sps:$4 sm:$0xff]   ;;  %v3341_v44 = vld [vmem:[%s4143_s18 + $0x214] ss:$24 sps:$4 sm:$0xff]  }
  0x8b   : > { %2127 = vmatpush1.bf16.msra.mxu0 %v3298_v15  ;;  %2085 = vmatprep.subr.bf16.mxu1 %v3299_v16  ;;  %v3340_v43 = vld [vmem:[%s4143_s18 + $0x4e0] ss:$24 sps:$4 sm:$0xff]   ;;  %v3343_v45 = vld [vmem:[%s4143_s18 + $0x514] ss:$24 sps:$4 sm:$0xff]   ;;  %v3345_v46 = vld [vmem:[%s4143_s18 + $0x210] ss:$24 sps:$4 sm:$0xff]  }
  0x8c   : > { %2128 = vmatprep.subr.bf16.mxu0 %v3301_v17  ;;  %v3346_v47 = vld [vmem:[%s4143_s18 + $0x510] ss:$24 sps:$4 sm:$0xff]   ;;  %v4197_v48 = vld [vmem:[#allocation3 + $0x4] ss:$24 sps:$4 sm:$0xff]   ;;  %v3347_v50 = vld [vmem:[%s4143_s18 + $0x244] ss:$24 sps:$4 sm:$0xff]  }
  0x8d   : > { %v4199_v49 = vld [vmem:[#allocation3 + $0xc] ss:$24 sps:$4 sm:$0xff]   ;;  %2109 = vmatprep.mubr.bf16.mxu1 %v4197_v48  ;;  %v3351_v52 = vld [vmem:[%s4143_s18 + $0x240] ss:$24 sps:$4 sm:$0xff]   ;;  %v3357_v56 = vld [vmem:[%s4143_s18 + $0x270] ss:$24 sps:$4 sm:$0xff]  }
  0x8e   : > { %2086 = vmatpush1.bf16.msra.mxu1 %v3303_v18  ;;  %v3349_v51 = vld [vmem:[%s4143_s18 + $0x544] ss:$24 sps:$4 sm:$0xff]   ;;  %2152 = vmatprep.mubr.bf16.mxu0 %v4199_v49  ;;  %v3352_v53 = vld [vmem:[%s4143_s18 + $0x540] ss:$24 sps:$4 sm:$0xff]   ;;  %v3353_v54 = vld [vmem:[%s4143_s18 + $0x274] ss:$24 sps:$4 sm:$0xff]  }
  0x8f   : > { %2129 = vmatpush1.bf16.msra.mxu0 %v3304_v19  ;;  %2087 = vmatprep.subr.bf16.mxu1 %v3305_v20  ;;  %v3355_v55 = vld [vmem:[%s4143_s18 + $0x574] ss:$24 sps:$4 sm:$0xff]   ;;  %v3358_v57 = vld [vmem:[%s4143_s18 + $0x570] ss:$24 sps:$4 sm:$0xff]   ;;  %v3359_v58 = vld [vmem:[%s4143_s18 + $0x2a4] ss:$24 sps:$4 sm:$0xff]  }
  0x90   : > { %2130 = vmatprep.subr.bf16.mxu0 %v3307_v21  ;;  %v3361_v59 = vld [vmem:[%s4143_s18 + $0x5a4] ss:$24 sps:$4 sm:$0xff]   ;;  %v3363_v60 = vld [vmem:[%s4143_s18 + $0x2a0] ss:$24 sps:$4 sm:$0xff]   ;;  %v3365_v62 = vld [vmem:[%s4143_s18 + $0x2d4] ss:$24 sps:$4 sm:$0xff]  }
  0x91   : > { %v3364_v61 = vld [vmem:[%s4143_s18 + $0x5a0] ss:$24 sps:$4 sm:$0xff]   ;;  %v3367_v63 = vld [vmem:[%s4143_s18 + $0x5d4] ss:$24 sps:$4 sm:$0xff]   ;;  %v3369_v0 = vld [vmem:[%s4143_s18 + $0x2d0] ss:$24 sps:$4 sm:$0xff]  }
  0x92   : > { %2088 = vmatpush1.bf16.msra.mxu1 %v3309_v22  ;;  %v3370_v1 = vld [vmem:[%s4143_s18 + $0x5d0] ss:$24 sps:$4 sm:$0xff]   ;;  %v3377_v2 = vld [vmem:[%s4143_s18 + $0x604] ss:$24 sps:$4 sm:$0xff]   ;;  %v3375_v4 = vld [vmem:[%s4143_s18 + $0x600] ss:$24 sps:$4 sm:$0xff]  }
  0x93   : > { %2131 = vmatpush1.bf16.msra.mxu0 %v3310_v23  ;;  %2089 = vmatprep.subr.bf16.mxu1 %v3311_v24  ;;  %v3380_v3 = vld [vmem:[%s4143_s18 + $0xc] ss:$24 sps:$4 sm:$0xff]   ;;  %v3378_v5 = vld [vmem:[%s4143_s18 + $0x8] ss:$24 sps:$4 sm:$0xff]   ;;  %v4225_v7 = vld [vmem:[#allocation3 + $0x8] ss:$24 sps:$4 sm:$0xff]  }
  0x94   : > { %2132 = vmatprep.subr.bf16.mxu0 %v3313_v25  ;;  %v4223_v6 = vld [vmem:[#allocation3] ss:$24 sps:$4 sm:$0xff]   ;;  %v3385_v8 = vld [vmem:[%s4143_s18 + $0x634] ss:$24 sps:$4 sm:$0xff]   ;;  %v3391_v12 = vld [vmem:[%s4143_s18 + $0x664] ss:$24 sps:$4 sm:$0xff]  }
  0x95   : > { %v3388_v9 = vld [vmem:[%s4143_s18 + $0x3c] ss:$24 sps:$4 sm:$0xff]   ;;  %v3383_v10 = vld [vmem:[%s4143_s18 + $0x630] ss:$24 sps:$4 sm:$0xff]   ;;  %v3394_v13 = vld [vmem:[%s4143_s18 + $0x6c] ss:$24 sps:$4 sm:$0xff]  }
  0x96   : > { %2090 = vmatpush1.bf16.msra.mxu1 %v3315_v26  ;;  %v3386_v11 = vld [vmem:[%s4143_s18 + $0x38] ss:$24 sps:$4 sm:$0xff]   ;;  %v3392_v15 = vld [vmem:[%s4143_s18 + $0x68] ss:$24 sps:$4 sm:$0xff]   ;;  %v3397_v16 = vld [vmem:[%s4143_s18 + $0x694] ss:$24 sps:$4 sm:$0xff]  }
  0x97   : > { %2133 = vmatpush1.bf16.msra.mxu0 %v3316_v27  ;;  %2091 = vmatprep.subr.bf16.mxu1 %v3317_v28  ;;  %v3389_v14 = vld [vmem:[%s4143_s18 + $0x660] ss:$24 sps:$4 sm:$0xff]   ;;  %v3400_v17 = vld [vmem:[%s4143_s18 + $0x9c] ss:$24 sps:$4 sm:$0xff]   ;;  %v3395_v18 = vld [vmem:[%s4143_s18 + $0x690] ss:$24 sps:$4 sm:$0xff]  }
  0x98   : > { %2134 = vmatprep.subr.bf16.mxu0 %v3319_v29  ;;  %v3398_v19 = vld [vmem:[%s4143_s18 + $0x98] ss:$24 sps:$4 sm:$0xff]   ;;  %v3403_v20 = vld [vmem:[%s4143_s18 + $0x6c4] ss:$24 sps:$4 sm:$0xff]   ;;  %v3404_v23 = vld [vmem:[%s4143_s18 + $0xc8] ss:$24 sps:$4 sm:$0xff]  }
  0x99   : > { %v3406_v21 = vld [vmem:[%s4143_s18 + $0xcc] ss:$24 sps:$4 sm:$0xff]   ;;  %v3401_v22 = vld [vmem:[%s4143_s18 + $0x6c0] ss:$24 sps:$4 sm:$0xff]   ;;  %v3412_v25 = vld [vmem:[%s4143_s18 + $0xfc] ss:$24 sps:$4 sm:$0xff]  }
  0x9a   : > { %2092 = vmatpush1.bf16.msra.mxu1 %v3321_v30  ;;  %v3409_v24 = vld [vmem:[%s4143_s18 + $0x6f4] ss:$24 sps:$4 sm:$0xff]   ;;  %v3407_v26 = vld [vmem:[%s4143_s18 + $0x6f0] ss:$24 sps:$4 sm:$0xff]   ;;  %v3415_v28 = vld [vmem:[%s4143_s18 + $0x724] ss:$24 sps:$4 sm:$0xff]  }
  0x9b   : > { %2135 = vmatpush1.bf16.msra.mxu0 %v3322_v31  ;;  %2093 = vmatprep.subr.bf16.mxu1 %v3323_v32  ;;  %v3410_v27 = vld [vmem:[%s4143_s18 + $0xf8] ss:$24 sps:$4 sm:$0xff]   ;;  %v3418_v29 = vld [vmem:[%s4143_s18 + $0x12c] ss:$24 sps:$4 sm:$0xff]   ;;  %v3416_v31 = vld [vmem:[%s4143_s18 + $0x128] ss:$24 sps:$4 sm:$0xff]  }
  0x9c   : > { %2136 = vmatprep.subr.bf16.mxu0 %v3325_v33  ;;  %v3413_v30 = vld [vmem:[%s4143_s18 + $0x720] ss:$24 sps:$4 sm:$0xff]   ;;  %v3421_v32 = vld [vmem:[%s4143_s18 + $0x754] ss:$24 sps:$4 sm:$0xff]   ;;  %s250_s30 = scalar_lea.vmem [#allocation8], %s3189_s5  ;;  %s3190_s7 = smul.u32 48, %s4140_s10 }
  0x9d   : > { %v3424_v33 = vld [vmem:[%s4143_s18 + $0x15c] ss:$24 sps:$4 sm:$0xff]   ;;  %s3161_s21 = smul.u32 384, %s3908_s15  ;;  %s2698_s15 = scalar_lea.sflag [#allocation5], %s4140_s10 }
  0x9e   : > { %2094 = vmatpush1.bf16.msra.mxu1 %v3327_v34  ;;  %v4256_v34 = vld [vmem:[#allocation3 + $0x14] ss:$24 sps:$4 sm:$0xff]   ;;  %s4475_s9 = scalar_lea.vmem [#allocation9], %s3190_s7  ;;  %p4578_p5 = scmp.ne.s32.totalorder %s4565_s29, 0 }
  0x9f   : > { %2137 = vmatpush1.bf16.msra.mxu0 %v3328_v35  ;;  %2095 = vmatprep.subr.bf16.mxu1 %v3329_v36  ;;  %v3419_v35 = vld [vmem:[%s4143_s18 + $0x750] ss:$24 sps:$4 sm:$0xff]   ;;  %s2714_s6 = sshll.u32 %s4475_s9, 4  ;;  %s4494_s8 = scalar_lea.hbm %s4549_s3, %s3161_s21  ;;  %s4496_s6 = int_to_ptr.vmem [resolvable:$true] %s2714_s6 }
  0xa0   : > { %2138 = vmatprep.subr.bf16.mxu0 %v3331_v37  ;;  %v3422_v36 = vld [vmem:[%s4143_s18 + $0x158] ss:$24 sps:$4 sm:$0xff]   ;;  %v3427_v37 = vld [vmem:[%s4143_s18 + $0x784] ss:$24 sps:$4 sm:$0xff]   ;;  %s3830_s20 = scalar_lea.vmem %s4496_s6, 768  ;;  %s3924_s11 = smov [#allocation9]  }
  0xa1   : > { %p3831_p3 = scmp.ne.s32.totalorder %s4496_s6, %s3830_s20  ;;  %s3834_s19 = sshll.u32 %s3924_s11, 4  ;;  %s3835_s19 = int_to_ptr.vmem [resolvable:$false] %s3834_s19 }
  0xa2   : > { %2096 = vmatpush1.bf16.msra.mxu1 %v3333_v38  ;;  %v3430_v38 = vld [vmem:[%s4143_s18 + $0x18c] ss:$24 sps:$4 sm:$0xff]   ;;  %s3836_s27 = scalar_lea.vmem %s3835_s19, 1536  ;;  %p3837_p13 = scmp.lt.s32.totalorder %s4496_s6, %s3835_s19 }
  0xa3   : > { %2139 = vmatpush1.bf16.msra.mxu0 %v3334_v39  ;;  %2097 = vmatprep.subr.bf16.mxu1 %v3335_v40  ;;  %v3425_v39 = vld [vmem:[%s4143_s18 + $0x780] ss:$24 sps:$4 sm:$0xff]   ;;  %p3832_p1 = pnand %p3831_p3, %p4578_p5  ;;  %p3838_p8 = scmp.lt.s32.totalorder %s3836_s27, %s3830_s20 }
  0xa4   : > { %2140 = vmatprep.subr.bf16.mxu0 %v3337_v41  ;;  %v3428_v40 = vld [vmem:[%s4143_s18 + $0x188] ss:$24 sps:$4 sm:$0xff]   ;;  %v3433_v41 = vld [vmem:[%s4143_s18 + $0x7b4] ss:$24 sps:$4 sm:$0xff]  }
  0xa5   : > { %p3833_p11 = pneg %p3832_p1  ;;  %p3839_p4 = por %p3838_p8, %p3837_p13 }
  0xa6   : > { %2098 = vmatpush1.bf16.msra.mxu1 %v3339_v42  ;;  %v3436_v42 = vld [vmem:[%s4143_s18 + $0x1bc] ss:$24 sps:$4 sm:$0xff]  }
  0xa7   : > { %2141 = vmatpush1.bf16.msra.mxu0 %v3340_v43  ;;  %2099 = vmatprep.subr.bf16.mxu1 %v3341_v44  ;;  %v3431_v43 = vld [vmem:[%s4143_s18 + $0x7b0] ss:$24 sps:$4 sm:$0xff]   ;;  %p3840_p7 = pnand %p3839_p4, %p3833_p11 }
  0xa8   : > { %2142 = vmatprep.subr.bf16.mxu0 %v3343_v45  ;;  %v3434_v44 = vld [vmem:[%s4143_s18 + $0x1b8] ss:$24 sps:$4 sm:$0xff]   ;;  %v3439_v45 = vld [vmem:[%s4143_s18 + $0x7e4] ss:$24 sps:$4 sm:$0xff]  }
  0xaa   : > { %2100 = vmatpush1.bf16.msra.mxu1 %v3345_v46  ;;  %v3442_v46 = vld [vmem:[%s4143_s18 + $0x1ec] ss:$24 sps:$4 sm:$0xff]  }
  0xab   : > { %2143 = vmatpush1.bf16.msra.mxu0 %v3346_v47  ;;  %2101 = vmatprep.subr.bf16.mxu1 %v3347_v50  ;;  %v3437_v47 = vld [vmem:[%s4143_s18 + $0x7e0] ss:$24 sps:$4 sm:$0xff]  }
  0xac   : > { %2144 = vmatprep.subr.bf16.mxu0 %v3349_v51  ;;  %v3440_v50 = vld [vmem:[%s4143_s18 + $0x1e8] ss:$24 sps:$4 sm:$0xff]   ;;  %v3445_v51 = vld [vmem:[%s4143_s18 + $0x814] ss:$24 sps:$4 sm:$0xff]  }
  0xae   : > { %2102 = vmatpush1.bf16.msra.mxu1 %v3351_v52  ;;  %v3448_v52 = vld [vmem:[%s4143_s18 + $0x21c] ss:$24 sps:$4 sm:$0xff]  }
  0xaf   : > { %2145 = vmatpush1.bf16.msra.mxu0 %v3352_v53  ;;  %2103 = vmatprep.subr.bf16.mxu1 %v3353_v54  ;;  %v3443_v53 = vld [vmem:[%s4143_s18 + $0x810] ss:$24 sps:$4 sm:$0xff]  }
  0xb0   : > { %2146 = vmatprep.subr.bf16.mxu0 %v3355_v55  ;;  %v3446_v54 = vld [vmem:[%s4143_s18 + $0x218] ss:$24 sps:$4 sm:$0xff]   ;;  %v3451_v55 = vld [vmem:[%s4143_s18 + $0x844] ss:$24 sps:$4 sm:$0xff]  }
  0xb2   : > { %2104 = vmatpush1.bf16.msra.mxu1 %v3357_v56  ;;  %v3454_v56 = vld [vmem:[%s4143_s18 + $0x24c] ss:$24 sps:$4 sm:$0xff]  }
  0xb3   : > { %2147 = vmatpush1.bf16.msra.mxu0 %v3358_v57  ;;  %2105 = vmatprep.subr.bf16.mxu1 %v3359_v58  ;;  %v3449_v57 = vld [vmem:[%s4143_s18 + $0x840] ss:$24 sps:$4 sm:$0xff]  }
  0xb4   : > { %2148 = vmatprep.subr.bf16.mxu0 %v3361_v59  ;;  %v3452_v58 = vld [vmem:[%s4143_s18 + $0x248] ss:$24 sps:$4 sm:$0xff]   ;;  %v3457_v59 = vld [vmem:[%s4143_s18 + $0x874] ss:$24 sps:$4 sm:$0xff]  }
  0xb6   : > { %2106 = vmatpush1.bf16.msra.mxu1 %v3363_v60  ;;  %v3460_v60 = vld [vmem:[%s4143_s18 + $0x27c] ss:$24 sps:$4 sm:$0xff]  }
  0xb7   : > { %2149 = vmatpush1.bf16.msra.mxu0 %v3364_v61  ;;  %2107 = vmatprep.subr.bf16.mxu1 %v3365_v62  ;;  %v3455_v61 = vld [vmem:[%s4143_s18 + $0x870] ss:$24 sps:$4 sm:$0xff]  }
  0xb8   : > { %2150 = vmatprep.subr.bf16.mxu0 %v3367_v63  ;;  %v3458_v62 = vld [vmem:[%s4143_s18 + $0x278] ss:$24 sps:$4 sm:$0xff]   ;;  %v3463_v63 = vld [vmem:[%s4143_s18 + $0x8a4] ss:$24 sps:$4 sm:$0xff]  }
  0xba   : > { %2108 = vmatpush1.bf16.msra.mxu1 %v3369_v0  ;;  %v3466_v0 = vld [vmem:[%s4143_s18 + $0x2ac] ss:$24 sps:$4 sm:$0xff]  }
  0xbb   : > { %2151 = vmatpush1.bf16.msra.mxu0 %v3370_v1  ;;  %2206 = vmatprep.subr.bf16.mxu1 %v3380_v3  ;;  %v3461_v1 = vld [vmem:[%s4143_s18 + $0x8a0] ss:$24 sps:$4 sm:$0xff]   ;;  %v3469_v3 = vld [vmem:[%s4143_s18 + $0x8d4] ss:$24 sps:$4 sm:$0xff]  }
  0xbc   : > { %2163 = vmatprep.subr.bf16.mxu0 %v3377_v2  ;;  %v3464_v2 = vld [vmem:[%s4143_s18 + $0x2a8] ss:$24 sps:$4 sm:$0xff]  }
  0xbd   : > { %2110 = vmatmul.mubr.bf16.vlgmr.msra.gmra.mrb[0].mxu1 %v4223_v6 }
  0xbe   : > { %2153 = vmatmul.mubr.bf16.vlgmr.msra.gmra.mrb[0].mxu0 %v4225_v7  ;;  %2207 = vmatpush1.bf16.msra.mxu1 %v3378_v5  ;;  %v3467_v5 = vld [vmem:[%s4143_s18 + $0x8d0] ss:$24 sps:$4 sm:$0xff]  }
  0xbf   : > { %2164 = vmatpush1.bf16.msra.mxu0 %v3375_v4  ;;  %2208 = vmatprep.subr.bf16.mxu1 %v3388_v9  ;;  %v3472_v4 = vld [vmem:[%s4143_s18 + $0x2dc] ss:$24 sps:$4 sm:$0xff]   ;;  %v3478_v9 = vld [vmem:[%s4143_s18 + $0x30c] ss:$24 sps:$4 sm:$0xff]  }
  0xc0   : > { %2165 = vmatprep.subr.bf16.mxu0 %v3385_v8  ;;  %2238 = vmatprep.mubr.bf16.mxu1 %v4197_v48  ;;  %v3470_v8 = vld [vmem:[%s4143_s18 + $0x2d8] ss:$24 sps:$4 sm:$0xff]  }
  0xc1   : > { %2195 = vmatprep.mubr.bf16.mxu0 %v4256_v34 }
  0xc2   : > { %2209 = vmatpush1.bf16.msra.mxu1 %v3386_v11  ;;  %v4295_v11 = vld [vmem:[#allocation3 + $0x10] ss:$24 sps:$4 sm:$0xff]  }
  0xc3   : > { %2166 = vmatpush1.bf16.msra.mxu0 %v3383_v10  ;;  %2210 = vmatprep.subr.bf16.mxu1 %v3394_v13  ;;  %v3481_v10 = vld [vmem:[%s4143_s18 + $0x14] ss:$24 sps:$4 sm:$0xff]   ;;  %v3479_v13 = vld [vmem:[%s4143_s18 + $0x10] ss:$24 sps:$4 sm:$0xff]  }
  0xc4   : > { %2167 = vmatprep.subr.bf16.mxu0 %v3391_v12  ;;  %v3476_v12 = vld [vmem:[%s4143_s18 + $0x308] ss:$24 sps:$4 sm:$0xff]  }
  0xc6   : > { %2211 = vmatpush1.bf16.msra.mxu1 %v3392_v15  ;;  %v3487_v15 = vld [vmem:[%s4143_s18 + $0x44] ss:$24 sps:$4 sm:$0xff]  }
  0xc7   : > { %2168 = vmatpush1.bf16.msra.mxu0 %v3389_v14  ;;  %2212 = vmatprep.subr.bf16.mxu1 %v3400_v17  ;;  %v3484_v14 = vld [vmem:[%s4143_s18 + $0x33c] ss:$24 sps:$4 sm:$0xff]   ;;  %v3485_v17 = vld [vmem:[%s4143_s18 + $0x40] ss:$24 sps:$4 sm:$0xff]  }
  0xc8   : > { %2169 = vmatprep.subr.bf16.mxu0 %v3397_v16  ;;  %v3482_v16 = vld [vmem:[%s4143_s18 + $0x338] ss:$24 sps:$4 sm:$0xff]  }
  0xca   : > { %2213 = vmatpush1.bf16.msra.mxu1 %v3398_v19  ;;  %v3493_v19 = vld [vmem:[%s4143_s18 + $0x74] ss:$24 sps:$4 sm:$0xff]  }
  0xcb   : > { %2170 = vmatpush1.bf16.msra.mxu0 %v3395_v18  ;;  %2214 = vmatprep.subr.bf16.mxu1 %v3406_v21  ;;  %v3490_v18 = vld [vmem:[%s4143_s18 + $0x36c] ss:$24 sps:$4 sm:$0xff]   ;;  %v3491_v21 = vld [vmem:[%s4143_s18 + $0x70] ss:$24 sps:$4 sm:$0xff]  }
  0xcc   : > { %2171 = vmatprep.subr.bf16.mxu0 %v3403_v20  ;;  %v3488_v20 = vld [vmem:[%s4143_s18 + $0x368] ss:$24 sps:$4 sm:$0xff]  }
  0xce   : > { %2215 = vmatpush1.bf16.msra.mxu1 %v3404_v23  ;;  %v3499_v23 = vld [vmem:[%s4143_s18 + $0xa4] ss:$24 sps:$4 sm:$0xff]  }
  0xcf   : > { %2172 = vmatpush1.bf16.msra.mxu0 %v3401_v22  ;;  %2216 = vmatprep.subr.bf16.mxu1 %v3412_v25  ;;  %v3496_v22 = vld [vmem:[%s4143_s18 + $0x39c] ss:$24 sps:$4 sm:$0xff]   ;;  %v3497_v25 = vld [vmem:[%s4143_s18 + $0xa0] ss:$24 sps:$4 sm:$0xff]  }
  0xd0   : > { %2173 = vmatprep.subr.bf16.mxu0 %v3409_v24  ;;  %v3494_v24 = vld [vmem:[%s4143_s18 + $0x398] ss:$24 sps:$4 sm:$0xff]  }
  0xd2   : > { %2217 = vmatpush1.bf16.msra.mxu1 %v3410_v27  ;;  %v3503_v27 = vld [vmem:[%s4143_s18 + $0xd0] ss:$24 sps:$4 sm:$0xff]  }
  0xd3   : > { %2174 = vmatpush1.bf16.msra.mxu0 %v3407_v26  ;;  %2218 = vmatprep.subr.bf16.mxu1 %v3418_v29  ;;  %v3500_v26 = vld [vmem:[%s4143_s18 + $0x3c8] ss:$24 sps:$4 sm:$0xff]   ;;  %v3511_v29 = vld [vmem:[%s4143_s18 + $0x104] ss:$24 sps:$4 sm:$0xff]  }
  0xd4   : > { %2175 = vmatprep.subr.bf16.mxu0 %v3415_v28  ;;  %v3508_v28 = vld [vmem:[%s4143_s18 + $0x3fc] ss:$24 sps:$4 sm:$0xff]  }
  0xd6   : > { %2219 = vmatpush1.bf16.msra.mxu1 %v3416_v31  ;;  %v3509_v31 = vld [vmem:[%s4143_s18 + $0x100] ss:$24 sps:$4 sm:$0xff]  }
  0xd7   : > { %2176 = vmatpush1.bf16.msra.mxu0 %v3413_v30  ;;  %2220 = vmatprep.subr.bf16.mxu1 %v3424_v33  ;;  %v3506_v30 = vld [vmem:[%s4143_s18 + $0x3f8] ss:$24 sps:$4 sm:$0xff]   ;;  %v3517_v33 = vld [vmem:[%s4143_s18 + $0x134] ss:$24 sps:$4 sm:$0xff]  }
  0xd8   : > { %2177 = vmatprep.subr.bf16.mxu0 %v3421_v32  ;;  %v3514_v32 = vld [vmem:[%s4143_s18 + $0x42c] ss:$24 sps:$4 sm:$0xff]  }
  0xda   : > { %2221 = vmatpush1.bf16.msra.mxu1 %v3422_v36  ;;  %v3515_v36 = vld [vmem:[%s4143_s18 + $0x130] ss:$24 sps:$4 sm:$0xff]  }
  0xdb   : > { %2178 = vmatpush1.bf16.msra.mxu0 %v3419_v35  ;;  %2222 = vmatprep.subr.bf16.mxu1 %v3430_v38  ;;  %v3512_v35 = vld [vmem:[%s4143_s18 + $0x428] ss:$24 sps:$4 sm:$0xff]   ;;  %v3523_v38 = vld [vmem:[%s4143_s18 + $0x164] ss:$24 sps:$4 sm:$0xff]  }
  0xdc   : > { %2179 = vmatprep.subr.bf16.mxu0 %v3427_v37  ;;  %v3520_v37 = vld [vmem:[%s4143_s18 + $0x45c] ss:$24 sps:$4 sm:$0xff]  }
  0xde   : > { %2223 = vmatpush1.bf16.msra.mxu1 %v3428_v40  ;;  %v3521_v40 = vld [vmem:[%s4143_s18 + $0x160] ss:$24 sps:$4 sm:$0xff]  }
  0xdf   : > { %2180 = vmatpush1.bf16.msra.mxu0 %v3425_v39  ;;  %2224 = vmatprep.subr.bf16.mxu1 %v3436_v42  ;;  %v3518_v39 = vld [vmem:[%s4143_s18 + $0x458] ss:$24 sps:$4 sm:$0xff]   ;;  %v3529_v42 = vld [vmem:[%s4143_s18 + $0x194] ss:$24 sps:$4 sm:$0xff]  }
  0xe0   : > { %2181 = vmatprep.subr.bf16.mxu0 %v3433_v41  ;;  %v3526_v41 = vld [vmem:[%s4143_s18 + $0x48c] ss:$24 sps:$4 sm:$0xff]  }
  0xe2   : > { %2225 = vmatpush1.bf16.msra.mxu1 %v3434_v44  ;;  %v3527_v44 = vld [vmem:[%s4143_s18 + $0x190] ss:$24 sps:$4 sm:$0xff]  }
  0xe3   : > { %2182 = vmatpush1.bf16.msra.mxu0 %v3431_v43  ;;  %2226 = vmatprep.subr.bf16.mxu1 %v3442_v46  ;;  %v3524_v43 = vld [vmem:[%s4143_s18 + $0x488] ss:$24 sps:$4 sm:$0xff]   ;;  %v3535_v46 = vld [vmem:[%s4143_s18 + $0x1c4] ss:$24 sps:$4 sm:$0xff]  }
  0xe4   : > { %2183 = vmatprep.subr.bf16.mxu0 %v3439_v45  ;;  %v3532_v45 = vld [vmem:[%s4143_s18 + $0x4bc] ss:$24 sps:$4 sm:$0xff]  }
  0xe6   : > { %2227 = vmatpush1.bf16.msra.mxu1 %v3440_v50  ;;  %v3533_v50 = vld [vmem:[%s4143_s18 + $0x1c0] ss:$24 sps:$4 sm:$0xff]  }
  0xe7   : > { %2184 = vmatpush1.bf16.msra.mxu0 %v3437_v47  ;;  %2228 = vmatprep.subr.bf16.mxu1 %v3448_v52  ;;  %v3530_v47 = vld [vmem:[%s4143_s18 + $0x4b8] ss:$24 sps:$4 sm:$0xff]   ;;  %v3541_v52 = vld [vmem:[%s4143_s18 + $0x1f4] ss:$24 sps:$4 sm:$0xff]  }
  0xe8   : > { %2185 = vmatprep.subr.bf16.mxu0 %v3445_v51  ;;  %v3538_v51 = vld [vmem:[%s4143_s18 + $0x4ec] ss:$24 sps:$4 sm:$0xff]  }
  0xea   : > { %2229 = vmatpush1.bf16.msra.mxu1 %v3446_v54  ;;  %v3539_v54 = vld [vmem:[%s4143_s18 + $0x1f0] ss:$24 sps:$4 sm:$0xff]  }
  0xeb   : > { %2186 = vmatpush1.bf16.msra.mxu0 %v3443_v53  ;;  %2230 = vmatprep.subr.bf16.mxu1 %v3454_v56  ;;  %v3536_v53 = vld [vmem:[%s4143_s18 + $0x4e8] ss:$24 sps:$4 sm:$0xff]   ;;  %v3547_v56 = vld [vmem:[%s4143_s18 + $0x224] ss:$24 sps:$4 sm:$0xff]  }
  0xec   : > { %2187 = vmatprep.subr.bf16.mxu0 %v3451_v55  ;;  %v3544_v55 = vld [vmem:[%s4143_s18 + $0x51c] ss:$24 sps:$4 sm:$0xff]  }
  0xee   : > { %2231 = vmatpush1.bf16.msra.mxu1 %v3452_v58  ;;  %v3545_v58 = vld [vmem:[%s4143_s18 + $0x220] ss:$24 sps:$4 sm:$0xff]  }
  0xef   : > { %2188 = vmatpush1.bf16.msra.mxu0 %v3449_v57  ;;  %2232 = vmatprep.subr.bf16.mxu1 %v3460_v60  ;;  %v3542_v57 = vld [vmem:[%s4143_s18 + $0x518] ss:$24 sps:$4 sm:$0xff]   ;;  %v3553_v60 = vld [vmem:[%s4143_s18 + $0x254] ss:$24 sps:$4 sm:$0xff]  }
  0xf0   : > { %2189 = vmatprep.subr.bf16.mxu0 %v3457_v59  ;;  %v3550_v59 = vld [vmem:[%s4143_s18 + $0x54c] ss:$24 sps:$4 sm:$0xff]  }
  0xf2   : > { %2233 = vmatpush1.bf16.msra.mxu1 %v3458_v62  ;;  %v3551_v62 = vld [vmem:[%s4143_s18 + $0x250] ss:$24 sps:$4 sm:$0xff]  }
  0xf3   : > { %2190 = vmatpush1.bf16.msra.mxu0 %v3455_v61  ;;  %2234 = vmatprep.subr.bf16.mxu1 %v3466_v0  ;;  %v3548_v61 = vld [vmem:[%s4143_s18 + $0x548] ss:$24 sps:$4 sm:$0xff]   ;;  %v3559_v0 = vld [vmem:[%s4143_s18 + $0x284] ss:$24 sps:$4 sm:$0xff]  }
  0xf4   : > { %2191 = vmatprep.subr.bf16.mxu0 %v3463_v63  ;;  %v3556_v63 = vld [vmem:[%s4143_s18 + $0x57c] ss:$24 sps:$4 sm:$0xff]  }
  0xf6   : > { %2235 = vmatpush1.bf16.msra.mxu1 %v3464_v2  ;;  %v3557_v2 = vld [vmem:[%s4143_s18 + $0x280] ss:$24 sps:$4 sm:$0xff]  }
  0xf7   : > { %2192 = vmatpush1.bf16.msra.mxu0 %v3461_v1  ;;  %2236 = vmatprep.subr.bf16.mxu1 %v3472_v4  ;;  %v3554_v1 = vld [vmem:[%s4143_s18 + $0x578] ss:$24 sps:$4 sm:$0xff]   ;;  %v3565_v4 = vld [vmem:[%s4143_s18 + $0x2b4] ss:$24 sps:$4 sm:$0xff]  }
  0xf8   : > { %2193 = vmatprep.subr.bf16.mxu0 %v3469_v3  ;;  %v3562_v3 = vld [vmem:[%s4143_s18 + $0x5ac] ss:$24 sps:$4 sm:$0xff]  }
  0xfa   : > { %2237 = vmatpush1.bf16.msra.mxu1 %v3470_v8  ;;  %v3563_v8 = vld [vmem:[%s4143_s18 + $0x2b0] ss:$24 sps:$4 sm:$0xff]  }
  0xfb   : > { %2194 = vmatpush1.bf16.msra.mxu0 %v3467_v5  ;;  %2249 = vmatprep.subr.bf16.mxu1 %v3478_v9  ;;  %v3560_v5 = vld [vmem:[%s4143_s18 + $0x5a8] ss:$24 sps:$4 sm:$0xff]   ;;  %v3568_v9 = vld [vmem:[%s4143_s18 + $0x5dc] ss:$24 sps:$4 sm:$0xff]  }
  0xfc   : > { %2335 = vmatprep.subr.bf16.mxu0 %v3481_v10  ;;  %v3571_v10 = vld [vmem:[%s4143_s18 + $0x2e4] ss:$24 sps:$4 sm:$0xff]  }
  0xfd   : > { %2239 = vmatmul.mubr.bf16.vlgmr.msra.gmra.mrb[4].mxu1 %v4223_v6 }
  0xfe   : > { %2196 = vmatmul.mubr.bf16.vlgmr.msra.gmra.mrb[0].mxu0 %v4295_v11  ;;  %2250 = vmatpush1.bf16.msra.mxu1 %v3476_v12  ;;  %v3566_v12 = vld [vmem:[%s4143_s18 + $0x5d8] ss:$24 sps:$4 sm:$0xff]  }
  0xff   : > { %2336 = vmatpush1.bf16.msra.mxu0 %v3479_v13  ;;  %2251 = vmatprep.subr.bf16.mxu1 %v3484_v14  ;;  %v3569_v13 = vld [vmem:[%s4143_s18 + $0x2e0] ss:$24 sps:$4 sm:$0xff]   ;;  %v3574_v14 = vld [vmem:[%s4143_s18 + $0x60c] ss:$24 sps:$4 sm:$0xff]  }
 0x100   : > { %2337 = vmatprep.subr.bf16.mxu0 %v3487_v15  ;;  %2281 = vmatprep.mubr.bf16.mxu1 %v4199_v49  ;;  %v3505_v49 = vld [vmem:[%s4143_s18 + $0xd4] ss:$24 sps:$4 sm:$0xff]  }
 0x101   : > { %2367 = vmatprep.mubr.bf16.mxu0 %v4197_v48  ;;  %v3502_v48 = vld [vmem:[%s4143_s18 + $0x3cc] ss:$24 sps:$4 sm:$0xff]  }
 0x102   : > { %2252 = vmatpush1.bf16.msra.mxu1 %v3482_v16  ;;  %v3577_v15 = vld [vmem:[%s4143_s18 + $0x314] ss:$24 sps:$4 sm:$0xff]   ;;  %v3572_v16 = vld [vmem:[%s4143_s18 + $0x608] ss:$24 sps:$4 sm:$0xff]  }
 0x103   : > { %2338 = vmatpush1.bf16.msra.mxu0 %v3485_v17  ;;  %2253 = vmatprep.subr.bf16.mxu1 %v3490_v18  ;;  %v3575_v17 = vld [vmem:[%s4143_s18 + $0x310] ss:$24 sps:$4 sm:$0xff]   ;;  %v3580_v18 = vld [vmem:[%s4143_s18 + $0x63c] ss:$24 sps:$4 sm:$0xff]  }
 0x104   : > { %2339 = vmatprep.subr.bf16.mxu0 %v3493_v19  ;;  %v3583_v19 = vld [vmem:[%s4143_s18 + $0x344] ss:$24 sps:$4 sm:$0xff]  }
 0x106   : > { %2254 = vmatpush1.bf16.msra.mxu1 %v3488_v20  ;;  %v3578_v20 = vld [vmem:[%s4143_s18 + $0x638] ss:$24 sps:$4 sm:$0xff]  }
 0x107   : > { %2340 = vmatpush1.bf16.msra.mxu0 %v3491_v21  ;;  %2255 = vmatprep.subr.bf16.mxu1 %v3496_v22  ;;  %v3581_v21 = vld [vmem:[%s4143_s18 + $0x340] ss:$24 sps:$4 sm:$0xff]   ;;  %v3586_v22 = vld [vmem:[%s4143_s18 + $0x66c] ss:$24 sps:$4 sm:$0xff]  }
 0x108   : > { %2341 = vmatprep.subr.bf16.mxu0 %v3499_v23  ;;  %v3589_v23 = vld [vmem:[%s4143_s18 + $0x374] ss:$24 sps:$4 sm:$0xff]  }
 0x10a   : > { %2256 = vmatpush1.bf16.msra.mxu1 %v3494_v24  ;;  %v3740_v24 = vld [vmem:[#allocation3 + $0xc] ss:$24 sps:$4 sm:$0xff]  }
 0x10b   : > { %2342 = vmatpush1.bf16.msra.mxu0 %v3497_v25  ;;  %2257 = vmatprep.subr.bf16.mxu1 %v3502_v48  ;;  %v3592_v25 = vld [vmem:[%s4143_s18 + $0x69c] ss:$24 sps:$4 sm:$0xff]  }
 0x10c   : > { %2343 = vmatprep.subr.bf16.mxu0 %v3505_v49  ;;  %v3595_v48 = vld [vmem:[%s4143_s18 + $0x3a4] ss:$24 sps:$4 sm:$0xff]   ;;  %v3590_v49 = vld [vmem:[%s4143_s18 + $0x698] ss:$24 sps:$4 sm:$0xff]  }
 0x10e   : > { %2258 = vmatpush1.bf16.msra.mxu1 %v3500_v26  ;;  %v3593_v26 = vld [vmem:[%s4143_s18 + $0x3a0] ss:$24 sps:$4 sm:$0xff]  }
 0x10f   : > { %2344 = vmatpush1.bf16.msra.mxu0 %v3503_v27  ;;  %2259 = vmatprep.subr.bf16.mxu1 %v3508_v28  ;;  %v3598_v27 = vld [vmem:[%s4143_s18 + $0x6cc] ss:$24 sps:$4 sm:$0xff]  }
 0x110   : > { %2345 = vmatprep.subr.bf16.mxu0 %v3511_v29  ;;  %v3601_v28 = vld [vmem:[%s4143_s18 + $0x3d4] ss:$24 sps:$4 sm:$0xff]   ;;  %v3596_v29 = vld [vmem:[%s4143_s18 + $0x6c8] ss:$24 sps:$4 sm:$0xff]  }
 0x112   : > { %2260 = vmatpush1.bf16.msra.mxu1 %v3506_v30  ;;  %v3599_v30 = vld [vmem:[%s4143_s18 + $0x3d0] ss:$24 sps:$4 sm:$0xff]  }
 0x113   : > { %2346 = vmatpush1.bf16.msra.mxu0 %v3509_v31  ;;  %2261 = vmatprep.subr.bf16.mxu1 %v3514_v32  ;;  %v3604_v31 = vld [vmem:[%s4143_s18 + $0x6fc] ss:$24 sps:$4 sm:$0xff]  }
 0x114   : > { %2347 = vmatprep.subr.bf16.mxu0 %v3517_v33  ;;  %v3607_v32 = vld [vmem:[%s4143_s18 + $0x404] ss:$24 sps:$4 sm:$0xff]   ;;  %v3602_v33 = vld [vmem:[%s4143_s18 + $0x6f8] ss:$24 sps:$4 sm:$0xff]  }
 0x116   : > { %2262 = vmatpush1.bf16.msra.mxu1 %v3512_v35  ;;  %v3605_v35 = vld [vmem:[%s4143_s18 + $0x400] ss:$24 sps:$4 sm:$0xff]  }
 0x117   : > { %2348 = vmatpush1.bf16.msra.mxu0 %v3515_v36  ;;  %2263 = vmatprep.subr.bf16.mxu1 %v3520_v37  ;;  %v3610_v36 = vld [vmem:[%s4143_s18 + $0x72c] ss:$24 sps:$4 sm:$0xff]  }
 0x118   : > { %2349 = vmatprep.subr.bf16.mxu0 %v3523_v38  ;;  %v3613_v37 = vld [vmem:[%s4143_s18 + $0x434] ss:$24 sps:$4 sm:$0xff]   ;;  %v3608_v38 = vld [vmem:[%s4143_s18 + $0x728] ss:$24 sps:$4 sm:$0xff]  }
 0x11a   : > { %2264 = vmatpush1.bf16.msra.mxu1 %v3518_v39  ;;  %v3611_v39 = vld [vmem:[%s4143_s18 + $0x430] ss:$24 sps:$4 sm:$0xff]  }
 0x11b   : > { %2350 = vmatpush1.bf16.msra.mxu0 %v3521_v40  ;;  %2265 = vmatprep.subr.bf16.mxu1 %v3526_v41  ;;  %v3616_v40 = vld [vmem:[%s4143_s18 + $0x75c] ss:$24 sps:$4 sm:$0xff]  }
 0x11c   : > { %2351 = vmatprep.subr.bf16.mxu0 %v3529_v42  ;;  %v3619_v41 = vld [vmem:[%s4143_s18 + $0x464] ss:$24 sps:$4 sm:$0xff]   ;;  %v3614_v42 = vld [vmem:[%s4143_s18 + $0x758] ss:$24 sps:$4 sm:$0xff]  }
 0x11e   : > { %2266 = vmatpush1.bf16.msra.mxu1 %v3524_v43  ;;  %v3617_v43 = vld [vmem:[%s4143_s18 + $0x460] ss:$24 sps:$4 sm:$0xff]  }
 0x11f   : > { %2352 = vmatpush1.bf16.msra.mxu0 %v3527_v44  ;;  %2267 = vmatprep.subr.bf16.mxu1 %v3532_v45  ;;  %v3622_v44 = vld [vmem:[%s4143_s18 + $0x78c] ss:$24 sps:$4 sm:$0xff]  }
 0x120   : > { %2353 = vmatprep.subr.bf16.mxu0 %v3535_v46  ;;  %v3625_v45 = vld [vmem:[%s4143_s18 + $0x494] ss:$24 sps:$4 sm:$0xff]   ;;  %v3620_v46 = vld [vmem:[%s4143_s18 + $0x788] ss:$24 sps:$4 sm:$0xff]  }
 0x122   : > { %2268 = vmatpush1.bf16.msra.mxu1 %v3530_v47  ;;  %v3623_v47 = vld [vmem:[%s4143_s18 + $0x490] ss:$24 sps:$4 sm:$0xff]  }
 0x123   : > { %2354 = vmatpush1.bf16.msra.mxu0 %v3533_v50  ;;  %2269 = vmatprep.subr.bf16.mxu1 %v3538_v51  ;;  %v3628_v50 = vld [vmem:[%s4143_s18 + $0x7bc] ss:$24 sps:$4 sm:$0xff]  }
 0x124   : > { %2355 = vmatprep.subr.bf16.mxu0 %v3541_v52  ;;  %v3631_v51 = vld [vmem:[%s4143_s18 + $0x4c4] ss:$24 sps:$4 sm:$0xff]   ;;  %v3626_v52 = vld [vmem:[%s4143_s18 + $0x7b8] ss:$24 sps:$4 sm:$0xff]  }
 0x126   : > { %2270 = vmatpush1.bf16.msra.mxu1 %v3536_v53  ;;  %v3629_v53 = vld [vmem:[%s4143_s18 + $0x4c0] ss:$24 sps:$4 sm:$0xff]  }
 0x127   : > { %2356 = vmatpush1.bf16.msra.mxu0 %v3539_v54  ;;  %2271 = vmatprep.subr.bf16.mxu1 %v3544_v55  ;;  %v3634_v54 = vld [vmem:[%s4143_s18 + $0x7ec] ss:$24 sps:$4 sm:$0xff]  }
 0x128   : > { %2357 = vmatprep.subr.bf16.mxu0 %v3547_v56  ;;  %v3637_v55 = vld [vmem:[%s4143_s18 + $0x4f4] ss:$24 sps:$4 sm:$0xff]   ;;  %v3632_v56 = vld [vmem:[%s4143_s18 + $0x7e8] ss:$24 sps:$4 sm:$0xff]  }
 0x12a   : > { %2272 = vmatpush1.bf16.msra.mxu1 %v3542_v57  ;;  %v3635_v57 = vld [vmem:[%s4143_s18 + $0x4f0] ss:$24 sps:$4 sm:$0xff]  }
 0x12b   : > { %2358 = vmatpush1.bf16.msra.mxu0 %v3545_v58  ;;  %2273 = vmatprep.subr.bf16.mxu1 %v3550_v59  ;;  %v3640_v58 = vld [vmem:[%s4143_s18 + $0x81c] ss:$24 sps:$4 sm:$0xff]  }
 0x12c   : > { %2359 = vmatprep.subr.bf16.mxu0 %v3553_v60  ;;  %v3643_v59 = vld [vmem:[%s4143_s18 + $0x524] ss:$24 sps:$4 sm:$0xff]   ;;  %v3638_v60 = vld [vmem:[%s4143_s18 + $0x818] ss:$24 sps:$4 sm:$0xff]  }
 0x12e   : > { %2274 = vmatpush1.bf16.msra.mxu1 %v3548_v61  ;;  %v3641_v61 = vld [vmem:[%s4143_s18 + $0x520] ss:$24 sps:$4 sm:$0xff]  }
 0x12f   : > { %2360 = vmatpush1.bf16.msra.mxu0 %v3551_v62  ;;  %2275 = vmatprep.subr.bf16.mxu1 %v3556_v63  ;;  %v3646_v62 = vld [vmem:[%s4143_s18 + $0x84c] ss:$24 sps:$4 sm:$0xff]  }
 0x130   : > { %2361 = vmatprep.subr.bf16.mxu0 %v3559_v0  ;;  %v3649_v63 = vld [vmem:[%s4143_s18 + $0x554] ss:$24 sps:$4 sm:$0xff]   ;;  %v3644_v0 = vld [vmem:[%s4143_s18 + $0x848] ss:$24 sps:$4 sm:$0xff]  }
 0x132   : > { %2276 = vmatpush1.bf16.msra.mxu1 %v3554_v1  ;;  %v3647_v1 = vld [vmem:[%s4143_s18 + $0x550] ss:$24 sps:$4 sm:$0xff]  }
 0x133   : > { %2362 = vmatpush1.bf16.msra.mxu0 %v3557_v2  ;;  %2277 = vmatprep.subr.bf16.mxu1 %v3562_v3  ;;  %v3652_v2 = vld [vmem:[%s4143_s18 + $0x87c] ss:$24 sps:$4 sm:$0xff]  }
 0x134   : > { %2363 = vmatprep.subr.bf16.mxu0 %v3565_v4  ;;  %v3655_v3 = vld [vmem:[%s4143_s18 + $0x584] ss:$24 sps:$4 sm:$0xff]   ;;  %v3650_v4 = vld [vmem:[%s4143_s18 + $0x878] ss:$24 sps:$4 sm:$0xff]  }
 0x136   : > { %2278 = vmatpush1.bf16.msra.mxu1 %v3560_v5  ;;  %v3653_v5 = vld [vmem:[%s4143_s18 + $0x580] ss:$24 sps:$4 sm:$0xff]  }
 0x137   : > { %2364 = vmatpush1.bf16.msra.mxu0 %v3563_v8  ;;  %2279 = vmatprep.subr.bf16.mxu1 %v3568_v9  ;;  %v3658_v8 = vld [vmem:[%s4143_s18 + $0x8ac] ss:$24 sps:$4 sm:$0xff]  }
 0x138   : > { %2365 = vmatprep.subr.bf16.mxu0 %v3571_v10  ;;  %v3661_v9 = vld [vmem:[%s4143_s18 + $0x5b4] ss:$24 sps:$4 sm:$0xff]   ;;  %v3656_v10 = vld [vmem:[%s4143_s18 + $0x8a8] ss:$24 sps:$4 sm:$0xff]  }
 0x13a   : > { %2280 = vmatpush1.bf16.msra.mxu1 %v3566_v12  ;;  %v3659_v12 = vld [vmem:[%s4143_s18 + $0x5b0] ss:$24 sps:$4 sm:$0xff]  }
 0x13b   : > { %2366 = vmatpush1.bf16.msra.mxu0 %v3569_v13  ;;  %2292 = vmatprep.subr.bf16.mxu1 %v3574_v14  ;;  %v3664_v13 = vld [vmem:[%s4143_s18 + $0x8dc] ss:$24 sps:$4 sm:$0xff]  }
 0x13c   : > { %2378 = vmatprep.subr.bf16.mxu0 %v3577_v15  ;;  %v3667_v14 = vld [vmem:[%s4143_s18 + $0x5e4] ss:$24 sps:$4 sm:$0xff]   ;;  %v3662_v15 = vld [vmem:[%s4143_s18 + $0x8d8] ss:$24 sps:$4 sm:$0xff]  }
 0x13d   : > { %2282 = vmatmul.mubr.bf16.vlgmr.msra.gmra.mrb[4].mxu1 %v4225_v7  ;;  %v3587_v7 = vld [vmem:[%s4143_s18 + $0x370] ss:$24 sps:$4 sm:$0xff]  }
 0x13e   : > { %2368 = vmatmul.mubr.bf16.vlgmr.msra.gmra.mrb[4].mxu0 %v4223_v6  ;;  %2293 = vmatpush1.bf16.msra.mxu1 %v3572_v16  ;;  %v3584_v6 = vld [vmem:[%s4143_s18 + $0x668] ss:$24 sps:$4 sm:$0xff]  }
 0x13f   : > { %2379 = vmatpush1.bf16.msra.mxu0 %v3575_v17  ;;  %2294 = vmatprep.subr.bf16.mxu1 %v3580_v18  ;;  %v3665_v16 = vld [vmem:[%s4143_s18 + $0x5e0] ss:$24 sps:$4 sm:$0xff]   ;;  %v3670_v17 = vld [vmem:[%s4143_s18 + $0x614] ss:$24 sps:$4 sm:$0xff]   ;;  %v3668_v18 = vld [vmem:[%s4143_s18 + $0x610] ss:$24 sps:$4 sm:$0xff]  }
 0x140   : > { %2380 = vmatprep.subr.bf16.mxu0 %v3583_v19  ;;  %2324 = vmatprep.mubr.bf16.mxu1 %v4256_v34  ;;  %v3673_v19 = vld [vmem:[%s4143_s18 + $0x644] ss:$24 sps:$4 sm:$0xff]  }
 0x141   : > { %2410 = vmatprep.mubr.bf16.mxu0 %v3740_v24  ;;  %v3679_v24 = vld [vmem:[%s4143_s18 + $0x6a4] ss:$24 sps:$4 sm:$0xff]  }
 0x142   : > { %2295 = vmatpush1.bf16.msra.mxu1 %v3578_v20  ;;  %v3741_v20 = vld [vmem:[#allocation3 + $0x8] ss:$24 sps:$4 sm:$0xff]  }
 0x143   : > { %2381 = vmatpush1.bf16.msra.mxu0 %v3581_v21  ;;  %2296 = vmatprep.subr.bf16.mxu1 %v3586_v22  ;;  %v3671_v21 = vld [vmem:[%s4143_s18 + $0x640] ss:$24 sps:$4 sm:$0xff]   ;;  %v3676_v22 = vld [vmem:[%s4143_s18 + $0x674] ss:$24 sps:$4 sm:$0xff]  }
 0x144   : > { %2382 = vmatprep.subr.bf16.mxu0 %v3589_v23  ;;  %v3674_v23 = vld [vmem:[%s4143_s18 + $0x670] ss:$24 sps:$4 sm:$0xff]  }
 0x146   : > { %2297 = vmatpush1.bf16.msra.mxu1 %v3584_v6  ;;  %v3677_v6 = vld [vmem:[%s4143_s18 + $0x6a0] ss:$24 sps:$4 sm:$0xff]  }
 0x147   : > { %2383 = vmatpush1.bf16.msra.mxu0 %v3587_v7  ;;  %2298 = vmatprep.subr.bf16.mxu1 %v3592_v25  ;;  %v3682_v7 = vld [vmem:[%s4143_s18 + $0x6d4] ss:$24 sps:$4 sm:$0xff]   ;;  %v3680_v25 = vld [vmem:[%s4143_s18 + $0x6d0] ss:$24 sps:$4 sm:$0xff]  }
 0x148   : > { %2384 = vmatprep.subr.bf16.mxu0 %v3595_v48  ;;  %v3685_v48 = vld [vmem:[%s4143_s18 + $0x704] ss:$24 sps:$4 sm:$0xff]  }
 0x14a   : > { %2299 = vmatpush1.bf16.msra.mxu1 %v3590_v49  ;;  %v3688_v49 = vld [vmem:[%s4143_s18 + $0x734] ss:$24 sps:$4 sm:$0xff]  }
 0x14b   : > { %2385 = vmatpush1.bf16.msra.mxu0 %v3593_v26  ;;  %2300 = vmatprep.subr.bf16.mxu1 %v3598_v27 }
 0x14c   : > { %2386 = vmatprep.subr.bf16.mxu0 %v3601_v28  ;;  %v3686_v28 = vld [vmem:[%s4143_s18 + $0x730] ss:$24 sps:$4 sm:$0xff]  }
 0x14e   : > { %2301 = vmatpush1.bf16.msra.mxu1 %v3596_v29 }
 0x14f   : > { %2387 = vmatpush1.bf16.msra.mxu0 %v3599_v30  ;;  %2302 = vmatprep.subr.bf16.mxu1 %v3604_v31  ;;  %v3691_v30 = vld [vmem:[%s4143_s18 + $0x764] ss:$24 sps:$4 sm:$0xff]  }
 0x150   : > { %2388 = vmatprep.subr.bf16.mxu0 %v3607_v32  ;;  %v3689_v32 = vld [vmem:[%s4143_s18 + $0x760] ss:$24 sps:$4 sm:$0xff]  }
 0x152   : > { %2303 = vmatpush1.bf16.msra.mxu1 %v3602_v33  ;;  %v3694_v33 = vld [vmem:[%s4143_s18 + $0x794] ss:$24 sps:$4 sm:$0xff]  }
 0x153   : > { %2389 = vmatpush1.bf16.msra.mxu0 %v3605_v35  ;;  %2304 = vmatprep.subr.bf16.mxu1 %v3610_v36  ;;  %v3692_v35 = vld [vmem:[%s4143_s18 + $0x790] ss:$24 sps:$4 sm:$0xff]   ;;  %v3697_v36 = vld [vmem:[%s4143_s18 + $0x7c4] ss:$24 sps:$4 sm:$0xff]  }
 0x154   : > { %2390 = vmatprep.subr.bf16.mxu0 %v3613_v37  ;;  %v3695_v37 = vld [vmem:[%s4143_s18 + $0x7c0] ss:$24 sps:$4 sm:$0xff]  }
 0x156   : > { %2305 = vmatpush1.bf16.msra.mxu1 %v3608_v38  ;;  %v3700_v38 = vld [vmem:[%s4143_s18 + $0x7f4] ss:$24 sps:$4 sm:$0xff]  }
 0x157   : > { %2391 = vmatpush1.bf16.msra.mxu0 %v3611_v39  ;;  %2306 = vmatprep.subr.bf16.mxu1 %v3616_v40  ;;  %v3698_v39 = vld [vmem:[%s4143_s18 + $0x7f0] ss:$24 sps:$4 sm:$0xff]   ;;  %v3703_v40 = vld [vmem:[%s4143_s18 + $0x824] ss:$24 sps:$4 sm:$0xff]  }
 0x158   : > { %2392 = vmatprep.subr.bf16.mxu0 %v3619_v41  ;;  %v3701_v41 = vld [vmem:[%s4143_s18 + $0x820] ss:$24 sps:$4 sm:$0xff]  }
 0x15a   : > { %2307 = vmatpush1.bf16.msra.mxu1 %v3614_v42  ;;  %v3706_v42 = vld [vmem:[%s4143_s18 + $0x854] ss:$24 sps:$4 sm:$0xff]  }
 0x15b   : > { %2393 = vmatpush1.bf16.msra.mxu0 %v3617_v43  ;;  %2308 = vmatprep.subr.bf16.mxu1 %v3622_v44  ;;  %v3704_v43 = vld [vmem:[%s4143_s18 + $0x850] ss:$24 sps:$4 sm:$0xff]   ;;  %v3709_v44 = vld [vmem:[%s4143_s18 + $0x884] ss:$24 sps:$4 sm:$0xff]  }
 0x15c   : > { %2394 = vmatprep.subr.bf16.mxu0 %v3625_v45  ;;  %v3707_v45 = vld [vmem:[%s4143_s18 + $0x880] ss:$24 sps:$4 sm:$0xff]  }
 0x15e   : > { %2309 = vmatpush1.bf16.msra.mxu1 %v3620_v46  ;;  %v3712_v46 = vld [vmem:[%s4143_s18 + $0x8b4] ss:$24 sps:$4 sm:$0xff]  }
 0x15f   : > { %2395 = vmatpush1.bf16.msra.mxu0 %v3623_v47  ;;  %2310 = vmatprep.subr.bf16.mxu1 %v3628_v50  ;;  %v3710_v47 = vld [vmem:[%s4143_s18 + $0x8b0] ss:$24 sps:$4 sm:$0xff]   ;;  %v3715_v50 = vld [vmem:[%s4143_s18 + $0x8e4] ss:$24 sps:$4 sm:$0xff]  }
 0x160   : > { %2396 = vmatprep.subr.bf16.mxu0 %v3631_v51  ;;  %v3713_v51 = vld [vmem:[%s4143_s18 + $0x8e0] ss:$24 sps:$4 sm:$0xff]  }
 0x162   : > { %2311 = vmatpush1.bf16.msra.mxu1 %v3626_v52  ;;  %v2505_v52 = vlaneseq }
 0x163   : > { %2397 = vmatpush1.bf16.msra.mxu0 %v3629_v53  ;;  %2312 = vmatprep.subr.bf16.mxu1 %v3634_v54 }
 0x164   : > { %2398 = vmatprep.subr.bf16.mxu0 %v3637_v55  ;;  %v4466_v53 = vshrl.u32 %v2505_v52, 7  ;;  %v4469_v55 = vld [vmem:[%s250_s30] sm:$0x3f] }
 0x166   : > { %2313 = vmatpush1.bf16.msra.mxu1 %v3632_v56  ;;  %v2507_v54 = vsub.s32 0, %v4466_v53  ;;  %v2511_v56 = vsub.s32 1, %v4466_v53 }
 0x167   : > { %2399 = vmatpush1.bf16.msra.mxu0 %v3635_v57  ;;  %2314 = vmatprep.subr.bf16.mxu1 %v3640_v58 }
 0x168   : > { %2400 = vmatprep.subr.bf16.mxu0 %v3643_v59  ;;  %v2508_v57 = vrot.slane %v4469_v55, %v2507_v54  ;;  %v2512_v59 = vrot.slane %v4469_v55, %v2511_v56 }
 0x16a   : > { %2315 = vmatpush1.bf16.msra.mxu1 %v3638_v60 }
 0x16b   : > { %2401 = vmatpush1.bf16.msra.mxu0 %v3641_v61  ;;  %2316 = vmatprep.subr.bf16.mxu1 %v3646_v62 }
 0x16c   : > { %2402 = vmatprep.subr.bf16.mxu0 %v3649_v63 }
 0x16e   : > { %2317 = vmatpush1.bf16.msra.mxu1 %v3644_v0 }
 0x16f   : > { %2403 = vmatpush1.bf16.msra.mxu0 %v3647_v1  ;;  %2318 = vmatprep.subr.bf16.mxu1 %v3652_v2 }
 0x170   : > { %2404 = vmatprep.subr.bf16.mxu0 %v3655_v3 }
 0x172   : > { %2319 = vmatpush1.bf16.msra.mxu1 %v3650_v4 }
 0x173   : > { %2405 = vmatpush1.bf16.msra.mxu0 %v3653_v5  ;;  %2320 = vmatprep.subr.bf16.mxu1 %v3658_v8 }
 0x174   : > { %2406 = vmatprep.subr.bf16.mxu0 %v3661_v9 }
 0x176   : > { %2321 = vmatpush1.bf16.msra.mxu1 %v3656_v10 }
 0x177   : > { %2407 = vmatpush1.bf16.msra.mxu0 %v3659_v12  ;;  %2322 = vmatprep.subr.bf16.mxu1 %v3664_v13 }
 0x178   : > { %2408 = vmatprep.subr.bf16.mxu0 %v3667_v14 }
 0x17a   : > { %2323 = vmatpush1.bf16.msra.mxu1 %v3662_v15 }
 0x17b   : > { %2409 = vmatpush1.bf16.msra.mxu0 %v3665_v16 }
 0x17c   : > { %2421 = vmatprep.subr.bf16.mxu0 %v3670_v17 }
 0x17d   : > { %2325 = vmatmul.mubr.bf16.vlgmr.msra.gmra.mrb[4].mxu1 %v4295_v11 }
 0x17e   : > { %2411 = vmatmul.mubr.bf16.vlgmr.msra.gmra.mrb[4].mxu0 %v3741_v20 }
 0x17f   : > { %2422 = vmatpush1.bf16.msra.mxu0 %v3668_v18  ;;  %2453 = vmatprep.mubr.bf16.mxu0 %v4256_v34  ;;  %v3683_v34 = vld [vmem:[%s4143_s18 + $0x700] ss:$24 sps:$4 sm:$0xff]  }
 0x180   : > { %2423 = vmatprep.subr.bf16.mxu0 %v3673_v19 }
 0x183   : > { %2424 = vmatpush1.bf16.msra.mxu0 %v3671_v21 }
 0x184   : > { %2425 = vmatprep.subr.bf16.mxu0 %v3676_v22 }
 0x187   : > { %2426 = vmatpush1.bf16.msra.mxu0 %v3674_v23 }
 0x188   : > { %2427 = vmatprep.subr.bf16.mxu0 %v3679_v24 }
 0x18b   : > { %2428 = vmatpush1.bf16.msra.mxu0 %v3677_v6 }
 0x18c   : > { %2429 = vmatprep.subr.bf16.mxu0 %v3682_v7 }
 0x18f   : > { %2430 = vmatpush1.bf16.msra.mxu0 %v3680_v25 }
 0x190   : > { %2431 = vmatprep.subr.bf16.mxu0 %v3685_v48  ;;  %v2111_v26 = vpop.f32.mrb[0].mxu1 }
 0x191   : > { %v2113_v27 = vpop.f32.mrb[1].mxu1 }
 0x192   : > { %v2115_v29 = vpop.f32.mrb[2].mxu1 }
 0x193   : > { %2432 = vmatpush1.bf16.msra.mxu0 %v3683_v34  ;;  %v2117_v31 = vpop.f32.mrb[3].mxu1 }
 0x194   : > { %2433 = vmatprep.subr.bf16.mxu0 %v3688_v49 }
 0x197   : > { %2434 = vmatpush1.bf16.msra.mxu0 %v3686_v28 }
 0x198   : > { %2435 = vmatprep.subr.bf16.mxu0 %v3691_v30 }
 0x19b   : > { %2436 = vmatpush1.bf16.msra.mxu0 %v3689_v32 }
 0x19c   : > { %2437 = vmatprep.subr.bf16.mxu0 %v3694_v33 }
 0x19f   : > { %2438 = vmatpush1.bf16.msra.mxu0 %v3692_v35 }
 0x1a0   : > { %2439 = vmatprep.subr.bf16.mxu0 %v3697_v36 }
 0x1a3   : > { %2440 = vmatpush1.bf16.msra.mxu0 %v3695_v37 }
 0x1a4   : > { %2441 = vmatprep.subr.bf16.mxu0 %v3700_v38 }
 0x1a7   : > { %2442 = vmatpush1.bf16.msra.mxu0 %v3698_v39 }
 0x1a8   : > { %2443 = vmatprep.subr.bf16.mxu0 %v3703_v40 }
 0x1ab   : > { %2444 = vmatpush1.bf16.msra.mxu0 %v3701_v41 }
 0x1ac   : > { %2445 = vmatprep.subr.bf16.mxu0 %v3706_v42 }
 0x1af   : > { %2446 = vmatpush1.bf16.msra.mxu0 %v3704_v43  ;;  %v2515_v43 = vsub.s32 2, %v4466_v53 }
 0x1b0   : > { %2447 = vmatprep.subr.bf16.mxu0 %v3709_v44  ;;  %v2519_v44 = vsub.s32 3, %v4466_v53 }
 0x1b3   : > { %2448 = vmatpush1.bf16.msra.mxu0 %v3707_v45  ;;  %v2516_v45 = vrot.slane %v4469_v55, %v2515_v43 }
 0x1b4   : > { %2449 = vmatprep.subr.bf16.mxu0 %v3712_v46  ;;  %v2520_v46 = vrot.slane %v4469_v55, %v2519_v44 }
 0x1b7   : > { %2450 = vmatpush1.bf16.msra.mxu0 %v3710_v47 }
 0x1b8   : > { %2451 = vmatprep.subr.bf16.mxu0 %v3715_v50 }
 0x1bb   : > { %2452 = vmatpush1.bf16.msra.mxu0 %v3713_v51 }
 0x1be   : > { %2454 = vmatmul.mubr.bf16.vlgmr.msra.gmra.mrb[4].mxu0 %v4295_v11 }
 0x1d1   : > { %v2197_v58 = vpop.f32.mrb[0].mxu0 }
 0x1d2   : > { %v3162_v60 = vadd.f32 %v2197_v58, %v2111_v26  ;;  %v2199_v61 = vpop.f32.mrb[1].mxu0 }
 0x1d3   : > { %v3163_v62 = vadd.f32 %v2199_v61, %v2113_v27  ;;  %v2201_v11 = vpop.f32.mrb[2].mxu0 }
 0x1d4   : > { %v2535_v63 = vadd.f32 %v3162_v60, %v2508_v57  ;;  %v3164_v0 = vadd.f32 %v2201_v11, %v2115_v29  ;;  %v2203_v1 = vpop.f32.mrb[3].mxu0 }
 0x1d5   : > { %v2536_v2 = vadd.f32 %v3163_v62, %v2512_v59  ;;  %v3165_v3 = vadd.f32 %v2203_v1, %v2117_v31 }
 0x1d6   : > { %v2559_v4 = vmul.f32 0.044715, %v2535_v63  ;;  %v2541_v5 = vadd.f32 %v3164_v0, %v2508_v57  ;;  %v2547_v26 = vmul.f32 0.5, %v2535_v63 }
 0x1d7   : > { %v2560_v8 = vmul.f32 0.044715, %v2536_v2  ;;  %v2542_v9 = vadd.f32 %v3165_v3, %v2512_v59  ;;  %v2548_v29 = vmul.f32 0.5, %v2536_v2 }
 0x1d8   : > { %v2571_v10 = vmul.f32 %v2559_v4, %v2535_v63  ;;  %v2565_v12 = vmul.f32 0.044715, %v2541_v5  ;;  %v2553_v33 = vmul.f32 0.5, %v2541_v5 }
 0x1d9   : > { %v2572_v13 = vmul.f32 %v2560_v8, %v2536_v2  ;;  %v2566_v14 = vmul.f32 0.044715, %v2542_v9  ;;  %v2554_v37 = vmul.f32 0.5, %v2542_v9 }
 0x1da   : > { %v2583_v15 = vmul.f32 %v2571_v10, %v2535_v63  ;;  %v2577_v16 = vmul.f32 %v2565_v12, %v2541_v5 }
 0x1db   : > { %v2584_v17 = vmul.f32 %v2572_v13, %v2536_v2  ;;  %v2578_v18 = vmul.f32 %v2566_v14, %v2542_v9 }
 0x1dc   : > { %v2595_v19 = vadd.f32 %v2583_v15, %v2535_v63  ;;  %v2589_v20 = vmul.f32 %v2577_v16, %v2541_v5 }
 0x1dd   : > { %v2596_v21 = vadd.f32 %v2584_v17, %v2536_v2  ;;  %v2590_v22 = vmul.f32 %v2578_v18, %v2542_v9 }
 0x1de   : > { %v2607_v23 = vmul.f32 0.7978846, %v2595_v19  ;;  %v2601_v24 = vadd.f32 %v2589_v20, %v2541_v5 }
 0x1df   : > { %v2608_v6 = vmul.f32 0.7978846, %v2596_v21  ;;  %v2602_v7 = vadd.f32 %v2590_v22, %v2542_v9 }
 0x1e0   : > { %3716 = vtanh.f32 %v2607_v23  ;;  %v2613_v25 = vmul.f32 0.7978846, %v2601_v24 }
 0x1e1   : > { %3718 = vtanh.f32 %v2608_v6  ;;  %v2614_v48 = vmul.f32 0.7978846, %v2602_v7 }
 0x1e2   : > { %3720 = vtanh.f32 %v2613_v25 }
 0x1e3   : > { %3722 = vtanh.f32 %v2614_v48 }
 0x1ea   : > { %v3717_v34 = vpop.eup %3716 }
 0x1eb   : > { %v3719_v49 = vpop.eup %3718  ;;  %v2631_v27 = vadd.f32 1.0, %v3717_v34 }
 0x1ec   : > { %v3721_v28 = vpop.eup %3720  ;;  %v2632_v30 = vadd.f32 1.0, %v3719_v49 }
 0x1ed   : > { %v3723_v31 = vpop.eup %3722  ;;  %v2643_v32 = vmul.f32 %v2631_v27, %v2547_v26  ;;  %v2637_v35 = vadd.f32 1.0, %v3721_v28 }
 0x1ee   : > { %v2644_v36 = vmul.f32 %v2632_v30, %v2548_v29  ;;  %v2638_v38 = vadd.f32 1.0, %v3723_v31  ;;  %v2523_v30 = vsub.s32 4, %v4466_v53  ;;  %v2527_v31 = vsub.s32 5, %v4466_v53 }
 0x1ef   : > { %v2649_v39 = vmul.f32 %v2637_v35, %v2553_v33 }
 0x1f0   : > { %v3155_v40 = vpack.c.bf16 %v2644_v36, %v2643_v32  ;;  %v2650_v41 = vmul.f32 %v2638_v38, %v2554_v37  ;;  %v2524_v32 = vrot.slane %v4469_v55, %v2523_v30  ;;  %v2528_v33 = vrot.slane %v4469_v55, %v2527_v31 }
 0x1f2   : > { %2691 = vst [vmem:[%s4475_s9] sm:$0xff] %v3155_v40  ;;  %v3158_v42 = vpack.c.bf16 %v2650_v41, %v2649_v39 }
 0x1f4   : > { %2694 = vst [vmem:[%s4475_s9 + $0x18] sm:$0xff] %v3158_v42 }
 0x250   : > { %v2326_v47 = vpop.f32.mrb[4].mxu1 }
 0x251   : > { %v2537_v50 = vadd.f32 %v2516_v45, %v2326_v47  ;;  %v2328_v51 = vpop.f32.mrb[5].mxu1 }
 0x252   : > { %v2538_v52 = vadd.f32 %v2520_v46, %v2328_v51  ;;  %v2330_v54 = vpop.f32.mrb[6].mxu1 }
 0x253   : > { %v2561_v56 = vmul.f32 0.044715, %v2537_v50  ;;  %v2543_v57 = vadd.f32 %v2516_v45, %v2330_v54  ;;  %v2332_v58 = vpop.f32.mrb[7].mxu1  ;;  %v2549_v19 = vmul.f32 0.5, %v2537_v50 }
 0x254   : > { %v2562_v59 = vmul.f32 0.044715, %v2538_v52  ;;  %v2544_v60 = vadd.f32 %v2520_v46, %v2332_v58  ;;  %v2550_v22 = vmul.f32 0.5, %v2538_v52 }
 0x255   : > { %v2573_v61 = vmul.f32 %v2561_v56, %v2537_v50  ;;  %v2567_v62 = vmul.f32 0.044715, %v2543_v57  ;;  %v2555_v7 = vmul.f32 0.5, %v2543_v57 }
 0x256   : > { %v2574_v11 = vmul.f32 %v2562_v59, %v2538_v52  ;;  %v2568_v63 = vmul.f32 0.044715, %v2544_v60  ;;  %v2556_v34 = vmul.f32 0.5, %v2544_v60 }
 0x257   : > { %v2585_v0 = vmul.f32 %v2573_v61, %v2537_v50  ;;  %v2579_v1 = vmul.f32 %v2567_v62, %v2543_v57 }
 0x258   : > { %v2586_v2 = vmul.f32 %v2574_v11, %v2538_v52  ;;  %v2580_v3 = vmul.f32 %v2568_v63, %v2544_v60 }
 0x259   : > { %v2597_v4 = vadd.f32 %v2585_v0, %v2537_v50  ;;  %v2591_v5 = vmul.f32 %v2579_v1, %v2543_v57 }
 0x25a   : > { %v2598_v8 = vadd.f32 %v2586_v2, %v2538_v52  ;;  %v2592_v9 = vmul.f32 %v2580_v3, %v2544_v60 }
 0x25b   : > { %v2609_v10 = vmul.f32 0.7978846, %v2597_v4  ;;  %v2603_v12 = vadd.f32 %v2591_v5, %v2543_v57 }
 0x25c   : > { %v2610_v13 = vmul.f32 0.7978846, %v2598_v8  ;;  %v2604_v14 = vadd.f32 %v2592_v9, %v2544_v60 }
 0x25d   : > { %3724 = vtanh.f32 %v2609_v10  ;;  %v2615_v15 = vmul.f32 0.7978846, %v2603_v12 }
 0x25e   : > { %3726 = vtanh.f32 %v2610_v13  ;;  %v2616_v16 = vmul.f32 0.7978846, %v2604_v14 }
 0x25f   : > { %3728 = vtanh.f32 %v2615_v15 }
 0x260   : > { %3730 = vtanh.f32 %v2616_v16 }
 0x267   : > { %v3725_v17 = vpop.eup %3724 }
 0x268   : > { %v3727_v18 = vpop.eup %3726  ;;  %v2633_v20 = vadd.f32 1.0, %v3725_v17 }
 0x269   : > { %v3729_v21 = vpop.eup %3728  ;;  %v2634_v23 = vadd.f32 1.0, %v3727_v18 }
 0x26a   : > { %v3731_v24 = vpop.eup %3730  ;;  %v2645_v6 = vmul.f32 %v2633_v20, %v2549_v19  ;;  %v2639_v25 = vadd.f32 1.0, %v3729_v21 }
 0x26b   : > { %v2646_v48 = vmul.f32 %v2634_v23, %v2550_v22  ;;  %v2640_v49 = vadd.f32 1.0, %v3731_v24 }
 0x26c   : > { %v2651_v26 = vmul.f32 %v2639_v25, %v2555_v7 }
 0x26d   : > { %v3156_v27 = vpack.c.bf16 %v2646_v48, %v2645_v6  ;;  %v2652_v28 = vmul.f32 %v2640_v49, %v2556_v34 }
 0x26f   : > { %2692 = vst [vmem:[%s4475_s9 + $0x8] sm:$0xff] %v3156_v27  ;;  %v3159_v29 = vpack.c.bf16 %v2652_v28, %v2651_v26 }
 0x271   : > { %2695 = vst [vmem:[%s4475_s9 + $0x20] sm:$0xff] %v3159_v29 }
 0x291   : > { %v2455_v35 = vpop.f32.mrb[4].mxu0 }
 0x292   : > { %v2539_v36 = vadd.f32 %v2524_v32, %v2455_v35  ;;  %v2457_v37 = vpop.f32.mrb[5].mxu0 }
 0x293   : > { %v2540_v38 = vadd.f32 %v2528_v33, %v2457_v37  ;;  %v2459_v39 = vpop.f32.mrb[6].mxu0 }
 0x294   : > { %v2563_v40 = vmul.f32 0.044715, %v2539_v36  ;;  %v2545_v41 = vadd.f32 %v2524_v32, %v2459_v39  ;;  %v2461_v42 = vpop.f32.mrb[7].mxu0  ;;  %v2551_v2 = vmul.f32 0.5, %v2539_v36 }
 0x295   : > { %v2564_v43 = vmul.f32 0.044715, %v2540_v38  ;;  %v2546_v44 = vadd.f32 %v2528_v33, %v2461_v42  ;;  %v2552_v5 = vmul.f32 0.5, %v2540_v38 }
 0x296   : > { %v2575_v45 = vmul.f32 %v2563_v40, %v2539_v36  ;;  %v2569_v46 = vmul.f32 0.044715, %v2545_v41  ;;  %v2557_v12 = vmul.f32 0.5, %v2545_v41 }
 0x297   : > { %v2576_v47 = vmul.f32 %v2564_v43, %v2540_v38  ;;  %v2570_v50 = vmul.f32 0.044715, %v2546_v44  ;;  %v2558_v15 = vmul.f32 0.5, %v2546_v44 }
 0x298   : > { %v2587_v51 = vmul.f32 %v2575_v45, %v2539_v36  ;;  %v2581_v53 = vmul.f32 %v2569_v46, %v2545_v41 }
 0x299   : > { %v2588_v52 = vmul.f32 %v2576_v47, %v2540_v38  ;;  %v2582_v54 = vmul.f32 %v2570_v50, %v2546_v44 }
 0x29a   : > { %v2599_v56 = vadd.f32 %v2587_v51, %v2539_v36  ;;  %v2593_v55 = vmul.f32 %v2581_v53, %v2545_v41 }
 0x29b   : > { %v2600_v57 = vadd.f32 %v2588_v52, %v2540_v38  ;;  %v2594_v58 = vmul.f32 %v2582_v54, %v2546_v44 }
 0x29c   : > { %v2611_v59 = vmul.f32 0.7978846, %v2599_v56  ;;  %v2605_v60 = vadd.f32 %v2593_v55, %v2545_v41 }
 0x29d   : > { %v2612_v61 = vmul.f32 0.7978846, %v2600_v57  ;;  %v2606_v62 = vadd.f32 %v2594_v58, %v2546_v44 }
 0x29e   : > { %3732 = vtanh.f32 %v2611_v59  ;;  %v2617_v11 = vmul.f32 0.7978846, %v2605_v60 }
 0x29f   : > { %3734 = vtanh.f32 %v2612_v61  ;;  %v2618_v63 = vmul.f32 0.7978846, %v2606_v62 }
 0x2a0   : > { %3736 = vtanh.f32 %v2617_v11 }
 0x2a1   : > { %3738 = vtanh.f32 %v2618_v63 }
 0x2a8   : > { %v3733_v0 = vpop.eup %3732 }
 0x2a9   : > { %v3735_v1 = vpop.eup %3734  ;;  %v2635_v3 = vadd.f32 1.0, %v3733_v0 }
 0x2aa   : > { %v3737_v4 = vpop.eup %3736  ;;  %v2636_v8 = vadd.f32 1.0, %v3735_v1 }
 0x2ab   : > { %v3739_v9 = vpop.eup %3738  ;;  %v2647_v10 = vmul.f32 %v2635_v3, %v2551_v2  ;;  %v2641_v13 = vadd.f32 1.0, %v3737_v4 }
 0x2ac   : > { %v2648_v14 = vmul.f32 %v2636_v8, %v2552_v5  ;;  %v2642_v16 = vadd.f32 1.0, %v3739_v9 }
 0x2ad   : > { %v2653_v17 = vmul.f32 %v2641_v13, %v2557_v12 }
 0x2ae   : > { %v3157_v18 = vpack.c.bf16 %v2648_v14, %v2647_v10  ;;  %v2654_v19 = vmul.f32 %v2642_v16, %v2558_v15 }
 0x2b0   : > { %2693 = vst [vmem:[%s4475_s9 + $0x10] sm:$0xff] %v3157_v18  ;;  %v3160_v20 = vpack.c.bf16 %v2654_v19, %v2653_v17 }
 0x2b2   : > { %2696 = vst [vmem:[%s4475_s9 + $0x28] sm:$0xff] %v3160_v20 }
 0x2b3   : > { %3843 = shalt.err (!%p3840_p7)
}
 0x2b4   : > { %s3844_s25 = scalar_lea.hbm %s4494_s8, 768  ;;  %s3848_s1 = scalar_lea.hbm %s4549_s3, 3072 }
 0x2b5   : > { %p3845_p9 = scmp.ne.s32.totalorder %s4494_s8, %s3844_s25  ;;  %p3849_p10 = scmp.lt.u32.totalorder %s4494_s8, %s4549_s3 }
 0x2b6   : > { %p3850_p2 = scmp.lt.u32.totalorder %s3848_s1, %s3844_s25  ;;  %p3852_p3 = scmp.lt.u32.totalorder %s3844_s25, %s4494_s8 }
 0x2b7   : > { %p3846_p12 = pnand %p3845_p9, %p4578_p5 }
 0x2b8   : > { %p3851_p0 = por %p3850_p2, %p3849_p10 }
 0x2b9   : > { %p3847_p6 = pneg %p3846_p12 }
 0x2ba   : > { %p3853_p1 = por %p3852_p3, %p3851_p0 }
 0x2bc   : > { %p3854_p11 = pnand %p3853_p1, %p3847_p6 }
 0x2be   : > { %3857 = shalt.err (!%p3854_p11)
}
 0x2bf   : > { %s3925_s30 = smov 384   ;;  %s3926_s7 = smov 1536  }
 0x2c0   : > { %s3927_s9 = smov 24  }
 0x2c1   : > { %3199 = dma.vmem_to_hbm [thread:$0]  (%p4578_p5), %s4496_s6, 768, %s4494_s8, %s2698_s15, %s3925_s30, %s3926_s7, %s3927_s9  }
 0x2c2 PF: > { %p3219_p13 = scmp.ge.s32.totalorder %s3916_s17, 2  ;;  %s2729_s21 = sand.u32 1, %s3896_s12  }
 0x2c3   : > { %p4579_p8 = scmp.ne.s32.totalorder %s4566_s4, 0  ;;  %s2730_s28 = scalar_lea.sflag [#allocation5], %s2729_s21 }
 0x2c5   : > { %p3213_p4 = pnand %p3219_p13, %p4579_p8 }
 0x2c7   : > { %3891 = dma.done.wait (!%p3213_p4), %s2730_s28, 768  }
 0x2c8   : > { %3893 = vsyncadd (!%p3213_p4), %s2730_s28, 4294966528  ;;  %s20_s17 = sadd.s32 1, %s3916_s17   ;;  %s4580_s29 = sld [smem:[#allocation13_spill]] }
 0x2c9   : > { %p17_p7 = scmp.ge.s32.totalorder %s20_s17, 6   ;;  %s4581_s12 = smov %s3900_s13 }
 0x2ca   : > { %s4582_s13 = smov %s3904_s14  ;;  %s4583_s14 = smov %s3994_s23 }
 0x2cb   : > { %s4584_s15 = smov %s3912_s16  ;;  %19 = sbr.rel (!%p17_p7) target bundleno = 9 (0x9), region = 102 }
 0x2ce   : > { %s4585_s16 = smov %s4580_s29 }
 0x2d2   :  { %2735 = vsyncpa [#allocation4], 1 }
 0x2d3   :  { %2737 = vsyncpa [#allocation4 + $0x1], 1 }
 0x2d4   :  { %2738 = vsyncpa [#allocation7], 1 }
 0x2d5   :  { %2740 = vsyncpa [#allocation7 + $0x1], 1 }
 0x2d6   :  { %2741 = vsyncpa [#allocation5], 1 }
 0x2d7   :  { %2743 = vsyncpa [#allocation5 + $0x1], 1 }

// kernel: bert_classifier_forward.17
= control target key start
LH: loop header
LB: loop body
LE: loop exit
PB: predicated region body
PF: predicated region fallthrough
CT: control target
= control target key end

     0   :  { %s4951_s0 = inlined_call_operand.hbm [shape: bf16[16,3072], index: 0, kind: input, shape index: {}]   ;;  %s4952_s1 = inlined_call_operand.hbm [shape: bf16[3072,768], index: 1, kind: input, shape index: {}]   ;;  %s4953_s2 = inlined_call_operand.hbm [shape: f32[1,768], index: 2, kind: input, shape index: {}]   ;;  %s4954_s3 = inlined_call_operand.hbm [shape: bf16[16,768], index: 3, kind: input, shape index: {}]   ;;  %s4955_s4 = inlined_call_operand.hbm [shape: f32[1,768], index: 4, kind: input, shape index: {}]   ;;  %s4956_s5 = inlined_call_operand.hbm [shape: f32[1,768], index: 5, kind: input, shape index: {}]   ;;  %s4957_s6 = inlined_call_operand.hbm [shape: bf16[16,768], index: 6, kind: output, shape index: {}]  }
   0x1   :  { %4963 = sst [smem:[#allocation21_spill]] %s4951_s0 }
   0x2   :  { %4964 = sst [smem:[#allocation22_spill]] %s4953_s2 }
   0x3   :  { %4965 = sst [smem:[#allocation23_spill]] %s4954_s3 }
   0x4   :  { %4966 = sst [smem:[#allocation24_spill]] %s4955_s4 }
   0x5   :  { %11 = vsyncpa [#allocation4], 0 }
   0x6   :  { %13 = vsyncpa [#allocation4 + $0x1], 0 }
   0x7   :  { %14 = vsyncpa [#allocation7], 0 }
   0x8   :  { %16 = vsyncpa [#allocation7 + $0x1], 0 }
   0x9   :  { %17 = vsyncpa [#allocation10], 0 }
   0xa   :  { %18 = vsyncpa [#allocation13], 0 }
   0xb   :  { %19 = vsyncpa [#allocation5], 0  ;;  %s4259_s21 = smov 0   ;;  %s4261_s22 = smov 0  }
   0xc   :  { %s4263_s23 = smov 0   ;;  %s4265_s24 = smov 0  }
   0xd   :  { %s4267_s25 = smov 0   ;;  %s4269_s26 = smov 0  }
   0xe LB: > { %s4288_s27 = sadd.s32 4294967295, %s4209_s26   ;;  %p59_p0 = scmp.ne.s32.totalorder %s4193_s22, %s4189_s21  ;;  %s4209_s26 = sphi %s4269_s26, %s25_s26   ;;  %s4205_s25 = sphi %s4267_s25, %s4989_s25   ;;  %s4201_s24 = sphi %s4265_s24, %s4988_s24   ;;  %s4197_s23 = sphi %s4263_s23, %s4987_s23   ;;  %s4193_s22 = sphi %s4261_s22, %s4986_s22   ;;  %s4189_s21 = sphi %s4259_s21, %s4985_s21  }
   0xf   : > { %p4958_p1 = scmp.eq.s32.totalorder %s4288_s27, 0  ;;  %p3024_p2 = scmp.ge.s32.totalorder %s4209_s26, 1 }
  0x10   : > { %p211_p3 = scmp.lt.s32.totalorder %s4209_s26, 5  ;;  %s4211_s30 = smov [#allocation8]  }
  0x11   : > { %p4296_p4 = por %p4958_p1, %p59_p0  ;;  %s224_s7 = sshll.u32 %s4211_s30, 4  ;;  %s225_s7 = int_to_ptr.vmem [resolvable:$true] %s224_s7 }
  0x12   : > { %p4300_p5 = pnand %p3024_p2, %p211_p3  ;;  %s4212_s8 = smov [#allocation9]  }
  0x13   : > { %s4967_s28 = scalar_select %p4296_p4, 1, 0 }
  0x14   : > { %s4968_s29 = scalar_select %p4300_p5, 1, 0 }
  0x15   : > { %p3403_p6 = pneg %p4300_p5  ;;  %s238_s9 = sshll.u32 %s4212_s8, 4  ;;  %s4312_s9 = int_to_ptr.vmem [resolvable:$true] %s238_s9 }
  0x16   : > { %s4213_s11 = smov [#allocation11]   ;;  %s4970_s2 = sld [smem:[#allocation22_spill]] }
  0x17   : > { %p4308_p7 = pnand %p3403_p6, %p4958_p1  ;;  %s4314_s12 = sshll.u32 %s4213_s11, 4  ;;  %s253_s12 = int_to_ptr.vmem [resolvable:$true] %s4314_s12 }
  0x19   : > { %p4324_p9 = pneg %p4308_p7 }
  0x1c   : > { %s3941_s15 = scalar_lea.hbm %s4970_s2, 96 }
  0x1d   : > { %p3942_p8 = scmp.ne.s32.totalorder %s4970_s2, %s3941_s15  ;;  %p3948_p12 = scmp.lt.u32.totalorder %s3941_s15, %s4970_s2 }
  0x1f   : > { %p3944_p10 = pnand %p4324_p9, %p3942_p8 }
  0x21   : > { %p3945_p11 = pneg %p3944_p10 }
  0x23   : > { %p3950_p13 = pnand %p3948_p12, %p3945_p11 }
  0x25   : > { %3953 = shalt.err (!%p3950_p13)
}
  0x26   : > { %s3954_s21 = scalar_lea.vmem %s225_s7, 96  ;;  %p3962_p6 = scmp.lt.s32.totalorder %s225_s7, %s225_s7 }
  0x27   : > { %p3955_p0 = scmp.ne.s32.totalorder %s225_s7, %s3954_s21  ;;  %p3963_p1 = scmp.lt.s32.totalorder %s3954_s21, %s3954_s21 }
  0x29   : > { %p3957_p2 = pnand %p3955_p0, %p4324_p9  ;;  %p3964_p4 = por %p3963_p1, %p3962_p6 }
  0x2b   : > { %p3958_p3 = pneg %p3957_p2 }
  0x2d   : > { %p3965_p5 = pnand %p3964_p4, %p3958_p3 }
  0x2f   : > { %3968 = shalt.err (!%p3965_p5)
}
  0x30   : > { %3406 = dma.hbm_to_vmem [thread:$0]  (!%p4308_p7), %s4970_s2, 96, %s225_s7, [#allocation7]  }
  0x31   : > { %s4972_s3 = sld [smem:[#allocation23_spill]] }
  0x37   : > { %s3969_s14 = scalar_lea.hbm %s4972_s3, 768 }
  0x38   : > { %p3970_p8 = scmp.ne.s32.totalorder %s4972_s3, %s3969_s14  ;;  %p3976_p4 = scmp.lt.u32.totalorder %s3969_s14, %s4972_s3 }
  0x3a   : > { %p3972_p10 = pnand %p3970_p8, %p4324_p9 }
  0x3c   : > { %p3973_p1 = pneg %p3972_p10 }
  0x3e   : > { %p3978_p5 = pnand %p3976_p4, %p3973_p1 }
  0x40   : > { %3981 = shalt.err (!%p3978_p5)
}
  0x41   : > { %s3982_s7 = scalar_lea.vmem %s4312_s9, 768  ;;  %p3990_p0 = scmp.lt.s32.totalorder %s4312_s9, %s4312_s9 }
  0x42   : > { %p3983_p11 = scmp.ne.s32.totalorder %s4312_s9, %s3982_s7  ;;  %p3991_p2 = scmp.lt.s32.totalorder %s3982_s7, %s3982_s7 }
  0x44   : > { %p3985_p12 = pnand %p3983_p11, %p4324_p9  ;;  %p3992_p3 = por %p3991_p2, %p3990_p0 }
  0x46   : > { %p3986_p13 = pneg %p3985_p12 }
  0x48   : > { %p3993_p6 = pnand %p3992_p3, %p3986_p13 }
  0x4a   : > { %3996 = shalt.err (!%p3993_p6)
}
  0x4b   : > { %s4961_s20 = smov 384   ;;  %s4215_s21 = smov 24  }
  0x4c   : > { %3409 = dma.hbm_to_vmem [thread:$0]  (!%p4308_p7), %s4972_s3, 768, %s4312_s9, [#allocation10], %s4961_s20, %s4961_s20, %s4215_s21  }
  0x4d   : > { %s4973_s4 = sld [smem:[#allocation24_spill]] }
  0x53   : > { %s3997_s14 = scalar_lea.hbm %s4973_s4, 96 }
  0x54   : > { %p3998_p8 = scmp.ne.s32.totalorder %s4973_s4, %s3997_s14  ;;  %p4004_p4 = scmp.lt.u32.totalorder %s3997_s14, %s4973_s4 }
  0x56   : > { %p4000_p10 = pnand %p3998_p8, %p4324_p9 }
  0x58   : > { %p4001_p1 = pneg %p4000_p10 }
  0x5a   : > { %p4006_p5 = pnand %p4004_p4, %p4001_p1 }
  0x5c   : > { %4009 = shalt.err (!%p4006_p5)
}
  0x5d   : > { %s4010_s7 = scalar_lea.vmem %s253_s12, 96  ;;  %p4018_p0 = scmp.lt.s32.totalorder %s253_s12, %s253_s12 }
  0x5e   : > { %p4011_p11 = scmp.ne.s32.totalorder %s253_s12, %s4010_s7  ;;  %p4019_p2 = scmp.lt.s32.totalorder %s4010_s7, %s4010_s7 }
  0x60   : > { %p4013_p12 = pnand %p4011_p11, %p4324_p9  ;;  %p4020_p3 = por %p4019_p2, %p4018_p0 }
  0x62   : > { %p4014_p13 = pneg %p4013_p12 }
  0x64   : > { %p4021_p6 = pnand %p4020_p3, %p4014_p13 }
  0x66   : > { %4024 = shalt.err (!%p4021_p6)
}
  0x67   : > { %3412 = dma.hbm_to_vmem [thread:$0]  (!%p4308_p7), %s4973_s4, 96, %s253_s12, [#allocation10]  }
  0x68   : > { %s4216_s8 = smov [#allocation12]   ;;  %s4025_s15 = scalar_lea.hbm %s4956_s5, 96 }
  0x69   : > { %s263_s11 = sshll.u32 %s4216_s8, 4  ;;  %p4026_p8 = scmp.ne.s32.totalorder %s4956_s5, %s4025_s15  ;;  %s264_s11 = int_to_ptr.vmem [resolvable:$true] %s263_s11 }
  0x6a   : > { %p4032_p4 = scmp.lt.u32.totalorder %s4025_s15, %s4956_s5 }
  0x6b   : > { %p4028_p10 = pnand %p4026_p8, %p4324_p9 }
  0x6d   : > { %p4029_p1 = pneg %p4028_p10 }
  0x6f   : > { %p4034_p5 = pnand %p4032_p4, %p4029_p1 }
  0x71   : > { %4037 = shalt.err (!%p4034_p5)
}
  0x72   : > { %s4038_s12 = scalar_lea.vmem %s264_s11, 96  ;;  %p4046_p0 = scmp.lt.s32.totalorder %s264_s11, %s264_s11 }
  0x73   : > { %p4039_p11 = scmp.ne.s32.totalorder %s264_s11, %s4038_s12  ;;  %p4047_p2 = scmp.lt.s32.totalorder %s4038_s12, %s4038_s12 }
  0x75   : > { %p4041_p12 = pnand %p4039_p11, %p4324_p9  ;;  %p4048_p3 = por %p4047_p2, %p4046_p0 }
  0x77   : > { %p4042_p13 = pneg %p4041_p12 }
  0x79   : > { %p4049_p6 = pnand %p4048_p3, %p4042_p13 }
  0x7b   : > { %4052 = shalt.err (!%p4049_p6)
}
  0x7c   : > { %3415 = dma.hbm_to_vmem [thread:$0]  (!%p4308_p7), %s4956_s5, 96, %s264_s11, [#allocation13]  }
  0x7d   : > { %s34_s18 = sadd.s32 1, %s4205_s25  ;;  %s46_s8 = sadd.s32 1, %s4197_s23 }
  0x7e   : > { %p35_p9 = scmp.ge.s32.totalorder %s34_s18, 4  ;;  %p53_p8 = scmp.ne.s32.totalorder %s4197_s23, %s4193_s22 }
  0x7f   : > { %p54_p10 = scmp.eq.s32.totalorder %s4209_s26, 0  ;;  %p3427_p1 = scmp.lt.s32.totalorder %s4209_s26, 4 }
  0x80   : > { %s4991_s18 = smov (%p35_p9, %s34_s18), 0  ;;  %s4412_s10 = sand.u32 1, %s4197_s23  }
  0x81   : > { %p55_p4 = por %p54_p10, %p53_p8  ;;  %s42_s13 = ssub.s32 %s4205_s25, %s4991_s18 }
  0x82   : > { %p44_p5 = scmp.eq.s32.totalorder %s42_s13, 0  ;;  %s3374_s14 = smul.u32 48, %s4412_s10 }
  0x83   : > { %s3343_s15 = smul.u32 384, %s4205_s25  ;;  %p4418_p11 = pnand %p3427_p1, %p55_p4 }
  0x84   : > { %s4423_s16 = scalar_select %p44_p5, %s4197_s23, %s46_s8  }
  0x85   : > { %s4975_s0 = sld [smem:[#allocation21_spill]]  ;;  %s278_s12 = scalar_lea.vmem [#allocation3], %s3374_s14 }
  0x86   : > { %s288_s9 = sshll.u32 %s278_s12, 4  ;;  %s275_s30 = scalar_lea.sflag [#allocation4], %s4412_s10  ;;  %s4430_s9 = int_to_ptr.vmem [resolvable:$true] %s288_s9 }
  0x87   : > { %p4055_p12 = pneg %p4418_p11 }
  0x8b   : > { %s4428_s7 = scalar_lea.hbm %s4975_s0, %s3343_s15  ;;  %s4058_s17 = scalar_lea.hbm %s4975_s0, 3072 }
  0x8c   : > { %s4053_s13 = scalar_lea.hbm %s4428_s7, 768  ;;  %p4059_p2 = scmp.lt.u32.totalorder %s4428_s7, %s4975_s0 }
  0x8d   : > { %p4054_p7 = scmp.ne.s32.totalorder %s4428_s7, %s4053_s13  ;;  %p4060_p3 = scmp.lt.u32.totalorder %s4058_s17, %s4053_s13 }
  0x8e   : > { %p4062_p9 = scmp.lt.u32.totalorder %s4053_s13, %s4428_s7 }
  0x8f   : > { %p4056_p13 = pnand %p4055_p12, %p4054_p7  ;;  %p4061_p6 = por %p4060_p3, %p4059_p2 }
  0x91   : > { %p4057_p0 = pneg %p4056_p13  ;;  %p4063_p8 = por %p4062_p9, %p4061_p6 }
  0x93   : > { %p4064_p10 = pnand %p4063_p8, %p4057_p0 }
  0x95   : > { %4067 = shalt.err (!%p4064_p10)
}
  0x96   : > { %s4068_s14 = scalar_lea.vmem %s4430_s9, 768  ;;  %s4217_s12 = smov [#allocation3]  }
  0x97   : > { %p4069_p1 = scmp.ne.s32.totalorder %s4430_s9, %s4068_s14  ;;  %s4073_s8 = sshll.u32 %s4217_s12, 4  ;;  %s4074_s8 = int_to_ptr.vmem [resolvable:$false] %s4073_s8 }
  0x98   : > { %s4075_s20 = scalar_lea.vmem %s4074_s8, 1536  ;;  %p4076_p7 = scmp.lt.s32.totalorder %s4430_s9, %s4074_s8 }
  0x99   : > { %p4071_p4 = pnand %p4069_p1, %p4055_p12  ;;  %p4077_p13 = scmp.lt.s32.totalorder %s4075_s20, %s4068_s14 }
  0x9b   : > { %p4072_p5 = pneg %p4071_p4  ;;  %p4078_p2 = por %p4077_p13, %p4076_p7 }
  0x9d   : > { %p4079_p3 = pnand %p4078_p2, %p4072_p5 }
  0x9f   : > { %4082 = shalt.err (!%p4079_p3)
}
  0xa0   : > { %s4218_s13 = smov 1536   ;;  %s4976_s15 = smov 384  }
  0xa1   : > { %3419 = dma.hbm_to_vmem [thread:$0]  (!%p4418_p11), %s4428_s7, 768, %s4430_s9, %s275_s30, %s4218_s13, %s4976_s15, %s4215_s21  }
  0xa2   : > { %s298_s17 = sand.u32 1, %s4209_s26   ;;  %s3375_s19 = smul.u32 2304, %s4412_s10 }
  0xa3   : > { %s3428_s14 = smul.u32 36864, %s4205_s25  ;;  %s4472_s3 = scalar_lea.sflag [#allocation7], %s298_s17 }
  0xa4   : > { %s302_s0 = scalar_lea.vmem [#allocation6], %s3375_s19  ;;  %s4088_s9 = scalar_lea.hbm %s4952_s1, 147456 }
  0xa5   : > { %s4468_s20 = scalar_lea.hbm %s4952_s1, %s3428_s14  ;;  %s310_s2 = sshll.u32 %s302_s0, 4  ;;  %s4470_s2 = int_to_ptr.vmem [resolvable:$true] %s310_s2 }
  0xa6   : > { %s4083_s4 = scalar_lea.hbm %s4468_s20, 36864  ;;  %p4089_p8 = scmp.lt.u32.totalorder %s4468_s20, %s4952_s1 }
  0xa7   : > { %p4084_p0 = scmp.ne.s32.totalorder %s4468_s20, %s4083_s4  ;;  %p4090_p10 = scmp.lt.u32.totalorder %s4088_s9, %s4083_s4 }
  0xa8   : > { %p4092_p4 = scmp.lt.u32.totalorder %s4083_s4, %s4468_s20 }
  0xa9   : > { %p4086_p6 = pnand %p4084_p0, %p4055_p12  ;;  %p4091_p1 = por %p4090_p10, %p4089_p8 }
  0xab   : > { %p4087_p9 = pneg %p4086_p6  ;;  %p4093_p5 = por %p4092_p4, %p4091_p1 }
  0xad   : > { %p4094_p7 = pnand %p4093_p5, %p4087_p9 }
  0xaf   : > { %4097 = shalt.err (!%p4094_p7)
}
  0xb0   : > { %s4098_s0 = scalar_lea.vmem %s4470_s2, 36864  ;;  %s4219_s17 = smov [#allocation6]  }
  0xb1   : > { %p4099_p13 = scmp.ne.s32.totalorder %s4470_s2, %s4098_s0  ;;  %s4103_s19 = sshll.u32 %s4219_s17, 4  ;;  %s4104_s19 = int_to_ptr.vmem [resolvable:$false] %s4103_s19 }
  0xb2   : > { %s4105_s14 = scalar_lea.vmem %s4104_s19, 73728  ;;  %p4106_p0 = scmp.lt.s32.totalorder %s4470_s2, %s4104_s19 }
  0xb3   : > { %p4101_p2 = pnand %p4099_p13, %p4055_p12  ;;  %p4107_p6 = scmp.lt.s32.totalorder %s4105_s14, %s4098_s0 }
  0xb5   : > { %p4102_p3 = pneg %p4101_p2  ;;  %p4108_p8 = por %p4107_p6, %p4106_p0 }
  0xb7   : > { %p4109_p10 = pnand %p4108_p8, %p4102_p3 }
  0xb9   : > { %4112 = shalt.err (!%p4109_p10)
}
  0xba   : > { %3422 = dma.hbm_to_vmem [thread:$0]  (!%p4418_p11), %s4468_s20, 36864, %s4470_s2, %s4472_s3, %s4976_s15, %s4976_s15, %s4215_s21  }
  0xbb   : > { %p4977_p12 = scmp.ne.s32.totalorder %s4968_s29, 0 }
  0xbc   : > { %s324_s4 = sand.u32 (!%p4977_p12), 1, %s4193_s22   ;;  %p4978_p9 = scmp.ne.s32.totalorder (!%p4977_p12), %s4967_s28, 0 }
  0xbd   : > { %322 = sbr.rel (%p4977_p12) target bundleno = 1129 (0x469), region = 44  ;;  %s325_s8 = scalar_lea.sflag (!%p4977_p12), [#allocation4], %s324_s4 }
  0xbe   : > { %s3377_s12 = smul.u32 (!%p4977_p12), 48, %s324_s4 }
  0xc0   : > { %s4504_s10 = scalar_lea.vmem (!%p4977_p12), [#allocation3], %s3377_s12 }
  0xc4   : > { %4164 = dma.done.wait (%p4978_p9), %s325_s8, 768  }
  0xc5   : > { %4166 = vsyncadd (%p4978_p9), %s325_s8, 4294966528  ;;  %s333_s11 = sand.u32 1, %s4288_s27   ;;  %s3378_s7 = smul.u32 2304, %s324_s4 }
  0xc6   : > { %s334_s2 = scalar_lea.sflag [#allocation7], %s333_s11 }
  0xc7   : > { %s4511_s3 = scalar_lea.vmem [#allocation6], %s3378_s7 }
  0xc8   : > { %4168 = dma.done.wait (%p4978_p9), %s334_s2, 36864  }
  0xc9   : > { %4170 = vsyncadd (%p4978_p9), %s334_s2, 4294930432  ;;  %p4979_p11 = scmp.eq.s32.totalorder %s4288_s27, 0 }
  0xcb   : > { %4172 = dma.done.wait (%p4979_p11), [#allocation7], 96   ;;  %p4980_p1 = pmov %p4979_p11 }
  0xcd   : > { %4174 = vsyncadd (%p4980_p1), [#allocation7], 4294967200  ;;  %p4981_p4 = pmov %p4980_p1 }
  0xce   : > { %p4982_p5 = pmov %p4980_p1 }
  0xcf   : > { %4176 = dma.done.wait (%p4981_p4), [#allocation10], 864  }
  0xd0   : > { %4178 = vsyncadd (%p4982_p5), [#allocation10], 4294966432  ;;  %p4983_p7 = pmov %p4980_p1 }
  0xd1   : > { %p4984_p13 = pmov %p4980_p1 }
  0xd2   : > { %4180 = dma.done.wait (%p4983_p7), [#allocation13], 96  }
  0xd3   : > { %4182 = vsyncadd (%p4984_p13), [#allocation13], 4294967200  ;;  %p3037_p2 = scmp.ne.s32.totalorder %s4201_s24, 0 }
  0xd4   : > { %v4220_v0 = vmov (!%p3037_p2), 0.0  }
  0xd5   : > { %390 = sbr.rel (%p3037_p2) target bundleno = 220 (0xdc), region = 72  ;;  %391 = vst [vmem:[#allocation2] sm:$0xff] (!%p3037_p2), %v4220_v0  ;;  %392 = vst [vmem:[#allocation2 + $0x8] sm:$0xff] (!%p3037_p2), %v4220_v0 }
  0xd6   : > { %393 = vst [vmem:[#allocation2 + $0x10] sm:$0xff] (!%p3037_p2), %v4220_v0  ;;  %394 = vst [vmem:[#allocation2 + $0x18] sm:$0xff] (!%p3037_p2), %v4220_v0 }
  0xd7   : > { %395 = vst [vmem:[#allocation2 + $0x20] sm:$0xff] (!%p3037_p2), %v4220_v0  ;;  %396 = vst [vmem:[#allocation2 + $0x28] sm:$0xff] (!%p3037_p2), %v4220_v0 }
  0xd8   : > { %397 = vst [vmem:[#allocation2 + $0x30] sm:$0xff] (!%p3037_p2), %v4220_v0  ;;  %398 = vst [vmem:[#allocation2 + $0x38] sm:$0xff] (!%p3037_p2), %v4220_v0 }
  0xd9   : > { %399 = vst [vmem:[#allocation2 + $0x40] sm:$0xff] (!%p3037_p2), %v4220_v0  ;;  %400 = vst [vmem:[#allocation2 + $0x48] sm:$0xff] (!%p3037_p2), %v4220_v0 }
  0xda   : > { %401 = vst [vmem:[#allocation2 + $0x50] sm:$0xff] (!%p3037_p2), %v4220_v0  ;;  %402 = vst [vmem:[#allocation2 + $0x58] sm:$0xff] (!%p3037_p2), %v4220_v0 }
  0xdc PF: > { %v3494_v1 = vld [vmem:[%s4511_s3 + $0x4] ss:$24 sps:$4 sm:$0xff]   ;;  %v3498_v3 = vld [vmem:[%s4511_s3] ss:$24 sps:$4 sm:$0xff]   ;;  %v3500_v5 = vld [vmem:[%s4511_s3 + $0x34] ss:$24 sps:$4 sm:$0xff]  }
  0xdd   : > { %v3496_v2 = vld [vmem:[%s4511_s3 + $0x304] ss:$24 sps:$4 sm:$0xff]   ;;  %2179 = vmatprep.subr.bf16.mxu1 %v3494_v1  ;;  %v3499_v4 = vld [vmem:[%s4511_s3 + $0x300] ss:$24 sps:$4 sm:$0xff]   ;;  %v3502_v6 = vld [vmem:[%s4511_s3 + $0x334] ss:$24 sps:$4 sm:$0xff]  }
  0xde   : > { %2222 = vmatprep.subr.bf16.mxu0 %v3496_v2  ;;  %2180 = vmatpush1.bf16.msra.mxu1 %v3498_v3  ;;  %v3504_v7 = vld [vmem:[%s4511_s3 + $0x30] ss:$24 sps:$4 sm:$0xff]   ;;  %v3506_v9 = vld [vmem:[%s4511_s3 + $0x64] ss:$24 sps:$4 sm:$0xff]   ;;  %v3510_v11 = vld [vmem:[%s4511_s3 + $0x60] ss:$24 sps:$4 sm:$0xff]  }
  0xdf   : > { %2223 = vmatpush1.bf16.msra.mxu0 %v3499_v4  ;;  %2181 = vmatprep.subr.bf16.mxu1 %v3500_v5  ;;  %v3505_v8 = vld [vmem:[%s4511_s3 + $0x330] ss:$24 sps:$4 sm:$0xff]   ;;  %v3508_v10 = vld [vmem:[%s4511_s3 + $0x364] ss:$24 sps:$4 sm:$0xff]   ;;  %v3511_v12 = vld [vmem:[%s4511_s3 + $0x360] ss:$24 sps:$4 sm:$0xff]  }
  0xe0   : > { %2224 = vmatprep.subr.bf16.mxu0 %v3502_v6  ;;  %v3512_v13 = vld [vmem:[%s4511_s3 + $0x94] ss:$24 sps:$4 sm:$0xff]   ;;  %v3516_v15 = vld [vmem:[%s4511_s3 + $0x90] ss:$24 sps:$4 sm:$0xff]   ;;  %v3518_v17 = vld [vmem:[%s4511_s3 + $0xc4] ss:$24 sps:$4 sm:$0xff]  }
  0xe1   : > { %v3514_v14 = vld [vmem:[%s4511_s3 + $0x394] ss:$24 sps:$4 sm:$0xff]   ;;  %v3517_v16 = vld [vmem:[%s4511_s3 + $0x390] ss:$24 sps:$4 sm:$0xff]   ;;  %v3520_v18 = vld [vmem:[%s4511_s3 + $0x3c4] ss:$24 sps:$4 sm:$0xff]  }
  0xe2   : > { %2182 = vmatpush1.bf16.msra.mxu1 %v3504_v7  ;;  %v3522_v19 = vld [vmem:[%s4511_s3 + $0xc0] ss:$24 sps:$4 sm:$0xff]   ;;  %v3524_v21 = vld [vmem:[%s4511_s3 + $0xf4] ss:$24 sps:$4 sm:$0xff]   ;;  %v3528_v23 = vld [vmem:[%s4511_s3 + $0xf0] ss:$24 sps:$4 sm:$0xff]  }
  0xe3   : > { %2225 = vmatpush1.bf16.msra.mxu0 %v3505_v8  ;;  %2183 = vmatprep.subr.bf16.mxu1 %v3506_v9  ;;  %v3523_v20 = vld [vmem:[%s4511_s3 + $0x3c0] ss:$24 sps:$4 sm:$0xff]   ;;  %v3526_v22 = vld [vmem:[%s4511_s3 + $0x3f4] ss:$24 sps:$4 sm:$0xff]   ;;  %v3529_v24 = vld [vmem:[%s4511_s3 + $0x3f0] ss:$24 sps:$4 sm:$0xff]  }
  0xe4   : > { %2226 = vmatprep.subr.bf16.mxu0 %v3508_v10  ;;  %v3530_v25 = vld [vmem:[%s4511_s3 + $0x124] ss:$24 sps:$4 sm:$0xff]   ;;  %v3534_v27 = vld [vmem:[%s4511_s3 + $0x120] ss:$24 sps:$4 sm:$0xff]   ;;  %v3536_v29 = vld [vmem:[%s4511_s3 + $0x154] ss:$24 sps:$4 sm:$0xff]  }
  0xe5   : > { %v3532_v26 = vld [vmem:[%s4511_s3 + $0x424] ss:$24 sps:$4 sm:$0xff]   ;;  %v3535_v28 = vld [vmem:[%s4511_s3 + $0x420] ss:$24 sps:$4 sm:$0xff]   ;;  %v3538_v30 = vld [vmem:[%s4511_s3 + $0x454] ss:$24 sps:$4 sm:$0xff]  }
  0xe6   : > { %2184 = vmatpush1.bf16.msra.mxu1 %v3510_v11  ;;  %v3540_v31 = vld [vmem:[%s4511_s3 + $0x150] ss:$24 sps:$4 sm:$0xff]   ;;  %v3542_v33 = vld [vmem:[%s4511_s3 + $0x184] ss:$24 sps:$4 sm:$0xff]   ;;  %v3546_v35 = vld [vmem:[%s4511_s3 + $0x180] ss:$24 sps:$4 sm:$0xff]  }
  0xe7   : > { %2227 = vmatpush1.bf16.msra.mxu0 %v3511_v12  ;;  %2185 = vmatprep.subr.bf16.mxu1 %v3512_v13  ;;  %v3541_v32 = vld [vmem:[%s4511_s3 + $0x450] ss:$24 sps:$4 sm:$0xff]   ;;  %v3544_v34 = vld [vmem:[%s4511_s3 + $0x484] ss:$24 sps:$4 sm:$0xff]   ;;  %v3547_v36 = vld [vmem:[%s4511_s3 + $0x480] ss:$24 sps:$4 sm:$0xff]  }
  0xe8   : > { %2228 = vmatprep.subr.bf16.mxu0 %v3514_v14  ;;  %v3548_v37 = vld [vmem:[%s4511_s3 + $0x1b4] ss:$24 sps:$4 sm:$0xff]   ;;  %v3552_v39 = vld [vmem:[%s4511_s3 + $0x1b0] ss:$24 sps:$4 sm:$0xff]   ;;  %v3554_v41 = vld [vmem:[%s4511_s3 + $0x1e4] ss:$24 sps:$4 sm:$0xff]  }
  0xe9   : > { %v3550_v38 = vld [vmem:[%s4511_s3 + $0x4b4] ss:$24 sps:$4 sm:$0xff]   ;;  %v3553_v40 = vld [vmem:[%s4511_s3 + $0x4b0] ss:$24 sps:$4 sm:$0xff]   ;;  %v3556_v42 = vld [vmem:[%s4511_s3 + $0x4e4] ss:$24 sps:$4 sm:$0xff]  }
  0xea   : > { %2186 = vmatpush1.bf16.msra.mxu1 %v3516_v15  ;;  %v3558_v43 = vld [vmem:[%s4511_s3 + $0x1e0] ss:$24 sps:$4 sm:$0xff]   ;;  %v3560_v45 = vld [vmem:[%s4511_s3 + $0x214] ss:$24 sps:$4 sm:$0xff]   ;;  %v3564_v47 = vld [vmem:[%s4511_s3 + $0x210] ss:$24 sps:$4 sm:$0xff]  }
  0xeb   : > { %2229 = vmatpush1.bf16.msra.mxu0 %v3517_v16  ;;  %2187 = vmatprep.subr.bf16.mxu1 %v3518_v17  ;;  %v3559_v44 = vld [vmem:[%s4511_s3 + $0x4e0] ss:$24 sps:$4 sm:$0xff]   ;;  %v3562_v46 = vld [vmem:[%s4511_s3 + $0x514] ss:$24 sps:$4 sm:$0xff]   ;;  %v3565_v48 = vld [vmem:[%s4511_s3 + $0x510] ss:$24 sps:$4 sm:$0xff]  }
  0xec   : > { %2230 = vmatprep.subr.bf16.mxu0 %v3520_v18  ;;  %v4579_v49 = vld [vmem:[%s4504_s10 + $0x4] ss:$24 sps:$4 sm:$0xff]   ;;  %v3570_v53 = vld [vmem:[%s4511_s3 + $0x240] ss:$24 sps:$4 sm:$0xff]   ;;  %v3576_v57 = vld [vmem:[%s4511_s3 + $0x270] ss:$24 sps:$4 sm:$0xff]  }
  0xed   : > { %v4582_v50 = vld [vmem:[%s4504_s10 + $0xc] ss:$24 sps:$4 sm:$0xff]   ;;  %2211 = vmatprep.mubr.bf16.mxu1 %v4579_v49  ;;  %v3571_v54 = vld [vmem:[%s4511_s3 + $0x540] ss:$24 sps:$4 sm:$0xff]   ;;  %v3577_v58 = vld [vmem:[%s4511_s3 + $0x570] ss:$24 sps:$4 sm:$0xff]  }
  0xee   : > { %2188 = vmatpush1.bf16.msra.mxu1 %v3522_v19  ;;  %v3566_v51 = vld [vmem:[%s4511_s3 + $0x244] ss:$24 sps:$4 sm:$0xff]   ;;  %2254 = vmatprep.mubr.bf16.mxu0 %v4582_v50  ;;  %v3572_v55 = vld [vmem:[%s4511_s3 + $0x274] ss:$24 sps:$4 sm:$0xff]   ;;  %v3582_v61 = vld [vmem:[%s4511_s3 + $0x2a0] ss:$24 sps:$4 sm:$0xff]  }
  0xef   : > { %2231 = vmatpush1.bf16.msra.mxu0 %v3523_v20  ;;  %2189 = vmatprep.subr.bf16.mxu1 %v3524_v21  ;;  %v3568_v52 = vld [vmem:[%s4511_s3 + $0x544] ss:$24 sps:$4 sm:$0xff]   ;;  %v3574_v56 = vld [vmem:[%s4511_s3 + $0x574] ss:$24 sps:$4 sm:$0xff]   ;;  %v3583_v62 = vld [vmem:[%s4511_s3 + $0x5a0] ss:$24 sps:$4 sm:$0xff]  }
  0xf0   : > { %2232 = vmatprep.subr.bf16.mxu0 %v3526_v22  ;;  %v3578_v59 = vld [vmem:[%s4511_s3 + $0x2a4] ss:$24 sps:$4 sm:$0xff]   ;;  %v3584_v63 = vld [vmem:[%s4511_s3 + $0x2d4] ss:$24 sps:$4 sm:$0xff]   ;;  %v3588_v1 = vld [vmem:[%s4511_s3 + $0x2d0] ss:$24 sps:$4 sm:$0xff]  }
  0xf1   : > { %v3580_v60 = vld [vmem:[%s4511_s3 + $0x5a4] ss:$24 sps:$4 sm:$0xff]   ;;  %v3586_v0 = vld [vmem:[%s4511_s3 + $0x5d4] ss:$24 sps:$4 sm:$0xff]   ;;  %v3589_v2 = vld [vmem:[%s4511_s3 + $0x5d0] ss:$24 sps:$4 sm:$0xff]  }
  0xf2   : > { %2190 = vmatpush1.bf16.msra.mxu1 %v3528_v23  ;;  %v3596_v3 = vld [vmem:[%s4511_s3 + $0x604] ss:$24 sps:$4 sm:$0xff]   ;;  %v3594_v5 = vld [vmem:[%s4511_s3 + $0x600] ss:$24 sps:$4 sm:$0xff]   ;;  %v3604_v9 = vld [vmem:[%s4511_s3 + $0x634] ss:$24 sps:$4 sm:$0xff]  }
  0xf3   : > { %2233 = vmatpush1.bf16.msra.mxu0 %v3529_v24  ;;  %2191 = vmatprep.subr.bf16.mxu1 %v3530_v25  ;;  %v3599_v4 = vld [vmem:[%s4511_s3 + $0xc] ss:$24 sps:$4 sm:$0xff]   ;;  %v3597_v6 = vld [vmem:[%s4511_s3 + $0x8] ss:$24 sps:$4 sm:$0xff]   ;;  %v3607_v10 = vld [vmem:[%s4511_s3 + $0x3c] ss:$24 sps:$4 sm:$0xff]  }
  0xf4   : > { %2234 = vmatprep.subr.bf16.mxu0 %v3532_v26  ;;  %v4607_v7 = vld [vmem:[%s4504_s10] ss:$24 sps:$4 sm:$0xff]   ;;  %v3610_v13 = vld [vmem:[%s4511_s3 + $0x664] ss:$24 sps:$4 sm:$0xff]   ;;  %v3616_v17 = vld [vmem:[%s4511_s3 + $0x694] ss:$24 sps:$4 sm:$0xff]  }
  0xf5   : > { %v4610_v8 = vld [vmem:[%s4504_s10 + $0x8] ss:$24 sps:$4 sm:$0xff]   ;;  %v3613_v14 = vld [vmem:[%s4511_s3 + $0x6c] ss:$24 sps:$4 sm:$0xff]   ;;  %v3619_v18 = vld [vmem:[%s4511_s3 + $0x9c] ss:$24 sps:$4 sm:$0xff]  }
  0xf6   : > { %2192 = vmatpush1.bf16.msra.mxu1 %v3534_v27  ;;  %v3602_v11 = vld [vmem:[%s4511_s3 + $0x630] ss:$24 sps:$4 sm:$0xff]   ;;  %v3608_v15 = vld [vmem:[%s4511_s3 + $0x660] ss:$24 sps:$4 sm:$0xff]   ;;  %v3622_v21 = vld [vmem:[%s4511_s3 + $0x6c4] ss:$24 sps:$4 sm:$0xff]  }
  0xf7   : > { %2235 = vmatpush1.bf16.msra.mxu0 %v3535_v28  ;;  %2193 = vmatprep.subr.bf16.mxu1 %v3536_v29  ;;  %v3605_v12 = vld [vmem:[%s4511_s3 + $0x38] ss:$24 sps:$4 sm:$0xff]   ;;  %v3611_v16 = vld [vmem:[%s4511_s3 + $0x68] ss:$24 sps:$4 sm:$0xff]   ;;  %v3625_v22 = vld [vmem:[%s4511_s3 + $0xcc] ss:$24 sps:$4 sm:$0xff]  }
  0xf8   : > { %2236 = vmatprep.subr.bf16.mxu0 %v3538_v30  ;;  %v3614_v19 = vld [vmem:[%s4511_s3 + $0x690] ss:$24 sps:$4 sm:$0xff]   ;;  %v3620_v23 = vld [vmem:[%s4511_s3 + $0x6c0] ss:$24 sps:$4 sm:$0xff]   ;;  %v3628_v25 = vld [vmem:[%s4511_s3 + $0x6f4] ss:$24 sps:$4 sm:$0xff]  }
  0xf9   : > { %v3617_v20 = vld [vmem:[%s4511_s3 + $0x98] ss:$24 sps:$4 sm:$0xff]   ;;  %v3623_v24 = vld [vmem:[%s4511_s3 + $0xc8] ss:$24 sps:$4 sm:$0xff]   ;;  %v3631_v26 = vld [vmem:[%s4511_s3 + $0xfc] ss:$24 sps:$4 sm:$0xff]  }
  0xfa   : > { %2194 = vmatpush1.bf16.msra.mxu1 %v3540_v31  ;;  %v3626_v27 = vld [vmem:[%s4511_s3 + $0x6f0] ss:$24 sps:$4 sm:$0xff]   ;;  %v3634_v29 = vld [vmem:[%s4511_s3 + $0x724] ss:$24 sps:$4 sm:$0xff]   ;;  %v3632_v31 = vld [vmem:[%s4511_s3 + $0x720] ss:$24 sps:$4 sm:$0xff]  }
  0xfb   : > { %2237 = vmatpush1.bf16.msra.mxu0 %v3541_v32  ;;  %2195 = vmatprep.subr.bf16.mxu1 %v3542_v33  ;;  %v3629_v28 = vld [vmem:[%s4511_s3 + $0xf8] ss:$24 sps:$4 sm:$0xff]   ;;  %v3637_v30 = vld [vmem:[%s4511_s3 + $0x12c] ss:$24 sps:$4 sm:$0xff]   ;;  %v3635_v32 = vld [vmem:[%s4511_s3 + $0x128] ss:$24 sps:$4 sm:$0xff]  }
  0xfc   : > { %2238 = vmatprep.subr.bf16.mxu0 %v3544_v34  ;;  %v3640_v33 = vld [vmem:[%s4511_s3 + $0x754] ss:$24 sps:$4 sm:$0xff]   ;;  %p3332_p3 = scmp.ne.s32.totalorder %s4201_s24, 3 }
  0xfd   : > { %v3643_v34 = vld [vmem:[%s4511_s3 + $0x15c] ss:$24 sps:$4 sm:$0xff]  }
  0xfe   : > { %2196 = vmatpush1.bf16.msra.mxu1 %v3546_v35  ;;  %v4642_v35 = vld [vmem:[%s4504_s10 + $0x14] ss:$24 sps:$4 sm:$0xff]  }
  0xff   : > { %2239 = vmatpush1.bf16.msra.mxu0 %v3547_v36  ;;  %2197 = vmatprep.subr.bf16.mxu1 %v3548_v37  ;;  %v3638_v36 = vld [vmem:[%s4511_s3 + $0x750] ss:$24 sps:$4 sm:$0xff]  }
 0x100   : > { %2240 = vmatprep.subr.bf16.mxu0 %v3550_v38  ;;  %v3641_v37 = vld [vmem:[%s4511_s3 + $0x158] ss:$24 sps:$4 sm:$0xff]   ;;  %v3646_v38 = vld [vmem:[%s4511_s3 + $0x784] ss:$24 sps:$4 sm:$0xff]  }
 0x102   : > { %2198 = vmatpush1.bf16.msra.mxu1 %v3552_v39  ;;  %v3649_v39 = vld [vmem:[%s4511_s3 + $0x18c] ss:$24 sps:$4 sm:$0xff]  }
 0x103   : > { %2241 = vmatpush1.bf16.msra.mxu0 %v3553_v40  ;;  %2199 = vmatprep.subr.bf16.mxu1 %v3554_v41  ;;  %v3644_v40 = vld [vmem:[%s4511_s3 + $0x780] ss:$24 sps:$4 sm:$0xff]  }
 0x104   : > { %2242 = vmatprep.subr.bf16.mxu0 %v3556_v42  ;;  %v3647_v41 = vld [vmem:[%s4511_s3 + $0x188] ss:$24 sps:$4 sm:$0xff]   ;;  %v3652_v42 = vld [vmem:[%s4511_s3 + $0x7b4] ss:$24 sps:$4 sm:$0xff]  }
 0x106   : > { %2200 = vmatpush1.bf16.msra.mxu1 %v3558_v43  ;;  %v3655_v43 = vld [vmem:[%s4511_s3 + $0x1bc] ss:$24 sps:$4 sm:$0xff]  }
 0x107   : > { %2243 = vmatpush1.bf16.msra.mxu0 %v3559_v44  ;;  %2201 = vmatprep.subr.bf16.mxu1 %v3560_v45  ;;  %v3650_v44 = vld [vmem:[%s4511_s3 + $0x7b0] ss:$24 sps:$4 sm:$0xff]  }
 0x108   : > { %2244 = vmatprep.subr.bf16.mxu0 %v3562_v46  ;;  %v3653_v45 = vld [vmem:[%s4511_s3 + $0x1b8] ss:$24 sps:$4 sm:$0xff]   ;;  %v3658_v46 = vld [vmem:[%s4511_s3 + $0x7e4] ss:$24 sps:$4 sm:$0xff]  }
 0x10a   : > { %2202 = vmatpush1.bf16.msra.mxu1 %v3564_v47  ;;  %v3661_v47 = vld [vmem:[%s4511_s3 + $0x1ec] ss:$24 sps:$4 sm:$0xff]  }
 0x10b   : > { %2245 = vmatpush1.bf16.msra.mxu0 %v3565_v48  ;;  %2203 = vmatprep.subr.bf16.mxu1 %v3566_v51  ;;  %v3656_v48 = vld [vmem:[%s4511_s3 + $0x7e0] ss:$24 sps:$4 sm:$0xff]  }
 0x10c   : > { %2246 = vmatprep.subr.bf16.mxu0 %v3568_v52  ;;  %v3659_v51 = vld [vmem:[%s4511_s3 + $0x1e8] ss:$24 sps:$4 sm:$0xff]   ;;  %v3664_v52 = vld [vmem:[%s4511_s3 + $0x814] ss:$24 sps:$4 sm:$0xff]  }
 0x10e   : > { %2204 = vmatpush1.bf16.msra.mxu1 %v3570_v53  ;;  %v3667_v53 = vld [vmem:[%s4511_s3 + $0x21c] ss:$24 sps:$4 sm:$0xff]  }
 0x10f   : > { %2247 = vmatpush1.bf16.msra.mxu0 %v3571_v54  ;;  %2205 = vmatprep.subr.bf16.mxu1 %v3572_v55  ;;  %v3662_v54 = vld [vmem:[%s4511_s3 + $0x810] ss:$24 sps:$4 sm:$0xff]  }
 0x110   : > { %2248 = vmatprep.subr.bf16.mxu0 %v3574_v56  ;;  %v3665_v55 = vld [vmem:[%s4511_s3 + $0x218] ss:$24 sps:$4 sm:$0xff]   ;;  %v3670_v56 = vld [vmem:[%s4511_s3 + $0x844] ss:$24 sps:$4 sm:$0xff]  }
 0x112   : > { %2206 = vmatpush1.bf16.msra.mxu1 %v3576_v57  ;;  %v3673_v57 = vld [vmem:[%s4511_s3 + $0x24c] ss:$24 sps:$4 sm:$0xff]  }
 0x113   : > { %2249 = vmatpush1.bf16.msra.mxu0 %v3577_v58  ;;  %2207 = vmatprep.subr.bf16.mxu1 %v3578_v59  ;;  %v3668_v58 = vld [vmem:[%s4511_s3 + $0x840] ss:$24 sps:$4 sm:$0xff]  }
 0x114   : > { %2250 = vmatprep.subr.bf16.mxu0 %v3580_v60  ;;  %v3671_v59 = vld [vmem:[%s4511_s3 + $0x248] ss:$24 sps:$4 sm:$0xff]   ;;  %v3676_v60 = vld [vmem:[%s4511_s3 + $0x874] ss:$24 sps:$4 sm:$0xff]  }
 0x116   : > { %2208 = vmatpush1.bf16.msra.mxu1 %v3582_v61  ;;  %v3679_v61 = vld [vmem:[%s4511_s3 + $0x27c] ss:$24 sps:$4 sm:$0xff]  }
 0x117   : > { %2251 = vmatpush1.bf16.msra.mxu0 %v3583_v62  ;;  %2209 = vmatprep.subr.bf16.mxu1 %v3584_v63  ;;  %v3674_v62 = vld [vmem:[%s4511_s3 + $0x870] ss:$24 sps:$4 sm:$0xff]  }
 0x118   : > { %2252 = vmatprep.subr.bf16.mxu0 %v3586_v0  ;;  %v3677_v63 = vld [vmem:[%s4511_s3 + $0x278] ss:$24 sps:$4 sm:$0xff]   ;;  %v3682_v0 = vld [vmem:[%s4511_s3 + $0x8a4] ss:$24 sps:$4 sm:$0xff]  }
 0x11a   : > { %2210 = vmatpush1.bf16.msra.mxu1 %v3588_v1  ;;  %v3685_v1 = vld [vmem:[%s4511_s3 + $0x2ac] ss:$24 sps:$4 sm:$0xff]  }
 0x11b   : > { %2253 = vmatpush1.bf16.msra.mxu0 %v3589_v2  ;;  %2308 = vmatprep.subr.bf16.mxu1 %v3599_v4  ;;  %v3680_v2 = vld [vmem:[%s4511_s3 + $0x8a0] ss:$24 sps:$4 sm:$0xff]   ;;  %v3688_v4 = vld [vmem:[%s4511_s3 + $0x8d4] ss:$24 sps:$4 sm:$0xff]  }
 0x11c   : > { %2265 = vmatprep.subr.bf16.mxu0 %v3596_v3  ;;  %v3683_v3 = vld [vmem:[%s4511_s3 + $0x2a8] ss:$24 sps:$4 sm:$0xff]  }
 0x11d   : > { %2212 = vmatmul.mubr.bf16.vlgmr.msra.gmra.mrb[0].mxu1 %v4607_v7 }
 0x11e   : > { %2255 = vmatmul.mubr.bf16.vlgmr.msra.gmra.mrb[0].mxu0 %v4610_v8  ;;  %2309 = vmatpush1.bf16.msra.mxu1 %v3597_v6  ;;  %v3686_v6 = vld [vmem:[%s4511_s3 + $0x8d0] ss:$24 sps:$4 sm:$0xff]  }
 0x11f   : > { %2266 = vmatpush1.bf16.msra.mxu0 %v3594_v5  ;;  %2310 = vmatprep.subr.bf16.mxu1 %v3607_v10  ;;  %v3691_v5 = vld [vmem:[%s4511_s3 + $0x2dc] ss:$24 sps:$4 sm:$0xff]   ;;  %v3697_v10 = vld [vmem:[%s4511_s3 + $0x30c] ss:$24 sps:$4 sm:$0xff]  }
 0x120   : > { %2267 = vmatprep.subr.bf16.mxu0 %v3604_v9  ;;  %2340 = vmatprep.mubr.bf16.mxu1 %v4579_v49  ;;  %v3689_v9 = vld [vmem:[%s4511_s3 + $0x2d8] ss:$24 sps:$4 sm:$0xff]  }
 0x121   : > { %2297 = vmatprep.mubr.bf16.mxu0 %v4642_v35 }
 0x122   : > { %2311 = vmatpush1.bf16.msra.mxu1 %v3605_v12  ;;  %v4682_v12 = vld [vmem:[%s4504_s10 + $0x10] ss:$24 sps:$4 sm:$0xff]  }
 0x123   : > { %2268 = vmatpush1.bf16.msra.mxu0 %v3602_v11  ;;  %2312 = vmatprep.subr.bf16.mxu1 %v3613_v14  ;;  %v3700_v11 = vld [vmem:[%s4511_s3 + $0x14] ss:$24 sps:$4 sm:$0xff]   ;;  %v3698_v14 = vld [vmem:[%s4511_s3 + $0x10] ss:$24 sps:$4 sm:$0xff]  }
 0x124   : > { %2269 = vmatprep.subr.bf16.mxu0 %v3610_v13  ;;  %v3695_v13 = vld [vmem:[%s4511_s3 + $0x308] ss:$24 sps:$4 sm:$0xff]  }
 0x126   : > { %2313 = vmatpush1.bf16.msra.mxu1 %v3611_v16  ;;  %v3706_v16 = vld [vmem:[%s4511_s3 + $0x44] ss:$24 sps:$4 sm:$0xff]  }
 0x127   : > { %2270 = vmatpush1.bf16.msra.mxu0 %v3608_v15  ;;  %2314 = vmatprep.subr.bf16.mxu1 %v3619_v18  ;;  %v3703_v15 = vld [vmem:[%s4511_s3 + $0x33c] ss:$24 sps:$4 sm:$0xff]   ;;  %v3704_v18 = vld [vmem:[%s4511_s3 + $0x40] ss:$24 sps:$4 sm:$0xff]  }
 0x128   : > { %2271 = vmatprep.subr.bf16.mxu0 %v3616_v17  ;;  %v3701_v17 = vld [vmem:[%s4511_s3 + $0x338] ss:$24 sps:$4 sm:$0xff]  }
 0x12a   : > { %2315 = vmatpush1.bf16.msra.mxu1 %v3617_v20  ;;  %v3712_v20 = vld [vmem:[%s4511_s3 + $0x74] ss:$24 sps:$4 sm:$0xff]  }
 0x12b   : > { %2272 = vmatpush1.bf16.msra.mxu0 %v3614_v19  ;;  %2316 = vmatprep.subr.bf16.mxu1 %v3625_v22  ;;  %v3709_v19 = vld [vmem:[%s4511_s3 + $0x36c] ss:$24 sps:$4 sm:$0xff]   ;;  %v3710_v22 = vld [vmem:[%s4511_s3 + $0x70] ss:$24 sps:$4 sm:$0xff]  }
 0x12c   : > { %2273 = vmatprep.subr.bf16.mxu0 %v3622_v21  ;;  %v3707_v21 = vld [vmem:[%s4511_s3 + $0x368] ss:$24 sps:$4 sm:$0xff]  }
 0x12e   : > { %2317 = vmatpush1.bf16.msra.mxu1 %v3623_v24  ;;  %v3718_v24 = vld [vmem:[%s4511_s3 + $0xa4] ss:$24 sps:$4 sm:$0xff]  }
 0x12f   : > { %2274 = vmatpush1.bf16.msra.mxu0 %v3620_v23  ;;  %2318 = vmatprep.subr.bf16.mxu1 %v3631_v26  ;;  %v3715_v23 = vld [vmem:[%s4511_s3 + $0x39c] ss:$24 sps:$4 sm:$0xff]   ;;  %v3716_v26 = vld [vmem:[%s4511_s3 + $0xa0] ss:$24 sps:$4 sm:$0xff]  }
 0x130   : > { %2275 = vmatprep.subr.bf16.mxu0 %v3628_v25  ;;  %v3713_v25 = vld [vmem:[%s4511_s3 + $0x398] ss:$24 sps:$4 sm:$0xff]  }
 0x132   : > { %2319 = vmatpush1.bf16.msra.mxu1 %v3629_v28  ;;  %v3722_v28 = vld [vmem:[%s4511_s3 + $0xd0] ss:$24 sps:$4 sm:$0xff]  }
 0x133   : > { %2276 = vmatpush1.bf16.msra.mxu0 %v3626_v27  ;;  %2320 = vmatprep.subr.bf16.mxu1 %v3637_v30  ;;  %v3719_v27 = vld [vmem:[%s4511_s3 + $0x3c8] ss:$24 sps:$4 sm:$0xff]   ;;  %v3730_v30 = vld [vmem:[%s4511_s3 + $0x104] ss:$24 sps:$4 sm:$0xff]  }
 0x134   : > { %2277 = vmatprep.subr.bf16.mxu0 %v3634_v29  ;;  %v3727_v29 = vld [vmem:[%s4511_s3 + $0x3fc] ss:$24 sps:$4 sm:$0xff]  }
 0x136   : > { %2321 = vmatpush1.bf16.msra.mxu1 %v3635_v32  ;;  %v3728_v32 = vld [vmem:[%s4511_s3 + $0x100] ss:$24 sps:$4 sm:$0xff]  }
 0x137   : > { %2278 = vmatpush1.bf16.msra.mxu0 %v3632_v31  ;;  %2322 = vmatprep.subr.bf16.mxu1 %v3643_v34  ;;  %v3725_v31 = vld [vmem:[%s4511_s3 + $0x3f8] ss:$24 sps:$4 sm:$0xff]   ;;  %v3736_v34 = vld [vmem:[%s4511_s3 + $0x134] ss:$24 sps:$4 sm:$0xff]  }
 0x138   : > { %2279 = vmatprep.subr.bf16.mxu0 %v3640_v33  ;;  %v3733_v33 = vld [vmem:[%s4511_s3 + $0x42c] ss:$24 sps:$4 sm:$0xff]  }
 0x13a   : > { %2323 = vmatpush1.bf16.msra.mxu1 %v3641_v37  ;;  %v3734_v37 = vld [vmem:[%s4511_s3 + $0x130] ss:$24 sps:$4 sm:$0xff]  }
 0x13b   : > { %2280 = vmatpush1.bf16.msra.mxu0 %v3638_v36  ;;  %2324 = vmatprep.subr.bf16.mxu1 %v3649_v39  ;;  %v3731_v36 = vld [vmem:[%s4511_s3 + $0x428] ss:$24 sps:$4 sm:$0xff]   ;;  %v3742_v39 = vld [vmem:[%s4511_s3 + $0x164] ss:$24 sps:$4 sm:$0xff]  }
 0x13c   : > { %2281 = vmatprep.subr.bf16.mxu0 %v3646_v38  ;;  %v3739_v38 = vld [vmem:[%s4511_s3 + $0x45c] ss:$24 sps:$4 sm:$0xff]  }
 0x13e   : > { %2325 = vmatpush1.bf16.msra.mxu1 %v3647_v41  ;;  %v3740_v41 = vld [vmem:[%s4511_s3 + $0x160] ss:$24 sps:$4 sm:$0xff]  }
 0x13f   : > { %2282 = vmatpush1.bf16.msra.mxu0 %v3644_v40  ;;  %2326 = vmatprep.subr.bf16.mxu1 %v3655_v43  ;;  %v3737_v40 = vld [vmem:[%s4511_s3 + $0x458] ss:$24 sps:$4 sm:$0xff]   ;;  %v3748_v43 = vld [vmem:[%s4511_s3 + $0x194] ss:$24 sps:$4 sm:$0xff]  }
 0x140   : > { %2283 = vmatprep.subr.bf16.mxu0 %v3652_v42  ;;  %v3745_v42 = vld [vmem:[%s4511_s3 + $0x48c] ss:$24 sps:$4 sm:$0xff]  }
 0x142   : > { %2327 = vmatpush1.bf16.msra.mxu1 %v3653_v45  ;;  %v3746_v45 = vld [vmem:[%s4511_s3 + $0x190] ss:$24 sps:$4 sm:$0xff]  }
 0x143   : > { %2284 = vmatpush1.bf16.msra.mxu0 %v3650_v44  ;;  %2328 = vmatprep.subr.bf16.mxu1 %v3661_v47  ;;  %v3743_v44 = vld [vmem:[%s4511_s3 + $0x488] ss:$24 sps:$4 sm:$0xff]   ;;  %v3754_v47 = vld [vmem:[%s4511_s3 + $0x1c4] ss:$24 sps:$4 sm:$0xff]  }
 0x144   : > { %2285 = vmatprep.subr.bf16.mxu0 %v3658_v46  ;;  %v3751_v46 = vld [vmem:[%s4511_s3 + $0x4bc] ss:$24 sps:$4 sm:$0xff]  }
 0x146   : > { %2329 = vmatpush1.bf16.msra.mxu1 %v3659_v51  ;;  %v3752_v51 = vld [vmem:[%s4511_s3 + $0x1c0] ss:$24 sps:$4 sm:$0xff]  }
 0x147   : > { %2286 = vmatpush1.bf16.msra.mxu0 %v3656_v48  ;;  %2330 = vmatprep.subr.bf16.mxu1 %v3667_v53  ;;  %v3749_v48 = vld [vmem:[%s4511_s3 + $0x4b8] ss:$24 sps:$4 sm:$0xff]   ;;  %v3760_v53 = vld [vmem:[%s4511_s3 + $0x1f4] ss:$24 sps:$4 sm:$0xff]  }
 0x148   : > { %2287 = vmatprep.subr.bf16.mxu0 %v3664_v52  ;;  %v3757_v52 = vld [vmem:[%s4511_s3 + $0x4ec] ss:$24 sps:$4 sm:$0xff]  }
 0x14a   : > { %2331 = vmatpush1.bf16.msra.mxu1 %v3665_v55  ;;  %v3758_v55 = vld [vmem:[%s4511_s3 + $0x1f0] ss:$24 sps:$4 sm:$0xff]  }
 0x14b   : > { %2288 = vmatpush1.bf16.msra.mxu0 %v3662_v54  ;;  %2332 = vmatprep.subr.bf16.mxu1 %v3673_v57  ;;  %v3755_v54 = vld [vmem:[%s4511_s3 + $0x4e8] ss:$24 sps:$4 sm:$0xff]   ;;  %v3766_v57 = vld [vmem:[%s4511_s3 + $0x224] ss:$24 sps:$4 sm:$0xff]  }
 0x14c   : > { %2289 = vmatprep.subr.bf16.mxu0 %v3670_v56  ;;  %v3763_v56 = vld [vmem:[%s4511_s3 + $0x51c] ss:$24 sps:$4 sm:$0xff]  }
 0x14e   : > { %2333 = vmatpush1.bf16.msra.mxu1 %v3671_v59  ;;  %v3764_v59 = vld [vmem:[%s4511_s3 + $0x220] ss:$24 sps:$4 sm:$0xff]  }
 0x14f   : > { %2290 = vmatpush1.bf16.msra.mxu0 %v3668_v58  ;;  %2334 = vmatprep.subr.bf16.mxu1 %v3679_v61  ;;  %v3761_v58 = vld [vmem:[%s4511_s3 + $0x518] ss:$24 sps:$4 sm:$0xff]   ;;  %v3772_v61 = vld [vmem:[%s4511_s3 + $0x254] ss:$24 sps:$4 sm:$0xff]  }
 0x150   : > { %2291 = vmatprep.subr.bf16.mxu0 %v3676_v60  ;;  %v3769_v60 = vld [vmem:[%s4511_s3 + $0x54c] ss:$24 sps:$4 sm:$0xff]  }
 0x152   : > { %2335 = vmatpush1.bf16.msra.mxu1 %v3677_v63  ;;  %v3770_v63 = vld [vmem:[%s4511_s3 + $0x250] ss:$24 sps:$4 sm:$0xff]  }
 0x153   : > { %2292 = vmatpush1.bf16.msra.mxu0 %v3674_v62  ;;  %2336 = vmatprep.subr.bf16.mxu1 %v3685_v1  ;;  %v3767_v62 = vld [vmem:[%s4511_s3 + $0x548] ss:$24 sps:$4 sm:$0xff]   ;;  %v3778_v1 = vld [vmem:[%s4511_s3 + $0x284] ss:$24 sps:$4 sm:$0xff]  }
 0x154   : > { %2293 = vmatprep.subr.bf16.mxu0 %v3682_v0  ;;  %v3775_v0 = vld [vmem:[%s4511_s3 + $0x57c] ss:$24 sps:$4 sm:$0xff]  }
 0x156   : > { %2337 = vmatpush1.bf16.msra.mxu1 %v3683_v3  ;;  %v3776_v3 = vld [vmem:[%s4511_s3 + $0x280] ss:$24 sps:$4 sm:$0xff]  }
 0x157   : > { %2294 = vmatpush1.bf16.msra.mxu0 %v3680_v2  ;;  %2338 = vmatprep.subr.bf16.mxu1 %v3691_v5  ;;  %v3773_v2 = vld [vmem:[%s4511_s3 + $0x578] ss:$24 sps:$4 sm:$0xff]   ;;  %v3784_v5 = vld [vmem:[%s4511_s3 + $0x2b4] ss:$24 sps:$4 sm:$0xff]  }
 0x158   : > { %2295 = vmatprep.subr.bf16.mxu0 %v3688_v4  ;;  %v3781_v4 = vld [vmem:[%s4511_s3 + $0x5ac] ss:$24 sps:$4 sm:$0xff]  }
 0x15a   : > { %2339 = vmatpush1.bf16.msra.mxu1 %v3689_v9  ;;  %v3782_v9 = vld [vmem:[%s4511_s3 + $0x2b0] ss:$24 sps:$4 sm:$0xff]  }
 0x15b   : > { %2296 = vmatpush1.bf16.msra.mxu0 %v3686_v6  ;;  %2351 = vmatprep.subr.bf16.mxu1 %v3697_v10  ;;  %v3779_v6 = vld [vmem:[%s4511_s3 + $0x5a8] ss:$24 sps:$4 sm:$0xff]   ;;  %v3787_v10 = vld [vmem:[%s4511_s3 + $0x5dc] ss:$24 sps:$4 sm:$0xff]  }
 0x15c   : > { %2437 = vmatprep.subr.bf16.mxu0 %v3700_v11  ;;  %v3790_v11 = vld [vmem:[%s4511_s3 + $0x2e4] ss:$24 sps:$4 sm:$0xff]  }
 0x15d   : > { %2341 = vmatmul.mubr.bf16.vlgmr.msra.gmra.mrb[4].mxu1 %v4607_v7 }
 0x15e   : > { %2298 = vmatmul.mubr.bf16.vlgmr.msra.gmra.mrb[0].mxu0 %v4682_v12  ;;  %2352 = vmatpush1.bf16.msra.mxu1 %v3695_v13  ;;  %v3785_v13 = vld [vmem:[%s4511_s3 + $0x5d8] ss:$24 sps:$4 sm:$0xff]  }
 0x15f   : > { %2438 = vmatpush1.bf16.msra.mxu0 %v3698_v14  ;;  %2353 = vmatprep.subr.bf16.mxu1 %v3703_v15  ;;  %v3788_v14 = vld [vmem:[%s4511_s3 + $0x2e0] ss:$24 sps:$4 sm:$0xff]   ;;  %v3793_v15 = vld [vmem:[%s4511_s3 + $0x60c] ss:$24 sps:$4 sm:$0xff]  }
 0x160   : > { %2439 = vmatprep.subr.bf16.mxu0 %v3706_v16  ;;  %2383 = vmatprep.mubr.bf16.mxu1 %v4582_v50  ;;  %v3724_v50 = vld [vmem:[%s4511_s3 + $0xd4] ss:$24 sps:$4 sm:$0xff]  }
 0x161   : > { %2469 = vmatprep.mubr.bf16.mxu0 %v4579_v49  ;;  %v3721_v49 = vld [vmem:[%s4511_s3 + $0x3cc] ss:$24 sps:$4 sm:$0xff]  }
 0x162   : > { %2354 = vmatpush1.bf16.msra.mxu1 %v3701_v17  ;;  %v3796_v16 = vld [vmem:[%s4511_s3 + $0x314] ss:$24 sps:$4 sm:$0xff]   ;;  %v3791_v17 = vld [vmem:[%s4511_s3 + $0x608] ss:$24 sps:$4 sm:$0xff]  }
 0x163   : > { %2440 = vmatpush1.bf16.msra.mxu0 %v3704_v18  ;;  %2355 = vmatprep.subr.bf16.mxu1 %v3709_v19  ;;  %v3794_v18 = vld [vmem:[%s4511_s3 + $0x310] ss:$24 sps:$4 sm:$0xff]   ;;  %v3799_v19 = vld [vmem:[%s4511_s3 + $0x63c] ss:$24 sps:$4 sm:$0xff]  }
 0x164   : > { %2441 = vmatprep.subr.bf16.mxu0 %v3712_v20  ;;  %v3802_v20 = vld [vmem:[%s4511_s3 + $0x344] ss:$24 sps:$4 sm:$0xff]  }
 0x166   : > { %2356 = vmatpush1.bf16.msra.mxu1 %v3707_v21  ;;  %v3797_v21 = vld [vmem:[%s4511_s3 + $0x638] ss:$24 sps:$4 sm:$0xff]  }
 0x167   : > { %2442 = vmatpush1.bf16.msra.mxu0 %v3710_v22  ;;  %2357 = vmatprep.subr.bf16.mxu1 %v3715_v23  ;;  %v3800_v22 = vld [vmem:[%s4511_s3 + $0x340] ss:$24 sps:$4 sm:$0xff]   ;;  %v3805_v23 = vld [vmem:[%s4511_s3 + $0x66c] ss:$24 sps:$4 sm:$0xff]  }
 0x168   : > { %2443 = vmatprep.subr.bf16.mxu0 %v3718_v24  ;;  %v3808_v24 = vld [vmem:[%s4511_s3 + $0x374] ss:$24 sps:$4 sm:$0xff]  }
 0x16a   : > { %2358 = vmatpush1.bf16.msra.mxu1 %v3713_v25  ;;  %v3935_v25 = vld [vmem:[%s4504_s10 + $0xc] ss:$24 sps:$4 sm:$0xff]  }
 0x16b   : > { %2444 = vmatpush1.bf16.msra.mxu0 %v3716_v26  ;;  %2359 = vmatprep.subr.bf16.mxu1 %v3721_v49  ;;  %v3811_v26 = vld [vmem:[%s4511_s3 + $0x69c] ss:$24 sps:$4 sm:$0xff]  }
 0x16c   : > { %2445 = vmatprep.subr.bf16.mxu0 %v3724_v50  ;;  %v3814_v49 = vld [vmem:[%s4511_s3 + $0x3a4] ss:$24 sps:$4 sm:$0xff]   ;;  %v3809_v50 = vld [vmem:[%s4511_s3 + $0x698] ss:$24 sps:$4 sm:$0xff]  }
 0x16e   : > { %2360 = vmatpush1.bf16.msra.mxu1 %v3719_v27  ;;  %v3812_v27 = vld [vmem:[%s4511_s3 + $0x3a0] ss:$24 sps:$4 sm:$0xff]  }
 0x16f   : > { %2446 = vmatpush1.bf16.msra.mxu0 %v3722_v28  ;;  %2361 = vmatprep.subr.bf16.mxu1 %v3727_v29  ;;  %v3817_v28 = vld [vmem:[%s4511_s3 + $0x6cc] ss:$24 sps:$4 sm:$0xff]  }
 0x170   : > { %2447 = vmatprep.subr.bf16.mxu0 %v3730_v30  ;;  %v3820_v29 = vld [vmem:[%s4511_s3 + $0x3d4] ss:$24 sps:$4 sm:$0xff]   ;;  %v3815_v30 = vld [vmem:[%s4511_s3 + $0x6c8] ss:$24 sps:$4 sm:$0xff]  }
 0x172   : > { %2362 = vmatpush1.bf16.msra.mxu1 %v3725_v31  ;;  %v3818_v31 = vld [vmem:[%s4511_s3 + $0x3d0] ss:$24 sps:$4 sm:$0xff]  }
 0x173   : > { %2448 = vmatpush1.bf16.msra.mxu0 %v3728_v32  ;;  %2363 = vmatprep.subr.bf16.mxu1 %v3733_v33  ;;  %v3823_v32 = vld [vmem:[%s4511_s3 + $0x6fc] ss:$24 sps:$4 sm:$0xff]  }
 0x174   : > { %2449 = vmatprep.subr.bf16.mxu0 %v3736_v34  ;;  %v3826_v33 = vld [vmem:[%s4511_s3 + $0x404] ss:$24 sps:$4 sm:$0xff]   ;;  %v3821_v34 = vld [vmem:[%s4511_s3 + $0x6f8] ss:$24 sps:$4 sm:$0xff]  }
 0x176   : > { %2364 = vmatpush1.bf16.msra.mxu1 %v3731_v36  ;;  %v3824_v36 = vld [vmem:[%s4511_s3 + $0x400] ss:$24 sps:$4 sm:$0xff]  }
 0x177   : > { %2450 = vmatpush1.bf16.msra.mxu0 %v3734_v37  ;;  %2365 = vmatprep.subr.bf16.mxu1 %v3739_v38  ;;  %v3829_v37 = vld [vmem:[%s4511_s3 + $0x72c] ss:$24 sps:$4 sm:$0xff]  }
 0x178   : > { %2451 = vmatprep.subr.bf16.mxu0 %v3742_v39  ;;  %v3832_v38 = vld [vmem:[%s4511_s3 + $0x434] ss:$24 sps:$4 sm:$0xff]   ;;  %v3827_v39 = vld [vmem:[%s4511_s3 + $0x728] ss:$24 sps:$4 sm:$0xff]  }
 0x17a   : > { %2366 = vmatpush1.bf16.msra.mxu1 %v3737_v40  ;;  %v3830_v40 = vld [vmem:[%s4511_s3 + $0x430] ss:$24 sps:$4 sm:$0xff]  }
 0x17b   : > { %2452 = vmatpush1.bf16.msra.mxu0 %v3740_v41  ;;  %2367 = vmatprep.subr.bf16.mxu1 %v3745_v42  ;;  %v3835_v41 = vld [vmem:[%s4511_s3 + $0x75c] ss:$24 sps:$4 sm:$0xff]  }
 0x17c   : > { %2453 = vmatprep.subr.bf16.mxu0 %v3748_v43  ;;  %v3838_v42 = vld [vmem:[%s4511_s3 + $0x464] ss:$24 sps:$4 sm:$0xff]   ;;  %v3833_v43 = vld [vmem:[%s4511_s3 + $0x758] ss:$24 sps:$4 sm:$0xff]  }
 0x17e   : > { %2368 = vmatpush1.bf16.msra.mxu1 %v3743_v44  ;;  %v3836_v44 = vld [vmem:[%s4511_s3 + $0x460] ss:$24 sps:$4 sm:$0xff]  }
 0x17f   : > { %2454 = vmatpush1.bf16.msra.mxu0 %v3746_v45  ;;  %2369 = vmatprep.subr.bf16.mxu1 %v3751_v46  ;;  %v3841_v45 = vld [vmem:[%s4511_s3 + $0x78c] ss:$24 sps:$4 sm:$0xff]  }
 0x180   : > { %2455 = vmatprep.subr.bf16.mxu0 %v3754_v47  ;;  %v3844_v46 = vld [vmem:[%s4511_s3 + $0x494] ss:$24 sps:$4 sm:$0xff]   ;;  %v3839_v47 = vld [vmem:[%s4511_s3 + $0x788] ss:$24 sps:$4 sm:$0xff]  }
 0x182   : > { %2370 = vmatpush1.bf16.msra.mxu1 %v3749_v48  ;;  %v3842_v48 = vld [vmem:[%s4511_s3 + $0x490] ss:$24 sps:$4 sm:$0xff]  }
 0x183   : > { %2456 = vmatpush1.bf16.msra.mxu0 %v3752_v51  ;;  %2371 = vmatprep.subr.bf16.mxu1 %v3757_v52  ;;  %v3847_v51 = vld [vmem:[%s4511_s3 + $0x7bc] ss:$24 sps:$4 sm:$0xff]  }
 0x184   : > { %2457 = vmatprep.subr.bf16.mxu0 %v3760_v53  ;;  %v3850_v52 = vld [vmem:[%s4511_s3 + $0x4c4] ss:$24 sps:$4 sm:$0xff]   ;;  %v3845_v53 = vld [vmem:[%s4511_s3 + $0x7b8] ss:$24 sps:$4 sm:$0xff]  }
 0x186   : > { %2372 = vmatpush1.bf16.msra.mxu1 %v3755_v54  ;;  %v3848_v54 = vld [vmem:[%s4511_s3 + $0x4c0] ss:$24 sps:$4 sm:$0xff]  }
 0x187   : > { %2458 = vmatpush1.bf16.msra.mxu0 %v3758_v55  ;;  %2373 = vmatprep.subr.bf16.mxu1 %v3763_v56  ;;  %v3853_v55 = vld [vmem:[%s4511_s3 + $0x7ec] ss:$24 sps:$4 sm:$0xff]  }
 0x188   : > { %2459 = vmatprep.subr.bf16.mxu0 %v3766_v57  ;;  %v3856_v56 = vld [vmem:[%s4511_s3 + $0x4f4] ss:$24 sps:$4 sm:$0xff]   ;;  %v3851_v57 = vld [vmem:[%s4511_s3 + $0x7e8] ss:$24 sps:$4 sm:$0xff]  }
 0x18a   : > { %2374 = vmatpush1.bf16.msra.mxu1 %v3761_v58  ;;  %v3854_v58 = vld [vmem:[%s4511_s3 + $0x4f0] ss:$24 sps:$4 sm:$0xff]  }
 0x18b   : > { %2460 = vmatpush1.bf16.msra.mxu0 %v3764_v59  ;;  %2375 = vmatprep.subr.bf16.mxu1 %v3769_v60  ;;  %v3859_v59 = vld [vmem:[%s4511_s3 + $0x81c] ss:$24 sps:$4 sm:$0xff]  }
 0x18c   : > { %2461 = vmatprep.subr.bf16.mxu0 %v3772_v61  ;;  %v3862_v60 = vld [vmem:[%s4511_s3 + $0x524] ss:$24 sps:$4 sm:$0xff]   ;;  %v3857_v61 = vld [vmem:[%s4511_s3 + $0x818] ss:$24 sps:$4 sm:$0xff]  }
 0x18e   : > { %2376 = vmatpush1.bf16.msra.mxu1 %v3767_v62  ;;  %v3860_v62 = vld [vmem:[%s4511_s3 + $0x520] ss:$24 sps:$4 sm:$0xff]  }
 0x18f   : > { %2462 = vmatpush1.bf16.msra.mxu0 %v3770_v63  ;;  %2377 = vmatprep.subr.bf16.mxu1 %v3775_v0  ;;  %v3865_v63 = vld [vmem:[%s4511_s3 + $0x84c] ss:$24 sps:$4 sm:$0xff]  }
 0x190   : > { %2463 = vmatprep.subr.bf16.mxu0 %v3778_v1  ;;  %v3868_v0 = vld [vmem:[%s4511_s3 + $0x554] ss:$24 sps:$4 sm:$0xff]   ;;  %v3863_v1 = vld [vmem:[%s4511_s3 + $0x848] ss:$24 sps:$4 sm:$0xff]  }
 0x192   : > { %2378 = vmatpush1.bf16.msra.mxu1 %v3773_v2  ;;  %v3866_v2 = vld [vmem:[%s4511_s3 + $0x550] ss:$24 sps:$4 sm:$0xff]  }
 0x193   : > { %2464 = vmatpush1.bf16.msra.mxu0 %v3776_v3  ;;  %2379 = vmatprep.subr.bf16.mxu1 %v3781_v4  ;;  %v3871_v3 = vld [vmem:[%s4511_s3 + $0x87c] ss:$24 sps:$4 sm:$0xff]  }
 0x194   : > { %2465 = vmatprep.subr.bf16.mxu0 %v3784_v5  ;;  %v3874_v4 = vld [vmem:[%s4511_s3 + $0x584] ss:$24 sps:$4 sm:$0xff]   ;;  %v3869_v5 = vld [vmem:[%s4511_s3 + $0x878] ss:$24 sps:$4 sm:$0xff]  }
 0x196   : > { %2380 = vmatpush1.bf16.msra.mxu1 %v3779_v6  ;;  %v3872_v6 = vld [vmem:[%s4511_s3 + $0x580] ss:$24 sps:$4 sm:$0xff]  }
 0x197   : > { %2466 = vmatpush1.bf16.msra.mxu0 %v3782_v9  ;;  %2381 = vmatprep.subr.bf16.mxu1 %v3787_v10  ;;  %v3877_v9 = vld [vmem:[%s4511_s3 + $0x8ac] ss:$24 sps:$4 sm:$0xff]  }
 0x198   : > { %2467 = vmatprep.subr.bf16.mxu0 %v3790_v11  ;;  %v3880_v10 = vld [vmem:[%s4511_s3 + $0x5b4] ss:$24 sps:$4 sm:$0xff]   ;;  %v3875_v11 = vld [vmem:[%s4511_s3 + $0x8a8] ss:$24 sps:$4 sm:$0xff]  }
 0x19a   : > { %2382 = vmatpush1.bf16.msra.mxu1 %v3785_v13  ;;  %v3878_v13 = vld [vmem:[%s4511_s3 + $0x5b0] ss:$24 sps:$4 sm:$0xff]  }
 0x19b   : > { %2468 = vmatpush1.bf16.msra.mxu0 %v3788_v14  ;;  %2394 = vmatprep.subr.bf16.mxu1 %v3793_v15  ;;  %v3883_v14 = vld [vmem:[%s4511_s3 + $0x8dc] ss:$24 sps:$4 sm:$0xff]  }
 0x19c   : > { %2480 = vmatprep.subr.bf16.mxu0 %v3796_v16  ;;  %v3886_v15 = vld [vmem:[%s4511_s3 + $0x5e4] ss:$24 sps:$4 sm:$0xff]   ;;  %v3881_v16 = vld [vmem:[%s4511_s3 + $0x8d8] ss:$24 sps:$4 sm:$0xff]  }
 0x19d   : > { %2384 = vmatmul.mubr.bf16.vlgmr.msra.gmra.mrb[4].mxu1 %v4610_v8  ;;  %v3806_v8 = vld [vmem:[%s4511_s3 + $0x370] ss:$24 sps:$4 sm:$0xff]  }
 0x19e   : > { %2470 = vmatmul.mubr.bf16.vlgmr.msra.gmra.mrb[4].mxu0 %v4607_v7  ;;  %2395 = vmatpush1.bf16.msra.mxu1 %v3791_v17  ;;  %v3803_v7 = vld [vmem:[%s4511_s3 + $0x668] ss:$24 sps:$4 sm:$0xff]  }
 0x19f   : > { %2481 = vmatpush1.bf16.msra.mxu0 %v3794_v18  ;;  %2396 = vmatprep.subr.bf16.mxu1 %v3799_v19  ;;  %v3884_v17 = vld [vmem:[%s4511_s3 + $0x5e0] ss:$24 sps:$4 sm:$0xff]   ;;  %v3889_v18 = vld [vmem:[%s4511_s3 + $0x614] ss:$24 sps:$4 sm:$0xff]   ;;  %v3887_v19 = vld [vmem:[%s4511_s3 + $0x610] ss:$24 sps:$4 sm:$0xff]  }
 0x1a0   : > { %2482 = vmatprep.subr.bf16.mxu0 %v3802_v20  ;;  %2426 = vmatprep.mubr.bf16.mxu1 %v4642_v35  ;;  %v3892_v20 = vld [vmem:[%s4511_s3 + $0x644] ss:$24 sps:$4 sm:$0xff]  }
 0x1a1   : > { %2512 = vmatprep.mubr.bf16.mxu0 %v3935_v25  ;;  %v3898_v25 = vld [vmem:[%s4511_s3 + $0x6a4] ss:$24 sps:$4 sm:$0xff]  }
 0x1a2   : > { %2397 = vmatpush1.bf16.msra.mxu1 %v3797_v21  ;;  %v3936_v21 = vld [vmem:[%s4504_s10 + $0x8] ss:$24 sps:$4 sm:$0xff]  }
 0x1a3   : > { %2483 = vmatpush1.bf16.msra.mxu0 %v3800_v22  ;;  %2398 = vmatprep.subr.bf16.mxu1 %v3805_v23  ;;  %v3890_v22 = vld [vmem:[%s4511_s3 + $0x640] ss:$24 sps:$4 sm:$0xff]   ;;  %v3895_v23 = vld [vmem:[%s4511_s3 + $0x674] ss:$24 sps:$4 sm:$0xff]  }
 0x1a4   : > { %2484 = vmatprep.subr.bf16.mxu0 %v3808_v24  ;;  %v3893_v24 = vld [vmem:[%s4511_s3 + $0x670] ss:$24 sps:$4 sm:$0xff]  }
 0x1a6   : > { %2399 = vmatpush1.bf16.msra.mxu1 %v3803_v7  ;;  %v3896_v7 = vld [vmem:[%s4511_s3 + $0x6a0] ss:$24 sps:$4 sm:$0xff]  }
 0x1a7   : > { %2485 = vmatpush1.bf16.msra.mxu0 %v3806_v8  ;;  %2400 = vmatprep.subr.bf16.mxu1 %v3811_v26  ;;  %v3901_v8 = vld [vmem:[%s4511_s3 + $0x6d4] ss:$24 sps:$4 sm:$0xff]   ;;  %v3899_v26 = vld [vmem:[%s4511_s3 + $0x6d0] ss:$24 sps:$4 sm:$0xff]  }
 0x1a8   : > { %2486 = vmatprep.subr.bf16.mxu0 %v3814_v49  ;;  %v3904_v49 = vld [vmem:[%s4511_s3 + $0x704] ss:$24 sps:$4 sm:$0xff]  }
 0x1aa   : > { %2401 = vmatpush1.bf16.msra.mxu1 %v3809_v50  ;;  %v3907_v50 = vld [vmem:[%s4511_s3 + $0x734] ss:$24 sps:$4 sm:$0xff]  }
 0x1ab   : > { %2487 = vmatpush1.bf16.msra.mxu0 %v3812_v27  ;;  %2402 = vmatprep.subr.bf16.mxu1 %v3817_v28 }
 0x1ac   : > { %2488 = vmatprep.subr.bf16.mxu0 %v3820_v29  ;;  %v3905_v29 = vld [vmem:[%s4511_s3 + $0x730] ss:$24 sps:$4 sm:$0xff]  }
 0x1ae   : > { %2403 = vmatpush1.bf16.msra.mxu1 %v3815_v30 }
 0x1af   : > { %2489 = vmatpush1.bf16.msra.mxu0 %v3818_v31  ;;  %2404 = vmatprep.subr.bf16.mxu1 %v3823_v32  ;;  %v3910_v31 = vld [vmem:[%s4511_s3 + $0x764] ss:$24 sps:$4 sm:$0xff]  }
 0x1b0   : > { %2490 = vmatprep.subr.bf16.mxu0 %v3826_v33  ;;  %v3908_v33 = vld [vmem:[%s4511_s3 + $0x760] ss:$24 sps:$4 sm:$0xff]  }
 0x1b2   : > { %2405 = vmatpush1.bf16.msra.mxu1 %v3821_v34  ;;  %v3913_v34 = vld [vmem:[%s4511_s3 + $0x794] ss:$24 sps:$4 sm:$0xff]  }
 0x1b3   : > { %2491 = vmatpush1.bf16.msra.mxu0 %v3824_v36  ;;  %2406 = vmatprep.subr.bf16.mxu1 %v3829_v37  ;;  %v3911_v36 = vld [vmem:[%s4511_s3 + $0x790] ss:$24 sps:$4 sm:$0xff]   ;;  %v3916_v37 = vld [vmem:[%s4511_s3 + $0x7c4] ss:$24 sps:$4 sm:$0xff]  }
 0x1b4   : > { %2492 = vmatprep.subr.bf16.mxu0 %v3832_v38  ;;  %v3914_v38 = vld [vmem:[%s4511_s3 + $0x7c0] ss:$24 sps:$4 sm:$0xff]  }
 0x1b6   : > { %2407 = vmatpush1.bf16.msra.mxu1 %v3827_v39  ;;  %v3919_v39 = vld [vmem:[%s4511_s3 + $0x7f4] ss:$24 sps:$4 sm:$0xff]  }
 0x1b7   : > { %2493 = vmatpush1.bf16.msra.mxu0 %v3830_v40  ;;  %2408 = vmatprep.subr.bf16.mxu1 %v3835_v41  ;;  %v3917_v40 = vld [vmem:[%s4511_s3 + $0x7f0] ss:$24 sps:$4 sm:$0xff]   ;;  %v3922_v41 = vld [vmem:[%s4511_s3 + $0x824] ss:$24 sps:$4 sm:$0xff]  }
 0x1b8   : > { %2494 = vmatprep.subr.bf16.mxu0 %v3838_v42  ;;  %v3920_v42 = vld [vmem:[%s4511_s3 + $0x820] ss:$24 sps:$4 sm:$0xff]  }
 0x1ba   : > { %2409 = vmatpush1.bf16.msra.mxu1 %v3833_v43  ;;  %v3925_v43 = vld [vmem:[%s4511_s3 + $0x854] ss:$24 sps:$4 sm:$0xff]  }
 0x1bb   : > { %2495 = vmatpush1.bf16.msra.mxu0 %v3836_v44  ;;  %2410 = vmatprep.subr.bf16.mxu1 %v3841_v45  ;;  %v3923_v44 = vld [vmem:[%s4511_s3 + $0x850] ss:$24 sps:$4 sm:$0xff]   ;;  %v3928_v45 = vld [vmem:[%s4511_s3 + $0x884] ss:$24 sps:$4 sm:$0xff]  }
 0x1bc   : > { %2496 = vmatprep.subr.bf16.mxu0 %v3844_v46  ;;  %v3926_v46 = vld [vmem:[%s4511_s3 + $0x880] ss:$24 sps:$4 sm:$0xff]  }
 0x1be   : > { %2411 = vmatpush1.bf16.msra.mxu1 %v3839_v47  ;;  %v3931_v47 = vld [vmem:[%s4511_s3 + $0x8b4] ss:$24 sps:$4 sm:$0xff]  }
 0x1bf   : > { %2497 = vmatpush1.bf16.msra.mxu0 %v3842_v48  ;;  %2412 = vmatprep.subr.bf16.mxu1 %v3847_v51  ;;  %v3929_v48 = vld [vmem:[%s4511_s3 + $0x8b0] ss:$24 sps:$4 sm:$0xff]   ;;  %v3934_v51 = vld [vmem:[%s4511_s3 + $0x8e4] ss:$24 sps:$4 sm:$0xff]  }
 0x1c0   : > { %2498 = vmatprep.subr.bf16.mxu0 %v3850_v52  ;;  %v3932_v52 = vld [vmem:[%s4511_s3 + $0x8e0] ss:$24 sps:$4 sm:$0xff]  }
 0x1c2   : > { %2413 = vmatpush1.bf16.msra.mxu1 %v3845_v53  ;;  %v403_v53 = vld [vmem:[#allocation2] sm:$0xff] }
 0x1c3   : > { %2499 = vmatpush1.bf16.msra.mxu0 %v3848_v54  ;;  %2414 = vmatprep.subr.bf16.mxu1 %v3853_v55 }
 0x1c4   : > { %2500 = vmatprep.subr.bf16.mxu0 %v3856_v56  ;;  %v404_v56 = vld [vmem:[#allocation2 + $0x8] sm:$0xff] }
 0x1c6   : > { %2415 = vmatpush1.bf16.msra.mxu1 %v3851_v57 }
 0x1c7   : > { %2501 = vmatpush1.bf16.msra.mxu0 %v3854_v58  ;;  %2416 = vmatprep.subr.bf16.mxu1 %v3859_v59  ;;  %v409_v59 = vld [vmem:[#allocation2 + $0x30] sm:$0xff] }
 0x1c8   : > { %2502 = vmatprep.subr.bf16.mxu0 %v3862_v60 }
 0x1ca   : > { %2417 = vmatpush1.bf16.msra.mxu1 %v3857_v61 }
 0x1cb   : > { %2503 = vmatpush1.bf16.msra.mxu0 %v3860_v62  ;;  %2418 = vmatprep.subr.bf16.mxu1 %v3865_v63  ;;  %v410_v63 = vld [vmem:[#allocation2 + $0x38] sm:$0xff] }
 0x1cc   : > { %2504 = vmatprep.subr.bf16.mxu0 %v3868_v0 }
 0x1ce   : > { %2419 = vmatpush1.bf16.msra.mxu1 %v3863_v1 }
 0x1cf   : > { %2505 = vmatpush1.bf16.msra.mxu0 %v3866_v2  ;;  %2420 = vmatprep.subr.bf16.mxu1 %v3871_v3 }
 0x1d0   : > { %2506 = vmatprep.subr.bf16.mxu0 %v3874_v4 }
 0x1d2   : > { %2421 = vmatpush1.bf16.msra.mxu1 %v3869_v5  ;;  %v406_v5 = vld [vmem:[#allocation2 + $0x18] sm:$0xff] }
 0x1d3   : > { %2507 = vmatpush1.bf16.msra.mxu0 %v3872_v6  ;;  %2422 = vmatprep.subr.bf16.mxu1 %v3877_v9  ;;  %v411_v9 = vld [vmem:[#allocation2 + $0x40] sm:$0xff] }
 0x1d4   : > { %2508 = vmatprep.subr.bf16.mxu0 %v3880_v10 }
 0x1d6   : > { %2423 = vmatpush1.bf16.msra.mxu1 %v3875_v11 }
 0x1d7   : > { %2509 = vmatpush1.bf16.msra.mxu0 %v3878_v13  ;;  %2424 = vmatprep.subr.bf16.mxu1 %v3883_v14  ;;  %v412_v13 = vld [vmem:[#allocation2 + $0x48] sm:$0xff] }
 0x1d8   : > { %2510 = vmatprep.subr.bf16.mxu0 %v3886_v15 }
 0x1da   : > { %2425 = vmatpush1.bf16.msra.mxu1 %v3881_v16 }
 0x1db   : > { %2511 = vmatpush1.bf16.msra.mxu0 %v3884_v17 }
 0x1dc   : > { %2523 = vmatprep.subr.bf16.mxu0 %v3889_v18 }
 0x1dd   : > { %2427 = vmatmul.mubr.bf16.vlgmr.msra.gmra.mrb[4].mxu1 %v4682_v12 }
 0x1de   : > { %2513 = vmatmul.mubr.bf16.vlgmr.msra.gmra.mrb[4].mxu0 %v3936_v21 }
 0x1df   : > { %2524 = vmatpush1.bf16.msra.mxu0 %v3887_v19  ;;  %2555 = vmatprep.mubr.bf16.mxu0 %v4642_v35  ;;  %v3902_v35 = vld [vmem:[%s4511_s3 + $0x700] ss:$24 sps:$4 sm:$0xff]  }
 0x1e0   : > { %2525 = vmatprep.subr.bf16.mxu0 %v3892_v20  ;;  %v407_v19 = vld [vmem:[#allocation2 + $0x20] sm:$0xff]  ;;  %v408_v20 = vld [vmem:[#allocation2 + $0x28] sm:$0xff] }
 0x1e3   : > { %2526 = vmatpush1.bf16.msra.mxu0 %v3890_v22  ;;  %v413_v22 = vld [vmem:[#allocation2 + $0x50] sm:$0xff] }
 0x1e4   : > { %2527 = vmatprep.subr.bf16.mxu0 %v3895_v23 }
 0x1e7   : > { %2528 = vmatpush1.bf16.msra.mxu0 %v3893_v24 }
 0x1e8   : > { %2529 = vmatprep.subr.bf16.mxu0 %v3898_v25  ;;  %v414_v25 = vld [vmem:[#allocation2 + $0x58] sm:$0xff] }
 0x1eb   : > { %2530 = vmatpush1.bf16.msra.mxu0 %v3896_v7 }
 0x1ec   : > { %2531 = vmatprep.subr.bf16.mxu0 %v3901_v8 }
 0x1ef   : > { %2532 = vmatpush1.bf16.msra.mxu0 %v3899_v26 }
 0x1f0   : > { %2533 = vmatprep.subr.bf16.mxu0 %v3904_v49  ;;  %v2213_v27 = vpop.f32.mrb[0].mxu1 }
 0x1f1   : > { %v2215_v28 = vpop.f32.mrb[1].mxu1 }
 0x1f2   : > { %v2217_v30 = vpop.f32.mrb[2].mxu1 }
 0x1f3   : > { %2534 = vmatpush1.bf16.msra.mxu0 %v3902_v35  ;;  %v2219_v32 = vpop.f32.mrb[3].mxu1 }
 0x1f4   : > { %2535 = vmatprep.subr.bf16.mxu0 %v3907_v50  ;;  %v2608_v50 = vlaneseq (!%p3332_p3) }
 0x1f7   : > { %2536 = vmatpush1.bf16.msra.mxu0 %v3905_v29  ;;  %v2651_v29 = vld [vmem:[#allocation9 + $0x8] sm:$0xff] (!%p3332_p3) }
 0x1f8   : > { %2537 = vmatprep.subr.bf16.mxu0 %v3910_v31 }
 0x1fb   : > { %2538 = vmatpush1.bf16.msra.mxu0 %v3908_v33 }
 0x1fc   : > { %2539 = vmatprep.subr.bf16.mxu0 %v3913_v34 }
 0x1ff   : > { %2540 = vmatpush1.bf16.msra.mxu0 %v3911_v36 }
 0x200   : > { %2541 = vmatprep.subr.bf16.mxu0 %v3916_v37 }
 0x203   : > { %2542 = vmatpush1.bf16.msra.mxu0 %v3914_v38 }
 0x204   : > { %2543 = vmatprep.subr.bf16.mxu0 %v3919_v39 }
 0x207   : > { %2544 = vmatpush1.bf16.msra.mxu0 %v3917_v40 }
 0x208   : > { %2545 = vmatprep.subr.bf16.mxu0 %v3922_v41 }
 0x20b   : > { %2546 = vmatpush1.bf16.msra.mxu0 %v3920_v42 }
 0x20c   : > { %2547 = vmatprep.subr.bf16.mxu0 %v3925_v43 }
 0x20f   : > { %2548 = vmatpush1.bf16.msra.mxu0 %v3923_v44  ;;  %v2658_v44 = vunpack.c.l.bf16 (!%p3332_p3), %v2651_v29 }
 0x210   : > { %2549 = vmatprep.subr.bf16.mxu0 %v3928_v45 }
 0x213   : > { %2550 = vmatpush1.bf16.msra.mxu0 %v3926_v46 }
 0x214   : > { %2551 = vmatprep.subr.bf16.mxu0 %v3931_v47 }
 0x217   : > { %2552 = vmatpush1.bf16.msra.mxu0 %v3929_v48 }
 0x218   : > { %2553 = vmatprep.subr.bf16.mxu0 %v3934_v51  ;;  %v2652_v51 = vld [vmem:[#allocation9 + $0x10] sm:$0xff] (!%p3332_p3) }
 0x21b   : > { %2554 = vmatpush1.bf16.msra.mxu0 %v3932_v52 }
 0x21e   : > { %2556 = vmatmul.mubr.bf16.vlgmr.msra.gmra.mrb[4].mxu0 %v4682_v12  ;;  %v405_v12 = vld [vmem:[#allocation2 + $0x10] sm:$0xff] }
 0x231   : > { %v2299_v54 = vpop.f32.mrb[0].mxu0 }
 0x232   : > { %v3350_v55 = vadd.f32 %v2299_v54, %v2213_v27  ;;  %v2301_v57 = vpop.f32.mrb[1].mxu0  ;;  %v2609_v27 = vshrl.u32 (!%p3332_p3), %v2608_v50, 7 }
 0x233   : > { %v3351_v58 = vadd.f32 %v2301_v57, %v2215_v28  ;;  %v2303_v60 = vpop.f32.mrb[2].mxu0  ;;  %v2650_v28 = vld [vmem:[#allocation9] sm:$0xff] (!%p3332_p3) }
 0x234   : > { %v2566_v61 = vadd.f32 %v3350_v55, %v403_v53  ;;  %v3352_v62 = vadd.f32 %v2303_v60, %v2217_v30  ;;  %v2305_v0 = vpop.f32.mrb[3].mxu0  ;;  %v2606_v30 = vld [vmem:[#allocation8] sm:$0x3f] (!%p3332_p3)  ;;  %v2656_v31 = vunpack.c.l.bf16 (!%p3332_p3), %v2650_v28  ;;  %v4855_v33 = vsub.s32 (!%p3332_p3), 0, %v2609_v27 }
 0x235   : > { %v2567_v1 = vadd.f32 %v3351_v58, %v404_v56  ;;  %v3353_v2 = vadd.f32 %v2305_v0, %v2219_v32  ;;  %v4857_v34 = vsub.s32 (!%p3332_p3), 1, %v2609_v27  ;;  %v4859_v36 = vsub.s32 (!%p3332_p3), 2, %v2609_v27 }
 0x236   : > { %2578 = vst [vmem:[#allocation2] sm:$0xff] %v2566_v61  ;;  %v2572_v3 = vadd.f32 %v3352_v62, %v409_v59  ;;  %v4861_v37 = vsub.s32 (!%p3332_p3), 3, %v2609_v27  ;;  %v4863_v41 = vsub.s32 (!%p3332_p3), 4, %v2609_v27  ;;  %v4865_v42 = vsub.s32 (!%p3332_p3), 5, %v2609_v27 }
 0x237   : > { %2579 = vst [vmem:[#allocation2 + $0x8] sm:$0xff] %v2567_v1  ;;  %v2573_v4 = vadd.f32 %v3353_v2, %v410_v63  ;;  %v2657_v43 = vunpack.c.h.bf16 (!%p3332_p3), %v2650_v28  ;;  %v2611_v45 = vrot.slane (!%p3332_p3), %v2606_v30, %v4855_v33  ;;  %v2615_v46 = vrot.slane (!%p3332_p3), %v2606_v30, %v4857_v34 }
 0x238   : > { %2584 = vst [vmem:[#allocation2 + $0x30] sm:$0xff] %v2572_v3  ;;  %v2619_v47 = vrot.slane (!%p3332_p3), %v2606_v30, %v4859_v36  ;;  %v2623_v48 = vrot.slane (!%p3332_p3), %v2606_v30, %v4861_v37  ;;  %v2627_v53 = vrot.slane (!%p3332_p3), %v2606_v30, %v4863_v41  ;;  %v2631_v54 = vrot.slane (!%p3332_p3), %v2606_v30, %v4865_v42 }
 0x239   : > { %2585 = vst [vmem:[#allocation2 + $0x38] sm:$0xff] %v2573_v4  ;;  %v2659_v55 = vunpack.c.h.bf16 (!%p3332_p3), %v2651_v29  ;;  %v2660_v61 = vunpack.c.l.bf16 (!%p3332_p3), %v2652_v51 }
 0x23d   : > { %v2594_v32 = vld [vmem:[#allocation2] sm:$0xff] (!%p3332_p3) }
 0x23e   : > { %v2595_v38 = vld [vmem:[#allocation2 + $0x8] sm:$0xff] (!%p3332_p3)  ;;  %v2638_v56 = vadd.f32 (!%p3332_p3), %v2611_v45, %v2594_v32 }
 0x23f   : > { %v2639_v57 = vadd.f32 (!%p3332_p3), %v2615_v46, %v2595_v38  ;;  %v2600_v2 = vld [vmem:[#allocation2 + $0x30] sm:$0xff] (!%p3332_p3) }
 0x240   : > { %v2668_v63 = vadd.f32 (!%p3332_p3), %v2656_v31, %v2638_v56  ;;  %v2601_v3 = vld [vmem:[#allocation2 + $0x38] sm:$0xff] (!%p3332_p3) }
 0x241   : > { %v2669_v0 = vadd.f32 (!%p3332_p3), %v2657_v43, %v2639_v57 }
 0x2b0   : > { %v2428_v6 = vpop.f32.mrb[4].mxu1 }
 0x2b1   : > { %v2568_v10 = vadd.f32 %v2428_v6, %v405_v12  ;;  %v2430_v11 = vpop.f32.mrb[5].mxu1 }
 0x2b2   : > { %v2569_v14 = vadd.f32 %v2430_v11, %v406_v5  ;;  %v2432_v15 = vpop.f32.mrb[6].mxu1  ;;  %v2661_v5 = vunpack.c.h.bf16 (!%p3332_p3), %v2652_v51  ;;  %v2653_v11 = vld [vmem:[#allocation9 + $0x18] sm:$0xff] (!%p3332_p3) }
 0x2b3   : > { %2580 = vst [vmem:[#allocation2 + $0x10] sm:$0xff] %v2568_v10  ;;  %v2574_v16 = vadd.f32 %v2432_v15, %v411_v9  ;;  %v2434_v17 = vpop.f32.mrb[7].mxu1  ;;  %v2682_v9 = vadd.f32 (!%p3332_p3), %v2669_v0, %v2668_v63 }
 0x2b4   : > { %2581 = vst [vmem:[#allocation2 + $0x18] sm:$0xff] %v2569_v14  ;;  %v2575_v18 = vadd.f32 %v2434_v17, %v412_v13  ;;  %v2644_v13 = vadd.f32 (!%p3332_p3), %v2611_v45, %v2600_v2  ;;  %v2654_v14 = vld [vmem:[#allocation9 + $0x20] sm:$0xff] (!%p3332_p3) }
 0x2b5   : > { %2586 = vst [vmem:[#allocation2 + $0x40] sm:$0xff] %v2574_v16 }
 0x2b6   : > { %2587 = vst [vmem:[#allocation2 + $0x48] sm:$0xff] %v2575_v18  ;;  %v2645_v18 = vadd.f32 (!%p3332_p3), %v2615_v46, %v2601_v3 }
 0x2ba   : > { %v2596_v39 = vld [vmem:[#allocation2 + $0x10] sm:$0xff] (!%p3332_p3) }
 0x2bb   : > { %v2597_v40 = vld [vmem:[#allocation2 + $0x18] sm:$0xff] (!%p3332_p3)  ;;  %v2640_v58 = vadd.f32 (!%p3332_p3), %v2619_v47, %v2596_v39 }
 0x2bc   : > { %v2641_v59 = vadd.f32 (!%p3332_p3), %v2623_v48, %v2597_v40  ;;  %v2602_v4 = vld [vmem:[#allocation2 + $0x40] sm:$0xff] (!%p3332_p3) }
 0x2bd   : > { %v2670_v1 = vadd.f32 (!%p3332_p3), %v2658_v44, %v2640_v58  ;;  %v2603_v10 = vld [vmem:[#allocation2 + $0x48] sm:$0xff] (!%p3332_p3) }
 0x2be   : > { %v2671_v6 = vadd.f32 (!%p3332_p3), %v2659_v55, %v2641_v59 }
 0x2bf   : > { %v2683_v16 = vadd.f32 (!%p3332_p3), %v2682_v9, %v2670_v1 }
 0x2f1   : > { %v2557_v21 = vpop.f32.mrb[4].mxu0  ;;  %2593 = sbr.rel (%p3332_p3) target bundleno = 1103 (0x44f), region = 76 }
 0x2f2   : > { %v2570_v23 = vadd.f32 %v2557_v21, %v407_v19  ;;  %v2559_v24 = vpop.f32.mrb[5].mxu0  ;;  %v2646_v19 = vadd.f32 (!%p3332_p3), %v2619_v47, %v2602_v4  ;;  %v2647_v21 = vadd.f32 (!%p3332_p3), %v2623_v48, %v2603_v10 }
 0x2f3   : > { %v2571_v7 = vadd.f32 %v2559_v24, %v408_v20  ;;  %v2561_v8 = vpop.f32.mrb[6].mxu0  ;;  %v2655_v20 = vld [vmem:[#allocation9 + $0x28] sm:$0xff] (!%p3332_p3) }
 0x2f4   : > { %2582 = vst [vmem:[#allocation2 + $0x20] sm:$0xff] %v2570_v23  ;;  %v2576_v26 = vadd.f32 %v2561_v8, %v413_v22  ;;  %v2563_v49 = vpop.f32.mrb[7].mxu0  ;;  %v2662_v22 = vunpack.c.l.bf16 (!%p3332_p3), %v2653_v11  ;;  %v2663_v23 = vunpack.c.h.bf16 (!%p3332_p3), %v2653_v11  ;;  %v2664_v8 = vunpack.c.l.bf16 (!%p3332_p3), %v2654_v14 }
 0x2f5   : > { %2583 = vst [vmem:[#allocation2 + $0x28] sm:$0xff] %v2571_v7  ;;  %v2577_v35 = vadd.f32 %v2563_v49, %v414_v25  ;;  %v2684_v25 = vadd.f32 (!%p3332_p3), %v2683_v16, %v2671_v6  ;;  %v2667_v31 = vunpack.c.h.bf16 (!%p3332_p3), %v2655_v20 }
 0x2f6   : > { %2588 = vst [vmem:[#allocation2 + $0x50] sm:$0xff] %v2576_v26  ;;  %v2665_v26 = vunpack.c.h.bf16 (!%p3332_p3), %v2654_v14  ;;  %v2674_v50 = vadd.f32 (!%p3332_p3), %v2662_v22, %v2644_v13  ;;  %v2675_v27 = vadd.f32 (!%p3332_p3), %v2663_v23, %v2645_v18  ;;  %v2676_v29 = vadd.f32 (!%p3332_p3), %v2664_v8, %v2646_v19 }
 0x2f7   : > { %2589 = vst [vmem:[#allocation2 + $0x58] sm:$0xff] %v2577_v35  ;;  %v2666_v35 = vunpack.c.l.bf16 (!%p3332_p3), %v2655_v20 }
 0x2f8   : > { %v2677_v32 = vadd.f32 %v2665_v26, %v2647_v21  ;;  %v2689_v38 = vadd.f32 %v2675_v27, %v2674_v50 }
 0x2fa   : > { %v2690_v43 = vadd.f32 %v2689_v38, %v2676_v29 }
 0x2fb   : > { %v2598_v52 = vld [vmem:[#allocation2 + $0x20] sm:$0xff] }
 0x2fc   : > { %v2599_v60 = vld [vmem:[#allocation2 + $0x28] sm:$0xff]  ;;  %v2642_v62 = vadd.f32 %v2627_v53, %v2598_v52  ;;  %v2691_v45 = vadd.f32 %v2690_v43, %v2677_v32 }
 0x2fd   : > { %v2643_v12 = vadd.f32 %v2631_v54, %v2599_v60  ;;  %v2604_v17 = vld [vmem:[#allocation2 + $0x50] sm:$0xff] }
 0x2fe   : > { %v2672_v15 = vadd.f32 %v2660_v61, %v2642_v62  ;;  %v2605_v7 = vld [vmem:[#allocation2 + $0x58] sm:$0xff]  ;;  %v2648_v49 = vadd.f32 %v2627_v53, %v2604_v17 }
 0x2ff   : > { %v2673_v24 = vadd.f32 %v2661_v5, %v2643_v12  ;;  %v2649_v30 = vadd.f32 %v2631_v54, %v2605_v7 }
 0x300   : > { %v2685_v28 = vadd.f32 %v2684_v25, %v2672_v15  ;;  %v2678_v40 = vadd.f32 %v2666_v35, %v2648_v49 }
 0x301   : > { %v2679_v44 = vadd.f32 %v2667_v31, %v2649_v30 }
 0x302   : > { %v2686_v39 = vadd.f32 %v2685_v28, %v2673_v24  ;;  %v2692_v46 = vadd.f32 %v2691_v45, %v2678_v40  ;;  %v2681_v28 = vld [vmem:[#allocation12] sm:$0x3f] }
 0x303   : > { %v2802_v43 = vrot.slane %v2681_v28, %v4855_v33  ;;  %v2810_v45 = vrot.slane %v2681_v28, %v4859_v36 }
 0x304   : > { %2687 = vadd.xlane.f32.xlu0 %v2686_v39  ;;  %v2693_v47 = vadd.f32 %v2692_v46, %v2679_v44  ;;  %v2814_v46 = vrot.slane %v2681_v28, %v4861_v37 }
 0x308   : > { %2694 = vadd.xlane.f32.xlu0 %v2693_v47 }
 0x391   : > { %v2688_v48 = vpop.xlane.xlu0 %2687 }
 0x392   : > { %v2697_v51 = vmul.f32 0.0013020834, %v2688_v48 }
 0x394   : > { %v2699_v52 = vsub.f32 %v2668_v63, %v2697_v51  ;;  %v2700_v53 = vsub.f32 %v2669_v0, %v2697_v51  ;;  %v2701_v55 = vsub.f32 %v2670_v1, %v2697_v51  ;;  %v2702_v56 = vsub.f32 %v2671_v6, %v2697_v51 }
 0x395   : > { %v2695_v58 = vpop.xlane.xlu0 %2694  ;;  %v2703_v59 = vsub.f32 %v2672_v15, %v2697_v51  ;;  %v2704_v2 = vsub.f32 %v2673_v24, %v2697_v51 }
 0x396   : > { %v2711_v57 = vmul.f32 %v2699_v52, %v2699_v52  ;;  %v2712_v54 = vmul.f32 %v2700_v53, %v2700_v53  ;;  %v2713_v60 = vmul.f32 %v2701_v55, %v2701_v55  ;;  %v2698_v62 = vmul.f32 0.0013020834, %v2695_v58 }
 0x397   : > { %v2714_v3 = vmul.f32 %v2702_v56, %v2702_v56  ;;  %v2715_v63 = vmul.f32 %v2703_v59, %v2703_v59  ;;  %v2716_v11 = vmul.f32 %v2704_v2, %v2704_v2  ;;  %v2822_v58 = vrot.slane %v2681_v28, %v4865_v42 }
 0x398   : > { %v2723_v61 = vadd.f32 %v2712_v54, %v2711_v57  ;;  %v4873_v12 = vsub.f32 %v2674_v50, %v2698_v62  ;;  %v4875_v5 = vsub.f32 %v2675_v27, %v2698_v62  ;;  %v4877_v9 = vsub.f32 %v2676_v29, %v2698_v62  ;;  %v2680_v50 = vld [vmem:[#allocation11] sm:$0x3f] }
 0x399   : > { %v4879_v1 = vsub.f32 %v2677_v32, %v2698_v62  ;;  %v4885_v14 = vsub.f32 %v2678_v40, %v2698_v62  ;;  %v2710_v18 = vsub.f32 %v2679_v44, %v2698_v62  ;;  %v2759_v29 = vrot.slane %v2680_v50, %v4855_v33 }
 0x39a   : > { %v2724_v4 = vadd.f32 %v2723_v61, %v2713_v60  ;;  %v2717_v6 = vmul.f32 %v4873_v12, %v4873_v12  ;;  %v2718_v10 = vmul.f32 %v4875_v5, %v4875_v5  ;;  %v2719_v15 = vmul.f32 %v4877_v9, %v4877_v9 }
 0x39b   : > { %v2720_v19 = vmul.f32 %v4879_v1, %v4879_v1  ;;  %v2721_v21 = vmul.f32 %v4885_v14, %v4885_v14  ;;  %v2722_v23 = vmul.f32 %v2710_v18, %v2710_v18  ;;  %v2763_v30 = vrot.slane %v2680_v50, %v4857_v34 }
 0x39c   : > { %v2725_v0 = vadd.f32 %v2724_v4, %v2714_v3  ;;  %v2730_v16 = vadd.f32 %v2718_v10, %v2717_v6  ;;  %v2767_v31 = vrot.slane %v2680_v50, %v4859_v36  ;;  %v2771_v32 = vrot.slane %v2680_v50, %v4861_v37 }
 0x39d   : > { %v2775_v38 = vrot.slane %v2680_v50, %v4863_v41  ;;  %v2779_v39 = vrot.slane %v2680_v50, %v4865_v42  ;;  %v2806_v44 = vrot.slane %v2681_v28, %v4857_v34  ;;  %v2818_v54 = vrot.slane %v2681_v28, %v4863_v41 }
 0x39e   : > { %v2726_v13 = vadd.f32 %v2725_v0, %v2715_v63  ;;  %v2731_v20 = vadd.f32 %v2730_v16, %v2719_v15 }
 0x3a0   : > { %v2727_v17 = vadd.f32 %v2726_v13, %v2716_v11  ;;  %v2732_v22 = vadd.f32 %v2731_v20, %v2720_v19 }
 0x3a2   : > { %2728 = vadd.xlane.f32.xlu1 %v2727_v17  ;;  %v2733_v24 = vadd.f32 %v2732_v22, %v2721_v21 }
 0x3a4   : > { %v2734_v25 = vadd.f32 %v2733_v24, %v2722_v23 }
 0x3a6   : > { %2735 = vadd.xlane.f32.xlu1 %v2734_v25 }
 0x42f   : > { %v2729_v7 = vpop.xlane.xlu1 %2728 }
 0x430   : > { %v2737_v8 = vmul.f32 0.0013020834, %v2729_v7 }
 0x432   : > { %v2739_v26 = vadd.f32 1e-12, %v2737_v8 }
 0x433   : > { %v2736_v49 = vpop.xlane.xlu1 %2735 }
 0x434   : > { %3937 = vrsqrt.f32 %v2739_v26  ;;  %v2738_v35 = vmul.f32 0.0013020834, %v2736_v49 }
 0x436   : > { %v2740_v27 = vadd.f32 1e-12, %v2738_v35 }
 0x438   : > { %3939 = vrsqrt.f32 %v2740_v27 }
 0x43e   : > { %v3938_v40 = vpop.eup %3937 }
 0x43f   : > { %v2743_v47 = vmul.f32 %v3938_v40, %v2699_v52  ;;  %v2744_v48 = vmul.f32 %v3938_v40, %v2700_v53  ;;  %v2745_v51 = vmul.f32 %v3938_v40, %v2701_v55  ;;  %v2746_v57 = vmul.f32 %v3938_v40, %v2702_v56 }
 0x440   : > { %v2747_v60 = vmul.f32 %v3938_v40, %v2703_v59  ;;  %v2748_v61 = vmul.f32 %v3938_v40, %v2704_v2 }
 0x441   : > { %v2786_v62 = vmul.f32 %v2759_v29, %v2743_v47  ;;  %v2787_v3 = vmul.f32 %v2763_v30, %v2744_v48  ;;  %v2788_v4 = vmul.f32 %v2767_v31, %v2745_v51  ;;  %v2789_v33 = vmul.f32 %v2771_v32, %v2746_v57 }
 0x442   : > { %v2790_v63 = vmul.f32 %v2775_v38, %v2747_v60  ;;  %v2791_v34 = vmul.f32 %v2779_v39, %v2748_v61  ;;  %v3940_v55 = vpop.eup %3939 }
 0x443   : > { %v2829_v0 = vadd.f32 %v2802_v43, %v2786_v62  ;;  %v2830_v36 = vadd.f32 %v2806_v44, %v2787_v3  ;;  %v2831_v6 = vadd.f32 %v2810_v45, %v2788_v4  ;;  %v2832_v37 = vadd.f32 %v2814_v46, %v2789_v33 }
 0x444   : > { %v2833_v52 = vadd.f32 %v2818_v54, %v2790_v63  ;;  %v2834_v53 = vadd.f32 %v2822_v58, %v2791_v34  ;;  %v2749_v42 = vmul.f32 %v3940_v55, %v4873_v12  ;;  %v2750_v59 = vmul.f32 %v3940_v55, %v4875_v5 }
 0x445   : > { %v3344_v56 = vpack.c.bf16 %v2830_v36, %v2829_v0  ;;  %v3345_v10 = vpack.c.bf16 %v2832_v37, %v2831_v6  ;;  %v2751_v2 = vmul.f32 %v3940_v55, %v4877_v9  ;;  %v2752_v11 = vmul.f32 %v3940_v55, %v4879_v1 }
 0x446   : > { %v3346_v41 = vpack.c.bf16 %v2834_v53, %v2833_v52  ;;  %v2753_v13 = vmul.f32 %v3940_v55, %v4885_v14  ;;  %v2754_v15 = vmul.f32 %v3940_v55, %v2710_v18  ;;  %v2792_v16 = vmul.f32 %v2759_v29, %v2749_v42 }
 0x447   : > { %2877 = vst [vmem:[#allocation14] sm:$0xff] %v3344_v56  ;;  %2878 = vst [vmem:[#allocation14 + $0x8] sm:$0xff] %v3345_v10  ;;  %v2793_v17 = vmul.f32 %v2763_v30, %v2750_v59  ;;  %v2794_v19 = vmul.f32 %v2767_v31, %v2751_v2  ;;  %v2795_v20 = vmul.f32 %v2771_v32, %v2752_v11 }
 0x448   : > { %2879 = vst [vmem:[#allocation14 + $0x10] sm:$0xff] %v3346_v41  ;;  %v2796_v21 = vmul.f32 %v2775_v38, %v2753_v13  ;;  %v2797_v22 = vmul.f32 %v2779_v39, %v2754_v15  ;;  %v2835_v23 = vadd.f32 %v2802_v43, %v2792_v16 }
 0x449   : > { %v2836_v12 = vadd.f32 %v2806_v44, %v2793_v17  ;;  %v2837_v24 = vadd.f32 %v2810_v45, %v2794_v19  ;;  %v2838_v5 = vadd.f32 %v2814_v46, %v2795_v20 }
 0x44a   : > { %v2839_v25 = vadd.f32 %v2818_v54, %v2796_v21  ;;  %v2840_v9 = vadd.f32 %v2822_v58, %v2797_v22 }
 0x44b   : > { %v3347_v7 = vpack.c.bf16 %v2836_v12, %v2835_v23  ;;  %v3348_v8 = vpack.c.bf16 %v2838_v5, %v2837_v24 }
 0x44c   : > { %v3349_v26 = vpack.c.bf16 %v2840_v9, %v2839_v25 }
 0x44d   : > { %2880 = vst [vmem:[#allocation14 + $0x18] sm:$0xff] %v3347_v7  ;;  %2881 = vst [vmem:[#allocation14 + $0x20] sm:$0xff] %v3348_v8 }
 0x44e   : > { %2882 = vst [vmem:[#allocation14 + $0x28] sm:$0xff] %v3349_v26 }
 0x44f PF: > { %p3433_p0 = scmp.eq.s32.totalorder %s4288_s27, 3  ;;  %s4221_s24 = smov [#allocation14]  }
 0x450   : > { %s2893_s28 = sshll.u32 %s4221_s24, 4  ;;  %s2894_s28 = int_to_ptr.vmem [resolvable:$true] %s2893_s28 }
 0x451   : > { %s4113_s29 = scalar_lea.vmem %s2894_s28, 768  ;;  %p4120_p12 = scmp.lt.s32.totalorder %s2894_s28, %s2894_s28 }
 0x452   : > { %p4114_p6 = scmp.ne.s32.totalorder %s2894_s28, %s4113_s29  ;;  %p4121_p9 = scmp.lt.s32.totalorder %s4113_s29, %s4113_s29 }
 0x454   : > { %p4115_p8 = pnand %p4114_p6, %p3433_p0  ;;  %p4122_p11 = por %p4121_p9, %p4120_p12 }
 0x456   : > { %p4116_p10 = pneg %p4115_p8 }
 0x458   : > { %p4123_p1 = pnand %p4122_p11, %p4116_p10 }
 0x45a   : > { %4126 = shalt.err (!%p4123_p1)
}
 0x45b   : > { %s4127_s20 = scalar_lea.hbm %s4957_s6, 768 }
 0x45c   : > { %p4128_p4 = scmp.ne.s32.totalorder %s4957_s6, %s4127_s20  ;;  %p4133_p13 = scmp.lt.u32.totalorder %s4127_s20, %s4957_s6 }
 0x45e   : > { %p4129_p5 = pnand %p4128_p4, %p3433_p0 }
 0x460   : > { %p4130_p7 = pneg %p4129_p5 }
 0x462   : > { %p4135_p2 = pnand %p4133_p13, %p4130_p7 }
 0x464   : > { %4138 = shalt.err (!%p4135_p2)
}
 0x465   : > { %s4222_s17 = smov 384   ;;  %s4223_s19 = smov 24  }
 0x466   : > { %3400 = dma.vmem_to_hbm [thread:$0]  (%p3433_p0), %s2894_s28, 768, %s4957_s6, [#allocation5], %s4222_s17, %s4222_s17, %s4223_s19  }
 0x467   : > { %4184 = dma.done.wait (%p3433_p0), [#allocation5], 768  }
 0x468   : > { %4186 = vsyncadd (%p3433_p0), [#allocation5], 4294966528 }
 0x469 PF: > { %s25_s26 = sadd.s32 1, %s4209_s26   ;;  %s4985_s21 = smov %s4193_s22 }
 0x46a   : > { %p22_p3 = scmp.ge.s32.totalorder %s25_s26, 6   ;;  %s4986_s22 = smov %s4197_s23 }
 0x46b   : > { %s4987_s23 = smov %s4423_s16  ;;  %s4988_s24 = smov %s4205_s25 }
 0x46c   : > { %s4989_s25 = smov %s4991_s18  ;;  %24 = sbr.rel (!%p22_p3) target bundleno = 14 (0xe), region = 120 }
 0x473   :  { %2909 = vsyncpa [#allocation4], 1 }
 0x474   :  { %2911 = vsyncpa [#allocation4 + $0x1], 1 }
 0x475   :  { %2912 = vsyncpa [#allocation7], 1 }
 0x476   :  { %2914 = vsyncpa [#allocation7 + $0x1], 1 }
 0x477   :  { %2915 = vsyncpa [#allocation10], 1 }
 0x478   :  { %2916 = vsyncpa [#allocation13], 1 }
 0x479   :  { %2917 = vsyncpa [#allocation5], 1 }
 0x47a   :  { %2919 = vsyncpa [#allocation5 + $0x1], 1 }

// kernel: bert_classifier_forward.23
= control target key start
LH: loop header
LB: loop body
LE: loop exit
PB: predicated region body
PF: predicated region fallthrough
CT: control target
= control target key end

     0   :  { %10 = vsyncpa [#allocation3], 0  ;;  %s4056_s0 = inlined_call_operand.hbm [shape: bf16[2,768], index: 0, kind: input, shape index: {}]   ;;  %s4057_s1 = inlined_call_operand.hbm [shape: bf16[768,768], index: 1, kind: input, shape index: {}]   ;;  %s4058_s2 = inlined_call_operand.hbm [shape: f32[1,768], index: 2, kind: input, shape index: {}]   ;;  %s4059_s3 = inlined_call_operand.hbm [shape: bf16[768,128], index: 3, kind: input, shape index: {}]   ;;  %s4060_s4 = inlined_call_operand.hbm [shape: f32[1,128], index: 4, kind: input, shape index: {}]   ;;  %s4061_s5 = inlined_call_operand.hbm [shape: f32[2,128], index: 5, kind: output, shape index: {}]  }
   0x1   :  { %11 = vsyncpa [#allocation6], 0 }
   0x2   :  { %12 = vsyncpa [#allocation9], 0 }
   0x3   :  { %13 = vsyncpa [#allocation4], 0  ;;  %s3884_s18 = smov [#allocation5]   ;;  %s3744_s22 = scalar_lea.hbm %s4057_s1, 36864 }
   0x4   :  { %s29_s19 = sshll.u32 %s3884_s18, 4  ;;  %p3745_p0 = scmp.ne.s32.totalorder %s4057_s1, %s3744_s22  ;;  %s30_s19 = int_to_ptr.vmem [resolvable:$true] %s29_s19 }
   0x5   :  { %p3748_p1 = scmp.lt.u32.totalorder %s3744_s22, %s4057_s1 }
   0x7   :  { %p3750_p2 = pnand %p3748_p1, %p3745_p0 }
   0x9   :  { %3753 = shalt.err (!%p3750_p2)
}
   0xa   :  { %s3754_s27 = scalar_lea.vmem %s30_s19, 36864  ;;  %p3759_p4 = scmp.lt.s32.totalorder %s30_s19, %s30_s19 }
   0xb   :  { %p3755_p3 = scmp.ne.s32.totalorder %s30_s19, %s3754_s27  ;;  %p3760_p5 = scmp.lt.s32.totalorder %s3754_s27, %s3754_s27 }
   0xd   :  { %p3761_p6 = por %p3760_p5, %p3759_p4 }
   0xf   :  { %p3762_p7 = pnand %p3761_p6, %p3755_p3 }
  0x11   :  { %3765 = shalt.err (!%p3762_p7)
}
  0x12   :  { %s3885_s28 = smov 384   ;;  %s3886_s29 = smov 24  }
  0x13   :  { %35 = dma.hbm_to_vmem [thread:$0]  %s4057_s1, 36864, %s30_s19, [#allocation6], %s3885_s28, %s3885_s28, %s3886_s29  }
  0x14   :  { %s3887_s7 = smov [#allocation8]   ;;  %s3766_s11 = scalar_lea.hbm %s4059_s3, 6144 }
  0x15   :  { %s51_s8 = sshll.u32 %s3887_s7, 4  ;;  %p3767_p8 = scmp.ne.s32.totalorder %s4059_s3, %s3766_s11  ;;  %s52_s8 = int_to_ptr.vmem [resolvable:$true] %s51_s8 }
  0x16   :  { %p3770_p9 = scmp.lt.u32.totalorder %s3766_s11, %s4059_s3 }
  0x18   :  { %p3772_p10 = pnand %p3770_p9, %p3767_p8 }
  0x1a   :  { %3775 = shalt.err (!%p3772_p10)
}
  0x1b   :  { %s3776_s16 = scalar_lea.vmem %s52_s8, 6144  ;;  %p3781_p12 = scmp.lt.s32.totalorder %s52_s8, %s52_s8 }
  0x1c   :  { %p3777_p11 = scmp.ne.s32.totalorder %s52_s8, %s3776_s16  ;;  %p3782_p13 = scmp.lt.s32.totalorder %s3776_s16, %s3776_s16 }
  0x1e   :  { %p3783_p0 = por %p3782_p13, %p3781_p12 }
  0x20   :  { %p3784_p1 = pnand %p3783_p0, %p3777_p11 }
  0x22   :  { %3787 = shalt.err (!%p3784_p1)
}
  0x23   :  { %s3888_s1 = smov 64   ;;  %s3889_s17 = smov 4  }
  0x24   :  { %57 = dma.hbm_to_vmem [thread:$0]  %s4059_s3, 6144, %s52_s8, [#allocation9], %s3888_s1, %s3888_s1, %s3889_s17  }
  0x25   :  { %s3890_s20 = smov [#allocation2]   ;;  %s3891_s22 = smov [#allocation7]  }
  0x26   :  { %s20_s21 = sshll.u32 %s3890_s20, 4  ;;  %s42_s23 = sshll.u32 %s3891_s22, 4  ;;  %s21_s21 = int_to_ptr.vmem [resolvable:$true] %s20_s21  ;;  %s43_s23 = int_to_ptr.vmem [resolvable:$true] %s42_s23 }
  0x27   :  { %s3788_s26 = scalar_lea.hbm %s4056_s0, 96 }
  0x28   :  { %p3789_p2 = scmp.ne.s32.totalorder %s4056_s0, %s3788_s26  ;;  %p3792_p3 = scmp.lt.u32.totalorder %s3788_s26, %s4056_s0 }
  0x2a   :  { %p3794_p4 = pnand %p3792_p3, %p3789_p2 }
  0x2c   :  { %3797 = shalt.err (!%p3794_p4)
}
  0x2d   :  { %s3798_s3 = scalar_lea.vmem %s21_s21, 96  ;;  %p3803_p6 = scmp.lt.s32.totalorder %s21_s21, %s21_s21 }
  0x2e   :  { %p3799_p5 = scmp.ne.s32.totalorder %s21_s21, %s3798_s3  ;;  %p3804_p7 = scmp.lt.s32.totalorder %s3798_s3, %s3798_s3 }
  0x30   :  { %p3805_p8 = por %p3804_p7, %p3803_p6 }
  0x32   :  { %p3806_p9 = pnand %p3805_p8, %p3799_p5 }
  0x34   :  { %3809 = shalt.err (!%p3806_p9)
}
  0x35   :  { %23 = dma.hbm_to_vmem [thread:$0]  %s4056_s0, 96, %s21_s21, [#allocation3]  }
  0x36   :  { %s3810_s10 = scalar_lea.hbm %s4058_s2, 96 }
  0x37   :  { %p3811_p10 = scmp.ne.s32.totalorder %s4058_s2, %s3810_s10  ;;  %p3814_p11 = scmp.lt.u32.totalorder %s3810_s10, %s4058_s2 }
  0x39   :  { %p3816_p12 = pnand %p3814_p11, %p3811_p10 }
  0x3b   :  { %3819 = shalt.err (!%p3816_p12)
}
  0x3c   :  { %s3820_s15 = scalar_lea.vmem %s43_s23, 96  ;;  %p3825_p0 = scmp.lt.s32.totalorder %s43_s23, %s43_s23 }
  0x3d   :  { %p3821_p13 = scmp.ne.s32.totalorder %s43_s23, %s3820_s15  ;;  %p3826_p1 = scmp.lt.s32.totalorder %s3820_s15, %s3820_s15 }
  0x3f   :  { %p3827_p2 = por %p3826_p1, %p3825_p0 }
  0x41   :  { %p3828_p3 = pnand %p3827_p2, %p3821_p13 }
  0x43   :  { %3831 = shalt.err (!%p3828_p3)
}
  0x44   :  { %45 = dma.hbm_to_vmem [thread:$0]  %s4058_s2, 96, %s43_s23, [#allocation6]  }
  0x45   :  { %s3892_s1 = smov [#allocation10]   ;;  %s3832_s20 = scalar_lea.hbm %s4060_s4, 16 }
  0x46   :  { %s64_s17 = sshll.u32 %s3892_s1, 4  ;;  %p3833_p4 = scmp.ne.s32.totalorder %s4060_s4, %s3832_s20  ;;  %s65_s17 = int_to_ptr.vmem [resolvable:$true] %s64_s17 }
  0x47   :  { %p3836_p5 = scmp.lt.u32.totalorder %s3832_s20, %s4060_s4 }
  0x49   :  { %p3838_p6 = pnand %p3836_p5, %p3833_p4 }
  0x4b   :  { %3841 = shalt.err (!%p3838_p6)
}
  0x4c   :  { %s3842_s26 = scalar_lea.vmem %s65_s17, 16  ;;  %s3846_s2 = scalar_lea.vmem %s65_s17, 32 }
  0x4d   :  { %p3843_p7 = scmp.ne.s32.totalorder %s65_s17, %s3842_s26  ;;  %p3847_p8 = scmp.lt.s32.totalorder %s65_s17, %s65_s17 }
  0x4e   :  { %p3848_p9 = scmp.lt.s32.totalorder %s3846_s2, %s3842_s26 }
  0x50   :  { %p3849_p10 = por %p3848_p9, %p3847_p8 }
  0x52   :  { %p3850_p11 = pnand %p3849_p10, %p3843_p7 }
  0x54   :  { %3853 = shalt.err (!%p3850_p11)
}
  0x55   :  { %67 = dma.hbm_to_vmem [thread:$0]  %s4060_s4, 16, %s65_s17, [#allocation9]  }
  0x56   :  { %3876 = dma.done.wait [#allocation3], 96  }
  0x57   :  { %3877 = vsyncadd [#allocation3], 4294967200 }
  0x58   :  { %3878 = dma.done.wait [#allocation6], 36960  }
  0x59   :  { %3879 = vsyncadd [#allocation6], 4294930336 }
  0x5a   :  { %3880 = dma.done.wait [#allocation9], 6160  }
  0x5b   :  { %3881 = vsyncadd [#allocation9], 4294961136  ;;  %v3251_v0 = vld [vmem:[#allocation5 + $0x4] ss:$24 sps:$4 sm:$0xff]   ;;  %v3255_v2 = vld [vmem:[#allocation5] ss:$24 sps:$4 sm:$0xff]   ;;  %v375_v36 = vlaneseq }
  0x5c   :  { %v3253_v1 = vld [vmem:[#allocation5 + $0x304] ss:$24 sps:$4 sm:$0xff]   ;;  %1899 = vmatprep.subr.bf16.mxu1 %v3251_v0  ;;  %v3256_v3 = vld [vmem:[#allocation5 + $0x300] ss:$24 sps:$4 sm:$0xff]   ;;  %v3257_v4 = vld [vmem:[#allocation5 + $0x34] ss:$24 sps:$4 sm:$0xff]  }
  0x5d   :  { %1940 = vmatprep.subr.bf16.mxu0 %v3253_v1  ;;  %1900 = vmatpush1.bf16.msra.mxu1 %v3255_v2  ;;  %v3259_v5 = vld [vmem:[#allocation5 + $0x334] ss:$24 sps:$4 sm:$0xff]   ;;  %v3261_v6 = vld [vmem:[#allocation5 + $0x30] ss:$24 sps:$4 sm:$0xff]   ;;  %v3263_v8 = vld [vmem:[#allocation5 + $0x64] ss:$24 sps:$4 sm:$0xff]  }
  0x5e   :  { %1941 = vmatpush1.bf16.msra.mxu0 %v3256_v3  ;;  %1901 = vmatprep.subr.bf16.mxu1 %v3257_v4  ;;  %v3262_v7 = vld [vmem:[#allocation5 + $0x330] ss:$24 sps:$4 sm:$0xff]   ;;  %v3265_v9 = vld [vmem:[#allocation5 + $0x364] ss:$24 sps:$4 sm:$0xff]   ;;  %v3267_v10 = vld [vmem:[#allocation5 + $0x60] ss:$24 sps:$4 sm:$0xff]  }
  0x5f   :  { %1942 = vmatprep.subr.bf16.mxu0 %v3259_v5  ;;  %v3268_v11 = vld [vmem:[#allocation5 + $0x360] ss:$24 sps:$4 sm:$0xff]   ;;  %v3269_v12 = vld [vmem:[#allocation5 + $0x94] ss:$24 sps:$4 sm:$0xff]   ;;  %v3273_v14 = vld [vmem:[#allocation5 + $0x90] ss:$24 sps:$4 sm:$0xff]  }
  0x60   :  { %v3271_v13 = vld [vmem:[#allocation5 + $0x394] ss:$24 sps:$4 sm:$0xff]   ;;  %v3274_v15 = vld [vmem:[#allocation5 + $0x390] ss:$24 sps:$4 sm:$0xff]   ;;  %v3275_v16 = vld [vmem:[#allocation5 + $0xc4] ss:$24 sps:$4 sm:$0xff]  }
  0x61   :  { %1902 = vmatpush1.bf16.msra.mxu1 %v3261_v6  ;;  %v3277_v17 = vld [vmem:[#allocation5 + $0x3c4] ss:$24 sps:$4 sm:$0xff]   ;;  %v3279_v18 = vld [vmem:[#allocation5 + $0xc0] ss:$24 sps:$4 sm:$0xff]   ;;  %v3281_v20 = vld [vmem:[#allocation5 + $0xf4] ss:$24 sps:$4 sm:$0xff]  }
  0x62   :  { %1943 = vmatpush1.bf16.msra.mxu0 %v3262_v7  ;;  %1903 = vmatprep.subr.bf16.mxu1 %v3263_v8  ;;  %v3280_v19 = vld [vmem:[#allocation5 + $0x3c0] ss:$24 sps:$4 sm:$0xff]   ;;  %v3283_v21 = vld [vmem:[#allocation5 + $0x3f4] ss:$24 sps:$4 sm:$0xff]   ;;  %v3285_v22 = vld [vmem:[#allocation5 + $0xf0] ss:$24 sps:$4 sm:$0xff]  }
  0x63   :  { %1944 = vmatprep.subr.bf16.mxu0 %v3265_v9  ;;  %v3286_v23 = vld [vmem:[#allocation5 + $0x3f0] ss:$24 sps:$4 sm:$0xff]   ;;  %v3287_v24 = vld [vmem:[#allocation5 + $0x124] ss:$24 sps:$4 sm:$0xff]   ;;  %v3291_v26 = vld [vmem:[#allocation5 + $0x120] ss:$24 sps:$4 sm:$0xff]  }
  0x64   :  { %v3289_v25 = vld [vmem:[#allocation5 + $0x424] ss:$24 sps:$4 sm:$0xff]   ;;  %v3292_v27 = vld [vmem:[#allocation5 + $0x420] ss:$24 sps:$4 sm:$0xff]   ;;  %v3293_v28 = vld [vmem:[#allocation5 + $0x154] ss:$24 sps:$4 sm:$0xff]  }
  0x65   :  { %1904 = vmatpush1.bf16.msra.mxu1 %v3267_v10  ;;  %v3295_v29 = vld [vmem:[#allocation5 + $0x454] ss:$24 sps:$4 sm:$0xff]   ;;  %v3297_v30 = vld [vmem:[#allocation5 + $0x150] ss:$24 sps:$4 sm:$0xff]   ;;  %v3299_v32 = vld [vmem:[#allocation5 + $0x184] ss:$24 sps:$4 sm:$0xff]  }
  0x66   :  { %1945 = vmatpush1.bf16.msra.mxu0 %v3268_v11  ;;  %1905 = vmatprep.subr.bf16.mxu1 %v3269_v12  ;;  %v3298_v31 = vld [vmem:[#allocation5 + $0x450] ss:$24 sps:$4 sm:$0xff]   ;;  %v3301_v33 = vld [vmem:[#allocation5 + $0x484] ss:$24 sps:$4 sm:$0xff]   ;;  %v3303_v34 = vld [vmem:[#allocation5 + $0x180] ss:$24 sps:$4 sm:$0xff]  }
  0x67   :  { %1946 = vmatprep.subr.bf16.mxu0 %v3271_v13  ;;  %v3304_v35 = vld [vmem:[#allocation5 + $0x480] ss:$24 sps:$4 sm:$0xff]   ;;  %v3893_v37 = vmov 1966171168   ;;  %v3305_v39 = vld [vmem:[#allocation5 + $0x1b4] ss:$24 sps:$4 sm:$0xff]  }
  0x68   :  { %v408_v38 = vunpack.c.l.s4 %v3893_v37  ;;  %v3307_v40 = vld [vmem:[#allocation5 + $0x4b4] ss:$24 sps:$4 sm:$0xff]   ;;  %v3309_v41 = vld [vmem:[#allocation5 + $0x1b0] ss:$24 sps:$4 sm:$0xff]   ;;  %v3985_v42 = vshrl.u32 %v375_v36, 7  ;;  %s3894_s4 = smov [#allocation11]  }
  0x69   :  { %1906 = vmatpush1.bf16.msra.mxu1 %v3273_v14  ;;  %v3310_v44 = vld [vmem:[#allocation5 + $0x4b0] ss:$24 sps:$4 sm:$0xff]   ;;  %v3311_v45 = vld [vmem:[#allocation5 + $0x1e4] ss:$24 sps:$4 sm:$0xff]   ;;  %v3315_v47 = vld [vmem:[#allocation5 + $0x1e0] ss:$24 sps:$4 sm:$0xff]  }
  0x6a   :  { %1947 = vmatpush1.bf16.msra.mxu0 %v3274_v15  ;;  %1907 = vmatprep.subr.bf16.mxu1 %v3275_v16  ;;  %v409_v43 = vunpack.c.0.s8 %v408_v38  ;;  %v3313_v46 = vld [vmem:[#allocation5 + $0x4e4] ss:$24 sps:$4 sm:$0xff]   ;;  %v3316_v48 = vld [vmem:[#allocation5 + $0x4e0] ss:$24 sps:$4 sm:$0xff]   ;;  %v3317_v50 = vld [vmem:[#allocation5 + $0x214] ss:$24 sps:$4 sm:$0xff]  }
  0x6b   :  { %1948 = vmatprep.subr.bf16.mxu0 %v3277_v17  ;;  %v3319_v51 = vld [vmem:[#allocation5 + $0x514] ss:$24 sps:$4 sm:$0xff]   ;;  %v84_v52 = vld [vmem:[#allocation2] sm:$0x3f]  ;;  %v3321_v53 = vld [vmem:[#allocation5 + $0x210] ss:$24 sps:$4 sm:$0xff]  }
  0x6c   :  { %v3988_v49 = vsub.s32 %v409_v43, %v3985_v42  ;;  %v406_v55 = vcombine.high %v84_v52, %v84_v52  ;;  %v3322_v56 = vld [vmem:[#allocation5 + $0x510] ss:$24 sps:$4 sm:$0xff]   ;;  %v3323_v57 = vld [vmem:[#allocation5 + $0x244] ss:$24 sps:$4 sm:$0xff]   ;;  %v3327_v61 = vld [vmem:[#allocation5 + $0x240] ss:$24 sps:$4 sm:$0xff]  }
  0x6d   :  { %1908 = vmatpush1.bf16.msra.mxu1 %v3279_v18  ;;  %v3325_v58 = vld [vmem:[#allocation5 + $0x544] ss:$24 sps:$4 sm:$0xff]   ;;  %v3328_v0 = vld [vmem:[#allocation5 + $0x540] ss:$24 sps:$4 sm:$0xff]   ;;  %v3329_v1 = vld [vmem:[#allocation5 + $0x274] ss:$24 sps:$4 sm:$0xff]  }
  0x6e   :  { %1949 = vmatpush1.bf16.msra.mxu0 %v3280_v19  ;;  %1909 = vmatprep.subr.bf16.mxu1 %v3281_v20  ;;  %v413_v54 = vrot.slane %v84_v52, %v3988_v49  ;;  %v420_v60 = vrot.slane %v406_v55, %v3988_v49  ;;  %v3331_v2 = vld [vmem:[#allocation5 + $0x574] ss:$24 sps:$4 sm:$0xff]   ;;  %v3333_v4 = vld [vmem:[#allocation5 + $0x270] ss:$24 sps:$4 sm:$0xff]   ;;  %v3335_v6 = vld [vmem:[#allocation5 + $0x2a4] ss:$24 sps:$4 sm:$0xff]  }
  0x6f   :  { %1950 = vmatprep.subr.bf16.mxu0 %v3283_v21  ;;  %v3334_v5 = vld [vmem:[#allocation5 + $0x570] ss:$24 sps:$4 sm:$0xff]   ;;  %v3337_v7 = vld [vmem:[#allocation5 + $0x5a4] ss:$24 sps:$4 sm:$0xff]   ;;  %v3339_v8 = vld [vmem:[#allocation5 + $0x2a0] ss:$24 sps:$4 sm:$0xff]  }
  0x70   :  { %v421_v59 = vcombine.high %v413_v54, %v413_v54  ;;  %v3996_v63 = vrot.slane %v420_v60, %v3988_v49  ;;  %v3340_v9 = vld [vmem:[#allocation5 + $0x5a0] ss:$24 sps:$4 sm:$0xff]   ;;  %v3341_v10 = vld [vmem:[#allocation5 + $0x2d4] ss:$24 sps:$4 sm:$0xff]   ;;  %v3345_v12 = vld [vmem:[#allocation5 + $0x2d0] ss:$24 sps:$4 sm:$0xff]   ;;  %v4005_v13 = vrot.slane %v413_v54, %v3988_v49  ;;  %v422_v17 = vcombine.high %v420_v60, %v420_v60 }
  0x71   :  { %1910 = vmatpush1.bf16.msra.mxu1 %v3285_v22  ;;  %v3343_v11 = vld [vmem:[#allocation5 + $0x5d4] ss:$24 sps:$4 sm:$0xff]   ;;  %v3346_v14 = vld [vmem:[#allocation5 + $0x5d0] ss:$24 sps:$4 sm:$0xff]   ;;  %v3349_v15 = vld [vmem:[#allocation5 + $0x604] ss:$24 sps:$4 sm:$0xff]  }
  0x72   :  { %1951 = vmatpush1.bf16.msra.mxu0 %v3286_v23  ;;  %1911 = vmatprep.subr.bf16.mxu1 %v3287_v24  ;;  %v3993_v62 = vrot.slane %v421_v59, %v3988_v49  ;;  %v3352_v16 = vld [vmem:[#allocation5 + $0xc] ss:$24 sps:$4 sm:$0xff]   ;;  %v3347_v18 = vld [vmem:[#allocation5 + $0x600] ss:$24 sps:$4 sm:$0xff]   ;;  %v4009_v19 = vcombine.high %v4005_v13, %v4005_v13  ;;  %v3358_v22 = vld [vmem:[#allocation5 + $0x3c] ss:$24 sps:$4 sm:$0xff]   ;;  %v4012_v23 = vrot.slane %v422_v17, %v3988_v49 }
  0x73   :  { %1952 = vmatprep.subr.bf16.mxu0 %v3289_v25  ;;  %v3350_v20 = vld [vmem:[#allocation5 + $0x8] ss:$24 sps:$4 sm:$0xff]   ;;  %v3355_v21 = vld [vmem:[#allocation5 + $0x634] ss:$24 sps:$4 sm:$0xff]   ;;  %v3356_v25 = vld [vmem:[#allocation5 + $0x38] ss:$24 sps:$4 sm:$0xff]  }
  0x74   :  { %v4000_v3 = vcombine.high %v3993_v62, %v3993_v62  ;;  %1931 = vmatprep.mubr.bf16.mxu1 %v3993_v62  ;;  %v3353_v24 = vld [vmem:[#allocation5 + $0x630] ss:$24 sps:$4 sm:$0xff]   ;;  %v3371_v36 = vld [vmem:[#allocation5 + $0x6c0] ss:$24 sps:$4 sm:$0xff]   ;;  %v3379_v38 = vld [vmem:[#allocation5 + $0x6f4] ss:$24 sps:$4 sm:$0xff]  }
  0x75   :  { %1912 = vmatpush1.bf16.msra.mxu1 %v3291_v26  ;;  %v3361_v26 = vld [vmem:[#allocation5 + $0x664] ss:$24 sps:$4 sm:$0xff]   ;;  %v3374_v37 = vld [vmem:[#allocation5 + $0xc8] ss:$24 sps:$4 sm:$0xff]   ;;  %v3403_v55 = vld [vmem:[#allocation5 + $0x7b4] ss:$24 sps:$4 sm:$0xff]  }
  0x76   :  { %1953 = vmatpush1.bf16.msra.mxu0 %v3292_v27  ;;  %1913 = vmatprep.subr.bf16.mxu1 %v3293_v28  ;;  %v3364_v27 = vld [vmem:[#allocation5 + $0x6c] ss:$24 sps:$4 sm:$0xff]   ;;  %v3359_v28 = vld [vmem:[#allocation5 + $0x660] ss:$24 sps:$4 sm:$0xff]   ;;  %v3389_v49 = vld [vmem:[#allocation5 + $0x750] ss:$24 sps:$4 sm:$0xff]  }
  0x77   :  { %1954 = vmatprep.subr.bf16.mxu0 %v3295_v29  ;;  %1972 = vmatprep.mubr.bf16.mxu0 %v4000_v3  ;;  %v3362_v29 = vld [vmem:[#allocation5 + $0x68] ss:$24 sps:$4 sm:$0xff]   ;;  %v3385_v43 = vld [vmem:[#allocation5 + $0x724] ss:$24 sps:$4 sm:$0xff]   ;;  %s2798_s28 = sshll.u32 %s3894_s4, 4  ;;  %s2799_s28 = int_to_ptr.vmem [resolvable:$true] %s2798_s28 }
  0x78   :  { %v3400_v52 = vld [vmem:[#allocation5 + $0x18c] ss:$24 sps:$4 sm:$0xff]   ;;  %v3398_v54 = vld [vmem:[#allocation5 + $0x188] ss:$24 sps:$4 sm:$0xff]   ;;  %s3854_s29 = scalar_lea.vmem %s2799_s28, 32  ;;  %p3859_p13 = scmp.lt.s32.totalorder %s2799_s28, %s2799_s28 }
  0x79   :  { %1914 = vmatpush1.bf16.msra.mxu1 %v3297_v30  ;;  %v3367_v30 = vld [vmem:[#allocation5 + $0x694] ss:$24 sps:$4 sm:$0xff]   ;;  %v3409_v59 = vld [vmem:[#allocation5 + $0x7e4] ss:$24 sps:$4 sm:$0xff]   ;;  %v3431_v17 = vld [vmem:[#allocation5 + $0x8a0] ss:$24 sps:$4 sm:$0xff]   ;;  %p3855_p12 = scmp.ne.s32.totalorder %s2799_s28, %s3854_s29  ;;  %p3860_p0 = scmp.lt.s32.totalorder %s3854_s29, %s3854_s29 }
  0x7a   :  { %1955 = vmatpush1.bf16.msra.mxu0 %v3298_v31  ;;  %1915 = vmatprep.subr.bf16.mxu1 %v3299_v32  ;;  %v3370_v31 = vld [vmem:[#allocation5 + $0x9c] ss:$24 sps:$4 sm:$0xff]   ;;  %v3365_v32 = vld [vmem:[#allocation5 + $0x690] ss:$24 sps:$4 sm:$0xff]   ;;  %v3412_v60 = vld [vmem:[#allocation5 + $0x1ec] ss:$24 sps:$4 sm:$0xff]  }
  0x7b   :  { %1956 = vmatprep.subr.bf16.mxu0 %v3301_v33  ;;  %v3368_v33 = vld [vmem:[#allocation5 + $0x98] ss:$24 sps:$4 sm:$0xff]   ;;  %p3861_p1 = por %p3860_p0, %p3859_p13 }
  0x7d   :  { %1916 = vmatpush1.bf16.msra.mxu1 %v3303_v34  ;;  %v3373_v34 = vld [vmem:[#allocation5 + $0x6c4] ss:$24 sps:$4 sm:$0xff]   ;;  %p3862_p2 = pnand %p3861_p1, %p3855_p12 }
  0x7e   :  { %1957 = vmatpush1.bf16.msra.mxu0 %v3304_v35  ;;  %1917 = vmatprep.subr.bf16.mxu1 %v3305_v39  ;;  %v3376_v35 = vld [vmem:[#allocation5 + $0xcc] ss:$24 sps:$4 sm:$0xff]   ;;  %v3382_v39 = vld [vmem:[#allocation5 + $0xfc] ss:$24 sps:$4 sm:$0xff]  }
  0x7f   :  { %1958 = vmatprep.subr.bf16.mxu0 %v3307_v40  ;;  %v3377_v40 = vld [vmem:[#allocation5 + $0x6f0] ss:$24 sps:$4 sm:$0xff]  }
  0x81   :  { %1918 = vmatpush1.bf16.msra.mxu1 %v3309_v41  ;;  %v3380_v41 = vld [vmem:[#allocation5 + $0xf8] ss:$24 sps:$4 sm:$0xff]  }
  0x82   :  { %1959 = vmatpush1.bf16.msra.mxu0 %v3310_v44  ;;  %1919 = vmatprep.subr.bf16.mxu1 %v3311_v45  ;;  %v3388_v44 = vld [vmem:[#allocation5 + $0x12c] ss:$24 sps:$4 sm:$0xff]   ;;  %v3383_v45 = vld [vmem:[#allocation5 + $0x720] ss:$24 sps:$4 sm:$0xff]  }
  0x83   :  { %1960 = vmatprep.subr.bf16.mxu0 %v3313_v46  ;;  %v3386_v46 = vld [vmem:[#allocation5 + $0x128] ss:$24 sps:$4 sm:$0xff]  }
  0x85   :  { %1920 = vmatpush1.bf16.msra.mxu1 %v3315_v47  ;;  %v3391_v47 = vld [vmem:[#allocation5 + $0x754] ss:$24 sps:$4 sm:$0xff]  }
  0x86   :  { %1961 = vmatpush1.bf16.msra.mxu0 %v3316_v48  ;;  %1921 = vmatprep.subr.bf16.mxu1 %v3317_v50  ;;  %v3394_v48 = vld [vmem:[#allocation5 + $0x15c] ss:$24 sps:$4 sm:$0xff]   ;;  %v3392_v50 = vld [vmem:[#allocation5 + $0x158] ss:$24 sps:$4 sm:$0xff]  }
  0x87   :  { %1962 = vmatprep.subr.bf16.mxu0 %v3319_v51  ;;  %v3397_v51 = vld [vmem:[#allocation5 + $0x784] ss:$24 sps:$4 sm:$0xff]  }
  0x89   :  { %1922 = vmatpush1.bf16.msra.mxu1 %v3321_v53  ;;  %v3395_v53 = vld [vmem:[#allocation5 + $0x780] ss:$24 sps:$4 sm:$0xff]  }
  0x8a   :  { %1963 = vmatpush1.bf16.msra.mxu0 %v3322_v56  ;;  %1923 = vmatprep.subr.bf16.mxu1 %v3323_v57  ;;  %v3406_v56 = vld [vmem:[#allocation5 + $0x1bc] ss:$24 sps:$4 sm:$0xff]   ;;  %v3401_v57 = vld [vmem:[#allocation5 + $0x7b0] ss:$24 sps:$4 sm:$0xff]  }
  0x8b   :  { %1964 = vmatprep.subr.bf16.mxu0 %v3325_v58  ;;  %v3404_v58 = vld [vmem:[#allocation5 + $0x1b8] ss:$24 sps:$4 sm:$0xff]  }
  0x8d   :  { %1924 = vmatpush1.bf16.msra.mxu1 %v3327_v61  ;;  %v3407_v61 = vld [vmem:[#allocation5 + $0x7e0] ss:$24 sps:$4 sm:$0xff]  }
  0x8e   :  { %1965 = vmatpush1.bf16.msra.mxu0 %v3328_v0  ;;  %1925 = vmatprep.subr.bf16.mxu1 %v3329_v1  ;;  %v3410_v0 = vld [vmem:[#allocation5 + $0x1e8] ss:$24 sps:$4 sm:$0xff]   ;;  %v3415_v1 = vld [vmem:[#allocation5 + $0x814] ss:$24 sps:$4 sm:$0xff]  }
  0x8f   :  { %1966 = vmatprep.subr.bf16.mxu0 %v3331_v2  ;;  %v3418_v2 = vld [vmem:[#allocation5 + $0x21c] ss:$24 sps:$4 sm:$0xff]  }
  0x91   :  { %1926 = vmatpush1.bf16.msra.mxu1 %v3333_v4  ;;  %v3413_v4 = vld [vmem:[#allocation5 + $0x810] ss:$24 sps:$4 sm:$0xff]  }
  0x92   :  { %1967 = vmatpush1.bf16.msra.mxu0 %v3334_v5  ;;  %1927 = vmatprep.subr.bf16.mxu1 %v3335_v6  ;;  %v3416_v5 = vld [vmem:[#allocation5 + $0x218] ss:$24 sps:$4 sm:$0xff]   ;;  %v3421_v6 = vld [vmem:[#allocation5 + $0x844] ss:$24 sps:$4 sm:$0xff]  }
  0x93   :  { %1968 = vmatprep.subr.bf16.mxu0 %v3337_v7  ;;  %v3424_v7 = vld [vmem:[#allocation5 + $0x24c] ss:$24 sps:$4 sm:$0xff]  }
  0x95   :  { %1928 = vmatpush1.bf16.msra.mxu1 %v3339_v8  ;;  %v3419_v8 = vld [vmem:[#allocation5 + $0x840] ss:$24 sps:$4 sm:$0xff]  }
  0x96   :  { %1969 = vmatpush1.bf16.msra.mxu0 %v3340_v9  ;;  %1929 = vmatprep.subr.bf16.mxu1 %v3341_v10  ;;  %v3422_v9 = vld [vmem:[#allocation5 + $0x248] ss:$24 sps:$4 sm:$0xff]   ;;  %v3427_v10 = vld [vmem:[#allocation5 + $0x874] ss:$24 sps:$4 sm:$0xff]  }
  0x97   :  { %1970 = vmatprep.subr.bf16.mxu0 %v3343_v11  ;;  %v3430_v11 = vld [vmem:[#allocation5 + $0x27c] ss:$24 sps:$4 sm:$0xff]  }
  0x99   :  { %1930 = vmatpush1.bf16.msra.mxu1 %v3345_v12  ;;  %v3425_v12 = vld [vmem:[#allocation5 + $0x870] ss:$24 sps:$4 sm:$0xff]  }
  0x9a   :  { %1971 = vmatpush1.bf16.msra.mxu0 %v3346_v14  ;;  %2022 = vmatprep.subr.bf16.mxu1 %v3352_v16  ;;  %v3428_v14 = vld [vmem:[#allocation5 + $0x278] ss:$24 sps:$4 sm:$0xff]   ;;  %v3436_v16 = vld [vmem:[#allocation5 + $0x2ac] ss:$24 sps:$4 sm:$0xff]  }
  0x9b   :  { %1981 = vmatprep.subr.bf16.mxu0 %v3349_v15  ;;  %v3433_v15 = vld [vmem:[#allocation5 + $0x8a4] ss:$24 sps:$4 sm:$0xff]  }
  0x9c   :  { %1932 = vmatmul.mubr.bf16.vlgmr.msra.gmra.mrb[0].mxu1 %v4005_v13 }
  0x9d   :  { %1973 = vmatmul.mubr.bf16.vlgmr.msra.gmra.mrb[0].mxu0 %v4009_v19  ;;  %2023 = vmatpush1.bf16.msra.mxu1 %v3350_v20  ;;  %v3439_v20 = vld [vmem:[#allocation5 + $0x8d4] ss:$24 sps:$4 sm:$0xff]  }
  0x9e   :  { %1982 = vmatpush1.bf16.msra.mxu0 %v3347_v18  ;;  %2024 = vmatprep.subr.bf16.mxu1 %v3358_v22  ;;  %v3434_v18 = vld [vmem:[#allocation5 + $0x2a8] ss:$24 sps:$4 sm:$0xff]  }
  0x9f   :  { %1983 = vmatprep.subr.bf16.mxu0 %v3355_v21  ;;  %2013 = vmatprep.mubr.bf16.mxu0 %v4012_v23  ;;  %v3442_v21 = vld [vmem:[#allocation5 + $0x2dc] ss:$24 sps:$4 sm:$0xff]   ;;  %v3437_v22 = vld [vmem:[#allocation5 + $0x8d0] ss:$24 sps:$4 sm:$0xff]  }
  0xa0   :  { %2054 = vmatprep.mubr.bf16.mxu1 %v3993_v62 }
  0xa1   :  { %2025 = vmatpush1.bf16.msra.mxu1 %v3356_v25  ;;  %v3446_v25 = vld [vmem:[#allocation5 + $0x30c] ss:$24 sps:$4 sm:$0xff]  }
  0xa2   :  { %1984 = vmatpush1.bf16.msra.mxu0 %v3353_v24  ;;  %2026 = vmatprep.subr.bf16.mxu1 %v3364_v27  ;;  %v3440_v24 = vld [vmem:[#allocation5 + $0x2d8] ss:$24 sps:$4 sm:$0xff]   ;;  %v3444_v27 = vld [vmem:[#allocation5 + $0x308] ss:$24 sps:$4 sm:$0xff]  }
  0xa3   :  { %1985 = vmatprep.subr.bf16.mxu0 %v3361_v26  ;;  %v3449_v26 = vld [vmem:[#allocation5 + $0x14] ss:$24 sps:$4 sm:$0xff]  }
  0xa5   :  { %2027 = vmatpush1.bf16.msra.mxu1 %v3362_v29  ;;  %v3452_v29 = vld [vmem:[#allocation5 + $0x33c] ss:$24 sps:$4 sm:$0xff]  }
  0xa6   :  { %1986 = vmatpush1.bf16.msra.mxu0 %v3359_v28  ;;  %2028 = vmatprep.subr.bf16.mxu1 %v3370_v31  ;;  %v3447_v28 = vld [vmem:[#allocation5 + $0x10] ss:$24 sps:$4 sm:$0xff]  }
  0xa7   :  { %1987 = vmatprep.subr.bf16.mxu0 %v3367_v30  ;;  %v3455_v30 = vld [vmem:[#allocation5 + $0x44] ss:$24 sps:$4 sm:$0xff]   ;;  %v3450_v31 = vld [vmem:[#allocation5 + $0x338] ss:$24 sps:$4 sm:$0xff]  }
  0xa9   :  { %2029 = vmatpush1.bf16.msra.mxu1 %v3368_v33  ;;  %v3458_v33 = vld [vmem:[#allocation5 + $0x36c] ss:$24 sps:$4 sm:$0xff]  }
  0xaa   :  { %1988 = vmatpush1.bf16.msra.mxu0 %v3365_v32  ;;  %2030 = vmatprep.subr.bf16.mxu1 %v3376_v35  ;;  %v3453_v32 = vld [vmem:[#allocation5 + $0x40] ss:$24 sps:$4 sm:$0xff]  }
  0xab   :  { %1989 = vmatprep.subr.bf16.mxu0 %v3373_v34  ;;  %v3461_v34 = vld [vmem:[#allocation5 + $0x74] ss:$24 sps:$4 sm:$0xff]   ;;  %v3456_v35 = vld [vmem:[#allocation5 + $0x368] ss:$24 sps:$4 sm:$0xff]  }
  0xad   :  { %2031 = vmatpush1.bf16.msra.mxu1 %v3374_v37  ;;  %v3464_v37 = vld [vmem:[#allocation5 + $0x39c] ss:$24 sps:$4 sm:$0xff]  }
  0xae   :  { %1990 = vmatpush1.bf16.msra.mxu0 %v3371_v36  ;;  %2032 = vmatprep.subr.bf16.mxu1 %v3382_v39  ;;  %v3459_v36 = vld [vmem:[#allocation5 + $0x70] ss:$24 sps:$4 sm:$0xff]  }
  0xaf   :  { %1991 = vmatprep.subr.bf16.mxu0 %v3379_v38  ;;  %v3467_v38 = vld [vmem:[#allocation5 + $0xa4] ss:$24 sps:$4 sm:$0xff]   ;;  %v3462_v39 = vld [vmem:[#allocation5 + $0x398] ss:$24 sps:$4 sm:$0xff]  }
  0xb1   :  { %2033 = vmatpush1.bf16.msra.mxu1 %v3380_v41  ;;  %v3470_v41 = vld [vmem:[#allocation5 + $0x3cc] ss:$24 sps:$4 sm:$0xff]  }
  0xb2   :  { %1992 = vmatpush1.bf16.msra.mxu0 %v3377_v40  ;;  %2034 = vmatprep.subr.bf16.mxu1 %v3388_v44  ;;  %v3465_v40 = vld [vmem:[#allocation5 + $0xa0] ss:$24 sps:$4 sm:$0xff]  }
  0xb3   :  { %1993 = vmatprep.subr.bf16.mxu0 %v3385_v43  ;;  %v3473_v43 = vld [vmem:[#allocation5 + $0xd4] ss:$24 sps:$4 sm:$0xff]   ;;  %v3468_v44 = vld [vmem:[#allocation5 + $0x3c8] ss:$24 sps:$4 sm:$0xff]  }
  0xb5   :  { %2035 = vmatpush1.bf16.msra.mxu1 %v3386_v46  ;;  %v3479_v46 = vld [vmem:[#allocation5 + $0x104] ss:$24 sps:$4 sm:$0xff]  }
  0xb6   :  { %1994 = vmatpush1.bf16.msra.mxu0 %v3383_v45  ;;  %2036 = vmatprep.subr.bf16.mxu1 %v3394_v48  ;;  %v3476_v45 = vld [vmem:[#allocation5 + $0x3fc] ss:$24 sps:$4 sm:$0xff]   ;;  %v3477_v48 = vld [vmem:[#allocation5 + $0x100] ss:$24 sps:$4 sm:$0xff]  }
  0xb7   :  { %1995 = vmatprep.subr.bf16.mxu0 %v3391_v47  ;;  %v3474_v47 = vld [vmem:[#allocation5 + $0x3f8] ss:$24 sps:$4 sm:$0xff]  }
  0xb9   :  { %2037 = vmatpush1.bf16.msra.mxu1 %v3392_v50  ;;  %v3485_v50 = vld [vmem:[#allocation5 + $0x134] ss:$24 sps:$4 sm:$0xff]  }
  0xba   :  { %1996 = vmatpush1.bf16.msra.mxu0 %v3389_v49  ;;  %2038 = vmatprep.subr.bf16.mxu1 %v3400_v52  ;;  %v3482_v49 = vld [vmem:[#allocation5 + $0x42c] ss:$24 sps:$4 sm:$0xff]   ;;  %v3483_v52 = vld [vmem:[#allocation5 + $0x130] ss:$24 sps:$4 sm:$0xff]  }
  0xbb   :  { %1997 = vmatprep.subr.bf16.mxu0 %v3397_v51  ;;  %v3480_v51 = vld [vmem:[#allocation5 + $0x428] ss:$24 sps:$4 sm:$0xff]  }
  0xbd   :  { %2039 = vmatpush1.bf16.msra.mxu1 %v3398_v54  ;;  %v3491_v54 = vld [vmem:[#allocation5 + $0x164] ss:$24 sps:$4 sm:$0xff]  }
  0xbe   :  { %1998 = vmatpush1.bf16.msra.mxu0 %v3395_v53  ;;  %2040 = vmatprep.subr.bf16.mxu1 %v3406_v56  ;;  %v3488_v53 = vld [vmem:[#allocation5 + $0x45c] ss:$24 sps:$4 sm:$0xff]   ;;  %v3489_v56 = vld [vmem:[#allocation5 + $0x160] ss:$24 sps:$4 sm:$0xff]  }
  0xbf   :  { %1999 = vmatprep.subr.bf16.mxu0 %v3403_v55  ;;  %v3486_v55 = vld [vmem:[#allocation5 + $0x458] ss:$24 sps:$4 sm:$0xff]  }
  0xc1   :  { %2041 = vmatpush1.bf16.msra.mxu1 %v3404_v58  ;;  %v3497_v58 = vld [vmem:[#allocation5 + $0x194] ss:$24 sps:$4 sm:$0xff]  }
  0xc2   :  { %2000 = vmatpush1.bf16.msra.mxu0 %v3401_v57  ;;  %2042 = vmatprep.subr.bf16.mxu1 %v3412_v60  ;;  %v3494_v57 = vld [vmem:[#allocation5 + $0x48c] ss:$24 sps:$4 sm:$0xff]   ;;  %v3495_v60 = vld [vmem:[#allocation5 + $0x190] ss:$24 sps:$4 sm:$0xff]  }
  0xc3   :  { %2001 = vmatprep.subr.bf16.mxu0 %v3409_v59  ;;  %v3492_v59 = vld [vmem:[#allocation5 + $0x488] ss:$24 sps:$4 sm:$0xff]  }
  0xc5   :  { %2043 = vmatpush1.bf16.msra.mxu1 %v3410_v0  ;;  %v3503_v0 = vld [vmem:[#allocation5 + $0x1c4] ss:$24 sps:$4 sm:$0xff]  }
  0xc6   :  { %2002 = vmatpush1.bf16.msra.mxu0 %v3407_v61  ;;  %2044 = vmatprep.subr.bf16.mxu1 %v3418_v2  ;;  %v3500_v61 = vld [vmem:[#allocation5 + $0x4bc] ss:$24 sps:$4 sm:$0xff]   ;;  %v3501_v2 = vld [vmem:[#allocation5 + $0x1c0] ss:$24 sps:$4 sm:$0xff]  }
  0xc7   :  { %2003 = vmatprep.subr.bf16.mxu0 %v3415_v1  ;;  %v3498_v1 = vld [vmem:[#allocation5 + $0x4b8] ss:$24 sps:$4 sm:$0xff]  }
  0xc9   :  { %2045 = vmatpush1.bf16.msra.mxu1 %v3416_v5  ;;  %v3509_v5 = vld [vmem:[#allocation5 + $0x1f4] ss:$24 sps:$4 sm:$0xff]  }
  0xca   :  { %2004 = vmatpush1.bf16.msra.mxu0 %v3413_v4  ;;  %2046 = vmatprep.subr.bf16.mxu1 %v3424_v7  ;;  %v3506_v4 = vld [vmem:[#allocation5 + $0x4ec] ss:$24 sps:$4 sm:$0xff]   ;;  %v3507_v7 = vld [vmem:[#allocation5 + $0x1f0] ss:$24 sps:$4 sm:$0xff]  }
  0xcb   :  { %2005 = vmatprep.subr.bf16.mxu0 %v3421_v6  ;;  %v3504_v6 = vld [vmem:[#allocation5 + $0x4e8] ss:$24 sps:$4 sm:$0xff]  }
  0xcd   :  { %2047 = vmatpush1.bf16.msra.mxu1 %v3422_v9  ;;  %v3515_v9 = vld [vmem:[#allocation5 + $0x224] ss:$24 sps:$4 sm:$0xff]  }
  0xce   :  { %2006 = vmatpush1.bf16.msra.mxu0 %v3419_v8  ;;  %2048 = vmatprep.subr.bf16.mxu1 %v3430_v11  ;;  %v3512_v8 = vld [vmem:[#allocation5 + $0x51c] ss:$24 sps:$4 sm:$0xff]   ;;  %v3513_v11 = vld [vmem:[#allocation5 + $0x220] ss:$24 sps:$4 sm:$0xff]  }
  0xcf   :  { %2007 = vmatprep.subr.bf16.mxu0 %v3427_v10  ;;  %v3510_v10 = vld [vmem:[#allocation5 + $0x518] ss:$24 sps:$4 sm:$0xff]  }
  0xd1   :  { %2049 = vmatpush1.bf16.msra.mxu1 %v3428_v14  ;;  %v3521_v14 = vld [vmem:[#allocation5 + $0x254] ss:$24 sps:$4 sm:$0xff]  }
  0xd2   :  { %2008 = vmatpush1.bf16.msra.mxu0 %v3425_v12  ;;  %2050 = vmatprep.subr.bf16.mxu1 %v3436_v16  ;;  %v3518_v12 = vld [vmem:[#allocation5 + $0x54c] ss:$24 sps:$4 sm:$0xff]   ;;  %v3519_v16 = vld [vmem:[#allocation5 + $0x250] ss:$24 sps:$4 sm:$0xff]  }
  0xd3   :  { %2009 = vmatprep.subr.bf16.mxu0 %v3433_v15  ;;  %v3516_v15 = vld [vmem:[#allocation5 + $0x548] ss:$24 sps:$4 sm:$0xff]  }
  0xd5   :  { %2051 = vmatpush1.bf16.msra.mxu1 %v3434_v18  ;;  %v3527_v18 = vld [vmem:[#allocation5 + $0x284] ss:$24 sps:$4 sm:$0xff]  }
  0xd6   :  { %2010 = vmatpush1.bf16.msra.mxu0 %v3431_v17  ;;  %2052 = vmatprep.subr.bf16.mxu1 %v3442_v21  ;;  %v3524_v17 = vld [vmem:[#allocation5 + $0x57c] ss:$24 sps:$4 sm:$0xff]   ;;  %v3525_v21 = vld [vmem:[#allocation5 + $0x280] ss:$24 sps:$4 sm:$0xff]  }
  0xd7   :  { %2011 = vmatprep.subr.bf16.mxu0 %v3439_v20  ;;  %v3522_v20 = vld [vmem:[#allocation5 + $0x578] ss:$24 sps:$4 sm:$0xff]  }
  0xd9   :  { %2053 = vmatpush1.bf16.msra.mxu1 %v3440_v24  ;;  %v3533_v24 = vld [vmem:[#allocation5 + $0x2b4] ss:$24 sps:$4 sm:$0xff]  }
  0xda   :  { %2012 = vmatpush1.bf16.msra.mxu0 %v3437_v22  ;;  %2063 = vmatprep.subr.bf16.mxu1 %v3446_v25  ;;  %v3530_v22 = vld [vmem:[#allocation5 + $0x5ac] ss:$24 sps:$4 sm:$0xff]   ;;  %v3528_v25 = vld [vmem:[#allocation5 + $0x5a8] ss:$24 sps:$4 sm:$0xff]  }
  0xdb   :  { %2145 = vmatprep.subr.bf16.mxu0 %v3449_v26  ;;  %v3531_v26 = vld [vmem:[#allocation5 + $0x2b0] ss:$24 sps:$4 sm:$0xff]  }
  0xdc   :  { %2055 = vmatmul.mubr.bf16.vlgmr.msra.gmra.mrb[4].mxu1 %v4005_v13 }
  0xdd   :  { %2014 = vmatmul.mubr.bf16.vlgmr.msra.gmra.mrb[0].mxu0 %v3996_v63  ;;  %2064 = vmatpush1.bf16.msra.mxu1 %v3444_v27  ;;  %v3536_v27 = vld [vmem:[#allocation5 + $0x5dc] ss:$24 sps:$4 sm:$0xff]  }
  0xde   :  { %2146 = vmatpush1.bf16.msra.mxu0 %v3447_v28  ;;  %2065 = vmatprep.subr.bf16.mxu1 %v3452_v29  ;;  %v3539_v28 = vld [vmem:[#allocation5 + $0x2e4] ss:$24 sps:$4 sm:$0xff]   ;;  %v3534_v29 = vld [vmem:[#allocation5 + $0x5d8] ss:$24 sps:$4 sm:$0xff]  }
  0xdf   :  { %2147 = vmatprep.subr.bf16.mxu0 %v3455_v30  ;;  %2095 = vmatprep.mubr.bf16.mxu1 %v4000_v3  ;;  %v3537_v30 = vld [vmem:[#allocation5 + $0x2e0] ss:$24 sps:$4 sm:$0xff]  }
  0xe0   :  { %2177 = vmatprep.mubr.bf16.mxu0 %v3993_v62  ;;  %v3471_v62 = vld [vmem:[#allocation5 + $0xd0] ss:$24 sps:$4 sm:$0xff]  }
  0xe1   :  { %2066 = vmatpush1.bf16.msra.mxu1 %v3450_v31  ;;  %v3542_v31 = vld [vmem:[#allocation5 + $0x60c] ss:$24 sps:$4 sm:$0xff]  }
  0xe2   :  { %2148 = vmatpush1.bf16.msra.mxu0 %v3453_v32  ;;  %2067 = vmatprep.subr.bf16.mxu1 %v3458_v33  ;;  %v3545_v32 = vld [vmem:[#allocation5 + $0x314] ss:$24 sps:$4 sm:$0xff]   ;;  %v3540_v33 = vld [vmem:[#allocation5 + $0x608] ss:$24 sps:$4 sm:$0xff]  }
  0xe3   :  { %2149 = vmatprep.subr.bf16.mxu0 %v3461_v34  ;;  %v3543_v34 = vld [vmem:[#allocation5 + $0x310] ss:$24 sps:$4 sm:$0xff]  }
  0xe5   :  { %2068 = vmatpush1.bf16.msra.mxu1 %v3456_v35  ;;  %v3548_v35 = vld [vmem:[#allocation5 + $0x63c] ss:$24 sps:$4 sm:$0xff]  }
  0xe6   :  { %2150 = vmatpush1.bf16.msra.mxu0 %v3459_v36  ;;  %2069 = vmatprep.subr.bf16.mxu1 %v3464_v37  ;;  %v3551_v36 = vld [vmem:[#allocation5 + $0x344] ss:$24 sps:$4 sm:$0xff]   ;;  %v3546_v37 = vld [vmem:[#allocation5 + $0x638] ss:$24 sps:$4 sm:$0xff]  }
  0xe7   :  { %2151 = vmatprep.subr.bf16.mxu0 %v3467_v38  ;;  %v3549_v38 = vld [vmem:[#allocation5 + $0x340] ss:$24 sps:$4 sm:$0xff]  }
  0xe9   :  { %2070 = vmatpush1.bf16.msra.mxu1 %v3462_v39  ;;  %v3554_v39 = vld [vmem:[#allocation5 + $0x66c] ss:$24 sps:$4 sm:$0xff]  }
  0xea   :  { %2152 = vmatpush1.bf16.msra.mxu0 %v3465_v40  ;;  %2071 = vmatprep.subr.bf16.mxu1 %v3470_v41  ;;  %v3557_v40 = vld [vmem:[#allocation5 + $0x374] ss:$24 sps:$4 sm:$0xff]   ;;  %v3552_v41 = vld [vmem:[#allocation5 + $0x668] ss:$24 sps:$4 sm:$0xff]  }
  0xeb   :  { %2153 = vmatprep.subr.bf16.mxu0 %v3473_v43  ;;  %v3555_v43 = vld [vmem:[#allocation5 + $0x370] ss:$24 sps:$4 sm:$0xff]  }
  0xed   :  { %2072 = vmatpush1.bf16.msra.mxu1 %v3468_v44  ;;  %v3560_v44 = vld [vmem:[#allocation5 + $0x69c] ss:$24 sps:$4 sm:$0xff]  }
  0xee   :  { %2154 = vmatpush1.bf16.msra.mxu0 %v3471_v62  ;;  %2073 = vmatprep.subr.bf16.mxu1 %v3476_v45  ;;  %v3563_v62 = vld [vmem:[#allocation5 + $0x3a4] ss:$24 sps:$4 sm:$0xff]   ;;  %v3561_v45 = vld [vmem:[#allocation5 + $0x3a0] ss:$24 sps:$4 sm:$0xff]  }
  0xef   :  { %2155 = vmatprep.subr.bf16.mxu0 %v3479_v46  ;;  %v3566_v46 = vld [vmem:[#allocation5 + $0x6cc] ss:$24 sps:$4 sm:$0xff]  }
  0xf1   :  { %2074 = vmatpush1.bf16.msra.mxu1 %v3474_v47  ;;  %v3569_v47 = vld [vmem:[#allocation5 + $0x3d4] ss:$24 sps:$4 sm:$0xff]  }
  0xf2   :  { %2156 = vmatpush1.bf16.msra.mxu0 %v3477_v48  ;;  %2075 = vmatprep.subr.bf16.mxu1 %v3482_v49  ;;  %v3564_v48 = vld [vmem:[#allocation5 + $0x6c8] ss:$24 sps:$4 sm:$0xff]  }
  0xf3   :  { %2157 = vmatprep.subr.bf16.mxu0 %v3485_v50  ;;  %v3567_v49 = vld [vmem:[#allocation5 + $0x3d0] ss:$24 sps:$4 sm:$0xff]   ;;  %v3572_v50 = vld [vmem:[#allocation5 + $0x6fc] ss:$24 sps:$4 sm:$0xff]  }
  0xf5   :  { %2076 = vmatpush1.bf16.msra.mxu1 %v3480_v51  ;;  %v3575_v51 = vld [vmem:[#allocation5 + $0x404] ss:$24 sps:$4 sm:$0xff]  }
  0xf6   :  { %2158 = vmatpush1.bf16.msra.mxu0 %v3483_v52  ;;  %2077 = vmatprep.subr.bf16.mxu1 %v3488_v53  ;;  %v3573_v52 = vld [vmem:[#allocation5 + $0x400] ss:$24 sps:$4 sm:$0xff]   ;;  %v3578_v53 = vld [vmem:[#allocation5 + $0x72c] ss:$24 sps:$4 sm:$0xff]  }
  0xf7   :  { %2159 = vmatprep.subr.bf16.mxu0 %v3491_v54  ;;  %v3581_v54 = vld [vmem:[#allocation5 + $0x434] ss:$24 sps:$4 sm:$0xff]  }
  0xf9   :  { %2078 = vmatpush1.bf16.msra.mxu1 %v3486_v55  ;;  %v3576_v55 = vld [vmem:[#allocation5 + $0x728] ss:$24 sps:$4 sm:$0xff]  }
  0xfa   :  { %2160 = vmatpush1.bf16.msra.mxu0 %v3489_v56  ;;  %2079 = vmatprep.subr.bf16.mxu1 %v3494_v57  ;;  %v3579_v56 = vld [vmem:[#allocation5 + $0x430] ss:$24 sps:$4 sm:$0xff]   ;;  %v3584_v57 = vld [vmem:[#allocation5 + $0x75c] ss:$24 sps:$4 sm:$0xff]  }
  0xfb   :  { %2161 = vmatprep.subr.bf16.mxu0 %v3497_v58  ;;  %v3587_v58 = vld [vmem:[#allocation5 + $0x464] ss:$24 sps:$4 sm:$0xff]  }
  0xfd   :  { %2080 = vmatpush1.bf16.msra.mxu1 %v3492_v59  ;;  %v3582_v59 = vld [vmem:[#allocation5 + $0x758] ss:$24 sps:$4 sm:$0xff]  }
  0xfe   :  { %2162 = vmatpush1.bf16.msra.mxu0 %v3495_v60  ;;  %2081 = vmatprep.subr.bf16.mxu1 %v3500_v61  ;;  %v3585_v60 = vld [vmem:[#allocation5 + $0x460] ss:$24 sps:$4 sm:$0xff]   ;;  %v3590_v61 = vld [vmem:[#allocation5 + $0x78c] ss:$24 sps:$4 sm:$0xff]  }
  0xff   :  { %2163 = vmatprep.subr.bf16.mxu0 %v3503_v0  ;;  %v3593_v0 = vld [vmem:[#allocation5 + $0x494] ss:$24 sps:$4 sm:$0xff]  }
 0x101   :  { %2082 = vmatpush1.bf16.msra.mxu1 %v3498_v1  ;;  %v3588_v1 = vld [vmem:[#allocation5 + $0x788] ss:$24 sps:$4 sm:$0xff]  }
 0x102   :  { %2164 = vmatpush1.bf16.msra.mxu0 %v3501_v2  ;;  %2083 = vmatprep.subr.bf16.mxu1 %v3506_v4  ;;  %v3591_v2 = vld [vmem:[#allocation5 + $0x490] ss:$24 sps:$4 sm:$0xff]   ;;  %v3596_v4 = vld [vmem:[#allocation5 + $0x7bc] ss:$24 sps:$4 sm:$0xff]  }
 0x103   :  { %2165 = vmatprep.subr.bf16.mxu0 %v3509_v5  ;;  %v3599_v5 = vld [vmem:[#allocation5 + $0x4c4] ss:$24 sps:$4 sm:$0xff]  }
 0x105   :  { %2084 = vmatpush1.bf16.msra.mxu1 %v3504_v6  ;;  %v3594_v6 = vld [vmem:[#allocation5 + $0x7b8] ss:$24 sps:$4 sm:$0xff]  }
 0x106   :  { %2166 = vmatpush1.bf16.msra.mxu0 %v3507_v7  ;;  %2085 = vmatprep.subr.bf16.mxu1 %v3512_v8  ;;  %v3597_v7 = vld [vmem:[#allocation5 + $0x4c0] ss:$24 sps:$4 sm:$0xff]   ;;  %v3602_v8 = vld [vmem:[#allocation5 + $0x7ec] ss:$24 sps:$4 sm:$0xff]  }
 0x107   :  { %2167 = vmatprep.subr.bf16.mxu0 %v3515_v9  ;;  %v3605_v9 = vld [vmem:[#allocation5 + $0x4f4] ss:$24 sps:$4 sm:$0xff]  }
 0x109   :  { %2086 = vmatpush1.bf16.msra.mxu1 %v3510_v10  ;;  %v3600_v10 = vld [vmem:[#allocation5 + $0x7e8] ss:$24 sps:$4 sm:$0xff]  }
 0x10a   :  { %2168 = vmatpush1.bf16.msra.mxu0 %v3513_v11  ;;  %2087 = vmatprep.subr.bf16.mxu1 %v3518_v12  ;;  %v3603_v11 = vld [vmem:[#allocation5 + $0x4f0] ss:$24 sps:$4 sm:$0xff]   ;;  %v3608_v12 = vld [vmem:[#allocation5 + $0x81c] ss:$24 sps:$4 sm:$0xff]  }
 0x10b   :  { %2169 = vmatprep.subr.bf16.mxu0 %v3521_v14  ;;  %v3611_v14 = vld [vmem:[#allocation5 + $0x524] ss:$24 sps:$4 sm:$0xff]  }
 0x10d   :  { %2088 = vmatpush1.bf16.msra.mxu1 %v3516_v15  ;;  %v3606_v15 = vld [vmem:[#allocation5 + $0x818] ss:$24 sps:$4 sm:$0xff]  }
 0x10e   :  { %2170 = vmatpush1.bf16.msra.mxu0 %v3519_v16  ;;  %2089 = vmatprep.subr.bf16.mxu1 %v3524_v17  ;;  %v3609_v16 = vld [vmem:[#allocation5 + $0x520] ss:$24 sps:$4 sm:$0xff]   ;;  %v3614_v17 = vld [vmem:[#allocation5 + $0x84c] ss:$24 sps:$4 sm:$0xff]  }
 0x10f   :  { %2171 = vmatprep.subr.bf16.mxu0 %v3527_v18  ;;  %v3617_v18 = vld [vmem:[#allocation5 + $0x554] ss:$24 sps:$4 sm:$0xff]  }
 0x111   :  { %2090 = vmatpush1.bf16.msra.mxu1 %v3522_v20  ;;  %v3612_v20 = vld [vmem:[#allocation5 + $0x848] ss:$24 sps:$4 sm:$0xff]  }
 0x112   :  { %2172 = vmatpush1.bf16.msra.mxu0 %v3525_v21  ;;  %2091 = vmatprep.subr.bf16.mxu1 %v3530_v22  ;;  %v3615_v21 = vld [vmem:[#allocation5 + $0x550] ss:$24 sps:$4 sm:$0xff]   ;;  %v3620_v22 = vld [vmem:[#allocation5 + $0x87c] ss:$24 sps:$4 sm:$0xff]  }
 0x113   :  { %2173 = vmatprep.subr.bf16.mxu0 %v3533_v24  ;;  %v3623_v24 = vld [vmem:[#allocation5 + $0x584] ss:$24 sps:$4 sm:$0xff]  }
 0x115   :  { %2092 = vmatpush1.bf16.msra.mxu1 %v3528_v25  ;;  %v3618_v25 = vld [vmem:[#allocation5 + $0x878] ss:$24 sps:$4 sm:$0xff]  }
 0x116   :  { %2174 = vmatpush1.bf16.msra.mxu0 %v3531_v26  ;;  %2093 = vmatprep.subr.bf16.mxu1 %v3536_v27  ;;  %v3621_v26 = vld [vmem:[#allocation5 + $0x580] ss:$24 sps:$4 sm:$0xff]   ;;  %v3626_v27 = vld [vmem:[#allocation5 + $0x8ac] ss:$24 sps:$4 sm:$0xff]  }
 0x117   :  { %2175 = vmatprep.subr.bf16.mxu0 %v3539_v28  ;;  %v3629_v28 = vld [vmem:[#allocation5 + $0x5b4] ss:$24 sps:$4 sm:$0xff]  }
 0x119   :  { %2094 = vmatpush1.bf16.msra.mxu1 %v3534_v29  ;;  %v3624_v29 = vld [vmem:[#allocation5 + $0x8a8] ss:$24 sps:$4 sm:$0xff]  }
 0x11a   :  { %2176 = vmatpush1.bf16.msra.mxu0 %v3537_v30  ;;  %2104 = vmatprep.subr.bf16.mxu1 %v3542_v31  ;;  %v3627_v30 = vld [vmem:[#allocation5 + $0x5b0] ss:$24 sps:$4 sm:$0xff]   ;;  %v3632_v31 = vld [vmem:[#allocation5 + $0x8dc] ss:$24 sps:$4 sm:$0xff]  }
 0x11b   :  { %2186 = vmatprep.subr.bf16.mxu0 %v3545_v32  ;;  %v3635_v32 = vld [vmem:[#allocation5 + $0x5e4] ss:$24 sps:$4 sm:$0xff]  }
 0x11c   :  { %2096 = vmatmul.mubr.bf16.vlgmr.msra.gmra.mrb[4].mxu1 %v4009_v19 }
 0x11d   :  { %2178 = vmatmul.mubr.bf16.vlgmr.msra.gmra.mrb[4].mxu0 %v4005_v13  ;;  %2105 = vmatpush1.bf16.msra.mxu1 %v3540_v33  ;;  %v3558_v13 = vld [vmem:[#allocation5 + $0x698] ss:$24 sps:$4 sm:$0xff]  }
 0x11e   :  { %2187 = vmatpush1.bf16.msra.mxu0 %v3543_v34  ;;  %2106 = vmatprep.subr.bf16.mxu1 %v3548_v35  ;;  %v3630_v33 = vld [vmem:[#allocation5 + $0x8d8] ss:$24 sps:$4 sm:$0xff]   ;;  %v3638_v35 = vld [vmem:[#allocation5 + $0x614] ss:$24 sps:$4 sm:$0xff]  }
 0x11f   :  { %2188 = vmatprep.subr.bf16.mxu0 %v3551_v36  ;;  %2136 = vmatprep.mubr.bf16.mxu1 %v4012_v23  ;;  %v3633_v34 = vld [vmem:[#allocation5 + $0x5e0] ss:$24 sps:$4 sm:$0xff]   ;;  %v3684_v36 = vld [vmem:[#allocation8 + $0x40] sm:$0xff]  }
 0x120   :  { %2218 = vmatprep.mubr.bf16.mxu0 %v4000_v3  ;;  %v3570_v3 = vld [vmem:[#allocation5 + $0x6f8] ss:$24 sps:$4 sm:$0xff]  }
 0x121   :  { %2107 = vmatpush1.bf16.msra.mxu1 %v3546_v37  ;;  %v3636_v37 = vld [vmem:[#allocation5 + $0x610] ss:$24 sps:$4 sm:$0xff]  }
 0x122   :  { %2189 = vmatpush1.bf16.msra.mxu0 %v3549_v38  ;;  %2108 = vmatprep.subr.bf16.mxu1 %v3554_v39  ;;  %v3641_v38 = vld [vmem:[#allocation5 + $0x644] ss:$24 sps:$4 sm:$0xff]  }
 0x123   :  { %2190 = vmatprep.subr.bf16.mxu0 %v3557_v40  ;;  %v3685_v39 = vld [vmem:[#allocation8] sm:$0xff]   ;;  %v3686_v40 = vld [vmem:[#allocation8 + $0x48] sm:$0xff]  }
 0x125   :  { %2109 = vmatpush1.bf16.msra.mxu1 %v3552_v41  ;;  %v3639_v41 = vld [vmem:[#allocation5 + $0x640] ss:$24 sps:$4 sm:$0xff]  }
 0x126   :  { %2191 = vmatpush1.bf16.msra.mxu0 %v3555_v43  ;;  %2110 = vmatprep.subr.bf16.mxu1 %v3560_v44  ;;  %v3644_v43 = vld [vmem:[#allocation5 + $0x674] ss:$24 sps:$4 sm:$0xff]  }
 0x127   :  { %2192 = vmatprep.subr.bf16.mxu0 %v3563_v62  ;;  %v3687_v44 = vld [vmem:[#allocation8 + $0x8] sm:$0xff]   ;;  %v3688_v62 = vld [vmem:[#allocation8 + $0x50] sm:$0xff]  }
 0x129   :  { %2111 = vmatpush1.bf16.msra.mxu1 %v3558_v13  ;;  %v3642_v13 = vld [vmem:[#allocation5 + $0x670] ss:$24 sps:$4 sm:$0xff]  }
 0x12a   :  { %2193 = vmatpush1.bf16.msra.mxu0 %v3561_v45  ;;  %2112 = vmatprep.subr.bf16.mxu1 %v3566_v46  ;;  %v3647_v45 = vld [vmem:[#allocation5 + $0x6a4] ss:$24 sps:$4 sm:$0xff]  }
 0x12b   :  { %2194 = vmatprep.subr.bf16.mxu0 %v3569_v47  ;;  %v3689_v46 = vld [vmem:[#allocation8 + $0x10] sm:$0xff]   ;;  %v3690_v47 = vld [vmem:[#allocation8 + $0x58] sm:$0xff]  }
 0x12d   :  { %2113 = vmatpush1.bf16.msra.mxu1 %v3564_v48  ;;  %v3650_v48 = vld [vmem:[#allocation5 + $0x6d4] ss:$24 sps:$4 sm:$0xff]  }
 0x12e   :  { %2195 = vmatpush1.bf16.msra.mxu0 %v3567_v49  ;;  %2114 = vmatprep.subr.bf16.mxu1 %v3572_v50  ;;  %v3692_v49 = vld [vmem:[#allocation8 + $0x60] sm:$0xff]  }
 0x12f   :  { %2196 = vmatprep.subr.bf16.mxu0 %v3575_v51  ;;  %v3648_v50 = vld [vmem:[#allocation5 + $0x6d0] ss:$24 sps:$4 sm:$0xff]   ;;  %v3653_v51 = vld [vmem:[#allocation5 + $0x704] ss:$24 sps:$4 sm:$0xff]  }
 0x131   :  { %2115 = vmatpush1.bf16.msra.mxu1 %v3570_v3  ;;  %v3693_v3 = vld [vmem:[#allocation8 + $0x20] sm:$0xff]  }
 0x132   :  { %2197 = vmatpush1.bf16.msra.mxu0 %v3573_v52  ;;  %2116 = vmatprep.subr.bf16.mxu1 %v3578_v53  ;;  %v3694_v52 = vld [vmem:[#allocation8 + $0x68] sm:$0xff]   ;;  %v3651_v53 = vld [vmem:[#allocation5 + $0x700] ss:$24 sps:$4 sm:$0xff]  }
 0x133   :  { %2198 = vmatprep.subr.bf16.mxu0 %v3581_v54  ;;  %v3656_v54 = vld [vmem:[#allocation5 + $0x734] ss:$24 sps:$4 sm:$0xff]  }
 0x135   :  { %2117 = vmatpush1.bf16.msra.mxu1 %v3576_v55  ;;  %v3695_v55 = vld [vmem:[#allocation8 + $0x28] sm:$0xff]  }
 0x136   :  { %2199 = vmatpush1.bf16.msra.mxu0 %v3579_v56  ;;  %2118 = vmatprep.subr.bf16.mxu1 %v3584_v57  ;;  %v3696_v57 = vld [vmem:[#allocation8 + $0x70] sm:$0xff]  }
 0x137   :  { %2200 = vmatprep.subr.bf16.mxu0 %v3587_v58 }
 0x139   :  { %2119 = vmatpush1.bf16.msra.mxu1 %v3582_v59  ;;  %v3654_v59 = vld [vmem:[#allocation5 + $0x730] ss:$24 sps:$4 sm:$0xff]  }
 0x13a   :  { %2201 = vmatpush1.bf16.msra.mxu0 %v3585_v60  ;;  %2120 = vmatprep.subr.bf16.mxu1 %v3590_v61  ;;  %v3659_v61 = vld [vmem:[#allocation5 + $0x764] ss:$24 sps:$4 sm:$0xff]  }
 0x13b   :  { %2202 = vmatprep.subr.bf16.mxu0 %v3593_v0 }
 0x13d   :  { %2121 = vmatpush1.bf16.msra.mxu1 %v3588_v1  ;;  %v3697_v1 = vld [vmem:[#allocation8 + $0x30] sm:$0xff]  }
 0x13e   :  { %2203 = vmatpush1.bf16.msra.mxu0 %v3591_v2  ;;  %2122 = vmatprep.subr.bf16.mxu1 %v3596_v4  ;;  %v3698_v2 = vld [vmem:[#allocation8 + $0x78] sm:$0xff]  }
 0x13f   :  { %2204 = vmatprep.subr.bf16.mxu0 %v3599_v5  ;;  %v3657_v4 = vld [vmem:[#allocation5 + $0x760] ss:$24 sps:$4 sm:$0xff]   ;;  %v3662_v5 = vld [vmem:[#allocation5 + $0x794] ss:$24 sps:$4 sm:$0xff]  }
 0x141   :  { %2123 = vmatpush1.bf16.msra.mxu1 %v3594_v6  ;;  %v3699_v6 = vld [vmem:[#allocation8 + $0x38] sm:$0xff]  }
 0x142   :  { %2205 = vmatpush1.bf16.msra.mxu0 %v3597_v7  ;;  %2124 = vmatprep.subr.bf16.mxu1 %v3602_v8  ;;  %v3700_v7 = vld [vmem:[#allocation8 + $0xc0] sm:$0xff]  }
 0x143   :  { %2206 = vmatprep.subr.bf16.mxu0 %v3605_v9  ;;  %v3660_v8 = vld [vmem:[#allocation5 + $0x790] ss:$24 sps:$4 sm:$0xff]   ;;  %v3665_v9 = vld [vmem:[#allocation5 + $0x7c4] ss:$24 sps:$4 sm:$0xff]  }
 0x145   :  { %2125 = vmatpush1.bf16.msra.mxu1 %v3600_v10  ;;  %v3663_v10 = vld [vmem:[#allocation5 + $0x7c0] ss:$24 sps:$4 sm:$0xff]  }
 0x146   :  { %2207 = vmatpush1.bf16.msra.mxu0 %v3603_v11  ;;  %2126 = vmatprep.subr.bf16.mxu1 %v3608_v12  ;;  %v3668_v11 = vld [vmem:[#allocation5 + $0x7f4] ss:$24 sps:$4 sm:$0xff]   ;;  %v3666_v12 = vld [vmem:[#allocation5 + $0x7f0] ss:$24 sps:$4 sm:$0xff]  }
 0x147   :  { %2208 = vmatprep.subr.bf16.mxu0 %v3611_v14  ;;  %v3671_v14 = vld [vmem:[#allocation5 + $0x824] ss:$24 sps:$4 sm:$0xff]  }
 0x149   :  { %2127 = vmatpush1.bf16.msra.mxu1 %v3606_v15  ;;  %v3669_v15 = vld [vmem:[#allocation5 + $0x820] ss:$24 sps:$4 sm:$0xff]  }
 0x14a   :  { %2209 = vmatpush1.bf16.msra.mxu0 %v3609_v16  ;;  %2128 = vmatprep.subr.bf16.mxu1 %v3614_v17  ;;  %v3674_v16 = vld [vmem:[#allocation5 + $0x854] ss:$24 sps:$4 sm:$0xff]   ;;  %v3672_v17 = vld [vmem:[#allocation5 + $0x850] ss:$24 sps:$4 sm:$0xff]  }
 0x14b   :  { %2210 = vmatprep.subr.bf16.mxu0 %v3617_v18  ;;  %v3677_v18 = vld [vmem:[#allocation5 + $0x884] ss:$24 sps:$4 sm:$0xff]  }
 0x14d   :  { %2129 = vmatpush1.bf16.msra.mxu1 %v3612_v20  ;;  %v3675_v20 = vld [vmem:[#allocation5 + $0x880] ss:$24 sps:$4 sm:$0xff]  }
 0x14e   :  { %2211 = vmatpush1.bf16.msra.mxu0 %v3615_v21  ;;  %2130 = vmatprep.subr.bf16.mxu1 %v3620_v22  ;;  %v3680_v21 = vld [vmem:[#allocation5 + $0x8b4] ss:$24 sps:$4 sm:$0xff]   ;;  %v3678_v22 = vld [vmem:[#allocation5 + $0x8b0] ss:$24 sps:$4 sm:$0xff]  }
 0x14f   :  { %2212 = vmatprep.subr.bf16.mxu0 %v3623_v24  ;;  %v3683_v24 = vld [vmem:[#allocation5 + $0x8e4] ss:$24 sps:$4 sm:$0xff]  }
 0x151   :  { %2131 = vmatpush1.bf16.msra.mxu1 %v3618_v25  ;;  %v3681_v25 = vld [vmem:[#allocation5 + $0x8e0] ss:$24 sps:$4 sm:$0xff]  }
 0x152   :  { %2213 = vmatpush1.bf16.msra.mxu0 %v3621_v26  ;;  %2132 = vmatprep.subr.bf16.mxu1 %v3626_v27  ;;  %v377_v26 = vsub.s32 0, %v3985_v42  ;;  %v4031_v27 = vld [vmem:[#allocation7] sm:$0x3f] }
 0x153   :  { %2214 = vmatprep.subr.bf16.mxu0 %v3629_v28  ;;  %v381_v28 = vsub.s32 1, %v3985_v42 }
 0x155   :  { %2133 = vmatpush1.bf16.msra.mxu1 %v3624_v29  ;;  %v378_v29 = vrot.slane %v4031_v27, %v377_v26  ;;  %v397_v26 = vsub.s32 5, %v3985_v42 }
 0x156   :  { %2215 = vmatpush1.bf16.msra.mxu0 %v3627_v30  ;;  %2134 = vmatprep.subr.bf16.mxu1 %v3632_v31  ;;  %v382_v30 = vrot.slane %v4031_v27, %v381_v28 }
 0x157   :  { %2216 = vmatprep.subr.bf16.mxu0 %v3635_v32 }
 0x159   :  { %2135 = vmatpush1.bf16.msra.mxu1 %v3630_v33 }
 0x15a   :  { %2217 = vmatpush1.bf16.msra.mxu0 %v3633_v34  ;;  %3146 = vmatprep.subr.bf16.mxu1 %v3684_v36 }
 0x15b   :  { %2227 = vmatprep.subr.bf16.mxu0 %v3638_v35 }
 0x15c   :  { %2137 = vmatmul.mubr.bf16.vlgmr.msra.gmra.mrb[4].mxu1 %v3996_v63 }
 0x15d   :  { %2219 = vmatmul.mubr.bf16.vlgmr.msra.gmra.mrb[4].mxu0 %v4009_v19  ;;  %3147 = vmatpush3.bf16.msra.mxu1 %v3685_v39  ;;  %v3645_v19 = vld [vmem:[#allocation5 + $0x6a0] ss:$24 sps:$4 sm:$0xff]  }
 0x15e   :  { %2228 = vmatpush1.bf16.msra.mxu0 %v3636_v37  ;;  %2259 = vmatprep.mubr.bf16.mxu0 %v4012_v23  ;;  %v3691_v23 = vld [vmem:[#allocation8 + $0x18] sm:$0xff]  }
 0x15f   :  { %2229 = vmatprep.subr.bf16.mxu0 %v3641_v38  ;;  %3148 = vmatprep.subr.bf16.mxu1 %v3686_v40 }
 0x161   :  { %3149 = vmatpush3.bf16.msra.mxu1 %v3687_v44  ;;  %v3702_v44 = vld [vmem:[#allocation8 + $0xc8] sm:$0xff]  }
 0x162   :  { %2230 = vmatpush1.bf16.msra.mxu0 %v3639_v41  ;;  %3150 = vmatprep.subr.bf16.mxu1 %v3688_v62  ;;  %v3701_v41 = vld [vmem:[#allocation8 + $0x80] sm:$0xff]   ;;  %v3703_v62 = vld [vmem:[#allocation8 + $0x88] sm:$0xff]  }
 0x163   :  { %2231 = vmatprep.subr.bf16.mxu0 %v3644_v43 }
 0x165   :  { %3151 = vmatpush3.bf16.msra.mxu1 %v3689_v46  ;;  %v3706_v46 = vld [vmem:[#allocation8 + $0xd8] sm:$0xff]  }
 0x166   :  { %2232 = vmatpush1.bf16.msra.mxu0 %v3642_v13  ;;  %3152 = vmatprep.subr.bf16.mxu1 %v3690_v47  ;;  %v3704_v13 = vld [vmem:[#allocation8 + $0xd0] sm:$0xff]   ;;  %v3707_v47 = vld [vmem:[#allocation8 + $0x98] sm:$0xff]  }
 0x167   :  { %2233 = vmatprep.subr.bf16.mxu0 %v3647_v45  ;;  %v3705_v45 = vld [vmem:[#allocation8 + $0x90] sm:$0xff]  }
 0x169   :  { %3153 = vmatpush3.bf16.msra.mxu1 %v3691_v23  ;;  %v3710_v23 = vld [vmem:[#allocation8 + $0xe8] sm:$0xff]  }
 0x16a   :  { %2234 = vmatpush1.bf16.msra.mxu0 %v3645_v19  ;;  %3154 = vmatprep.subr.bf16.mxu1 %v3692_v49  ;;  %v3708_v19 = vld [vmem:[#allocation8 + $0xe0] sm:$0xff]   ;;  %v3711_v49 = vld [vmem:[#allocation8 + $0xa8] sm:$0xff]  }
 0x16b   :  { %2235 = vmatprep.subr.bf16.mxu0 %v3650_v48  ;;  %v3709_v48 = vld [vmem:[#allocation8 + $0xa0] sm:$0xff]  }
 0x16d   :  { %3155 = vmatpush3.bf16.msra.mxu1 %v3693_v3  ;;  %v3714_v3 = vld [vmem:[#allocation8 + $0xf8] sm:$0xff]  }
 0x16e   :  { %2236 = vmatpush1.bf16.msra.mxu0 %v3648_v50  ;;  %3156 = vmatprep.subr.bf16.mxu1 %v3694_v52  ;;  %v3712_v50 = vld [vmem:[#allocation8 + $0xf0] sm:$0xff]   ;;  %v3715_v52 = vld [vmem:[#allocation8 + $0xb8] sm:$0xff]  }
 0x16f   :  { %2237 = vmatprep.subr.bf16.mxu0 %v3653_v51  ;;  %v1933_v56 = vpop.f32.mrb[0].mxu1  ;;  %v3713_v51 = vld [vmem:[#allocation8 + $0xb0] sm:$0xff]  }
 0x170   :  { %v1935_v58 = vpop.f32.mrb[1].mxu1  ;;  %v1934_v31 = vadd.f32 %v1933_v56, %v378_v29  ;;  %v398_v29 = vrot.slane %v4031_v27, %v397_v26 }
 0x171   :  { %v1937_v60 = vpop.f32.mrb[2].mxu1  ;;  %3157 = vmatpush3.bf16.msra.mxu1 %v3695_v55  ;;  %v1936_v32 = vadd.f32 %v1935_v58, %v382_v30  ;;  %v389_v55 = vsub.s32 3, %v3985_v42 }
 0x172   :  { %2238 = vmatpush1.bf16.msra.mxu0 %v3651_v53  ;;  %v1938_v0 = vpop.f32.mrb[3].mxu1  ;;  %3158 = vmatprep.subr.bf16.mxu1 %v3696_v57  ;;  %v3716_v53 = vld [vmem:[#allocation8 + $0x140] sm:$0xff]  }
 0x173   :  { %2239 = vmatprep.subr.bf16.mxu0 %v3656_v54  ;;  %v385_v54 = vsub.s32 2, %v3985_v42  ;;  %v390_v57 = vrot.slane %v4031_v27, %v389_v55 }
 0x175   :  { %3159 = vmatpush3.bf16.msra.mxu1 %v3697_v1  ;;  %v386_v56 = vrot.slane %v4031_v27, %v385_v54 }
 0x176   :  { %2240 = vmatpush1.bf16.msra.mxu0 %v3654_v59  ;;  %3160 = vmatprep.subr.bf16.mxu1 %v3698_v2 }
 0x177   :  { %2241 = vmatprep.subr.bf16.mxu0 %v3659_v61 }
 0x179   :  { %3161 = vmatpush3.bf16.msra.mxu1 %v3699_v6  ;;  %v3717_v6 = vld [vmem:[#allocation8 + $0x100] sm:$0xff]  }
 0x17a   :  { %2242 = vmatpush1.bf16.msra.mxu0 %v3657_v4  ;;  %3168 = vmatprep.subr.bf16.mxu1 %v3700_v7 }
 0x17b   :  { %2243 = vmatprep.subr.bf16.mxu0 %v3662_v5 }
 0x17e   :  { %2244 = vmatpush1.bf16.msra.mxu0 %v3660_v8  ;;  %v3718_v8 = vld [vmem:[#allocation8 + $0x148] sm:$0xff]  }
 0x17f   :  { %2245 = vmatprep.subr.bf16.mxu0 %v3665_v9  ;;  %v3719_v9 = vld [vmem:[#allocation8 + $0x108] sm:$0xff]  }
 0x182   :  { %2246 = vmatpush1.bf16.msra.mxu0 %v3663_v10  ;;  %v3720_v10 = vld [vmem:[#allocation8 + $0x150] sm:$0xff]  }
 0x183   :  { %2247 = vmatprep.subr.bf16.mxu0 %v3668_v11  ;;  %v3721_v11 = vld [vmem:[#allocation8 + $0x110] sm:$0xff]  }
 0x186   :  { %2248 = vmatpush1.bf16.msra.mxu0 %v3666_v12  ;;  %v3722_v12 = vld [vmem:[#allocation8 + $0x158] sm:$0xff]  }
 0x187   :  { %2249 = vmatprep.subr.bf16.mxu0 %v3671_v14  ;;  %v3723_v14 = vld [vmem:[#allocation8 + $0x118] sm:$0xff]  }
 0x18a   :  { %2250 = vmatpush1.bf16.msra.mxu0 %v3669_v15  ;;  %v3724_v15 = vld [vmem:[#allocation8 + $0x160] sm:$0xff]  }
 0x18b   :  { %2251 = vmatprep.subr.bf16.mxu0 %v3674_v16  ;;  %v3725_v16 = vld [vmem:[#allocation8 + $0x120] sm:$0xff]  }
 0x18e   :  { %2252 = vmatpush1.bf16.msra.mxu0 %v3672_v17  ;;  %v3726_v17 = vld [vmem:[#allocation8 + $0x168] sm:$0xff]  }
 0x18f   :  { %2253 = vmatprep.subr.bf16.mxu0 %v3677_v18  ;;  %v3727_v18 = vld [vmem:[#allocation8 + $0x128] sm:$0xff]  }
 0x192   :  { %2254 = vmatpush1.bf16.msra.mxu0 %v3675_v20  ;;  %v3728_v20 = vld [vmem:[#allocation8 + $0x170] sm:$0xff]  }
 0x193   :  { %2255 = vmatprep.subr.bf16.mxu0 %v3680_v21  ;;  %v3729_v21 = vld [vmem:[#allocation8 + $0x130] sm:$0xff]  }
 0x196   :  { %2256 = vmatpush1.bf16.msra.mxu0 %v3678_v22  ;;  %v3730_v22 = vld [vmem:[#allocation8 + $0x178] sm:$0xff]  }
 0x197   :  { %2257 = vmatprep.subr.bf16.mxu0 %v3683_v24  ;;  %v3731_v24 = vld [vmem:[#allocation8 + $0x138] sm:$0xff]  }
 0x19a   :  { %2258 = vmatpush1.bf16.msra.mxu0 %v3681_v25  ;;  %v393_v25 = vsub.s32 4, %v3985_v42 }
 0x19c   :  { %v394_v28 = vrot.slane %v4031_v27, %v393_v25  ;;  %v3097_v27 = vld [vmem:[#allocation10] ss:$0 sm:$0xff] }
 0x19d   :  { %2260 = vmatmul.mubr.bf16.vlgmr.msra.gmra.mrb[4].mxu0 %v3996_v63 }
 0x1b0   :  { %v2015_v33 = vpop.f32.mrb[0].mxu0 }
 0x1b1   :  { %v3213_v34 = vadd.f32 %v2015_v33, %v1934_v31  ;;  %v2017_v35 = vpop.f32.mrb[1].mxu0 }
 0x1b2   :  { %v3215_v36 = vadd.f32 %v2017_v35, %v1936_v32  ;;  %v2019_v37 = vpop.f32.mrb[2].mxu0 }
 0x1b3   :  { %3732 = vtanh.f32 %v3213_v34  ;;  %v2020_v38 = vpop.f32.mrb[3].mxu0 }
 0x1b4   :  { %3734 = vtanh.f32 %v3215_v36 }
 0x1bd   :  { %v3733_v63 = vpop.eup %3732 }
 0x1be   :  { %v3735_v39 = vpop.eup %3734  ;;  %v2274_v43 = vpack.c.bf16 %v3733_v63, %v3733_v63 }
 0x1bf   :  { %v2275_v40 = vpack.c.bf16 %v3735_v39, %v3735_v39 }
 0x1c1   :  { %2703 = vmatprep.mubr.bf16.mxu1 %v2275_v40 }
 0x1c2   :  { %2704 = vmatmul.mubr.bf16.vlgmr.msra.gmra.mrb[8].mxu1 %v2274_v43 }
 0x1c3   :  { %3169 = vmatpush3.bf16.msra.mxu1 %v3701_v41 }
 0x1c4   :  { %3170 = vmatprep.subr.bf16.mxu1 %v3702_v44 }
 0x1c7   :  { %3171 = vmatpush3.bf16.msra.mxu1 %v3703_v62 }
 0x1c8   :  { %3172 = vmatprep.subr.bf16.mxu1 %v3704_v13 }
 0x1cb   :  { %3173 = vmatpush3.bf16.msra.mxu1 %v3705_v45 }
 0x1cc   :  { %3174 = vmatprep.subr.bf16.mxu1 %v3706_v46 }
 0x1cf   :  { %3175 = vmatpush3.bf16.msra.mxu1 %v3707_v47 }
 0x1d0   :  { %3176 = vmatprep.subr.bf16.mxu1 %v3708_v19 }
 0x1d3   :  { %3177 = vmatpush3.bf16.msra.mxu1 %v3709_v48 }
 0x1d4   :  { %3178 = vmatprep.subr.bf16.mxu1 %v3710_v23 }
 0x1d7   :  { %3179 = vmatpush3.bf16.msra.mxu1 %v3711_v49 }
 0x1d8   :  { %3180 = vmatprep.subr.bf16.mxu1 %v3712_v50 }
 0x1db   :  { %3181 = vmatpush3.bf16.msra.mxu1 %v3713_v51 }
 0x1dc   :  { %3182 = vmatprep.subr.bf16.mxu1 %v3714_v3 }
 0x1df   :  { %3183 = vmatpush3.bf16.msra.mxu1 %v3715_v52 }
 0x1e0   :  { %3190 = vmatprep.subr.bf16.mxu1 %v3716_v53 }
 0x22f   :  { %v2138_v58 = vpop.f32.mrb[4].mxu1 }
 0x230   :  { %v3216_v59 = vadd.f32 %v2138_v58, %v386_v56  ;;  %v2140_v60 = vpop.f32.mrb[5].mxu1 }
 0x231   :  { %v3217_v61 = vadd.f32 %v2140_v60, %v390_v57  ;;  %v2142_v0 = vpop.f32.mrb[6].mxu1 }
 0x232   :  { %3736 = vtanh.f32 %v3216_v59  ;;  %v2143_v1 = vpop.f32.mrb[7].mxu1 }
 0x233   :  { %3738 = vtanh.f32 %v3217_v61 }
 0x23c   :  { %v3737_v2 = vpop.eup %3736 }
 0x23d   :  { %v3739_v4 = vpop.eup %3738  ;;  %v2276_v7 = vpack.c.bf16 %v3737_v2, %v3737_v2 }
 0x23e   :  { %v2277_v5 = vpack.c.bf16 %v3739_v4, %v3739_v4 }
 0x240   :  { %2743 = vmatprep.mubr.bf16.mxu1 %v2277_v5 }
 0x241   :  { %2744 = vmatmul.mubr.bf16.vlgmr.msra.gmra.mrb[12].mxu1 %v2276_v7 }
 0x242   :  { %3191 = vmatpush3.bf16.msra.mxu1 %v3717_v6 }
 0x243   :  { %3192 = vmatprep.subr.bf16.mxu1 %v3718_v8 }
 0x246   :  { %3193 = vmatpush3.bf16.msra.mxu1 %v3719_v9 }
 0x247   :  { %3194 = vmatprep.subr.bf16.mxu1 %v3720_v10 }
 0x24a   :  { %3195 = vmatpush3.bf16.msra.mxu1 %v3721_v11 }
 0x24b   :  { %3196 = vmatprep.subr.bf16.mxu1 %v3722_v12 }
 0x24e   :  { %3197 = vmatpush3.bf16.msra.mxu1 %v3723_v14 }
 0x24f   :  { %3198 = vmatprep.subr.bf16.mxu1 %v3724_v15 }
 0x252   :  { %3199 = vmatpush3.bf16.msra.mxu1 %v3725_v16 }
 0x253   :  { %3200 = vmatprep.subr.bf16.mxu1 %v3726_v17 }
 0x256   :  { %3201 = vmatpush3.bf16.msra.mxu1 %v3727_v18 }
 0x257   :  { %3202 = vmatprep.subr.bf16.mxu1 %v3728_v20 }
 0x25a   :  { %3203 = vmatpush3.bf16.msra.mxu1 %v3729_v21 }
 0x25b   :  { %3204 = vmatprep.subr.bf16.mxu1 %v3730_v22 }
 0x25e   :  { %3205 = vmatpush3.bf16.msra.mxu1 %v3731_v24 }
 0x270   :  { %v2261_v30 = vpop.f32.mrb[4].mxu0 }
 0x271   :  { %v3218_v31 = vadd.f32 %v2261_v30, %v394_v28  ;;  %v2263_v32 = vpop.f32.mrb[5].mxu0 }
 0x272   :  { %v3219_v33 = vadd.f32 %v2263_v32, %v398_v29  ;;  %v2265_v34 = vpop.f32.mrb[6].mxu0 }
 0x273   :  { %3740 = vtanh.f32 %v3218_v31  ;;  %v2266_v35 = vpop.f32.mrb[7].mxu0 }
 0x274   :  { %3742 = vtanh.f32 %v3219_v33 }
 0x27d   :  { %v3741_v36 = vpop.eup %3740 }
 0x27e   :  { %v3743_v37 = vpop.eup %3742  ;;  %v2278_v63 = vpack.c.bf16 %v3741_v36, %v3741_v36 }
 0x27f   :  { %v2279_v38 = vpack.c.bf16 %v3743_v37, %v3743_v37 }
 0x281   :  { %2783 = vmatprep.mubr.bf16.mxu1 %v2279_v38 }
 0x282   :  { %2784 = vmatmul.mubr.bf16.vlgmr.msra.gmra.mrb[16].mxu1 %v2278_v63 }
 0x295   :  { %v3162_v39 = vpop.f32.mrb[8].mxu1 }
 0x296   :  { %v3163_v42 = vpop.f32.mrb[9].mxu1 }
 0x297   :  { %v3164_v40 = vadd.f32 %v3163_v42, %v3162_v39  ;;  %v3165_v41 = vpop.f32.mrb[10].mxu1 }
 0x298   :  { %v3166_v43 = vpop.f32.mrb[11].mxu1 }
 0x299   :  { %v2706_v13 = vadd.f32 %v3164_v40, %v3097_v27 }
 0x314   :  { %v3184_v44 = vpop.f32.mrb[12].mxu1 }
 0x315   :  { %v3185_v62 = vpop.f32.mrb[13].mxu1 }
 0x316   :  { %v3186_v45 = vadd.f32 %v3185_v62, %v3184_v44  ;;  %v3187_v46 = vpop.f32.mrb[14].mxu1 }
 0x317   :  { %v3188_v47 = vpop.f32.mrb[15].mxu1 }
 0x318   :  { %v2746_v19 = vadd.f32 %v3186_v45, %v2706_v13 }
 0x355   :  { %v3206_v48 = vpop.f32.mrb[16].mxu1 }
 0x356   :  { %v3207_v23 = vpop.f32.mrb[17].mxu1 }
 0x357   :  { %v3208_v49 = vadd.f32 %v3207_v23, %v3206_v48  ;;  %v3209_v50 = vpop.f32.mrb[18].mxu1 }
 0x358   :  { %v3210_v51 = vpop.f32.mrb[19].mxu1 }
 0x359   :  { %v2786_v3 = vadd.f32 %v3208_v49, %v2746_v19 }
 0x35b   :  { %2791 = vst [vmem:[#allocation11] sm:$0x3] %v2786_v3 }
 0x35c   :  { %3865 = shalt.err (!%p3862_p2)
}
 0x35d   :  { %s3866_s6 = scalar_lea.hbm %s4061_s5, 32 }
 0x35e   :  { %p3867_p3 = scmp.ne.s32.totalorder %s4061_s5, %s3866_s6  ;;  %p3870_p4 = scmp.lt.u32.totalorder %s3866_s6, %s4061_s5 }
 0x360   :  { %p3872_p5 = pnand %p3870_p4, %p3867_p3 }
 0x362   :  { %3875 = shalt.err (!%p3872_p5)
}
 0x363   :  { %2801 = dma.vmem_to_hbm [thread:$0]  %s2799_s28, 32, %s4061_s5, [#allocation4]  }
 0x364   :  { %3882 = dma.done.wait [#allocation4], 32  }
 0x365   :  { %3883 = vsyncadd [#allocation4], 4294967264 }
 0x366   :  { %2805 = vsyncpa [#allocation3], 1 }
 0x367   :  { %2806 = vsyncpa [#allocation6], 1 }
 0x368   :  { %2807 = vsyncpa [#allocation9], 1 }
 0x369   :  { %2808 = vsyncpa [#allocation4], 1 }

</bundles_post_ra>
